<compile_context>
chip_gen: v5e
topology: v5e:2x2
jax: 0.10.0
libtpu: 0.0.40
codegen_flags: <defaults>
</compile_context>

<pallas_src>
import functools

import jax
import jax.numpy as jnp
from jax.experimental import pallas as pl
from jax.experimental.pallas import tpu as pltpu  # noqa: F401  (not needed at these tiny sizes)

LRELU_SLOPE = 0.25
BN_EPS = 1e-5


def _lrelu(y):
    return jnp.where(y >= 0.0, y, LRELU_SLOPE * y)


# --------------------------------------------------------------------------
# Pallas kernels (one call per layer; everything resident in VMEM)
# --------------------------------------------------------------------------
def _gemm_lrelu_bn_kernel(a_ref, b_ref, bias_ref, gamma_ref, beta_ref, o_ref):
    """For each parity g: y_g = lrelu(A_g @ B_g + bias); then BatchNorm
    (training-mode batch stats, biased variance) over all G*M rows."""
    G, M, _ = a_ref.shape
    C = o_ref.shape[2]
    s = jnp.zeros((1, C), jnp.float32)
    sq = jnp.zeros((1, C), jnp.float32)
    ys = []
    for g in range(G):                      # G <= 4, unrolled at trace time
        y = jnp.dot(a_ref[g], b_ref[g], preferred_element_type=jnp.float32)
        y = _lrelu(y + bias_ref[...])
        ys.append(y)
        s = s + jnp.sum(y, axis=0, keepdims=True)
        sq = sq + jnp.sum(y * y, axis=0, keepdims=True)
    inv_cnt = 1.0 / (G * M)
    mean = s * inv_cnt
    var = jnp.maximum(sq * inv_cnt - mean * mean, 0.0)     # biased variance
    scale = jax.lax.rsqrt(var + BN_EPS) * gamma_ref[...]
    shift = beta_ref[...] - mean * scale
    for g in range(G):
        o_ref[g] = (ys[g] * scale + shift).astype(o_ref.dtype)


def _gemm_lrelu_kernel(a_ref, b_ref, bias_ref, o_ref):
    """lrelu(A_g @ B_g + bias) for each parity g (no BatchNorm)."""
    for g in range(a_ref.shape[0]):
        y = jnp.dot(a_ref[g], b_ref[g], preferred_element_type=jnp.float32)
        o_ref[g] = _lrelu(y + bias_ref[...]).astype(o_ref.dtype)


def _bottleneck_kernel(x_ref, w0_ref, b0_ref, g0_ref, be0_ref,
                       w1_ref, b1_ref, g1_ref, be1_ref, o_ref):
    """Both bottleneck [Linear + LeakyReLU + BatchNorm1d] layers fused."""
    def fc_lrelu_bn(h, w_ref, b_ref, g_ref, be_ref):
        y = jnp.dot(h, w_ref[...], preferred_element_type=jnp.float32)
        y = _lrelu(y + b_ref[...])
        inv_m = 1.0 / y.shape[0]
        mean = jnp.sum(y, axis=0, keepdims=True) * inv_m
        var = jnp.maximum(jnp.sum(y * y, axis=0, keepdims=True) * inv_m
                          - mean * mean, 0.0)
        scale = jax.lax.rsqrt(var + BN_EPS) * g_ref[...]
        return (y - mean) * scale + be_ref[...]

    h = fc_lrelu_bn(x_ref[...], w0_ref, b0_ref, g0_ref, be0_ref)
    h = fc_lrelu_bn(h.astype(jnp.bfloat16), w1_ref, b1_ref, g1_ref, be1_ref)
    o_ref[...] = h.astype(o_ref.dtype)


# --------------------------------------------------------------------------
# Pallas wrappers (grid=(1,), full-array blocks — all layers fit in VMEM)
# --------------------------------------------------------------------------
def fused_gemm_lrelu_bn(A, B, bias, gamma, beta, out_dtype=jnp.bfloat16):
    """A:(G,M,K) bf16, B:(G,K,C) bf16, bias/gamma/beta:(1,C) f32 -> (G,M,C)."""
    G, M, K = A.shape
    C = B.shape[2]
    blk3 = lambda s: pl.BlockSpec(s, lambda i: (0, 0, 0))
    vec = pl.BlockSpec((1, C), lambda i: (0, 0))
    return pl.pallas_call(
        _gemm_lrelu_bn_kernel,
        out_shape=jax.ShapeDtypeStruct((G, M, C), out_dtype),
        grid=(1,),
        in_specs=[blk3((G, M, K)), blk3((G, K, C)), vec, vec, vec],
        out_specs=blk3((G, M, C)),
    )(A, B, bias, gamma, beta)


def fused_gemm_lrelu(A, B, bias, out_dtype=jnp.float32):
    G, M, K = A.shape
    C = B.shape[2]
    blk3 = lambda s: pl.BlockSpec(s, lambda i: (0, 0, 0))
    vec = pl.BlockSpec((1, C), lambda i: (0, 0))
    return pl.pallas_call(
        _gemm_lrelu_kernel,
        out_shape=jax.ShapeDtypeStruct((G, M, C), out_dtype),
        grid=(1,),
        in_specs=[blk3((G, M, K)), blk3((G, K, C)), vec],
        out_specs=blk3((G, M, C)),
    )(A, B, bias)


def fused_bottleneck(x, prep):
    Nb, D = x.shape
    Hd = prep["fc0_B"].shape[1]
    blk = lambda s: pl.BlockSpec(s, lambda i: (0, 0))
    return pl.pallas_call(
        _bottleneck_kernel,
        out_shape=jax.ShapeDtypeStruct((Nb, D), jnp.bfloat16),
        grid=(1,),
        in_specs=[blk((Nb, D)),
                  blk((D, Hd)), blk((1, Hd)), blk((1, Hd)), blk((1, Hd)),
                  blk((Hd, D)), blk((1, D)), blk((1, D)), blk((1, D))],
        out_specs=blk((Nb, D)),
    )(x, prep["fc0_B"], prep["fc0_b"], prep["fc0_g"], prep["fc0_beta"],
      prep["fc1_B"], prep["fc1_b"], prep["fc1_g"], prep["fc1_beta"])


# --------------------------------------------------------------------------
# im2col helpers (XLA side; bf16, fused by XLA under jit)
# --------------------------------------------------------------------------
def _im2col_nhwc(x, k, stride, pad):
    """x:(N,H,W,C) -> (N*HO*WO, k*k*C) with K ordered (kh, kw, c)."""
    N, H, W, C = x.shape
    if pad:
        x = jnp.pad(x, ((0, 0), (pad, pad), (pad, pad), (0, 0)))
    HO = (H + 2 * pad - k) // stride + 1
    WO = (W + 2 * pad - k) // stride + 1
    cols = [x[:, i:i + stride * HO:stride, j:j + stride * WO:stride, :]
            for i in range(k) for j in range(k)]
    A = jnp.concatenate(cols, axis=-1)                    # (N, HO, WO, k*k*C)
    return A.reshape(N * HO * WO, k * k * C), HO, WO


def _convT_im2col(x):
    """Sub-pixel im2col for ConvTranspose2d(k=4,s=2,p=1).

    x:(N,H,W,C) -> (4, N*H*W, 4*C); leading axis = parity (ph,pw) in row-major
    order; K ordered (kh, kw, c) of the 2x2 sub-kernel taps.  Pad once."""
    N, H, W, C = x.shape
    xp = jnp.pad(x, ((0, 0), (1, 1), (1, 1), (0, 0)))
    mats = []
    for ph in (0, 1):
        for pw in (0, 1):
            taps = [xp[:, ph + i:ph + i + H, pw + j:pw + j + W, :]
                    for i in (0, 1) for j in (0, 1)]
            mats.append(jnp.concatenate(taps, axis=-1).reshape(N * H * W, 4 * C))
    return jnp.stack(mats)                                # (4, N*H*W, 4*C)


# --------------------------------------------------------------------------
# Parameters: PyTorch-layout init + one-time GEMM-form preparation (hoisted)
# --------------------------------------------------------------------------
def init_params(key, dim, h_dim):
    keys = iter(jax.random.split(key, 64))
    w = lambda shape, s=0.05: (s * jax.random.normal(next(keys), shape)).astype(jnp.float32)
    p = {}
    enc_ch = [1, dim, 2 * dim, 4 * dim, 8 * dim]
    for i in range(4):
        p[f"enc{i}_w"] = w((enc_ch[i + 1], enc_ch[i], 4, 4))
        p[f"enc{i}_b"] = w((enc_ch[i + 1],))
        p[f"enc{i}_g"] = 1.0 + w((enc_ch[i + 1],))
        p[f"enc{i}_beta"] = w((enc_ch[i + 1],))
    p["fc0_w"], p["fc0_b"] = w((h_dim, dim * 32)), w((h_dim,))
    p["fc0_g"], p["fc0_beta"] = 1.0 + w((h_dim,)), w((h_dim,))
    p["fc1_w"], p["fc1_b"] = w((dim * 32, h_dim)), w((dim * 32,))
    p["fc1_g"], p["fc1_beta"] = 1.0 + w((dim * 32,)), w((dim * 32,))
    dec_ch = [8 * dim, 4 * dim, 2 * dim, dim, 1]
    for i in range(4):
        p[f"dec{i}_w"] = w((dec_ch[i], dec_ch[i + 1], 4, 4))    # (IC, OC, k, k)
        p[f"dec{i}_b"] = w((dec_ch[i + 1],))
        if i < 3:
            p[f"dec{i}_g"] = 1.0 + w((dec_ch[i + 1],))
            p[f"dec{i}_beta"] = w((dec_ch[i + 1],))
    return p


def prepare_params(p):
    """One-time weight preprocessing into GEMM form (bf16) — out of the fwd."""
    q = {}
    vec = lambda v: jnp.asarray(v, jnp.float32).reshape(1, -1)
    for i in range(4):
        w = p[f"enc{i}_w"]                                      # (OC, IC, 4, 4)
        OC, IC = w.shape[0], w.shape[1]
        q[f"enc{i}_B"] = (w.transpose(2, 3, 1, 0)               # K order (kh,kw,ic)
                          .reshape(16 * IC, OC).astype(jnp.bfloat16))
        q[f"enc{i}_b"] = vec(p[f"enc{i}_b"])
        q[f"enc{i}_g"] = vec(p[f"enc{i}_g"])
        q[f"enc{i}_beta"] = vec(p[f"enc{i}_beta"])
    for name in ("fc0", "fc1"):
        q[f"{name}_B"] = p[f"{name}_w"].T.astype(jnp.bfloat16)
        q[f"{name}_b"] = vec(p[f"{name}_b"])
        q[f"{name}_g"] = vec(p[f"{name}_g"])
        q[f"{name}_beta"] = vec(p[f"{name}_beta"])
    for i in range(4):
        w = p[f"dec{i}_w"]                                      # (IC, OC, 4, 4)
        IC, OC = w.shape[0], w.shape[1]
        # regular-conv form: flip spatially, swap channel axes -> (OC, IC, 4, 4)
        wf = jnp.flip(w, (2, 3)).transpose(1, 0, 2, 3)
        # 2x2 sub-kernels per output parity (ph, pw); K order (kh, kw, ic)
        subs = [wf[:, :, ph::2, pw::2].transpose(2, 3, 1, 0).reshape(4 * IC, OC)
                for ph in (0, 1) for pw in (0, 1)]
        q[f"dec{i}_B"] = jnp.stack(subs).astype(jnp.bfloat16)   # (4, 4*IC, OC)
        q[f"dec{i}_b"] = vec(p[f"dec{i}_b"])
        if i < 3:
            q[f"dec{i}_g"] = vec(p[f"dec{i}_g"])
            q[f"dec{i}_beta"] = vec(p[f"dec{i}_beta"])
    return q


# --------------------------------------------------------------------------
# CAE forward (Pallas)
# --------------------------------------------------------------------------
def cae_forward(prep, x, dim, h_dim):
    N = x.shape[0]
    h = x.transpose(0, 2, 3, 1).astype(jnp.bfloat16)     # NCHW -> NHWC, once

    # encoder: 4 x [Conv(k4,s2,p1) + LeakyReLU(0.25) + BatchNorm2d]
    # each layer = one fused pallas_call (GEMM + bias + LReLU + BN).
    for i in range(4):
        A, HO, WO = _im2col_nhwc(h, 4, 2, 1)
        out = fused_gemm_lrelu_bn(A[None], prep[f"enc{i}_B"][None],
                                  prep[f"enc{i}_b"], prep[f"enc{i}_g"],
                                  prep[f"enc{i}_beta"])
        h = out[0].reshape(N, HO, WO, prep[f"enc{i}_B"].shape[1])

    # flatten in PyTorch's (C, H, W) order for weight-layout parity
    h = h.transpose(0, 3, 1, 2).reshape(N, dim * 32)

    # bottleneck: 2 x [Linear + LeakyReLU + BatchNorm1d] in ONE pallas_call
    h = fused_bottleneck(h, prep)
    h = h.reshape(N, 8 * dim, 2, 2).transpose(0, 2, 3, 1)       # back to NHWC

    # decoder: 3 x [ConvT + LReLU + BN] + [ConvT + LReLU]; each layer is one
    # pallas_call over the 4 sub-pixel parities (BN stats span all parities).
    for i in range(4):
        Nb, H, W, _ = h.shape
        A4 = _convT_im2col(h)                                   # (4, N*H*W, 4*IC)
        OC = prep[f"dec{i}_B"].shape[2]
        if i < 3:
            out = fused_gemm_lrelu_bn(A4, prep[f"dec{i}_B"], prep[f"dec{i}_b"],
                                      prep[f"dec{i}_g"], prep[f"dec{i}_beta"])
        else:
            out = fused_gemm_lrelu(A4, prep[f"dec{i}_B"], prep[f"dec{i}_b"],
                                   out_dtype=jnp.float32)
        # interleave: out[n, 2r+ph, 2c+pw, oc] = sub[ph, pw, n, r, c, oc]
        sub = out.reshape(2, 2, Nb, H, W, OC)
        h = sub.transpose(2, 3, 0, 4, 1, 5).reshape(Nb, 2 * H, 2 * W, OC)
    return h.transpose(0, 3, 1, 2)                              # NHWC -> NCHW


# --------------------------------------------------------------------------
# Pure-JAX reference (lax convs, same bf16 activation policy) for validation
# --------------------------------------------------------------------------
def cae_reference(params, x, dim, h_dim):
    f32, bf16 = jnp.float32, jnp.bfloat16

    def bn(y, g, b, axes):
        mean = jnp.mean(y, axis=axes, keepdims=True)
        var = jnp.mean((y - mean) ** 2, axis=axes, keepdims=True)   # biased
        return (y - mean) * jax.lax.rsqrt(var + BN_EPS) * g + b

    N = x.shape[0]
    h = x.transpose(0, 2, 3, 1).astype(bf16)
    for i in range(4):
        y = jax.lax.conv_general_dilated(
            h, params[f"enc{i}_w"].astype(bf16), (2, 2), [(1, 1), (1, 1)],
            dimension_numbers=("NHWC", "OIHW", "NHWC"),
            preferred_element_type=f32)
        y = _lrelu(y + params[f"enc{i}_b"])
        h = bn(y, params[f"enc{i}_g"], params[f"enc{i}_beta"], (0, 1, 2)).astype(bf16)
    h = h.transpose(0, 3, 1, 2).reshape(N, dim * 32)
    for name in ("fc0", "fc1"):
        y = jnp.dot(h, params[f"{name}_w"].T.astype(bf16), preferred_element_type=f32)
        y = _lrelu(y + params[f"{name}_b"])
        h = bn(y, params[f"{name}_g"], params[f"{name}_beta"], (0,)).astype(bf16)
    h = h.reshape(N, 8 * dim, 2, 2).transpose(0, 2, 3, 1)
    for i in range(4):
        w_f = jnp.flip(params[f"dec{i}_w"], (2, 3)).astype(bf16)     # (IC,OC,4,4)
        y = jax.lax.conv_general_dilated(
            h, w_f, (1, 1), [(2, 2), (2, 2)], lhs_dilation=(2, 2),
            dimension_numbers=("NHWC", "IOHW", "NHWC"),
            preferred_element_type=f32)
        y = _lrelu(y + params[f"dec{i}_b"])
        if i < 3:
            h = bn(y, params[f"dec{i}_g"], params[f"dec{i}_beta"], (0, 1, 2)).astype(bf16)
        else:
            h = y
    return h.transpose(0, 3, 1, 2)


if __name__ == "__main__":
    dim, h_dim = 4, 32
    batch = 2
    key = jax.random.PRNGKey(0)
    k_param, k_x = jax.random.split(key)
    params = init_params(k_param, dim, h_dim)
    prep = prepare_params(params)       # one-time weight prep (hoisted out of fwd)
    # Input must be 32x32 so the encoder output is (N, 8*dim, 2, 2) = dim*32 feats.
    x = jax.random.normal(k_x, (batch, 1, 32, 32), dtype=jnp.float32)

    fwd = jax.jit(functools.partial(cae_forward, dim=dim, h_dim=h_dim))
    out = fwd(prep, x)
    jax.block_until_ready(out)

    assert out.shape == (batch, 1, 32, 32), out.shape
    assert bool(jnp.all(jnp.isfinite(out)))

    # Numerical validation (conv / convT-parity mapping / BN) vs lax reference.
    ref = jax.jit(functools.partial(cae_reference, dim=dim, h_dim=h_dim))(params, x)
    max_err = float(jnp.max(jnp.abs(out - ref)))
    assert max_err < 5e-2, f"mismatch vs reference: {max_err}"
    print("KERNEL_OK")
</pallas_src>

<mosaic_0001>
module attributes {stable_mosaic.version = 11 : i64} {
  func.func @_gemm_lrelu_bn_kernel(%arg0: i32, %arg1: memref<1x512x16xbf16, #tpu.memory_space<vmem>>, %arg2: memref<1x16x4xbf16, #tpu.memory_space<vmem>>, %arg3: memref<1x4xf32, #tpu.memory_space<vmem>>, %arg4: memref<1x4xf32, #tpu.memory_space<vmem>>, %arg5: memref<1x4xf32, #tpu.memory_space<vmem>>, %arg6: memref<1x512x4xbf16, #tpu.memory_space<vmem>>) attributes {dimension_semantics = [#tpu.dimension_semantics<arbitrary>], iteration_bounds = array<i64: 1>, scalar_prefetch = 0 : i64, scratch_operands = 0 : i64, tpu.core_type = #tpu.core_type<tc>, window_params = [{pipeline_mode = #tpu.pipeline_mode<synchronous>, transform_indices = @transform_0, window_bounds = array<i64: 1, 512, 16>}, {pipeline_mode = #tpu.pipeline_mode<synchronous>, transform_indices = @transform_1, window_bounds = array<i64: 1, 16, 4>}, {pipeline_mode = #tpu.pipeline_mode<synchronous>, transform_indices = @transform_2, window_bounds = array<i64: 1, 4>}, {pipeline_mode = #tpu.pipeline_mode<synchronous>, transform_indices = @transform_3, window_bounds = array<i64: 1, 4>}, {pipeline_mode = #tpu.pipeline_mode<synchronous>, transform_indices = @transform_4, window_bounds = array<i64: 1, 4>}, {pipeline_mode = #tpu.pipeline_mode<synchronous>, transform_indices = @transform_5, window_bounds = array<i64: 1, 512, 4>}]} {
    %cst = arith.constant 0.000000e+00 : f32
    %0 = vector.broadcast %cst : f32 to vector<1x4xf32>
    %cst_0 = arith.constant 0.000000e+00 : f32
    %1 = vector.broadcast %cst_0 : f32 to vector<1x4xf32>
    %c0 = arith.constant 0 : index
    %c0_1 = arith.constant 0 : index
    %c0_2 = arith.constant 0 : index
    %2 = vector.load %arg1[%c0, %c0_1, %c0_2] : memref<1x512x16xbf16, #tpu.memory_space<vmem>>, vector<1x512x16xbf16>
    %3 = vector.shape_cast %2 : vector<1x512x16xbf16> to vector<512x16xbf16>
    %c0_3 = arith.constant 0 : index
    %c0_4 = arith.constant 0 : index
    %c0_5 = arith.constant 0 : index
    %4 = vector.load %arg2[%c0_3, %c0_4, %c0_5] : memref<1x16x4xbf16, #tpu.memory_space<vmem>>, vector<1x16x4xbf16>
    %5 = vector.shape_cast %4 : vector<1x16x4xbf16> to vector<16x4xbf16>
    %cst_6 = arith.constant dense<0.000000e+00> : vector<512x4xf32>
    %6 = tpu.matmul %3, %5, %cst_6 {dimension_numbers = #tpu.dot_dimension_numbers<[1], [0], [0], [1], [0, 0, 1, 1], [], []>} : vector<512x16xbf16>, vector<16x4xbf16>, vector<512x4xf32> -> vector<512x4xf32>
    %c0_7 = arith.constant 0 : index
    %c0_8 = arith.constant 0 : index
    %7 = vector.load %arg3[%c0_7, %c0_8] : memref<1x4xf32, #tpu.memory_space<vmem>>, vector<1x4xf32>
    %8 = vector.broadcast %7 : vector<1x4xf32> to vector<512x4xf32>
    %9 = arith.addf %6, %8 : vector<512x4xf32>
    %cst_9 = arith.constant 0.000000e+00 : f32
    %10 = vector.broadcast %cst_9 : f32 to vector<512x4xf32>
    %11 = arith.cmpf oge, %9, %10 : vector<512x4xf32>
    %cst_10 = arith.constant 2.500000e-01 : f32
    %12 = vector.broadcast %cst_10 : f32 to vector<512x4xf32>
    %13 = arith.mulf %12, %9 : vector<512x4xf32>
    %14 = arith.select %11, %9, %13 : vector<512x4xi1>, vector<512x4xf32>
    %cst_11 = arith.constant dense<0.000000e+00> : vector<4xf32>
    %15 = vector.multi_reduction <add>, %14, %cst_11 [0] : vector<512x4xf32> to vector<4xf32>
    %16 = vector.shape_cast %15 : vector<4xf32> to vector<1x4xf32>
    %17 = arith.addf %0, %16 : vector<1x4xf32>
    %18 = arith.mulf %14, %14 : vector<512x4xf32>
    %cst_12 = arith.constant dense<0.000000e+00> : vector<4xf32>
    %19 = vector.multi_reduction <add>, %18, %cst_12 [0] : vector<512x4xf32> to vector<4xf32>
    %20 = vector.shape_cast %19 : vector<4xf32> to vector<1x4xf32>
    %21 = arith.addf %1, %20 : vector<1x4xf32>
    %cst_13 = arith.constant 0.001953125 : f32
    %22 = vector.broadcast %cst_13 : f32 to vector<1x4xf32>
    %23 = arith.mulf %17, %22 : vector<1x4xf32>
    %cst_14 = arith.constant 0.001953125 : f32
    %24 = vector.broadcast %cst_14 : f32 to vector<1x4xf32>
    %25 = arith.mulf %21, %24 : vector<1x4xf32>
    %26 = arith.mulf %23, %23 : vector<1x4xf32>
    %27 = arith.subf %25, %26 : vector<1x4xf32>
    %cst_15 = arith.constant 0.000000e+00 : f32
    %28 = vector.broadcast %cst_15 : f32 to vector<1x4xf32>
    %29 = arith.maximumf %27, %28 : vector<1x4xf32>
    %cst_16 = arith.constant 9.99999974E-6 : f32
    %30 = vector.broadcast %cst_16 : f32 to vector<1x4xf32>
    %31 = arith.addf %29, %30 : vector<1x4xf32>
    %32 = math.rsqrt %31 : vector<1x4xf32>
    %c0_17 = arith.constant 0 : index
    %c0_18 = arith.constant 0 : index
    %33 = vector.load %arg4[%c0_17, %c0_18] : memref<1x4xf32, #tpu.memory_space<vmem>>, vector<1x4xf32>
    %34 = arith.mulf %32, %33 : vector<1x4xf32>
    %c0_19 = arith.constant 0 : index
    %c0_20 = arith.constant 0 : index
    %35 = vector.load %arg5[%c0_19, %c0_20] : memref<1x4xf32, #tpu.memory_space<vmem>>, vector<1x4xf32>
    %36 = arith.mulf %23, %34 : vector<1x4xf32>
    %37 = arith.subf %35, %36 : vector<1x4xf32>
    %38 = vector.broadcast %34 : vector<1x4xf32> to vector<512x4xf32>
    %39 = arith.mulf %14, %38 : vector<512x4xf32>
    %40 = vector.broadcast %37 : vector<1x4xf32> to vector<512x4xf32>
    %41 = arith.addf %39, %40 : vector<512x4xf32>
    %42 = arith.truncf %41 : vector<512x4xf32> to vector<512x4xbf16>
    %c0_21 = arith.constant 0 : index
    %c0_22 = arith.constant 0 : index
    %c0_23 = arith.constant 0 : index
    %43 = vector.load %arg6[%c0_21, %c0_22, %c0_23] : memref<1x512x4xbf16, #tpu.memory_space<vmem>>, vector<1x512x4xbf16>
    %44 = vector.shape_cast %43 : vector<1x512x4xbf16> to vector<512x4xbf16>
    %45 = vector.shape_cast %42 : vector<512x4xbf16> to vector<1x512x4xbf16>
    tpu.vector_store %arg6[%c0_21, %c0_22, %c0_23], %45 {strides = array<i32>} : memref<1x512x4xbf16, #tpu.memory_space<vmem>>, vector<1x512x4xbf16>,
    return
  }
  func.func @transform_0(%arg0: i32) -> (i32, i32, i32) {
    %c0_i32 = arith.constant 0 : i32
    %c0_i32_0 = arith.constant 0 : i32
    %c0_i32_1 = arith.constant 0 : i32
    %c0_i32_2 = arith.constant 0 : i32
    return %c0_i32, %c0_i32_0, %c0_i32_1 : i32, i32, i32
  }
  func.func @transform_1(%arg0: i32) -> (i32, i32, i32) {
    %c0_i32 = arith.constant 0 : i32
    %c0_i32_0 = arith.constant 0 : i32
    %c0_i32_1 = arith.constant 0 : i32
    %c0_i32_2 = arith.constant 0 : i32
    return %c0_i32, %c0_i32_0, %c0_i32_1 : i32, i32, i32
  }
  func.func @transform_2(%arg0: i32) -> (i32, i32) {
    %c0_i32 = arith.constant 0 : i32
    %c0_i32_0 = arith.constant 0 : i32
    %c0_i32_1 = arith.constant 0 : i32
    return %c0_i32, %c0_i32_0 : i32, i32
  }
  func.func @transform_3(%arg0: i32) -> (i32, i32) {
    %c0_i32 = arith.constant 0 : i32
    %c0_i32_0 = arith.constant 0 : i32
    %c0_i32_1 = arith.constant 0 : i32
    return %c0_i32, %c0_i32_0 : i32, i32
  }
  func.func @transform_4(%arg0: i32) -> (i32, i32) {
    %c0_i32 = arith.constant 0 : i32
    %c0_i32_0 = arith.constant 0 : i32
    %c0_i32_1 = arith.constant 0 : i32
    return %c0_i32, %c0_i32_0 : i32, i32
  }
  func.func @transform_5(%arg0: i32) -> (i32, i32, i32) {
    %c0_i32 = arith.constant 0 : i32
    %c0_i32_0 = arith.constant 0 : i32
    %c0_i32_1 = arith.constant 0 : i32
    %c0_i32_2 = arith.constant 0 : i32
    return %c0_i32, %c0_i32_0, %c0_i32_1 : i32, i32, i32
  }
}

module attributes {stable_mosaic.version = 11 : i64} {
  func.func @_gemm_lrelu_bn_kernel(%arg0: i32, %arg1: memref<1x128x64xbf16, #tpu.memory_space<vmem>>, %arg2: memref<1x64x8xbf16, #tpu.memory_space<vmem>>, %arg3: memref<1x8xf32, #tpu.memory_space<vmem>>, %arg4: memref<1x8xf32, #tpu.memory_space<vmem>>, %arg5: memref<1x8xf32, #tpu.memory_space<vmem>>, %arg6: memref<1x128x8xbf16, #tpu.memory_space<vmem>>) attributes {dimension_semantics = [#tpu.dimension_semantics<arbitrary>], iteration_bounds = array<i64: 1>, scalar_prefetch = 0 : i64, scratch_operands = 0 : i64, tpu.core_type = #tpu.core_type<tc>, window_params = [{pipeline_mode = #tpu.pipeline_mode<synchronous>, transform_indices = @transform_0, window_bounds = array<i64: 1, 128, 64>}, {pipeline_mode = #tpu.pipeline_mode<synchronous>, transform_indices = @transform_1, window_bounds = array<i64: 1, 64, 8>}, {pipeline_mode = #tpu.pipeline_mode<synchronous>, transform_indices = @transform_2, window_bounds = array<i64: 1, 8>}, {pipeline_mode = #tpu.pipeline_mode<synchronous>, transform_indices = @transform_3, window_bounds = array<i64: 1, 8>}, {pipeline_mode = #tpu.pipeline_mode<synchronous>, transform_indices = @transform_4, window_bounds = array<i64: 1, 8>}, {pipeline_mode = #tpu.pipeline_mode<synchronous>, transform_indices = @transform_5, window_bounds = array<i64: 1, 128, 8>}]} {
    %cst = arith.constant 0.000000e+00 : f32
    %0 = vector.broadcast %cst : f32 to vector<1x8xf32>
    %cst_0 = arith.constant 0.000000e+00 : f32
    %1 = vector.broadcast %cst_0 : f32 to vector<1x8xf32>
    %c0 = arith.constant 0 : index
    %c0_1 = arith.constant 0 : index
    %c0_2 = arith.constant 0 : index
    %2 = vector.load %arg1[%c0, %c0_1, %c0_2] : memref<1x128x64xbf16, #tpu.memory_space<vmem>>, vector<1x128x64xbf16>
    %3 = vector.shape_cast %2 : vector<1x128x64xbf16> to vector<128x64xbf16>
    %c0_3 = arith.constant 0 : index
    %c0_4 = arith.constant 0 : index
    %c0_5 = arith.constant 0 : index
    %4 = vector.load %arg2[%c0_3, %c0_4, %c0_5] : memref<1x64x8xbf16, #tpu.memory_space<vmem>>, vector<1x64x8xbf16>
    %5 = vector.shape_cast %4 : vector<1x64x8xbf16> to vector<64x8xbf16>
    %cst_6 = arith.constant dense<0.000000e+00> : vector<128x8xf32>
    %6 = tpu.matmul %3, %5, %cst_6 {dimension_numbers = #tpu.dot_dimension_numbers<[1], [0], [0], [1], [0, 0, 1, 1], [], []>} : vector<128x64xbf16>, vector<64x8xbf16>, vector<128x8xf32> -> vector<128x8xf32>
    %c0_7 = arith.constant 0 : index
    %c0_8 = arith.constant 0 : index
    %7 = vector.load %arg3[%c0_7, %c0_8] : memref<1x8xf32, #tpu.memory_space<vmem>>, vector<1x8xf32>
    %8 = vector.broadcast %7 : vector<1x8xf32> to vector<128x8xf32>
    %9 = arith.addf %6, %8 : vector<128x8xf32>
    %cst_9 = arith.constant 0.000000e+00 : f32
    %10 = vector.broadcast %cst_9 : f32 to vector<128x8xf32>
    %11 = arith.cmpf oge, %9, %10 : vector<128x8xf32>
    %cst_10 = arith.constant 2.500000e-01 : f32
    %12 = vector.broadcast %cst_10 : f32 to vector<128x8xf32>
    %13 = arith.mulf %12, %9 : vector<128x8xf32>
    %14 = arith.select %11, %9, %13 : vector<128x8xi1>, vector<128x8xf32>
    %cst_11 = arith.constant dense<0.000000e+00> : vector<8xf32>
    %15 = vector.multi_reduction <add>, %14, %cst_11 [0] : vector<128x8xf32> to vector<8xf32>
    %16 = vector.shape_cast %15 : vector<8xf32> to vector<1x8xf32>
    %17 = arith.addf %0, %16 : vector<1x8xf32>
    %18 = arith.mulf %14, %14 : vector<128x8xf32>
    %cst_12 = arith.constant dense<0.000000e+00> : vector<8xf32>
    %19 = vector.multi_reduction <add>, %18, %cst_12 [0] : vector<128x8xf32> to vector<8xf32>
    %20 = vector.shape_cast %19 : vector<8xf32> to vector<1x8xf32>
    %21 = arith.addf %1, %20 : vector<1x8xf32>
    %cst_13 = arith.constant 7.812500e-03 : f32
    %22 = vector.broadcast %cst_13 : f32 to vector<1x8xf32>
    %23 = arith.mulf %17, %22 : vector<1x8xf32>
    %cst_14 = arith.constant 7.812500e-03 : f32
    %24 = vector.broadcast %cst_14 : f32 to vector<1x8xf32>
    %25 = arith.mulf %21, %24 : vector<1x8xf32>
    %26 = arith.mulf %23, %23 : vector<1x8xf32>
    %27 = arith.subf %25, %26 : vector<1x8xf32>
    %cst_15 = arith.constant 0.000000e+00 : f32
    %28 = vector.broadcast %cst_15 : f32 to vector<1x8xf32>
    %29 = arith.maximumf %27, %28 : vector<1x8xf32>
    %cst_16 = arith.constant 9.99999974E-6 : f32
    %30 = vector.broadcast %cst_16 : f32 to vector<1x8xf32>
    %31 = arith.addf %29, %30 : vector<1x8xf32>
    %32 = math.rsqrt %31 : vector<1x8xf32>
    %c0_17 = arith.constant 0 : index
    %c0_18 = arith.constant 0 : index
    %33 = vector.load %arg4[%c0_17, %c0_18] : memref<1x8xf32, #tpu.memory_space<vmem>>, vector<1x8xf32>
    %34 = arith.mulf %32, %33 : vector<1x8xf32>
    %c0_19 = arith.constant 0 : index
    %c0_20 = arith.constant 0 : index
    %35 = vector.load %arg5[%c0_19, %c0_20] : memref<1x8xf32, #tpu.memory_space<vmem>>, vector<1x8xf32>
    %36 = arith.mulf %23, %34 : vector<1x8xf32>
    %37 = arith.subf %35, %36 : vector<1x8xf32>
    %38 = vector.broadcast %34 : vector<1x8xf32> to vector<128x8xf32>
    %39 = arith.mulf %14, %38 : vector<128x8xf32>
    %40 = vector.broadcast %37 : vector<1x8xf32> to vector<128x8xf32>
    %41 = arith.addf %39, %40 : vector<128x8xf32>
    %42 = arith.truncf %41 : vector<128x8xf32> to vector<128x8xbf16>
    %c0_21 = arith.constant 0 : index
    %c0_22 = arith.constant 0 : index
    %c0_23 = arith.constant 0 : index
    %43 = vector.load %arg6[%c0_21, %c0_22, %c0_23] : memref<1x128x8xbf16, #tpu.memory_space<vmem>>, vector<1x128x8xbf16>
    %44 = vector.shape_cast %43 : vector<1x128x8xbf16> to vector<128x8xbf16>
    %45 = vector.shape_cast %42 : vector<128x8xbf16> to vector<1x128x8xbf16>
    tpu.vector_store %arg6[%c0_21, %c0_22, %c0_23], %45 {strides = array<i32>} : memref<1x128x8xbf16, #tpu.memory_space<vmem>>, vector<1x128x8xbf16>,
    return
  }
  func.func @transform_0(%arg0: i32) -> (i32, i32, i32) {
    %c0_i32 = arith.constant 0 : i32
    %c0_i32_0 = arith.constant 0 : i32
    %c0_i32_1 = arith.constant 0 : i32
    %c0_i32_2 = arith.constant 0 : i32
    return %c0_i32, %c0_i32_0, %c0_i32_1 : i32, i32, i32
  }
  func.func @transform_1(%arg0: i32) -> (i32, i32, i32) {
    %c0_i32 = arith.constant 0 : i32
    %c0_i32_0 = arith.constant 0 : i32
    %c0_i32_1 = arith.constant 0 : i32
    %c0_i32_2 = arith.constant 0 : i32
    return %c0_i32, %c0_i32_0, %c0_i32_1 : i32, i32, i32
  }
  func.func @transform_2(%arg0: i32) -> (i32, i32) {
    %c0_i32 = arith.constant 0 : i32
    %c0_i32_0 = arith.constant 0 : i32
    %c0_i32_1 = arith.constant 0 : i32
    return %c0_i32, %c0_i32_0 : i32, i32
  }
  func.func @transform_3(%arg0: i32) -> (i32, i32) {
    %c0_i32 = arith.constant 0 : i32
    %c0_i32_0 = arith.constant 0 : i32
    %c0_i32_1 = arith.constant 0 : i32
    return %c0_i32, %c0_i32_0 : i32, i32
  }
  func.func @transform_4(%arg0: i32) -> (i32, i32) {
    %c0_i32 = arith.constant 0 : i32
    %c0_i32_0 = arith.constant 0 : i32
    %c0_i32_1 = arith.constant 0 : i32
    return %c0_i32, %c0_i32_0 : i32, i32
  }
  func.func @transform_5(%arg0: i32) -> (i32, i32, i32) {
    %c0_i32 = arith.constant 0 : i32
    %c0_i32_0 = arith.constant 0 : i32
    %c0_i32_1 = arith.constant 0 : i32
    %c0_i32_2 = arith.constant 0 : i32
    return %c0_i32, %c0_i32_0, %c0_i32_1 : i32, i32, i32
  }
}

module attributes {stable_mosaic.version = 11 : i64} {
  func.func @_gemm_lrelu_bn_kernel(%arg0: i32, %arg1: memref<1x32x128xbf16, #tpu.memory_space<vmem>>, %arg2: memref<1x128x16xbf16, #tpu.memory_space<vmem>>, %arg3: memref<1x16xf32, #tpu.memory_space<vmem>>, %arg4: memref<1x16xf32, #tpu.memory_space<vmem>>, %arg5: memref<1x16xf32, #tpu.memory_space<vmem>>, %arg6: memref<1x32x16xbf16, #tpu.memory_space<vmem>>) attributes {dimension_semantics = [#tpu.dimension_semantics<arbitrary>], iteration_bounds = array<i64: 1>, scalar_prefetch = 0 : i64, scratch_operands = 0 : i64, tpu.core_type = #tpu.core_type<tc>, window_params = [{pipeline_mode = #tpu.pipeline_mode<synchronous>, transform_indices = @transform_0, window_bounds = array<i64: 1, 32, 128>}, {pipeline_mode = #tpu.pipeline_mode<synchronous>, transform_indices = @transform_1, window_bounds = array<i64: 1, 128, 16>}, {pipeline_mode = #tpu.pipeline_mode<synchronous>, transform_indices = @transform_2, window_bounds = array<i64: 1, 16>}, {pipeline_mode = #tpu.pipeline_mode<synchronous>, transform_indices = @transform_3, window_bounds = array<i64: 1, 16>}, {pipeline_mode = #tpu.pipeline_mode<synchronous>, transform_indices = @transform_4, window_bounds = array<i64: 1, 16>}, {pipeline_mode = #tpu.pipeline_mode<synchronous>, transform_indices = @transform_5, window_bounds = array<i64: 1, 32, 16>}]} {
    %cst = arith.constant 0.000000e+00 : f32
    %0 = vector.broadcast %cst : f32 to vector<1x16xf32>
    %cst_0 = arith.constant 0.000000e+00 : f32
    %1 = vector.broadcast %cst_0 : f32 to vector<1x16xf32>
    %c0 = arith.constant 0 : index
    %c0_1 = arith.constant 0 : index
    %c0_2 = arith.constant 0 : index
    %2 = vector.load %arg1[%c0, %c0_1, %c0_2] : memref<1x32x128xbf16, #tpu.memory_space<vmem>>, vector<1x32x128xbf16>
    %3 = vector.shape_cast %2 : vector<1x32x128xbf16> to vector<32x128xbf16>
    %c0_3 = arith.constant 0 : index
    %c0_4 = arith.constant 0 : index
    %c0_5 = arith.constant 0 : index
    %4 = vector.load %arg2[%c0_3, %c0_4, %c0_5] : memref<1x128x16xbf16, #tpu.memory_space<vmem>>, vector<1x128x16xbf16>
    %5 = vector.shape_cast %4 : vector<1x128x16xbf16> to vector<128x16xbf16>
    %cst_6 = arith.constant dense<0.000000e+00> : vector<32x16xf32>
    %6 = tpu.matmul %3, %5, %cst_6 {dimension_numbers = #tpu.dot_dimension_numbers<[1], [0], [0], [1], [0, 0, 1, 1], [], []>} : vector<32x128xbf16>, vector<128x16xbf16>, vector<32x16xf32> -> vector<32x16xf32>
    %c0_7 = arith.constant 0 : index
    %c0_8 = arith.constant 0 : index
    %7 = vector.load %arg3[%c0_7, %c0_8] : memref<1x16xf32, #tpu.memory_space<vmem>>, vector<1x16xf32>
    %8 = vector.broadcast %7 : vector<1x16xf32> to vector<32x16xf32>
    %9 = arith.addf %6, %8 : vector<32x16xf32>
    %cst_9 = arith.constant 0.000000e+00 : f32
    %10 = vector.broadcast %cst_9 : f32 to vector<32x16xf32>
    %11 = arith.cmpf oge, %9, %10 : vector<32x16xf32>
    %cst_10 = arith.constant 2.500000e-01 : f32
    %12 = vector.broadcast %cst_10 : f32 to vector<32x16xf32>
    %13 = arith.mulf %12, %9 : vector<32x16xf32>
    %14 = arith.select %11, %9, %13 : vector<32x16xi1>, vector<32x16xf32>
    %cst_11 = arith.constant dense<0.000000e+00> : vector<16xf32>
    %15 = vector.multi_reduction <add>, %14, %cst_11 [0] : vector<32x16xf32> to vector<16xf32>
    %16 = vector.shape_cast %15 : vector<16xf32> to vector<1x16xf32>
    %17 = arith.addf %0, %16 : vector<1x16xf32>
    %18 = arith.mulf %14, %14 : vector<32x16xf32>
    %cst_12 = arith.constant dense<0.000000e+00> : vector<16xf32>
    %19 = vector.multi_reduction <add>, %18, %cst_12 [0] : vector<32x16xf32> to vector<16xf32>
    %20 = vector.shape_cast %19 : vector<16xf32> to vector<1x16xf32>
    %21 = arith.addf %1, %20 : vector<1x16xf32>
    %cst_13 = arith.constant 3.125000e-02 : f32
    %22 = vector.broadcast %cst_13 : f32 to vector<1x16xf32>
    %23 = arith.mulf %17, %22 : vector<1x16xf32>
    %cst_14 = arith.constant 3.125000e-02 : f32
    %24 = vector.broadcast %cst_14 : f32 to vector<1x16xf32>
    %25 = arith.mulf %21, %24 : vector<1x16xf32>
    %26 = arith.mulf %23, %23 : vector<1x16xf32>
    %27 = arith.subf %25, %26 : vector<1x16xf32>
    %cst_15 = arith.constant 0.000000e+00 : f32
    %28 = vector.broadcast %cst_15 : f32 to vector<1x16xf32>
    %29 = arith.maximumf %27, %28 : vector<1x16xf32>
    %cst_16 = arith.constant 9.99999974E-6 : f32
    %30 = vector.broadcast %cst_16 : f32 to vector<1x16xf32>
    %31 = arith.addf %29, %30 : vector<1x16xf32>
    %32 = math.rsqrt %31 : vector<1x16xf32>
    %c0_17 = arith.constant 0 : index
    %c0_18 = arith.constant 0 : index
    %33 = vector.load %arg4[%c0_17, %c0_18] : memref<1x16xf32, #tpu.memory_space<vmem>>, vector<1x16xf32>
    %34 = arith.mulf %32, %33 : vector<1x16xf32>
    %c0_19 = arith.constant 0 : index
    %c0_20 = arith.constant 0 : index
    %35 = vector.load %arg5[%c0_19, %c0_20] : memref<1x16xf32, #tpu.memory_space<vmem>>, vector<1x16xf32>
    %36 = arith.mulf %23, %34 : vector<1x16xf32>
    %37 = arith.subf %35, %36 : vector<1x16xf32>
    %38 = vector.broadcast %34 : vector<1x16xf32> to vector<32x16xf32>
    %39 = arith.mulf %14, %38 : vector<32x16xf32>
    %40 = vector.broadcast %37 : vector<1x16xf32> to vector<32x16xf32>
    %41 = arith.addf %39, %40 : vector<32x16xf32>
    %42 = arith.truncf %41 : vector<32x16xf32> to vector<32x16xbf16>
    %c0_21 = arith.constant 0 : index
    %c0_22 = arith.constant 0 : index
    %c0_23 = arith.constant 0 : index
    %43 = vector.load %arg6[%c0_21, %c0_22, %c0_23] : memref<1x32x16xbf16, #tpu.memory_space<vmem>>, vector<1x32x16xbf16>
    %44 = vector.shape_cast %43 : vector<1x32x16xbf16> to vector<32x16xbf16>
    %45 = vector.shape_cast %42 : vector<32x16xbf16> to vector<1x32x16xbf16>
    tpu.vector_store %arg6[%c0_21, %c0_22, %c0_23], %45 {strides = array<i32>} : memref<1x32x16xbf16, #tpu.memory_space<vmem>>, vector<1x32x16xbf16>,
    return
  }
  func.func @transform_0(%arg0: i32) -> (i32, i32, i32) {
    %c0_i32 = arith.constant 0 : i32
    %c0_i32_0 = arith.constant 0 : i32
    %c0_i32_1 = arith.constant 0 : i32
    %c0_i32_2 = arith.constant 0 : i32
    return %c0_i32, %c0_i32_0, %c0_i32_1 : i32, i32, i32
  }
  func.func @transform_1(%arg0: i32) -> (i32, i32, i32) {
    %c0_i32 = arith.constant 0 : i32
    %c0_i32_0 = arith.constant 0 : i32
    %c0_i32_1 = arith.constant 0 : i32
    %c0_i32_2 = arith.constant 0 : i32
    return %c0_i32, %c0_i32_0, %c0_i32_1 : i32, i32, i32
  }
  func.func @transform_2(%arg0: i32) -> (i32, i32) {
    %c0_i32 = arith.constant 0 : i32
    %c0_i32_0 = arith.constant 0 : i32
    %c0_i32_1 = arith.constant 0 : i32
    return %c0_i32, %c0_i32_0 : i32, i32
  }
  func.func @transform_3(%arg0: i32) -> (i32, i32) {
    %c0_i32 = arith.constant 0 : i32
    %c0_i32_0 = arith.constant 0 : i32
    %c0_i32_1 = arith.constant 0 : i32
    return %c0_i32, %c0_i32_0 : i32, i32
  }
  func.func @transform_4(%arg0: i32) -> (i32, i32) {
    %c0_i32 = arith.constant 0 : i32
    %c0_i32_0 = arith.constant 0 : i32
    %c0_i32_1 = arith.constant 0 : i32
    return %c0_i32, %c0_i32_0 : i32, i32
  }
  func.func @transform_5(%arg0: i32) -> (i32, i32, i32) {
    %c0_i32 = arith.constant 0 : i32
    %c0_i32_0 = arith.constant 0 : i32
    %c0_i32_1 = arith.constant 0 : i32
    %c0_i32_2 = arith.constant 0 : i32
    return %c0_i32, %c0_i32_0, %c0_i32_1 : i32, i32, i32
  }
}

module attributes {stable_mosaic.version = 11 : i64} {
  func.func @_gemm_lrelu_bn_kernel(%arg0: i32, %arg1: memref<1x8x256xbf16, #tpu.memory_space<vmem>>, %arg2: memref<1x256x32xbf16, #tpu.memory_space<vmem>>, %arg3: memref<1x32xf32, #tpu.memory_space<vmem>>, %arg4: memref<1x32xf32, #tpu.memory_space<vmem>>, %arg5: memref<1x32xf32, #tpu.memory_space<vmem>>, %arg6: memref<1x8x32xbf16, #tpu.memory_space<vmem>>) attributes {dimension_semantics = [#tpu.dimension_semantics<arbitrary>], iteration_bounds = array<i64: 1>, scalar_prefetch = 0 : i64, scratch_operands = 0 : i64, tpu.core_type = #tpu.core_type<tc>, window_params = [{pipeline_mode = #tpu.pipeline_mode<synchronous>, transform_indices = @transform_0, window_bounds = array<i64: 1, 8, 256>}, {pipeline_mode = #tpu.pipeline_mode<synchronous>, transform_indices = @transform_1, window_bounds = array<i64: 1, 256, 32>}, {pipeline_mode = #tpu.pipeline_mode<synchronous>, transform_indices = @transform_2, window_bounds = array<i64: 1, 32>}, {pipeline_mode = #tpu.pipeline_mode<synchronous>, transform_indices = @transform_3, window_bounds = array<i64: 1, 32>}, {pipeline_mode = #tpu.pipeline_mode<synchronous>, transform_indices = @transform_4, window_bounds = array<i64: 1, 32>}, {pipeline_mode = #tpu.pipeline_mode<synchronous>, transform_indices = @transform_5, window_bounds = array<i64: 1, 8, 32>}]} {
    %cst = arith.constant 0.000000e+00 : f32
    %0 = vector.broadcast %cst : f32 to vector<1x32xf32>
    %cst_0 = arith.constant 0.000000e+00 : f32
    %1 = vector.broadcast %cst_0 : f32 to vector<1x32xf32>
    %c0 = arith.constant 0 : index
    %c0_1 = arith.constant 0 : index
    %c0_2 = arith.constant 0 : index
    %2 = vector.load %arg1[%c0, %c0_1, %c0_2] : memref<1x8x256xbf16, #tpu.memory_space<vmem>>, vector<1x8x256xbf16>
    %3 = vector.shape_cast %2 : vector<1x8x256xbf16> to vector<8x256xbf16>
    %c0_3 = arith.constant 0 : index
    %c0_4 = arith.constant 0 : index
    %c0_5 = arith.constant 0 : index
    %4 = vector.load %arg2[%c0_3, %c0_4, %c0_5] : memref<1x256x32xbf16, #tpu.memory_space<vmem>>, vector<1x256x32xbf16>
    %5 = vector.shape_cast %4 : vector<1x256x32xbf16> to vector<256x32xbf16>
    %cst_6 = arith.constant dense<0.000000e+00> : vector<8x32xf32>
    %6 = tpu.matmul %3, %5, %cst_6 {dimension_numbers = #tpu.dot_dimension_numbers<[1], [0], [0], [1], [0, 0, 1, 1], [], []>} : vector<8x256xbf16>, vector<256x32xbf16>, vector<8x32xf32> -> vector<8x32xf32>
    %c0_7 = arith.constant 0 : index
    %c0_8 = arith.constant 0 : index
    %7 = vector.load %arg3[%c0_7, %c0_8] : memref<1x32xf32, #tpu.memory_space<vmem>>, vector<1x32xf32>
    %8 = vector.broadcast %7 : vector<1x32xf32> to vector<8x32xf32>
    %9 = arith.addf %6, %8 : vector<8x32xf32>
    %cst_9 = arith.constant 0.000000e+00 : f32
    %10 = vector.broadcast %cst_9 : f32 to vector<8x32xf32>
    %11 = arith.cmpf oge, %9, %10 : vector<8x32xf32>
    %cst_10 = arith.constant 2.500000e-01 : f32
    %12 = vector.broadcast %cst_10 : f32 to vector<8x32xf32>
    %13 = arith.mulf %12, %9 : vector<8x32xf32>
    %14 = arith.select %11, %9, %13 : vector<8x32xi1>, vector<8x32xf32>
    %cst_11 = arith.constant dense<0.000000e+00> : vector<32xf32>
    %15 = vector.multi_reduction <add>, %14, %cst_11 [0] : vector<8x32xf32> to vector<32xf32>
    %16 = vector.shape_cast %15 : vector<32xf32> to vector<1x32xf32>
    %17 = arith.addf %0, %16 : vector<1x32xf32>
    %18 = arith.mulf %14, %14 : vector<8x32xf32>
    %cst_12 = arith.constant dense<0.000000e+00> : vector<32xf32>
    %19 = vector.multi_reduction <add>, %18, %cst_12 [0] : vector<8x32xf32> to vector<32xf32>
    %20 = vector.shape_cast %19 : vector<32xf32> to vector<1x32xf32>
    %21 = arith.addf %1, %20 : vector<1x32xf32>
    %cst_13 = arith.constant 1.250000e-01 : f32
    %22 = vector.broadcast %cst_13 : f32 to vector<1x32xf32>
    %23 = arith.mulf %17, %22 : vector<1x32xf32>
    %cst_14 = arith.constant 1.250000e-01 : f32
    %24 = vector.broadcast %cst_14 : f32 to vector<1x32xf32>
    %25 = arith.mulf %21, %24 : vector<1x32xf32>
    %26 = arith.mulf %23, %23 : vector<1x32xf32>
    %27 = arith.subf %25, %26 : vector<1x32xf32>
    %cst_15 = arith.constant 0.000000e+00 : f32
    %28 = vector.broadcast %cst_15 : f32 to vector<1x32xf32>
    %29 = arith.maximumf %27, %28 : vector<1x32xf32>
    %cst_16 = arith.constant 9.99999974E-6 : f32
    %30 = vector.broadcast %cst_16 : f32 to vector<1x32xf32>
    %31 = arith.addf %29, %30 : vector<1x32xf32>
    %32 = math.rsqrt %31 : vector<1x32xf32>
    %c0_17 = arith.constant 0 : index
    %c0_18 = arith.constant 0 : index
    %33 = vector.load %arg4[%c0_17, %c0_18] : memref<1x32xf32, #tpu.memory_space<vmem>>, vector<1x32xf32>
    %34 = arith.mulf %32, %33 : vector<1x32xf32>
    %c0_19 = arith.constant 0 : index
    %c0_20 = arith.constant 0 : index
    %35 = vector.load %arg5[%c0_19, %c0_20] : memref<1x32xf32, #tpu.memory_space<vmem>>, vector<1x32xf32>
    %36 = arith.mulf %23, %34 : vector<1x32xf32>
    %37 = arith.subf %35, %36 : vector<1x32xf32>
    %38 = vector.broadcast %34 : vector<1x32xf32> to vector<8x32xf32>
    %39 = arith.mulf %14, %38 : vector<8x32xf32>
    %40 = vector.broadcast %37 : vector<1x32xf32> to vector<8x32xf32>
    %41 = arith.addf %39, %40 : vector<8x32xf32>
    %42 = arith.truncf %41 : vector<8x32xf32> to vector<8x32xbf16>
    %c0_21 = arith.constant 0 : index
    %c0_22 = arith.constant 0 : index
    %c0_23 = arith.constant 0 : index
    %43 = vector.load %arg6[%c0_21, %c0_22, %c0_23] : memref<1x8x32xbf16, #tpu.memory_space<vmem>>, vector<1x8x32xbf16>
    %44 = vector.shape_cast %43 : vector<1x8x32xbf16> to vector<8x32xbf16>
    %45 = vector.shape_cast %42 : vector<8x32xbf16> to vector<1x8x32xbf16>
    tpu.vector_store %arg6[%c0_21, %c0_22, %c0_23], %45 {strides = array<i32>} : memref<1x8x32xbf16, #tpu.memory_space<vmem>>, vector<1x8x32xbf16>,
    return
  }
  func.func @transform_0(%arg0: i32) -> (i32, i32, i32) {
    %c0_i32 = arith.constant 0 : i32
    %c0_i32_0 = arith.constant 0 : i32
    %c0_i32_1 = arith.constant 0 : i32
    %c0_i32_2 = arith.constant 0 : i32
    return %c0_i32, %c0_i32_0, %c0_i32_1 : i32, i32, i32
  }
  func.func @transform_1(%arg0: i32) -> (i32, i32, i32) {
    %c0_i32 = arith.constant 0 : i32
    %c0_i32_0 = arith.constant 0 : i32
    %c0_i32_1 = arith.constant 0 : i32
    %c0_i32_2 = arith.constant 0 : i32
    return %c0_i32, %c0_i32_0, %c0_i32_1 : i32, i32, i32
  }
  func.func @transform_2(%arg0: i32) -> (i32, i32) {
    %c0_i32 = arith.constant 0 : i32
    %c0_i32_0 = arith.constant 0 : i32
    %c0_i32_1 = arith.constant 0 : i32
    return %c0_i32, %c0_i32_0 : i32, i32
  }
  func.func @transform_3(%arg0: i32) -> (i32, i32) {
    %c0_i32 = arith.constant 0 : i32
    %c0_i32_0 = arith.constant 0 : i32
    %c0_i32_1 = arith.constant 0 : i32
    return %c0_i32, %c0_i32_0 : i32, i32
  }
  func.func @transform_4(%arg0: i32) -> (i32, i32) {
    %c0_i32 = arith.constant 0 : i32
    %c0_i32_0 = arith.constant 0 : i32
    %c0_i32_1 = arith.constant 0 : i32
    return %c0_i32, %c0_i32_0 : i32, i32
  }
  func.func @transform_5(%arg0: i32) -> (i32, i32, i32) {
    %c0_i32 = arith.constant 0 : i32
    %c0_i32_0 = arith.constant 0 : i32
    %c0_i32_1 = arith.constant 0 : i32
    %c0_i32_2 = arith.constant 0 : i32
    return %c0_i32, %c0_i32_0, %c0_i32_1 : i32, i32, i32
  }
}

module attributes {stable_mosaic.version = 11 : i64} {
  func.func @_bottleneck_kernel(%arg0: i32, %arg1: memref<2x128xbf16, #tpu.memory_space<vmem>>, %arg2: memref<128x32xbf16, #tpu.memory_space<vmem>>, %arg3: memref<1x32xf32, #tpu.memory_space<vmem>>, %arg4: memref<1x32xf32, #tpu.memory_space<vmem>>, %arg5: memref<1x32xf32, #tpu.memory_space<vmem>>, %arg6: memref<32x128xbf16, #tpu.memory_space<vmem>>, %arg7: memref<1x128xf32, #tpu.memory_space<vmem>>, %arg8: memref<1x128xf32, #tpu.memory_space<vmem>>, %arg9: memref<1x128xf32, #tpu.memory_space<vmem>>, %arg10: memref<2x128xbf16, #tpu.memory_space<vmem>>) attributes {dimension_semantics = [#tpu.dimension_semantics<arbitrary>], iteration_bounds = array<i64: 1>, scalar_prefetch = 0 : i64, scratch_operands = 0 : i64, tpu.core_type = #tpu.core_type<tc>, window_params = [{pipeline_mode = #tpu.pipeline_mode<synchronous>, transform_indices = @transform_0, window_bounds = array<i64: 2, 128>}, {pipeline_mode = #tpu.pipeline_mode<synchronous>, transform_indices = @transform_1, window_bounds = array<i64: 128, 32>}, {pipeline_mode = #tpu.pipeline_mode<synchronous>, transform_indices = @transform_2, window_bounds = array<i64: 1, 32>}, {pipeline_mode = #tpu.pipeline_mode<synchronous>, transform_indices = @transform_3, window_bounds = array<i64: 1, 32>}, {pipeline_mode = #tpu.pipeline_mode<synchronous>, transform_indices = @transform_4, window_bounds = array<i64: 1, 32>}, {pipeline_mode = #tpu.pipeline_mode<synchronous>, transform_indices = @transform_5, window_bounds = array<i64: 32, 128>}, {pipeline_mode = #tpu.pipeline_mode<synchronous>, transform_indices = @transform_6, window_bounds = array<i64: 1, 128>}, {pipeline_mode = #tpu.pipeline_mode<synchronous>, transform_indices = @transform_7, window_bounds = array<i64: 1, 128>}, {pipeline_mode = #tpu.pipeline_mode<synchronous>, transform_indices = @transform_8, window_bounds = array<i64: 1, 128>}, {pipeline_mode = #tpu.pipeline_mode<synchronous>, transform_indices = @transform_9, window_bounds = array<i64: 2, 128>}]} {
    %c0 = arith.constant 0 : index
    %c0_0 = arith.constant 0 : index
    %0 = vector.load %arg1[%c0, %c0_0] : memref<2x128xbf16, #tpu.memory_space<vmem>>, vector<2x128xbf16>
    %c0_1 = arith.constant 0 : index
    %c0_2 = arith.constant 0 : index
    %1 = vector.load %arg2[%c0_1, %c0_2] : memref<128x32xbf16, #tpu.memory_space<vmem>>, vector<128x32xbf16>
    %cst = arith.constant dense<0.000000e+00> : vector<2x32xf32>
    %2 = tpu.matmul %0, %1, %cst {dimension_numbers = #tpu.dot_dimension_numbers<[1], [0], [0], [1], [0, 0, 1, 1], [], []>} : vector<2x128xbf16>, vector<128x32xbf16>, vector<2x32xf32> -> vector<2x32xf32>
    %c0_3 = arith.constant 0 : index
    %c0_4 = arith.constant 0 : index
    %3 = vector.load %arg3[%c0_3, %c0_4] : memref<1x32xf32, #tpu.memory_space<vmem>>, vector<1x32xf32>
    %4 = vector.broadcast %3 : vector<1x32xf32> to vector<2x32xf32>
    %5 = arith.addf %2, %4 : vector<2x32xf32>
    %cst_5 = arith.constant 0.000000e+00 : f32
    %6 = vector.broadcast %cst_5 : f32 to vector<2x32xf32>
    %7 = arith.cmpf oge, %5, %6 : vector<2x32xf32>
    %cst_6 = arith.constant 2.500000e-01 : f32
    %8 = vector.broadcast %cst_6 : f32 to vector<2x32xf32>
    %9 = arith.mulf %8, %5 : vector<2x32xf32>
    %10 = arith.select %7, %5, %9 : vector<2x32xi1>, vector<2x32xf32>
    %cst_7 = arith.constant dense<0.000000e+00> : vector<32xf32>
    %11 = vector.multi_reduction <add>, %10, %cst_7 [0] : vector<2x32xf32> to vector<32xf32>
    %12 = vector.shape_cast %11 : vector<32xf32> to vector<1x32xf32>
    %cst_8 = arith.constant 5.000000e-01 : f32
    %13 = vector.broadcast %cst_8 : f32 to vector<1x32xf32>
    %14 = arith.mulf %12, %13 : vector<1x32xf32>
    %15 = arith.mulf %10, %10 : vector<2x32xf32>
    %cst_9 = arith.constant dense<0.000000e+00> : vector<32xf32>
    %16 = vector.multi_reduction <add>, %15, %cst_9 [0] : vector<2x32xf32> to vector<32xf32>
    %17 = vector.shape_cast %16 : vector<32xf32> to vector<1x32xf32>
    %cst_10 = arith.constant 5.000000e-01 : f32
    %18 = vector.broadcast %cst_10 : f32 to vector<1x32xf32>
    %19 = arith.mulf %17, %18 : vector<1x32xf32>
    %20 = arith.mulf %14, %14 : vector<1x32xf32>
    %21 = arith.subf %19, %20 : vector<1x32xf32>
    %cst_11 = arith.constant 0.000000e+00 : f32
    %22 = vector.broadcast %cst_11 : f32 to vector<1x32xf32>
    %23 = arith.maximumf %21, %22 : vector<1x32xf32>
    %cst_12 = arith.constant 9.99999974E-6 : f32
    %24 = vector.broadcast %cst_12 : f32 to vector<1x32xf32>
    %25 = arith.addf %23, %24 : vector<1x32xf32>
    %26 = math.rsqrt %25 : vector<1x32xf32>
    %c0_13 = arith.constant 0 : index
    %c0_14 = arith.constant 0 : index
    %27 = vector.load %arg4[%c0_13, %c0_14] : memref<1x32xf32, #tpu.memory_space<vmem>>, vector<1x32xf32>
    %28 = arith.mulf %26, %27 : vector<1x32xf32>
    %29 = vector.broadcast %14 : vector<1x32xf32> to vector<2x32xf32>
    %30 = arith.subf %10, %29 : vector<2x32xf32>
    %31 = vector.broadcast %28 : vector<1x32xf32> to vector<2x32xf32>
    %32 = arith.mulf %30, %31 : vector<2x32xf32>
    %c0_15 = arith.constant 0 : index
    %c0_16 = arith.constant 0 : index
    %33 = vector.load %arg5[%c0_15, %c0_16] : memref<1x32xf32, #tpu.memory_space<vmem>>, vector<1x32xf32>
    %34 = vector.broadcast %33 : vector<1x32xf32> to vector<2x32xf32>
    %35 = arith.addf %32, %34 : vector<2x32xf32>
    %36 = arith.truncf %35 : vector<2x32xf32> to vector<2x32xbf16>
    %c0_17 = arith.constant 0 : index
    %c0_18 = arith.constant 0 : index
    %37 = vector.load %arg6[%c0_17, %c0_18] : memref<32x128xbf16, #tpu.memory_space<vmem>>, vector<32x128xbf16>
    %cst_19 = arith.constant dense<0.000000e+00> : vector<2x128xf32>
    %38 = tpu.matmul %36, %37, %cst_19 {dimension_numbers = #tpu.dot_dimension_numbers<[1], [0], [0], [1], [0, 0, 1, 1], [], []>} : vector<2x32xbf16>, vector<32x128xbf16>, vector<2x128xf32> -> vector<2x128xf32>
    %c0_20 = arith.constant 0 : index
    %c0_21 = arith.constant 0 : index
    %39 = vector.load %arg7[%c0_20, %c0_21] : memref<1x128xf32, #tpu.memory_space<vmem>>, vector<1x128xf32>
    %40 = vector.broadcast %39 : vector<1x128xf32> to vector<2x128xf32>
    %41 = arith.addf %38, %40 : vector<2x128xf32>
    %cst_22 = arith.constant 0.000000e+00 : f32
    %42 = vector.broadcast %cst_22 : f32 to vector<2x128xf32>
    %43 = arith.cmpf oge, %41, %42 : vector<2x128xf32>
    %cst_23 = arith.constant 2.500000e-01 : f32
    %44 = vector.broadcast %cst_23 : f32 to vector<2x128xf32>
    %45 = arith.mulf %44, %41 : vector<2x128xf32>
    %46 = arith.select %43, %41, %45 : vector<2x128xi1>, vector<2x128xf32>
    %cst_24 = arith.constant dense<0.000000e+00> : vector<128xf32>
    %47 = vector.multi_reduction <add>, %46, %cst_24 [0] : vector<2x128xf32> to vector<128xf32>
    %48 = vector.shape_cast %47 : vector<128xf32> to vector<1x128xf32>
    %cst_25 = arith.constant 5.000000e-01 : f32
    %49 = vector.broadcast %cst_25 : f32 to vector<1x128xf32>
    %50 = arith.mulf %48, %49 : vector<1x128xf32>
    %51 = arith.mulf %46, %46 : vector<2x128xf32>
    %cst_26 = arith.constant dense<0.000000e+00> : vector<128xf32>
    %52 = vector.multi_reduction <add>, %51, %cst_26 [0] : vector<2x128xf32> to vector<128xf32>
    %53 = vector.shape_cast %52 : vector<128xf32> to vector<1x128xf32>
    %cst_27 = arith.constant 5.000000e-01 : f32
    %54 = vector.broadcast %cst_27 : f32 to vector<1x128xf32>
    %55 = arith.mulf %53, %54 : vector<1x128xf32>
    %56 = arith.mulf %50, %50 : vector<1x128xf32>
    %57 = arith.subf %55, %56 : vector<1x128xf32>
    %cst_28 = arith.constant 0.000000e+00 : f32
    %58 = vector.broadcast %cst_28 : f32 to vector<1x128xf32>
    %59 = arith.maximumf %57, %58 : vector<1x128xf32>
    %cst_29 = arith.constant 9.99999974E-6 : f32
    %60 = vector.broadcast %cst_29 : f32 to vector<1x128xf32>
    %61 = arith.addf %59, %60 : vector<1x128xf32>
    %62 = math.rsqrt %61 : vector<1x128xf32>
    %c0_30 = arith.constant 0 : index
    %c0_31 = arith.constant 0 : index
    %63 = vector.load %arg8[%c0_30, %c0_31] : memref<1x128xf32, #tpu.memory_space<vmem>>, vector<1x128xf32>
    %64 = arith.mulf %62, %63 : vector<1x128xf32>
    %65 = vector.broadcast %50 : vector<1x128xf32> to vector<2x128xf32>
    %66 = arith.subf %46, %65 : vector<2x128xf32>
    %67 = vector.broadcast %64 : vector<1x128xf32> to vector<2x128xf32>
    %68 = arith.mulf %66, %67 : vector<2x128xf32>
    %c0_32 = arith.constant 0 : index
    %c0_33 = arith.constant 0 : index
    %69 = vector.load %arg9[%c0_32, %c0_33] : memref<1x128xf32, #tpu.memory_space<vmem>>, vector<1x128xf32>
    %70 = vector.broadcast %69 : vector<1x128xf32> to vector<2x128xf32>
    %71 = arith.addf %68, %70 : vector<2x128xf32>
    %72 = arith.truncf %71 : vector<2x128xf32> to vector<2x128xbf16>
    %c0_34 = arith.constant 0 : index
    %c0_35 = arith.constant 0 : index
    %73 = vector.load %arg10[%c0_34, %c0_35] : memref<2x128xbf16, #tpu.memory_space<vmem>>, vector<2x128xbf16>
    tpu.vector_store %arg10[%c0_34, %c0_35], %72 {strides = array<i32>} : memref<2x128xbf16, #tpu.memory_space<vmem>>, vector<2x128xbf16>,
    return
  }
  func.func @transform_0(%arg0: i32) -> (i32, i32) {
    %c0_i32 = arith.constant 0 : i32
    %c0_i32_0 = arith.constant 0 : i32
    %c0_i32_1 = arith.constant 0 : i32
    return %c0_i32, %c0_i32_0 : i32, i32
  }
  func.func @transform_1(%arg0: i32) -> (i32, i32) {
    %c0_i32 = arith.constant 0 : i32
    %c0_i32_0 = arith.constant 0 : i32
    %c0_i32_1 = arith.constant 0 : i32
    return %c0_i32, %c0_i32_0 : i32, i32
  }
  func.func @transform_2(%arg0: i32) -> (i32, i32) {
    %c0_i32 = arith.constant 0 : i32
    %c0_i32_0 = arith.constant 0 : i32
    %c0_i32_1 = arith.constant 0 : i32
    return %c0_i32, %c0_i32_0 : i32, i32
  }
  func.func @transform_3(%arg0: i32) -> (i32, i32) {
    %c0_i32 = arith.constant 0 : i32
    %c0_i32_0 = arith.constant 0 : i32
    %c0_i32_1 = arith.constant 0 : i32
    return %c0_i32, %c0_i32_0 : i32, i32
  }
  func.func @transform_4(%arg0: i32) -> (i32, i32) {
    %c0_i32 = arith.constant 0 : i32
    %c0_i32_0 = arith.constant 0 : i32
    %c0_i32_1 = arith.constant 0 : i32
    return %c0_i32, %c0_i32_0 : i32, i32
  }
  func.func @transform_5(%arg0: i32) -> (i32, i32) {
    %c0_i32 = arith.constant 0 : i32
    %c0_i32_0 = arith.constant 0 : i32
    %c0_i32_1 = arith.constant 0 : i32
    return %c0_i32, %c0_i32_0 : i32, i32
  }
  func.func @transform_6(%arg0: i32) -> (i32, i32) {
    %c0_i32 = arith.constant 0 : i32
    %c0_i32_0 = arith.constant 0 : i32
    %c0_i32_1 = arith.constant 0 : i32
    return %c0_i32, %c0_i32_0 : i32, i32
  }
  func.func @transform_7(%arg0: i32) -> (i32, i32) {
    %c0_i32 = arith.constant 0 : i32
    %c0_i32_0 = arith.constant 0 : i32
    %c0_i32_1 = arith.constant 0 : i32
    return %c0_i32, %c0_i32_0 : i32, i32
  }
  func.func @transform_8(%arg0: i32) -> (i32, i32) {
    %c0_i32 = arith.constant 0 : i32
    %c0_i32_0 = arith.constant 0 : i32
    %c0_i32_1 = arith.constant 0 : i32
    return %c0_i32, %c0_i32_0 : i32, i32
  }
  func.func @transform_9(%arg0: i32) -> (i32, i32) {
    %c0_i32 = arith.constant 0 : i32
    %c0_i32_0 = arith.constant 0 : i32
    %c0_i32_1 = arith.constant 0 : i32
    return %c0_i32, %c0_i32_0 : i32, i32
  }
}

module attributes {stable_mosaic.version = 11 : i64} {
  func.func @_gemm_lrelu_bn_kernel(%arg0: i32, %arg1: memref<4x8x128xbf16, #tpu.memory_space<vmem>>, %arg2: memref<4x128x16xbf16, #tpu.memory_space<vmem>>, %arg3: memref<1x16xf32, #tpu.memory_space<vmem>>, %arg4: memref<1x16xf32, #tpu.memory_space<vmem>>, %arg5: memref<1x16xf32, #tpu.memory_space<vmem>>, %arg6: memref<4x8x16xbf16, #tpu.memory_space<vmem>>) attributes {dimension_semantics = [#tpu.dimension_semantics<arbitrary>], iteration_bounds = array<i64: 1>, scalar_prefetch = 0 : i64, scratch_operands = 0 : i64, tpu.core_type = #tpu.core_type<tc>, window_params = [{pipeline_mode = #tpu.pipeline_mode<synchronous>, transform_indices = @transform_0, window_bounds = array<i64: 4, 8, 128>}, {pipeline_mode = #tpu.pipeline_mode<synchronous>, transform_indices = @transform_1, window_bounds = array<i64: 4, 128, 16>}, {pipeline_mode = #tpu.pipeline_mode<synchronous>, transform_indices = @transform_2, window_bounds = array<i64: 1, 16>}, {pipeline_mode = #tpu.pipeline_mode<synchronous>, transform_indices = @transform_3, window_bounds = array<i64: 1, 16>}, {pipeline_mode = #tpu.pipeline_mode<synchronous>, transform_indices = @transform_4, window_bounds = array<i64: 1, 16>}, {pipeline_mode = #tpu.pipeline_mode<synchronous>, transform_indices = @transform_5, window_bounds = array<i64: 4, 8, 16>}]} {
    %cst = arith.constant 0.000000e+00 : f32
    %0 = vector.broadcast %cst : f32 to vector<1x16xf32>
    %cst_0 = arith.constant 0.000000e+00 : f32
    %1 = vector.broadcast %cst_0 : f32 to vector<1x16xf32>
    %c0 = arith.constant 0 : index
    %c0_1 = arith.constant 0 : index
    %c0_2 = arith.constant 0 : index
    %2 = vector.load %arg1[%c0, %c0_1, %c0_2] : memref<4x8x128xbf16, #tpu.memory_space<vmem>>, vector<1x8x128xbf16>
    %3 = vector.shape_cast %2 : vector<1x8x128xbf16> to vector<8x128xbf16>
    %c0_3 = arith.constant 0 : index
    %c0_4 = arith.constant 0 : index
    %c0_5 = arith.constant 0 : index
    %4 = vector.load %arg2[%c0_3, %c0_4, %c0_5] : memref<4x128x16xbf16, #tpu.memory_space<vmem>>, vector<1x128x16xbf16>
    %5 = vector.shape_cast %4 : vector<1x128x16xbf16> to vector<128x16xbf16>
    %cst_6 = arith.constant dense<0.000000e+00> : vector<8x16xf32>
    %6 = tpu.matmul %3, %5, %cst_6 {dimension_numbers = #tpu.dot_dimension_numbers<[1], [0], [0], [1], [0, 0, 1, 1], [], []>} : vector<8x128xbf16>, vector<128x16xbf16>, vector<8x16xf32> -> vector<8x16xf32>
    %c0_7 = arith.constant 0 : index
    %c0_8 = arith.constant 0 : index
    %7 = vector.load %arg3[%c0_7, %c0_8] : memref<1x16xf32, #tpu.memory_space<vmem>>, vector<1x16xf32>
    %8 = vector.broadcast %7 : vector<1x16xf32> to vector<8x16xf32>
    %9 = arith.addf %6, %8 : vector<8x16xf32>
    %cst_9 = arith.constant 0.000000e+00 : f32
    %10 = vector.broadcast %cst_9 : f32 to vector<8x16xf32>
    %11 = arith.cmpf oge, %9, %10 : vector<8x16xf32>
    %cst_10 = arith.constant 2.500000e-01 : f32
    %12 = vector.broadcast %cst_10 : f32 to vector<8x16xf32>
    %13 = arith.mulf %12, %9 : vector<8x16xf32>
    %14 = arith.select %11, %9, %13 : vector<8x16xi1>, vector<8x16xf32>
    %cst_11 = arith.constant dense<0.000000e+00> : vector<16xf32>
    %15 = vector.multi_reduction <add>, %14, %cst_11 [0] : vector<8x16xf32> to vector<16xf32>
    %16 = vector.shape_cast %15 : vector<16xf32> to vector<1x16xf32>
    %17 = arith.addf %0, %16 : vector<1x16xf32>
    %18 = arith.mulf %14, %14 : vector<8x16xf32>
    %cst_12 = arith.constant dense<0.000000e+00> : vector<16xf32>
    %19 = vector.multi_reduction <add>, %18, %cst_12 [0] : vector<8x16xf32> to vector<16xf32>
    %20 = vector.shape_cast %19 : vector<16xf32> to vector<1x16xf32>
    %21 = arith.addf %1, %20 : vector<1x16xf32>
    %c1 = arith.constant 1 : index
    %c0_13 = arith.constant 0 : index
    %c0_14 = arith.constant 0 : index
    %22 = vector.load %arg1[%c1, %c0_13, %c0_14] : memref<4x8x128xbf16, #tpu.memory_space<vmem>>, vector<1x8x128xbf16>
    %23 = vector.shape_cast %22 : vector<1x8x128xbf16> to vector<8x128xbf16>
    %c1_15 = arith.constant 1 : index
    %c0_16 = arith.constant 0 : index
    %c0_17 = arith.constant 0 : index
    %24 = vector.load %arg2[%c1_15, %c0_16, %c0_17] : memref<4x128x16xbf16, #tpu.memory_space<vmem>>, vector<1x128x16xbf16>
    %25 = vector.shape_cast %24 : vector<1x128x16xbf16> to vector<128x16xbf16>
    %cst_18 = arith.constant dense<0.000000e+00> : vector<8x16xf32>
    %26 = tpu.matmul %23, %25, %cst_18 {dimension_numbers = #tpu.dot_dimension_numbers<[1], [0], [0], [1], [0, 0, 1, 1], [], []>} : vector<8x128xbf16>, vector<128x16xbf16>, vector<8x16xf32> -> vector<8x16xf32>
    %c0_19 = arith.constant 0 : index
    %c0_20 = arith.constant 0 : index
    %27 = vector.load %arg3[%c0_19, %c0_20] : memref<1x16xf32, #tpu.memory_space<vmem>>, vector<1x16xf32>
    %28 = vector.broadcast %27 : vector<1x16xf32> to vector<8x16xf32>
    %29 = arith.addf %26, %28 : vector<8x16xf32>
    %cst_21 = arith.constant 0.000000e+00 : f32
    %30 = vector.broadcast %cst_21 : f32 to vector<8x16xf32>
    %31 = arith.cmpf oge, %29, %30 : vector<8x16xf32>
    %cst_22 = arith.constant 2.500000e-01 : f32
    %32 = vector.broadcast %cst_22 : f32 to vector<8x16xf32>
    %33 = arith.mulf %32, %29 : vector<8x16xf32>
    %34 = arith.select %31, %29, %33 : vector<8x16xi1>, vector<8x16xf32>
    %cst_23 = arith.constant dense<0.000000e+00> : vector<16xf32>
    %35 = vector.multi_reduction <add>, %34, %cst_23 [0] : vector<8x16xf32> to vector<16xf32>
    %36 = vector.shape_cast %35 : vector<16xf32> to vector<1x16xf32>
    %37 = arith.addf %17, %36 : vector<1x16xf32>
    %38 = arith.mulf %34, %34 : vector<8x16xf32>
    %cst_24 = arith.constant dense<0.000000e+00> : vector<16xf32>
    %39 = vector.multi_reduction <add>, %38, %cst_24 [0] : vector<8x16xf32> to vector<16xf32>
    %40 = vector.shape_cast %39 : vector<16xf32> to vector<1x16xf32>
    %41 = arith.addf %21, %40 : vector<1x16xf32>
    %c2 = arith.constant 2 : index
    %c0_25 = arith.constant 0 : index
    %c0_26 = arith.constant 0 : index
    %42 = vector.load %arg1[%c2, %c0_25, %c0_26] : memref<4x8x128xbf16, #tpu.memory_space<vmem>>, vector<1x8x128xbf16>
    %43 = vector.shape_cast %42 : vector<1x8x128xbf16> to vector<8x128xbf16>
    %c2_27 = arith.constant 2 : index
    %c0_28 = arith.constant 0 : index
    %c0_29 = arith.constant 0 : index
    %44 = vector.load %arg2[%c2_27, %c0_28, %c0_29] : memref<4x128x16xbf16, #tpu.memory_space<vmem>>, vector<1x128x16xbf16>
    %45 = vector.shape_cast %44 : vector<1x128x16xbf16> to vector<128x16xbf16>
    %cst_30 = arith.constant dense<0.000000e+00> : vector<8x16xf32>
    %46 = tpu.matmul %43, %45, %cst_30 {dimension_numbers = #tpu.dot_dimension_numbers<[1], [0], [0], [1], [0, 0, 1, 1], [], []>} : vector<8x128xbf16>, vector<128x16xbf16>, vector<8x16xf32> -> vector<8x16xf32>
    %c0_31 = arith.constant 0 : index
    %c0_32 = arith.constant 0 : index
    %47 = vector.load %arg3[%c0_31, %c0_32] : memref<1x16xf32, #tpu.memory_space<vmem>>, vector<1x16xf32>
    %48 = vector.broadcast %47 : vector<1x16xf32> to vector<8x16xf32>
    %49 = arith.addf %46, %48 : vector<8x16xf32>
    %cst_33 = arith.constant 0.000000e+00 : f32
    %50 = vector.broadcast %cst_33 : f32 to vector<8x16xf32>
    %51 = arith.cmpf oge, %49, %50 : vector<8x16xf32>
    %cst_34 = arith.constant 2.500000e-01 : f32
    %52 = vector.broadcast %cst_34 : f32 to vector<8x16xf32>
    %53 = arith.mulf %52, %49 : vector<8x16xf32>
    %54 = arith.select %51, %49, %53 : vector<8x16xi1>, vector<8x16xf32>
    %cst_35 = arith.constant dense<0.000000e+00> : vector<16xf32>
    %55 = vector.multi_reduction <add>, %54, %cst_35 [0] : vector<8x16xf32> to vector<16xf32>
    %56 = vector.shape_cast %55 : vector<16xf32> to vector<1x16xf32>
    %57 = arith.addf %37, %56 : vector<1x16xf32>
    %58 = arith.mulf %54, %54 : vector<8x16xf32>
    %cst_36 = arith.constant dense<0.000000e+00> : vector<16xf32>
    %59 = vector.multi_reduction <add>, %58, %cst_36 [0] : vector<8x16xf32> to vector<16xf32>
    %60 = vector.shape_cast %59 : vector<16xf32> to vector<1x16xf32>
    %61 = arith.addf %41, %60 : vector<1x16xf32>
    %c3 = arith.constant 3 : index
    %c0_37 = arith.constant 0 : index
    %c0_38 = arith.constant 0 : index
    %62 = vector.load %arg1[%c3, %c0_37, %c0_38] : memref<4x8x128xbf16, #tpu.memory_space<vmem>>, vector<1x8x128xbf16>
    %63 = vector.shape_cast %62 : vector<1x8x128xbf16> to vector<8x128xbf16>
    %c3_39 = arith.constant 3 : index
    %c0_40 = arith.constant 0 : index
    %c0_41 = arith.constant 0 : index
    %64 = vector.load %arg2[%c3_39, %c0_40, %c0_41] : memref<4x128x16xbf16, #tpu.memory_space<vmem>>, vector<1x128x16xbf16>
    %65 = vector.shape_cast %64 : vector<1x128x16xbf16> to vector<128x16xbf16>
    %cst_42 = arith.constant dense<0.000000e+00> : vector<8x16xf32>
    %66 = tpu.matmul %63, %65, %cst_42 {dimension_numbers = #tpu.dot_dimension_numbers<[1], [0], [0], [1], [0, 0, 1, 1], [], []>} : vector<8x128xbf16>, vector<128x16xbf16>, vector<8x16xf32> -> vector<8x16xf32>
    %c0_43 = arith.constant 0 : index
    %c0_44 = arith.constant 0 : index
    %67 = vector.load %arg3[%c0_43, %c0_44] : memref<1x16xf32, #tpu.memory_space<vmem>>, vector<1x16xf32>
    %68 = vector.broadcast %67 : vector<1x16xf32> to vector<8x16xf32>
    %69 = arith.addf %66, %68 : vector<8x16xf32>
    %cst_45 = arith.constant 0.000000e+00 : f32
    %70 = vector.broadcast %cst_45 : f32 to vector<8x16xf32>
    %71 = arith.cmpf oge, %69, %70 : vector<8x16xf32>
    %cst_46 = arith.constant 2.500000e-01 : f32
    %72 = vector.broadcast %cst_46 : f32 to vector<8x16xf32>
    %73 = arith.mulf %72, %69 : vector<8x16xf32>
    %74 = arith.select %71, %69, %73 : vector<8x16xi1>, vector<8x16xf32>
    %cst_47 = arith.constant dense<0.000000e+00> : vector<16xf32>
    %75 = vector.multi_reduction <add>, %74, %cst_47 [0] : vector<8x16xf32> to vector<16xf32>
    %76 = vector.shape_cast %75 : vector<16xf32> to vector<1x16xf32>
    %77 = arith.addf %57, %76 : vector<1x16xf32>
    %78 = arith.mulf %74, %74 : vector<8x16xf32>
    %cst_48 = arith.constant dense<0.000000e+00> : vector<16xf32>
    %79 = vector.multi_reduction <add>, %78, %cst_48 [0] : vector<8x16xf32> to vector<16xf32>
    %80 = vector.shape_cast %79 : vector<16xf32> to vector<1x16xf32>
    %81 = arith.addf %61, %80 : vector<1x16xf32>
    %cst_49 = arith.constant 3.125000e-02 : f32
    %82 = vector.broadcast %cst_49 : f32 to vector<1x16xf32>
    %83 = arith.mulf %77, %82 : vector<1x16xf32>
    %cst_50 = arith.constant 3.125000e-02 : f32
    %84 = vector.broadcast %cst_50 : f32 to vector<1x16xf32>
    %85 = arith.mulf %81, %84 : vector<1x16xf32>
    %86 = arith.mulf %83, %83 : vector<1x16xf32>
    %87 = arith.subf %85, %86 : vector<1x16xf32>
    %cst_51 = arith.constant 0.000000e+00 : f32
    %88 = vector.broadcast %cst_51 : f32 to vector<1x16xf32>
    %89 = arith.maximumf %87, %88 : vector<1x16xf32>
    %cst_52 = arith.constant 9.99999974E-6 : f32
    %90 = vector.broadcast %cst_52 : f32 to vector<1x16xf32>
    %91 = arith.addf %89, %90 : vector<1x16xf32>
    %92 = math.rsqrt %91 : vector<1x16xf32>
    %c0_53 = arith.constant 0 : index
    %c0_54 = arith.constant 0 : index
    %93 = vector.load %arg4[%c0_53, %c0_54] : memref<1x16xf32, #tpu.memory_space<vmem>>, vector<1x16xf32>
    %94 = arith.mulf %92, %93 : vector<1x16xf32>
    %c0_55 = arith.constant 0 : index
    %c0_56 = arith.constant 0 : index
    %95 = vector.load %arg5[%c0_55, %c0_56] : memref<1x16xf32, #tpu.memory_space<vmem>>, vector<1x16xf32>
    %96 = arith.mulf %83, %94 : vector<1x16xf32>
    %97 = arith.subf %95, %96 : vector<1x16xf32>
    %98 = vector.broadcast %94 : vector<1x16xf32> to vector<8x16xf32>
    %99 = arith.mulf %14, %98 : vector<8x16xf32>
    %100 = vector.broadcast %97 : vector<1x16xf32> to vector<8x16xf32>
    %101 = arith.addf %99, %100 : vector<8x16xf32>
    %102 = arith.truncf %101 : vector<8x16xf32> to vector<8x16xbf16>
    %c0_57 = arith.constant 0 : index
    %c0_58 = arith.constant 0 : index
    %c0_59 = arith.constant 0 : index
    %103 = vector.load %arg6[%c0_57, %c0_58, %c0_59] : memref<4x8x16xbf16, #tpu.memory_space<vmem>>, vector<1x8x16xbf16>
    %104 = vector.shape_cast %103 : vector<1x8x16xbf16> to vector<8x16xbf16>
    %105 = vector.shape_cast %102 : vector<8x16xbf16> to vector<1x8x16xbf16>
    tpu.vector_store %arg6[%c0_57, %c0_58, %c0_59], %105 {strides = array<i32>} : memref<4x8x16xbf16, #tpu.memory_space<vmem>>, vector<1x8x16xbf16>,
    %106 = vector.broadcast %94 : vector<1x16xf32> to vector<8x16xf32>
    %107 = arith.mulf %34, %106 : vector<8x16xf32>
    %108 = vector.broadcast %97 : vector<1x16xf32> to vector<8x16xf32>
    %109 = arith.addf %107, %108 : vector<8x16xf32>
    %110 = arith.truncf %109 : vector<8x16xf32> to vector<8x16xbf16>
    %c1_60 = arith.constant 1 : index
    %c0_61 = arith.constant 0 : index
    %c0_62 = arith.constant 0 : index
    %111 = vector.load %arg6[%c1_60, %c0_61, %c0_62] : memref<4x8x16xbf16, #tpu.memory_space<vmem>>, vector<1x8x16xbf16>
    %112 = vector.shape_cast %111 : vector<1x8x16xbf16> to vector<8x16xbf16>
    %113 = vector.shape_cast %110 : vector<8x16xbf16> to vector<1x8x16xbf16>
    tpu.vector_store %arg6[%c1_60, %c0_61, %c0_62], %113 {strides = array<i32>} : memref<4x8x16xbf16, #tpu.memory_space<vmem>>, vector<1x8x16xbf16>,
    %114 = vector.broadcast %94 : vector<1x16xf32> to vector<8x16xf32>
    %115 = arith.mulf %54, %114 : vector<8x16xf32>
    %116 = vector.broadcast %97 : vector<1x16xf32> to vector<8x16xf32>
    %117 = arith.addf %115, %116 : vector<8x16xf32>
    %118 = arith.truncf %117 : vector<8x16xf32> to vector<8x16xbf16>
    %c2_63 = arith.constant 2 : index
    %c0_64 = arith.constant 0 : index
    %c0_65 = arith.constant 0 : index
    %119 = vector.load %arg6[%c2_63, %c0_64, %c0_65] : memref<4x8x16xbf16, #tpu.memory_space<vmem>>, vector<1x8x16xbf16>
    %120 = vector.shape_cast %119 : vector<1x8x16xbf16> to vector<8x16xbf16>
    %121 = vector.shape_cast %118 : vector<8x16xbf16> to vector<1x8x16xbf16>
    tpu.vector_store %arg6[%c2_63, %c0_64, %c0_65], %121 {strides = array<i32>} : memref<4x8x16xbf16, #tpu.memory_space<vmem>>, vector<1x8x16xbf16>,
    %122 = vector.broadcast %94 : vector<1x16xf32> to vector<8x16xf32>
    %123 = arith.mulf %74, %122 : vector<8x16xf32>
    %124 = vector.broadcast %97 : vector<1x16xf32> to vector<8x16xf32>
    %125 = arith.addf %123, %124 : vector<8x16xf32>
    %126 = arith.truncf %125 : vector<8x16xf32> to vector<8x16xbf16>
    %c3_66 = arith.constant 3 : index
    %c0_67 = arith.constant 0 : index
    %c0_68 = arith.constant 0 : index
    %127 = vector.load %arg6[%c3_66, %c0_67, %c0_68] : memref<4x8x16xbf16, #tpu.memory_space<vmem>>, vector<1x8x16xbf16>
    %128 = vector.shape_cast %127 : vector<1x8x16xbf16> to vector<8x16xbf16>
    %129 = vector.shape_cast %126 : vector<8x16xbf16> to vector<1x8x16xbf16>
    tpu.vector_store %arg6[%c3_66, %c0_67, %c0_68], %129 {strides = array<i32>} : memref<4x8x16xbf16, #tpu.memory_space<vmem>>, vector<1x8x16xbf16>,
    return
  }
  func.func @transform_0(%arg0: i32) -> (i32, i32, i32) {
    %c0_i32 = arith.constant 0 : i32
    %c0_i32_0 = arith.constant 0 : i32
    %c0_i32_1 = arith.constant 0 : i32
    %c0_i32_2 = arith.constant 0 : i32
    return %c0_i32, %c0_i32_0, %c0_i32_1 : i32, i32, i32
  }
  func.func @transform_1(%arg0: i32) -> (i32, i32, i32) {
    %c0_i32 = arith.constant 0 : i32
    %c0_i32_0 = arith.constant 0 : i32
    %c0_i32_1 = arith.constant 0 : i32
    %c0_i32_2 = arith.constant 0 : i32
    return %c0_i32, %c0_i32_0, %c0_i32_1 : i32, i32, i32
  }
  func.func @transform_2(%arg0: i32) -> (i32, i32) {
    %c0_i32 = arith.constant 0 : i32
    %c0_i32_0 = arith.constant 0 : i32
    %c0_i32_1 = arith.constant 0 : i32
    return %c0_i32, %c0_i32_0 : i32, i32
  }
  func.func @transform_3(%arg0: i32) -> (i32, i32) {
    %c0_i32 = arith.constant 0 : i32
    %c0_i32_0 = arith.constant 0 : i32
    %c0_i32_1 = arith.constant 0 : i32
    return %c0_i32, %c0_i32_0 : i32, i32
  }
  func.func @transform_4(%arg0: i32) -> (i32, i32) {
    %c0_i32 = arith.constant 0 : i32
    %c0_i32_0 = arith.constant 0 : i32
    %c0_i32_1 = arith.constant 0 : i32
    return %c0_i32, %c0_i32_0 : i32, i32
  }
  func.func @transform_5(%arg0: i32) -> (i32, i32, i32) {
    %c0_i32 = arith.constant 0 : i32
    %c0_i32_0 = arith.constant 0 : i32
    %c0_i32_1 = arith.constant 0 : i32
    %c0_i32_2 = arith.constant 0 : i32
    return %c0_i32, %c0_i32_0, %c0_i32_1 : i32, i32, i32
  }
}

module attributes {stable_mosaic.version = 11 : i64} {
  func.func @_gemm_lrelu_bn_kernel(%arg0: i32, %arg1: memref<4x32x64xbf16, #tpu.memory_space<vmem>>, %arg2: memref<4x64x8xbf16, #tpu.memory_space<vmem>>, %arg3: memref<1x8xf32, #tpu.memory_space<vmem>>, %arg4: memref<1x8xf32, #tpu.memory_space<vmem>>, %arg5: memref<1x8xf32, #tpu.memory_space<vmem>>, %arg6: memref<4x32x8xbf16, #tpu.memory_space<vmem>>) attributes {dimension_semantics = [#tpu.dimension_semantics<arbitrary>], iteration_bounds = array<i64: 1>, scalar_prefetch = 0 : i64, scratch_operands = 0 : i64, tpu.core_type = #tpu.core_type<tc>, window_params = [{pipeline_mode = #tpu.pipeline_mode<synchronous>, transform_indices = @transform_0, window_bounds = array<i64: 4, 32, 64>}, {pipeline_mode = #tpu.pipeline_mode<synchronous>, transform_indices = @transform_1, window_bounds = array<i64: 4, 64, 8>}, {pipeline_mode = #tpu.pipeline_mode<synchronous>, transform_indices = @transform_2, window_bounds = array<i64: 1, 8>}, {pipeline_mode = #tpu.pipeline_mode<synchronous>, transform_indices = @transform_3, window_bounds = array<i64: 1, 8>}, {pipeline_mode = #tpu.pipeline_mode<synchronous>, transform_indices = @transform_4, window_bounds = array<i64: 1, 8>}, {pipeline_mode = #tpu.pipeline_mode<synchronous>, transform_indices = @transform_5, window_bounds = array<i64: 4, 32, 8>}]} {
    %cst = arith.constant 0.000000e+00 : f32
    %0 = vector.broadcast %cst : f32 to vector<1x8xf32>
    %cst_0 = arith.constant 0.000000e+00 : f32
    %1 = vector.broadcast %cst_0 : f32 to vector<1x8xf32>
    %c0 = arith.constant 0 : index
    %c0_1 = arith.constant 0 : index
    %c0_2 = arith.constant 0 : index
    %2 = vector.load %arg1[%c0, %c0_1, %c0_2] : memref<4x32x64xbf16, #tpu.memory_space<vmem>>, vector<1x32x64xbf16>
    %3 = vector.shape_cast %2 : vector<1x32x64xbf16> to vector<32x64xbf16>
    %c0_3 = arith.constant 0 : index
    %c0_4 = arith.constant 0 : index
    %c0_5 = arith.constant 0 : index
    %4 = vector.load %arg2[%c0_3, %c0_4, %c0_5] : memref<4x64x8xbf16, #tpu.memory_space<vmem>>, vector<1x64x8xbf16>
    %5 = vector.shape_cast %4 : vector<1x64x8xbf16> to vector<64x8xbf16>
    %cst_6 = arith.constant dense<0.000000e+00> : vector<32x8xf32>
    %6 = tpu.matmul %3, %5, %cst_6 {dimension_numbers = #tpu.dot_dimension_numbers<[1], [0], [0], [1], [0, 0, 1, 1], [], []>} : vector<32x64xbf16>, vector<64x8xbf16>, vector<32x8xf32> -> vector<32x8xf32>
    %c0_7 = arith.constant 0 : index
    %c0_8 = arith.constant 0 : index
    %7 = vector.load %arg3[%c0_7, %c0_8] : memref<1x8xf32, #tpu.memory_space<vmem>>, vector<1x8xf32>
    %8 = vector.broadcast %7 : vector<1x8xf32> to vector<32x8xf32>
    %9 = arith.addf %6, %8 : vector<32x8xf32>
    %cst_9 = arith.constant 0.000000e+00 : f32
    %10 = vector.broadcast %cst_9 : f32 to vector<32x8xf32>
    %11 = arith.cmpf oge, %9, %10 : vector<32x8xf32>
    %cst_10 = arith.constant 2.500000e-01 : f32
    %12 = vector.broadcast %cst_10 : f32 to vector<32x8xf32>
    %13 = arith.mulf %12, %9 : vector<32x8xf32>
    %14 = arith.select %11, %9, %13 : vector<32x8xi1>, vector<32x8xf32>
    %cst_11 = arith.constant dense<0.000000e+00> : vector<8xf32>
    %15 = vector.multi_reduction <add>, %14, %cst_11 [0] : vector<32x8xf32> to vector<8xf32>
    %16 = vector.shape_cast %15 : vector<8xf32> to vector<1x8xf32>
    %17 = arith.addf %0, %16 : vector<1x8xf32>
    %18 = arith.mulf %14, %14 : vector<32x8xf32>
    %cst_12 = arith.constant dense<0.000000e+00> : vector<8xf32>
    %19 = vector.multi_reduction <add>, %18, %cst_12 [0] : vector<32x8xf32> to vector<8xf32>
    %20 = vector.shape_cast %19 : vector<8xf32> to vector<1x8xf32>
    %21 = arith.addf %1, %20 : vector<1x8xf32>
    %c1 = arith.constant 1 : index
    %c0_13 = arith.constant 0 : index
    %c0_14 = arith.constant 0 : index
    %22 = vector.load %arg1[%c1, %c0_13, %c0_14] : memref<4x32x64xbf16, #tpu.memory_space<vmem>>, vector<1x32x64xbf16>
    %23 = vector.shape_cast %22 : vector<1x32x64xbf16> to vector<32x64xbf16>
    %c1_15 = arith.constant 1 : index
    %c0_16 = arith.constant 0 : index
    %c0_17 = arith.constant 0 : index
    %24 = vector.load %arg2[%c1_15, %c0_16, %c0_17] : memref<4x64x8xbf16, #tpu.memory_space<vmem>>, vector<1x64x8xbf16>
    %25 = vector.shape_cast %24 : vector<1x64x8xbf16> to vector<64x8xbf16>
    %cst_18 = arith.constant dense<0.000000e+00> : vector<32x8xf32>
    %26 = tpu.matmul %23, %25, %cst_18 {dimension_numbers = #tpu.dot_dimension_numbers<[1], [0], [0], [1], [0, 0, 1, 1], [], []>} : vector<32x64xbf16>, vector<64x8xbf16>, vector<32x8xf32> -> vector<32x8xf32>
    %c0_19 = arith.constant 0 : index
    %c0_20 = arith.constant 0 : index
    %27 = vector.load %arg3[%c0_19, %c0_20] : memref<1x8xf32, #tpu.memory_space<vmem>>, vector<1x8xf32>
    %28 = vector.broadcast %27 : vector<1x8xf32> to vector<32x8xf32>
    %29 = arith.addf %26, %28 : vector<32x8xf32>
    %cst_21 = arith.constant 0.000000e+00 : f32
    %30 = vector.broadcast %cst_21 : f32 to vector<32x8xf32>
    %31 = arith.cmpf oge, %29, %30 : vector<32x8xf32>
    %cst_22 = arith.constant 2.500000e-01 : f32
    %32 = vector.broadcast %cst_22 : f32 to vector<32x8xf32>
    %33 = arith.mulf %32, %29 : vector<32x8xf32>
    %34 = arith.select %31, %29, %33 : vector<32x8xi1>, vector<32x8xf32>
    %cst_23 = arith.constant dense<0.000000e+00> : vector<8xf32>
    %35 = vector.multi_reduction <add>, %34, %cst_23 [0] : vector<32x8xf32> to vector<8xf32>
    %36 = vector.shape_cast %35 : vector<8xf32> to vector<1x8xf32>
    %37 = arith.addf %17, %36 : vector<1x8xf32>
    %38 = arith.mulf %34, %34 : vector<32x8xf32>
    %cst_24 = arith.constant dense<0.000000e+00> : vector<8xf32>
    %39 = vector.multi_reduction <add>, %38, %cst_24 [0] : vector<32x8xf32> to vector<8xf32>
    %40 = vector.shape_cast %39 : vector<8xf32> to vector<1x8xf32>
    %41 = arith.addf %21, %40 : vector<1x8xf32>
    %c2 = arith.constant 2 : index
    %c0_25 = arith.constant 0 : index
    %c0_26 = arith.constant 0 : index
    %42 = vector.load %arg1[%c2, %c0_25, %c0_26] : memref<4x32x64xbf16, #tpu.memory_space<vmem>>, vector<1x32x64xbf16>
    %43 = vector.shape_cast %42 : vector<1x32x64xbf16> to vector<32x64xbf16>
    %c2_27 = arith.constant 2 : index
    %c0_28 = arith.constant 0 : index
    %c0_29 = arith.constant 0 : index
    %44 = vector.load %arg2[%c2_27, %c0_28, %c0_29] : memref<4x64x8xbf16, #tpu.memory_space<vmem>>, vector<1x64x8xbf16>
    %45 = vector.shape_cast %44 : vector<1x64x8xbf16> to vector<64x8xbf16>
    %cst_30 = arith.constant dense<0.000000e+00> : vector<32x8xf32>
    %46 = tpu.matmul %43, %45, %cst_30 {dimension_numbers = #tpu.dot_dimension_numbers<[1], [0], [0], [1], [0, 0, 1, 1], [], []>} : vector<32x64xbf16>, vector<64x8xbf16>, vector<32x8xf32> -> vector<32x8xf32>
    %c0_31 = arith.constant 0 : index
    %c0_32 = arith.constant 0 : index
    %47 = vector.load %arg3[%c0_31, %c0_32] : memref<1x8xf32, #tpu.memory_space<vmem>>, vector<1x8xf32>
    %48 = vector.broadcast %47 : vector<1x8xf32> to vector<32x8xf32>
    %49 = arith.addf %46, %48 : vector<32x8xf32>
    %cst_33 = arith.constant 0.000000e+00 : f32
    %50 = vector.broadcast %cst_33 : f32 to vector<32x8xf32>
    %51 = arith.cmpf oge, %49, %50 : vector<32x8xf32>
    %cst_34 = arith.constant 2.500000e-01 : f32
    %52 = vector.broadcast %cst_34 : f32 to vector<32x8xf32>
    %53 = arith.mulf %52, %49 : vector<32x8xf32>
    %54 = arith.select %51, %49, %53 : vector<32x8xi1>, vector<32x8xf32>
    %cst_35 = arith.constant dense<0.000000e+00> : vector<8xf32>
    %55 = vector.multi_reduction <add>, %54, %cst_35 [0] : vector<32x8xf32> to vector<8xf32>
    %56 = vector.shape_cast %55 : vector<8xf32> to vector<1x8xf32>
    %57 = arith.addf %37, %56 : vector<1x8xf32>
    %58 = arith.mulf %54, %54 : vector<32x8xf32>
    %cst_36 = arith.constant dense<0.000000e+00> : vector<8xf32>
    %59 = vector.multi_reduction <add>, %58, %cst_36 [0] : vector<32x8xf32> to vector<8xf32>
    %60 = vector.shape_cast %59 : vector<8xf32> to vector<1x8xf32>
    %61 = arith.addf %41, %60 : vector<1x8xf32>
    %c3 = arith.constant 3 : index
    %c0_37 = arith.constant 0 : index
    %c0_38 = arith.constant 0 : index
    %62 = vector.load %arg1[%c3, %c0_37, %c0_38] : memref<4x32x64xbf16, #tpu.memory_space<vmem>>, vector<1x32x64xbf16>
    %63 = vector.shape_cast %62 : vector<1x32x64xbf16> to vector<32x64xbf16>
    %c3_39 = arith.constant 3 : index
    %c0_40 = arith.constant 0 : index
    %c0_41 = arith.constant 0 : index
    %64 = vector.load %arg2[%c3_39, %c0_40, %c0_41] : memref<4x64x8xbf16, #tpu.memory_space<vmem>>, vector<1x64x8xbf16>
    %65 = vector.shape_cast %64 : vector<1x64x8xbf16> to vector<64x8xbf16>
    %cst_42 = arith.constant dense<0.000000e+00> : vector<32x8xf32>
    %66 = tpu.matmul %63, %65, %cst_42 {dimension_numbers = #tpu.dot_dimension_numbers<[1], [0], [0], [1], [0, 0, 1, 1], [], []>} : vector<32x64xbf16>, vector<64x8xbf16>, vector<32x8xf32> -> vector<32x8xf32>
    %c0_43 = arith.constant 0 : index
    %c0_44 = arith.constant 0 : index
    %67 = vector.load %arg3[%c0_43, %c0_44] : memref<1x8xf32, #tpu.memory_space<vmem>>, vector<1x8xf32>
    %68 = vector.broadcast %67 : vector<1x8xf32> to vector<32x8xf32>
    %69 = arith.addf %66, %68 : vector<32x8xf32>
    %cst_45 = arith.constant 0.000000e+00 : f32
    %70 = vector.broadcast %cst_45 : f32 to vector<32x8xf32>
    %71 = arith.cmpf oge, %69, %70 : vector<32x8xf32>
    %cst_46 = arith.constant 2.500000e-01 : f32
    %72 = vector.broadcast %cst_46 : f32 to vector<32x8xf32>
    %73 = arith.mulf %72, %69 : vector<32x8xf32>
    %74 = arith.select %71, %69, %73 : vector<32x8xi1>, vector<32x8xf32>
    %cst_47 = arith.constant dense<0.000000e+00> : vector<8xf32>
    %75 = vector.multi_reduction <add>, %74, %cst_47 [0] : vector<32x8xf32> to vector<8xf32>
    %76 = vector.shape_cast %75 : vector<8xf32> to vector<1x8xf32>
    %77 = arith.addf %57, %76 : vector<1x8xf32>
    %78 = arith.mulf %74, %74 : vector<32x8xf32>
    %cst_48 = arith.constant dense<0.000000e+00> : vector<8xf32>
    %79 = vector.multi_reduction <add>, %78, %cst_48 [0] : vector<32x8xf32> to vector<8xf32>
    %80 = vector.shape_cast %79 : vector<8xf32> to vector<1x8xf32>
    %81 = arith.addf %61, %80 : vector<1x8xf32>
    %cst_49 = arith.constant 7.812500e-03 : f32
    %82 = vector.broadcast %cst_49 : f32 to vector<1x8xf32>
    %83 = arith.mulf %77, %82 : vector<1x8xf32>
    %cst_50 = arith.constant 7.812500e-03 : f32
    %84 = vector.broadcast %cst_50 : f32 to vector<1x8xf32>
    %85 = arith.mulf %81, %84 : vector<1x8xf32>
    %86 = arith.mulf %83, %83 : vector<1x8xf32>
    %87 = arith.subf %85, %86 : vector<1x8xf32>
    %cst_51 = arith.constant 0.000000e+00 : f32
    %88 = vector.broadcast %cst_51 : f32 to vector<1x8xf32>
    %89 = arith.maximumf %87, %88 : vector<1x8xf32>
    %cst_52 = arith.constant 9.99999974E-6 : f32
    %90 = vector.broadcast %cst_52 : f32 to vector<1x8xf32>
    %91 = arith.addf %89, %90 : vector<1x8xf32>
    %92 = math.rsqrt %91 : vector<1x8xf32>
    %c0_53 = arith.constant 0 : index
    %c0_54 = arith.constant 0 : index
    %93 = vector.load %arg4[%c0_53, %c0_54] : memref<1x8xf32, #tpu.memory_space<vmem>>, vector<1x8xf32>
    %94 = arith.mulf %92, %93 : vector<1x8xf32>
    %c0_55 = arith.constant 0 : index
    %c0_56 = arith.constant 0 : index
    %95 = vector.load %arg5[%c0_55, %c0_56] : memref<1x8xf32, #tpu.memory_space<vmem>>, vector<1x8xf32>
    %96 = arith.mulf %83, %94 : vector<1x8xf32>
    %97 = arith.subf %95, %96 : vector<1x8xf32>
    %98 = vector.broadcast %94 : vector<1x8xf32> to vector<32x8xf32>
    %99 = arith.mulf %14, %98 : vector<32x8xf32>
    %100 = vector.broadcast %97 : vector<1x8xf32> to vector<32x8xf32>
    %101 = arith.addf %99, %100 : vector<32x8xf32>
    %102 = arith.truncf %101 : vector<32x8xf32> to vector<32x8xbf16>
    %c0_57 = arith.constant 0 : index
    %c0_58 = arith.constant 0 : index
    %c0_59 = arith.constant 0 : index
    %103 = vector.load %arg6[%c0_57, %c0_58, %c0_59] : memref<4x32x8xbf16, #tpu.memory_space<vmem>>, vector<1x32x8xbf16>
    %104 = vector.shape_cast %103 : vector<1x32x8xbf16> to vector<32x8xbf16>
    %105 = vector.shape_cast %102 : vector<32x8xbf16> to vector<1x32x8xbf16>
    tpu.vector_store %arg6[%c0_57, %c0_58, %c0_59], %105 {strides = array<i32>} : memref<4x32x8xbf16, #tpu.memory_space<vmem>>, vector<1x32x8xbf16>,
    %106 = vector.broadcast %94 : vector<1x8xf32> to vector<32x8xf32>
    %107 = arith.mulf %34, %106 : vector<32x8xf32>
    %108 = vector.broadcast %97 : vector<1x8xf32> to vector<32x8xf32>
    %109 = arith.addf %107, %108 : vector<32x8xf32>
    %110 = arith.truncf %109 : vector<32x8xf32> to vector<32x8xbf16>
    %c1_60 = arith.constant 1 : index
    %c0_61 = arith.constant 0 : index
    %c0_62 = arith.constant 0 : index
    %111 = vector.load %arg6[%c1_60, %c0_61, %c0_62] : memref<4x32x8xbf16, #tpu.memory_space<vmem>>, vector<1x32x8xbf16>
    %112 = vector.shape_cast %111 : vector<1x32x8xbf16> to vector<32x8xbf16>
    %113 = vector.shape_cast %110 : vector<32x8xbf16> to vector<1x32x8xbf16>
    tpu.vector_store %arg6[%c1_60, %c0_61, %c0_62], %113 {strides = array<i32>} : memref<4x32x8xbf16, #tpu.memory_space<vmem>>, vector<1x32x8xbf16>,
    %114 = vector.broadcast %94 : vector<1x8xf32> to vector<32x8xf32>
    %115 = arith.mulf %54, %114 : vector<32x8xf32>
    %116 = vector.broadcast %97 : vector<1x8xf32> to vector<32x8xf32>
    %117 = arith.addf %115, %116 : vector<32x8xf32>
    %118 = arith.truncf %117 : vector<32x8xf32> to vector<32x8xbf16>
    %c2_63 = arith.constant 2 : index
    %c0_64 = arith.constant 0 : index
    %c0_65 = arith.constant 0 : index
    %119 = vector.load %arg6[%c2_63, %c0_64, %c0_65] : memref<4x32x8xbf16, #tpu.memory_space<vmem>>, vector<1x32x8xbf16>
    %120 = vector.shape_cast %119 : vector<1x32x8xbf16> to vector<32x8xbf16>
    %121 = vector.shape_cast %118 : vector<32x8xbf16> to vector<1x32x8xbf16>
    tpu.vector_store %arg6[%c2_63, %c0_64, %c0_65], %121 {strides = array<i32>} : memref<4x32x8xbf16, #tpu.memory_space<vmem>>, vector<1x32x8xbf16>,
    %122 = vector.broadcast %94 : vector<1x8xf32> to vector<32x8xf32>
    %123 = arith.mulf %74, %122 : vector<32x8xf32>
    %124 = vector.broadcast %97 : vector<1x8xf32> to vector<32x8xf32>
    %125 = arith.addf %123, %124 : vector<32x8xf32>
    %126 = arith.truncf %125 : vector<32x8xf32> to vector<32x8xbf16>
    %c3_66 = arith.constant 3 : index
    %c0_67 = arith.constant 0 : index
    %c0_68 = arith.constant 0 : index
    %127 = vector.load %arg6[%c3_66, %c0_67, %c0_68] : memref<4x32x8xbf16, #tpu.memory_space<vmem>>, vector<1x32x8xbf16>
    %128 = vector.shape_cast %127 : vector<1x32x8xbf16> to vector<32x8xbf16>
    %129 = vector.shape_cast %126 : vector<32x8xbf16> to vector<1x32x8xbf16>
    tpu.vector_store %arg6[%c3_66, %c0_67, %c0_68], %129 {strides = array<i32>} : memref<4x32x8xbf16, #tpu.memory_space<vmem>>, vector<1x32x8xbf16>,
    return
  }
  func.func @transform_0(%arg0: i32) -> (i32, i32, i32) {
    %c0_i32 = arith.constant 0 : i32
    %c0_i32_0 = arith.constant 0 : i32
    %c0_i32_1 = arith.constant 0 : i32
    %c0_i32_2 = arith.constant 0 : i32
    return %c0_i32, %c0_i32_0, %c0_i32_1 : i32, i32, i32
  }
  func.func @transform_1(%arg0: i32) -> (i32, i32, i32) {
    %c0_i32 = arith.constant 0 : i32
    %c0_i32_0 = arith.constant 0 : i32
    %c0_i32_1 = arith.constant 0 : i32
    %c0_i32_2 = arith.constant 0 : i32
    return %c0_i32, %c0_i32_0, %c0_i32_1 : i32, i32, i32
  }
  func.func @transform_2(%arg0: i32) -> (i32, i32) {
    %c0_i32 = arith.constant 0 : i32
    %c0_i32_0 = arith.constant 0 : i32
    %c0_i32_1 = arith.constant 0 : i32
    return %c0_i32, %c0_i32_0 : i32, i32
  }
  func.func @transform_3(%arg0: i32) -> (i32, i32) {
    %c0_i32 = arith.constant 0 : i32
    %c0_i32_0 = arith.constant 0 : i32
    %c0_i32_1 = arith.constant 0 : i32
    return %c0_i32, %c0_i32_0 : i32, i32
  }
  func.func @transform_4(%arg0: i32) -> (i32, i32) {
    %c0_i32 = arith.constant 0 : i32
    %c0_i32_0 = arith.constant 0 : i32
    %c0_i32_1 = arith.constant 0 : i32
    return %c0_i32, %c0_i32_0 : i32, i32
  }
  func.func @transform_5(%arg0: i32) -> (i32, i32, i32) {
    %c0_i32 = arith.constant 0 : i32
    %c0_i32_0 = arith.constant 0 : i32
    %c0_i32_1 = arith.constant 0 : i32
    %c0_i32_2 = arith.constant 0 : i32
    return %c0_i32, %c0_i32_0, %c0_i32_1 : i32, i32, i32
  }
}

module attributes {stable_mosaic.version = 11 : i64} {
  func.func @_gemm_lrelu_bn_kernel(%arg0: i32, %arg1: memref<4x128x32xbf16, #tpu.memory_space<vmem>>, %arg2: memref<4x32x4xbf16, #tpu.memory_space<vmem>>, %arg3: memref<1x4xf32, #tpu.memory_space<vmem>>, %arg4: memref<1x4xf32, #tpu.memory_space<vmem>>, %arg5: memref<1x4xf32, #tpu.memory_space<vmem>>, %arg6: memref<4x128x4xbf16, #tpu.memory_space<vmem>>) attributes {dimension_semantics = [#tpu.dimension_semantics<arbitrary>], iteration_bounds = array<i64: 1>, scalar_prefetch = 0 : i64, scratch_operands = 0 : i64, tpu.core_type = #tpu.core_type<tc>, window_params = [{pipeline_mode = #tpu.pipeline_mode<synchronous>, transform_indices = @transform_0, window_bounds = array<i64: 4, 128, 32>}, {pipeline_mode = #tpu.pipeline_mode<synchronous>, transform_indices = @transform_1, window_bounds = array<i64: 4, 32, 4>}, {pipeline_mode = #tpu.pipeline_mode<synchronous>, transform_indices = @transform_2, window_bounds = array<i64: 1, 4>}, {pipeline_mode = #tpu.pipeline_mode<synchronous>, transform_indices = @transform_3, window_bounds = array<i64: 1, 4>}, {pipeline_mode = #tpu.pipeline_mode<synchronous>, transform_indices = @transform_4, window_bounds = array<i64: 1, 4>}, {pipeline_mode = #tpu.pipeline_mode<synchronous>, transform_indices = @transform_5, window_bounds = array<i64: 4, 128, 4>}]} {
    %cst = arith.constant 0.000000e+00 : f32
    %0 = vector.broadcast %cst : f32 to vector<1x4xf32>
    %cst_0 = arith.constant 0.000000e+00 : f32
    %1 = vector.broadcast %cst_0 : f32 to vector<1x4xf32>
    %c0 = arith.constant 0 : index
    %c0_1 = arith.constant 0 : index
    %c0_2 = arith.constant 0 : index
    %2 = vector.load %arg1[%c0, %c0_1, %c0_2] : memref<4x128x32xbf16, #tpu.memory_space<vmem>>, vector<1x128x32xbf16>
    %3 = vector.shape_cast %2 : vector<1x128x32xbf16> to vector<128x32xbf16>
    %c0_3 = arith.constant 0 : index
    %c0_4 = arith.constant 0 : index
    %c0_5 = arith.constant 0 : index
    %4 = vector.load %arg2[%c0_3, %c0_4, %c0_5] : memref<4x32x4xbf16, #tpu.memory_space<vmem>>, vector<1x32x4xbf16>
    %5 = vector.shape_cast %4 : vector<1x32x4xbf16> to vector<32x4xbf16>
    %cst_6 = arith.constant dense<0.000000e+00> : vector<128x4xf32>
    %6 = tpu.matmul %3, %5, %cst_6 {dimension_numbers = #tpu.dot_dimension_numbers<[1], [0], [0], [1], [0, 0, 1, 1], [], []>} : vector<128x32xbf16>, vector<32x4xbf16>, vector<128x4xf32> -> vector<128x4xf32>
    %c0_7 = arith.constant 0 : index
    %c0_8 = arith.constant 0 : index
    %7 = vector.load %arg3[%c0_7, %c0_8] : memref<1x4xf32, #tpu.memory_space<vmem>>, vector<1x4xf32>
    %8 = vector.broadcast %7 : vector<1x4xf32> to vector<128x4xf32>
    %9 = arith.addf %6, %8 : vector<128x4xf32>
    %cst_9 = arith.constant 0.000000e+00 : f32
    %10 = vector.broadcast %cst_9 : f32 to vector<128x4xf32>
    %11 = arith.cmpf oge, %9, %10 : vector<128x4xf32>
    %cst_10 = arith.constant 2.500000e-01 : f32
    %12 = vector.broadcast %cst_10 : f32 to vector<128x4xf32>
    %13 = arith.mulf %12, %9 : vector<128x4xf32>
    %14 = arith.select %11, %9, %13 : vector<128x4xi1>, vector<128x4xf32>
    %cst_11 = arith.constant dense<0.000000e+00> : vector<4xf32>
    %15 = vector.multi_reduction <add>, %14, %cst_11 [0] : vector<128x4xf32> to vector<4xf32>
    %16 = vector.shape_cast %15 : vector<4xf32> to vector<1x4xf32>
    %17 = arith.addf %0, %16 : vector<1x4xf32>
    %18 = arith.mulf %14, %14 : vector<128x4xf32>
    %cst_12 = arith.constant dense<0.000000e+00> : vector<4xf32>
    %19 = vector.multi_reduction <add>, %18, %cst_12 [0] : vector<128x4xf32> to vector<4xf32>
    %20 = vector.shape_cast %19 : vector<4xf32> to vector<1x4xf32>
    %21 = arith.addf %1, %20 : vector<1x4xf32>
    %c1 = arith.constant 1 : index
    %c0_13 = arith.constant 0 : index
    %c0_14 = arith.constant 0 : index
    %22 = vector.load %arg1[%c1, %c0_13, %c0_14] : memref<4x128x32xbf16, #tpu.memory_space<vmem>>, vector<1x128x32xbf16>
    %23 = vector.shape_cast %22 : vector<1x128x32xbf16> to vector<128x32xbf16>
    %c1_15 = arith.constant 1 : index
    %c0_16 = arith.constant 0 : index
    %c0_17 = arith.constant 0 : index
    %24 = vector.load %arg2[%c1_15, %c0_16, %c0_17] : memref<4x32x4xbf16, #tpu.memory_space<vmem>>, vector<1x32x4xbf16>
    %25 = vector.shape_cast %24 : vector<1x32x4xbf16> to vector<32x4xbf16>
    %cst_18 = arith.constant dense<0.000000e+00> : vector<128x4xf32>
    %26 = tpu.matmul %23, %25, %cst_18 {dimension_numbers = #tpu.dot_dimension_numbers<[1], [0], [0], [1], [0, 0, 1, 1], [], []>} : vector<128x32xbf16>, vector<32x4xbf16>, vector<128x4xf32> -> vector<128x4xf32>
    %c0_19 = arith.constant 0 : index
    %c0_20 = arith.constant 0 : index
    %27 = vector.load %arg3[%c0_19, %c0_20] : memref<1x4xf32, #tpu.memory_space<vmem>>, vector<1x4xf32>
    %28 = vector.broadcast %27 : vector<1x4xf32> to vector<128x4xf32>
    %29 = arith.addf %26, %28 : vector<128x4xf32>
    %cst_21 = arith.constant 0.000000e+00 : f32
    %30 = vector.broadcast %cst_21 : f32 to vector<128x4xf32>
    %31 = arith.cmpf oge, %29, %30 : vector<128x4xf32>
    %cst_22 = arith.constant 2.500000e-01 : f32
    %32 = vector.broadcast %cst_22 : f32 to vector<128x4xf32>
    %33 = arith.mulf %32, %29 : vector<128x4xf32>
    %34 = arith.select %31, %29, %33 : vector<128x4xi1>, vector<128x4xf32>
    %cst_23 = arith.constant dense<0.000000e+00> : vector<4xf32>
    %35 = vector.multi_reduction <add>, %34, %cst_23 [0] : vector<128x4xf32> to vector<4xf32>
    %36 = vector.shape_cast %35 : vector<4xf32> to vector<1x4xf32>
    %37 = arith.addf %17, %36 : vector<1x4xf32>
    %38 = arith.mulf %34, %34 : vector<128x4xf32>
    %cst_24 = arith.constant dense<0.000000e+00> : vector<4xf32>
    %39 = vector.multi_reduction <add>, %38, %cst_24 [0] : vector<128x4xf32> to vector<4xf32>
    %40 = vector.shape_cast %39 : vector<4xf32> to vector<1x4xf32>
    %41 = arith.addf %21, %40 : vector<1x4xf32>
    %c2 = arith.constant 2 : index
    %c0_25 = arith.constant 0 : index
    %c0_26 = arith.constant 0 : index
    %42 = vector.load %arg1[%c2, %c0_25, %c0_26] : memref<4x128x32xbf16, #tpu.memory_space<vmem>>, vector<1x128x32xbf16>
    %43 = vector.shape_cast %42 : vector<1x128x32xbf16> to vector<128x32xbf16>
    %c2_27 = arith.constant 2 : index
    %c0_28 = arith.constant 0 : index
    %c0_29 = arith.constant 0 : index
    %44 = vector.load %arg2[%c2_27, %c0_28, %c0_29] : memref<4x32x4xbf16, #tpu.memory_space<vmem>>, vector<1x32x4xbf16>
    %45 = vector.shape_cast %44 : vector<1x32x4xbf16> to vector<32x4xbf16>
    %cst_30 = arith.constant dense<0.000000e+00> : vector<128x4xf32>
    %46 = tpu.matmul %43, %45, %cst_30 {dimension_numbers = #tpu.dot_dimension_numbers<[1], [0], [0], [1], [0, 0, 1, 1], [], []>} : vector<128x32xbf16>, vector<32x4xbf16>, vector<128x4xf32> -> vector<128x4xf32>
    %c0_31 = arith.constant 0 : index
    %c0_32 = arith.constant 0 : index
    %47 = vector.load %arg3[%c0_31, %c0_32] : memref<1x4xf32, #tpu.memory_space<vmem>>, vector<1x4xf32>
    %48 = vector.broadcast %47 : vector<1x4xf32> to vector<128x4xf32>
    %49 = arith.addf %46, %48 : vector<128x4xf32>
    %cst_33 = arith.constant 0.000000e+00 : f32
    %50 = vector.broadcast %cst_33 : f32 to vector<128x4xf32>
    %51 = arith.cmpf oge, %49, %50 : vector<128x4xf32>
    %cst_34 = arith.constant 2.500000e-01 : f32
    %52 = vector.broadcast %cst_34 : f32 to vector<128x4xf32>
    %53 = arith.mulf %52, %49 : vector<128x4xf32>
    %54 = arith.select %51, %49, %53 : vector<128x4xi1>, vector<128x4xf32>
    %cst_35 = arith.constant dense<0.000000e+00> : vector<4xf32>
    %55 = vector.multi_reduction <add>, %54, %cst_35 [0] : vector<128x4xf32> to vector<4xf32>
    %56 = vector.shape_cast %55 : vector<4xf32> to vector<1x4xf32>
    %57 = arith.addf %37, %56 : vector<1x4xf32>
    %58 = arith.mulf %54, %54 : vector<128x4xf32>
    %cst_36 = arith.constant dense<0.000000e+00> : vector<4xf32>
    %59 = vector.multi_reduction <add>, %58, %cst_36 [0] : vector<128x4xf32> to vector<4xf32>
    %60 = vector.shape_cast %59 : vector<4xf32> to vector<1x4xf32>
    %61 = arith.addf %41, %60 : vector<1x4xf32>
    %c3 = arith.constant 3 : index
    %c0_37 = arith.constant 0 : index
    %c0_38 = arith.constant 0 : index
    %62 = vector.load %arg1[%c3, %c0_37, %c0_38] : memref<4x128x32xbf16, #tpu.memory_space<vmem>>, vector<1x128x32xbf16>
    %63 = vector.shape_cast %62 : vector<1x128x32xbf16> to vector<128x32xbf16>
    %c3_39 = arith.constant 3 : index
    %c0_40 = arith.constant 0 : index
    %c0_41 = arith.constant 0 : index
    %64 = vector.load %arg2[%c3_39, %c0_40, %c0_41] : memref<4x32x4xbf16, #tpu.memory_space<vmem>>, vector<1x32x4xbf16>
    %65 = vector.shape_cast %64 : vector<1x32x4xbf16> to vector<32x4xbf16>
    %cst_42 = arith.constant dense<0.000000e+00> : vector<128x4xf32>
    %66 = tpu.matmul %63, %65, %cst_42 {dimension_numbers = #tpu.dot_dimension_numbers<[1], [0], [0], [1], [0, 0, 1, 1], [], []>} : vector<128x32xbf16>, vector<32x4xbf16>, vector<128x4xf32> -> vector<128x4xf32>
    %c0_43 = arith.constant 0 : index
    %c0_44 = arith.constant 0 : index
    %67 = vector.load %arg3[%c0_43, %c0_44] : memref<1x4xf32, #tpu.memory_space<vmem>>, vector<1x4xf32>
    %68 = vector.broadcast %67 : vector<1x4xf32> to vector<128x4xf32>
    %69 = arith.addf %66, %68 : vector<128x4xf32>
    %cst_45 = arith.constant 0.000000e+00 : f32
    %70 = vector.broadcast %cst_45 : f32 to vector<128x4xf32>
    %71 = arith.cmpf oge, %69, %70 : vector<128x4xf32>
    %cst_46 = arith.constant 2.500000e-01 : f32
    %72 = vector.broadcast %cst_46 : f32 to vector<128x4xf32>
    %73 = arith.mulf %72, %69 : vector<128x4xf32>
    %74 = arith.select %71, %69, %73 : vector<128x4xi1>, vector<128x4xf32>
    %cst_47 = arith.constant dense<0.000000e+00> : vector<4xf32>
    %75 = vector.multi_reduction <add>, %74, %cst_47 [0] : vector<128x4xf32> to vector<4xf32>
    %76 = vector.shape_cast %75 : vector<4xf32> to vector<1x4xf32>
    %77 = arith.addf %57, %76 : vector<1x4xf32>
    %78 = arith.mulf %74, %74 : vector<128x4xf32>
    %cst_48 = arith.constant dense<0.000000e+00> : vector<4xf32>
    %79 = vector.multi_reduction <add>, %78, %cst_48 [0] : vector<128x4xf32> to vector<4xf32>
    %80 = vector.shape_cast %79 : vector<4xf32> to vector<1x4xf32>
    %81 = arith.addf %61, %80 : vector<1x4xf32>
    %cst_49 = arith.constant 0.001953125 : f32
    %82 = vector.broadcast %cst_49 : f32 to vector<1x4xf32>
    %83 = arith.mulf %77, %82 : vector<1x4xf32>
    %cst_50 = arith.constant 0.001953125 : f32
    %84 = vector.broadcast %cst_50 : f32 to vector<1x4xf32>
    %85 = arith.mulf %81, %84 : vector<1x4xf32>
    %86 = arith.mulf %83, %83 : vector<1x4xf32>
    %87 = arith.subf %85, %86 : vector<1x4xf32>
    %cst_51 = arith.constant 0.000000e+00 : f32
    %88 = vector.broadcast %cst_51 : f32 to vector<1x4xf32>
    %89 = arith.maximumf %87, %88 : vector<1x4xf32>
    %cst_52 = arith.constant 9.99999974E-6 : f32
    %90 = vector.broadcast %cst_52 : f32 to vector<1x4xf32>
    %91 = arith.addf %89, %90 : vector<1x4xf32>
    %92 = math.rsqrt %91 : vector<1x4xf32>
    %c0_53 = arith.constant 0 : index
    %c0_54 = arith.constant 0 : index
    %93 = vector.load %arg4[%c0_53, %c0_54] : memref<1x4xf32, #tpu.memory_space<vmem>>, vector<1x4xf32>
    %94 = arith.mulf %92, %93 : vector<1x4xf32>
    %c0_55 = arith.constant 0 : index
    %c0_56 = arith.constant 0 : index
    %95 = vector.load %arg5[%c0_55, %c0_56] : memref<1x4xf32, #tpu.memory_space<vmem>>, vector<1x4xf32>
    %96 = arith.mulf %83, %94 : vector<1x4xf32>
    %97 = arith.subf %95, %96 : vector<1x4xf32>
    %98 = vector.broadcast %94 : vector<1x4xf32> to vector<128x4xf32>
    %99 = arith.mulf %14, %98 : vector<128x4xf32>
    %100 = vector.broadcast %97 : vector<1x4xf32> to vector<128x4xf32>
    %101 = arith.addf %99, %100 : vector<128x4xf32>
    %102 = arith.truncf %101 : vector<128x4xf32> to vector<128x4xbf16>
    %c0_57 = arith.constant 0 : index
    %c0_58 = arith.constant 0 : index
    %c0_59 = arith.constant 0 : index
    %103 = vector.load %arg6[%c0_57, %c0_58, %c0_59] : memref<4x128x4xbf16, #tpu.memory_space<vmem>>, vector<1x128x4xbf16>
    %104 = vector.shape_cast %103 : vector<1x128x4xbf16> to vector<128x4xbf16>
    %105 = vector.shape_cast %102 : vector<128x4xbf16> to vector<1x128x4xbf16>
    tpu.vector_store %arg6[%c0_57, %c0_58, %c0_59], %105 {strides = array<i32>} : memref<4x128x4xbf16, #tpu.memory_space<vmem>>, vector<1x128x4xbf16>,
    %106 = vector.broadcast %94 : vector<1x4xf32> to vector<128x4xf32>
    %107 = arith.mulf %34, %106 : vector<128x4xf32>
    %108 = vector.broadcast %97 : vector<1x4xf32> to vector<128x4xf32>
    %109 = arith.addf %107, %108 : vector<128x4xf32>
    %110 = arith.truncf %109 : vector<128x4xf32> to vector<128x4xbf16>
    %c1_60 = arith.constant 1 : index
    %c0_61 = arith.constant 0 : index
    %c0_62 = arith.constant 0 : index
    %111 = vector.load %arg6[%c1_60, %c0_61, %c0_62] : memref<4x128x4xbf16, #tpu.memory_space<vmem>>, vector<1x128x4xbf16>
    %112 = vector.shape_cast %111 : vector<1x128x4xbf16> to vector<128x4xbf16>
    %113 = vector.shape_cast %110 : vector<128x4xbf16> to vector<1x128x4xbf16>
    tpu.vector_store %arg6[%c1_60, %c0_61, %c0_62], %113 {strides = array<i32>} : memref<4x128x4xbf16, #tpu.memory_space<vmem>>, vector<1x128x4xbf16>,
    %114 = vector.broadcast %94 : vector<1x4xf32> to vector<128x4xf32>
    %115 = arith.mulf %54, %114 : vector<128x4xf32>
    %116 = vector.broadcast %97 : vector<1x4xf32> to vector<128x4xf32>
    %117 = arith.addf %115, %116 : vector<128x4xf32>
    %118 = arith.truncf %117 : vector<128x4xf32> to vector<128x4xbf16>
    %c2_63 = arith.constant 2 : index
    %c0_64 = arith.constant 0 : index
    %c0_65 = arith.constant 0 : index
    %119 = vector.load %arg6[%c2_63, %c0_64, %c0_65] : memref<4x128x4xbf16, #tpu.memory_space<vmem>>, vector<1x128x4xbf16>
    %120 = vector.shape_cast %119 : vector<1x128x4xbf16> to vector<128x4xbf16>
    %121 = vector.shape_cast %118 : vector<128x4xbf16> to vector<1x128x4xbf16>
    tpu.vector_store %arg6[%c2_63, %c0_64, %c0_65], %121 {strides = array<i32>} : memref<4x128x4xbf16, #tpu.memory_space<vmem>>, vector<1x128x4xbf16>,
    %122 = vector.broadcast %94 : vector<1x4xf32> to vector<128x4xf32>
    %123 = arith.mulf %74, %122 : vector<128x4xf32>
    %124 = vector.broadcast %97 : vector<1x4xf32> to vector<128x4xf32>
    %125 = arith.addf %123, %124 : vector<128x4xf32>
    %126 = arith.truncf %125 : vector<128x4xf32> to vector<128x4xbf16>
    %c3_66 = arith.constant 3 : index
    %c0_67 = arith.constant 0 : index
    %c0_68 = arith.constant 0 : index
    %127 = vector.load %arg6[%c3_66, %c0_67, %c0_68] : memref<4x128x4xbf16, #tpu.memory_space<vmem>>, vector<1x128x4xbf16>
    %128 = vector.shape_cast %127 : vector<1x128x4xbf16> to vector<128x4xbf16>
    %129 = vector.shape_cast %126 : vector<128x4xbf16> to vector<1x128x4xbf16>
    tpu.vector_store %arg6[%c3_66, %c0_67, %c0_68], %129 {strides = array<i32>} : memref<4x128x4xbf16, #tpu.memory_space<vmem>>, vector<1x128x4xbf16>,
    return
  }
  func.func @transform_0(%arg0: i32) -> (i32, i32, i32) {
    %c0_i32 = arith.constant 0 : i32
    %c0_i32_0 = arith.constant 0 : i32
    %c0_i32_1 = arith.constant 0 : i32
    %c0_i32_2 = arith.constant 0 : i32
    return %c0_i32, %c0_i32_0, %c0_i32_1 : i32, i32, i32
  }
  func.func @transform_1(%arg0: i32) -> (i32, i32, i32) {
    %c0_i32 = arith.constant 0 : i32
    %c0_i32_0 = arith.constant 0 : i32
    %c0_i32_1 = arith.constant 0 : i32
    %c0_i32_2 = arith.constant 0 : i32
    return %c0_i32, %c0_i32_0, %c0_i32_1 : i32, i32, i32
  }
  func.func @transform_2(%arg0: i32) -> (i32, i32) {
    %c0_i32 = arith.constant 0 : i32
    %c0_i32_0 = arith.constant 0 : i32
    %c0_i32_1 = arith.constant 0 : i32
    return %c0_i32, %c0_i32_0 : i32, i32
  }
  func.func @transform_3(%arg0: i32) -> (i32, i32) {
    %c0_i32 = arith.constant 0 : i32
    %c0_i32_0 = arith.constant 0 : i32
    %c0_i32_1 = arith.constant 0 : i32
    return %c0_i32, %c0_i32_0 : i32, i32
  }
  func.func @transform_4(%arg0: i32) -> (i32, i32) {
    %c0_i32 = arith.constant 0 : i32
    %c0_i32_0 = arith.constant 0 : i32
    %c0_i32_1 = arith.constant 0 : i32
    return %c0_i32, %c0_i32_0 : i32, i32
  }
  func.func @transform_5(%arg0: i32) -> (i32, i32, i32) {
    %c0_i32 = arith.constant 0 : i32
    %c0_i32_0 = arith.constant 0 : i32
    %c0_i32_1 = arith.constant 0 : i32
    %c0_i32_2 = arith.constant 0 : i32
    return %c0_i32, %c0_i32_0, %c0_i32_1 : i32, i32, i32
  }
}

module attributes {stable_mosaic.version = 11 : i64} {
  func.func @_gemm_lrelu_kernel(%arg0: i32, %arg1: memref<4x512x16xbf16, #tpu.memory_space<vmem>>, %arg2: memref<4x16x1xbf16, #tpu.memory_space<vmem>>, %arg3: memref<1x1xf32, #tpu.memory_space<vmem>>, %arg4: memref<4x512x1xf32, #tpu.memory_space<vmem>>) attributes {dimension_semantics = [#tpu.dimension_semantics<arbitrary>], iteration_bounds = array<i64: 1>, scalar_prefetch = 0 : i64, scratch_operands = 0 : i64, tpu.core_type = #tpu.core_type<tc>, window_params = [{pipeline_mode = #tpu.pipeline_mode<synchronous>, transform_indices = @transform_0, window_bounds = array<i64: 4, 512, 16>}, {pipeline_mode = #tpu.pipeline_mode<synchronous>, transform_indices = @transform_1, window_bounds = array<i64: 4, 16, 1>}, {pipeline_mode = #tpu.pipeline_mode<synchronous>, transform_indices = @transform_2, window_bounds = array<i64: 1, 1>}, {pipeline_mode = #tpu.pipeline_mode<synchronous>, transform_indices = @transform_3, window_bounds = array<i64: 4, 512, 1>}]} {
    %c0 = arith.constant 0 : index
    %c0_0 = arith.constant 0 : index
    %c0_1 = arith.constant 0 : index
    %0 = vector.load %arg1[%c0, %c0_0, %c0_1] : memref<4x512x16xbf16, #tpu.memory_space<vmem>>, vector<1x512x16xbf16>
    %1 = vector.shape_cast %0 : vector<1x512x16xbf16> to vector<512x16xbf16>
    %c0_2 = arith.constant 0 : index
    %c0_3 = arith.constant 0 : index
    %c0_4 = arith.constant 0 : index
    %2 = vector.load %arg2[%c0_2, %c0_3, %c0_4] : memref<4x16x1xbf16, #tpu.memory_space<vmem>>, vector<1x16x1xbf16>
    %3 = vector.shape_cast %2 : vector<1x16x1xbf16> to vector<16x1xbf16>
    %cst = arith.constant dense<0.000000e+00> : vector<512x1xf32>
    %4 = tpu.matmul %1, %3, %cst {dimension_numbers = #tpu.dot_dimension_numbers<[1], [0], [0], [1], [0, 0, 1, 1], [], []>} : vector<512x16xbf16>, vector<16x1xbf16>, vector<512x1xf32> -> vector<512x1xf32>
    %c0_5 = arith.constant 0 : index
    %c0_6 = arith.constant 0 : index
    %5 = vector.load %arg3[%c0_5, %c0_6] : memref<1x1xf32, #tpu.memory_space<vmem>>, vector<1x1xf32>
    %6 = vector.broadcast %5 : vector<1x1xf32> to vector<512x1xf32>
    %7 = arith.addf %4, %6 : vector<512x1xf32>
    %cst_7 = arith.constant 0.000000e+00 : f32
    %8 = vector.broadcast %cst_7 : f32 to vector<512x1xf32>
    %9 = arith.cmpf oge, %7, %8 : vector<512x1xf32>
    %cst_8 = arith.constant 2.500000e-01 : f32
    %10 = vector.broadcast %cst_8 : f32 to vector<512x1xf32>
    %11 = arith.mulf %10, %7 : vector<512x1xf32>
    %12 = arith.select %9, %7, %11 : vector<512x1xi1>, vector<512x1xf32>
    %c0_9 = arith.constant 0 : index
    %c0_10 = arith.constant 0 : index
    %c0_11 = arith.constant 0 : index
    %13 = vector.load %arg4[%c0_9, %c0_10, %c0_11] : memref<4x512x1xf32, #tpu.memory_space<vmem>>, vector<1x512x1xf32>
    %14 = vector.shape_cast %13 : vector<1x512x1xf32> to vector<512x1xf32>
    %15 = vector.shape_cast %12 : vector<512x1xf32> to vector<1x512x1xf32>
    tpu.vector_store %arg4[%c0_9, %c0_10, %c0_11], %15 {strides = array<i32>} : memref<4x512x1xf32, #tpu.memory_space<vmem>>, vector<1x512x1xf32>,
    %c1 = arith.constant 1 : index
    %c0_12 = arith.constant 0 : index
    %c0_13 = arith.constant 0 : index
    %16 = vector.load %arg1[%c1, %c0_12, %c0_13] : memref<4x512x16xbf16, #tpu.memory_space<vmem>>, vector<1x512x16xbf16>
    %17 = vector.shape_cast %16 : vector<1x512x16xbf16> to vector<512x16xbf16>
    %c1_14 = arith.constant 1 : index
    %c0_15 = arith.constant 0 : index
    %c0_16 = arith.constant 0 : index
    %18 = vector.load %arg2[%c1_14, %c0_15, %c0_16] : memref<4x16x1xbf16, #tpu.memory_space<vmem>>, vector<1x16x1xbf16>
    %19 = vector.shape_cast %18 : vector<1x16x1xbf16> to vector<16x1xbf16>
    %cst_17 = arith.constant dense<0.000000e+00> : vector<512x1xf32>
    %20 = tpu.matmul %17, %19, %cst_17 {dimension_numbers = #tpu.dot_dimension_numbers<[1], [0], [0], [1], [0, 0, 1, 1], [], []>} : vector<512x16xbf16>, vector<16x1xbf16>, vector<512x1xf32> -> vector<512x1xf32>
    %c0_18 = arith.constant 0 : index
    %c0_19 = arith.constant 0 : index
    %21 = vector.load %arg3[%c0_18, %c0_19] : memref<1x1xf32, #tpu.memory_space<vmem>>, vector<1x1xf32>
    %22 = vector.broadcast %21 : vector<1x1xf32> to vector<512x1xf32>
    %23 = arith.addf %20, %22 : vector<512x1xf32>
    %cst_20 = arith.constant 0.000000e+00 : f32
    %24 = vector.broadcast %cst_20 : f32 to vector<512x1xf32>
    %25 = arith.cmpf oge, %23, %24 : vector<512x1xf32>
    %cst_21 = arith.constant 2.500000e-01 : f32
    %26 = vector.broadcast %cst_21 : f32 to vector<512x1xf32>
    %27 = arith.mulf %26, %23 : vector<512x1xf32>
    %28 = arith.select %25, %23, %27 : vector<512x1xi1>, vector<512x1xf32>
    %c1_22 = arith.constant 1 : index
    %c0_23 = arith.constant 0 : index
    %c0_24 = arith.constant 0 : index
    %29 = vector.load %arg4[%c1_22, %c0_23, %c0_24] : memref<4x512x1xf32, #tpu.memory_space<vmem>>, vector<1x512x1xf32>
    %30 = vector.shape_cast %29 : vector<1x512x1xf32> to vector<512x1xf32>
    %31 = vector.shape_cast %28 : vector<512x1xf32> to vector<1x512x1xf32>
    tpu.vector_store %arg4[%c1_22, %c0_23, %c0_24], %31 {strides = array<i32>} : memref<4x512x1xf32, #tpu.memory_space<vmem>>, vector<1x512x1xf32>,
    %c2 = arith.constant 2 : index
    %c0_25 = arith.constant 0 : index
    %c0_26 = arith.constant 0 : index
    %32 = vector.load %arg1[%c2, %c0_25, %c0_26] : memref<4x512x16xbf16, #tpu.memory_space<vmem>>, vector<1x512x16xbf16>
    %33 = vector.shape_cast %32 : vector<1x512x16xbf16> to vector<512x16xbf16>
    %c2_27 = arith.constant 2 : index
    %c0_28 = arith.constant 0 : index
    %c0_29 = arith.constant 0 : index
    %34 = vector.load %arg2[%c2_27, %c0_28, %c0_29] : memref<4x16x1xbf16, #tpu.memory_space<vmem>>, vector<1x16x1xbf16>
    %35 = vector.shape_cast %34 : vector<1x16x1xbf16> to vector<16x1xbf16>
    %cst_30 = arith.constant dense<0.000000e+00> : vector<512x1xf32>
    %36 = tpu.matmul %33, %35, %cst_30 {dimension_numbers = #tpu.dot_dimension_numbers<[1], [0], [0], [1], [0, 0, 1, 1], [], []>} : vector<512x16xbf16>, vector<16x1xbf16>, vector<512x1xf32> -> vector<512x1xf32>
    %c0_31 = arith.constant 0 : index
    %c0_32 = arith.constant 0 : index
    %37 = vector.load %arg3[%c0_31, %c0_32] : memref<1x1xf32, #tpu.memory_space<vmem>>, vector<1x1xf32>
    %38 = vector.broadcast %37 : vector<1x1xf32> to vector<512x1xf32>
    %39 = arith.addf %36, %38 : vector<512x1xf32>
    %cst_33 = arith.constant 0.000000e+00 : f32
    %40 = vector.broadcast %cst_33 : f32 to vector<512x1xf32>
    %41 = arith.cmpf oge, %39, %40 : vector<512x1xf32>
    %cst_34 = arith.constant 2.500000e-01 : f32
    %42 = vector.broadcast %cst_34 : f32 to vector<512x1xf32>
    %43 = arith.mulf %42, %39 : vector<512x1xf32>
    %44 = arith.select %41, %39, %43 : vector<512x1xi1>, vector<512x1xf32>
    %c2_35 = arith.constant 2 : index
    %c0_36 = arith.constant 0 : index
    %c0_37 = arith.constant 0 : index
    %45 = vector.load %arg4[%c2_35, %c0_36, %c0_37] : memref<4x512x1xf32, #tpu.memory_space<vmem>>, vector<1x512x1xf32>
    %46 = vector.shape_cast %45 : vector<1x512x1xf32> to vector<512x1xf32>
    %47 = vector.shape_cast %44 : vector<512x1xf32> to vector<1x512x1xf32>
    tpu.vector_store %arg4[%c2_35, %c0_36, %c0_37], %47 {strides = array<i32>} : memref<4x512x1xf32, #tpu.memory_space<vmem>>, vector<1x512x1xf32>,
    %c3 = arith.constant 3 : index
    %c0_38 = arith.constant 0 : index
    %c0_39 = arith.constant 0 : index
    %48 = vector.load %arg1[%c3, %c0_38, %c0_39] : memref<4x512x16xbf16, #tpu.memory_space<vmem>>, vector<1x512x16xbf16>
    %49 = vector.shape_cast %48 : vector<1x512x16xbf16> to vector<512x16xbf16>
    %c3_40 = arith.constant 3 : index
    %c0_41 = arith.constant 0 : index
    %c0_42 = arith.constant 0 : index
    %50 = vector.load %arg2[%c3_40, %c0_41, %c0_42] : memref<4x16x1xbf16, #tpu.memory_space<vmem>>, vector<1x16x1xbf16>
    %51 = vector.shape_cast %50 : vector<1x16x1xbf16> to vector<16x1xbf16>
    %cst_43 = arith.constant dense<0.000000e+00> : vector<512x1xf32>
    %52 = tpu.matmul %49, %51, %cst_43 {dimension_numbers = #tpu.dot_dimension_numbers<[1], [0], [0], [1], [0, 0, 1, 1], [], []>} : vector<512x16xbf16>, vector<16x1xbf16>, vector<512x1xf32> -> vector<512x1xf32>
    %c0_44 = arith.constant 0 : index
    %c0_45 = arith.constant 0 : index
    %53 = vector.load %arg3[%c0_44, %c0_45] : memref<1x1xf32, #tpu.memory_space<vmem>>, vector<1x1xf32>
    %54 = vector.broadcast %53 : vector<1x1xf32> to vector<512x1xf32>
    %55 = arith.addf %52, %54 : vector<512x1xf32>
    %cst_46 = arith.constant 0.000000e+00 : f32
    %56 = vector.broadcast %cst_46 : f32 to vector<512x1xf32>
    %57 = arith.cmpf oge, %55, %56 : vector<512x1xf32>
    %cst_47 = arith.constant 2.500000e-01 : f32
    %58 = vector.broadcast %cst_47 : f32 to vector<512x1xf32>
    %59 = arith.mulf %58, %55 : vector<512x1xf32>
    %60 = arith.select %57, %55, %59 : vector<512x1xi1>, vector<512x1xf32>
    %c3_48 = arith.constant 3 : index
    %c0_49 = arith.constant 0 : index
    %c0_50 = arith.constant 0 : index
    %61 = vector.load %arg4[%c3_48, %c0_49, %c0_50] : memref<4x512x1xf32, #tpu.memory_space<vmem>>, vector<1x512x1xf32>
    %62 = vector.shape_cast %61 : vector<1x512x1xf32> to vector<512x1xf32>
    %63 = vector.shape_cast %60 : vector<512x1xf32> to vector<1x512x1xf32>
    tpu.vector_store %arg4[%c3_48, %c0_49, %c0_50], %63 {strides = array<i32>} : memref<4x512x1xf32, #tpu.memory_space<vmem>>, vector<1x512x1xf32>,
    return
  }
  func.func @transform_0(%arg0: i32) -> (i32, i32, i32) {
    %c0_i32 = arith.constant 0 : i32
    %c0_i32_0 = arith.constant 0 : i32
    %c0_i32_1 = arith.constant 0 : i32
    %c0_i32_2 = arith.constant 0 : i32
    return %c0_i32, %c0_i32_0, %c0_i32_1 : i32, i32, i32
  }
  func.func @transform_1(%arg0: i32) -> (i32, i32, i32) {
    %c0_i32 = arith.constant 0 : i32
    %c0_i32_0 = arith.constant 0 : i32
    %c0_i32_1 = arith.constant 0 : i32
    %c0_i32_2 = arith.constant 0 : i32
    return %c0_i32, %c0_i32_0, %c0_i32_1 : i32, i32, i32
  }
  func.func @transform_2(%arg0: i32) -> (i32, i32) {
    %c0_i32 = arith.constant 0 : i32
    %c0_i32_0 = arith.constant 0 : i32
    %c0_i32_1 = arith.constant 0 : i32
    return %c0_i32, %c0_i32_0 : i32, i32
  }
  func.func @transform_3(%arg0: i32) -> (i32, i32, i32) {
    %c0_i32 = arith.constant 0 : i32
    %c0_i32_0 = arith.constant 0 : i32
    %c0_i32_1 = arith.constant 0 : i32
    %c0_i32_2 = arith.constant 0 : i32
    return %c0_i32, %c0_i32_0, %c0_i32_1 : i32, i32, i32
  }
}

</mosaic_0001>

<bundles_post_ra>
// kernel: cae_forward.9
= control target key start
LH: loop header
LB: loop body
LE: loop exit
PB: predicated region body
PF: predicated region fallthrough
CT: control target
= control target key end

     0   :  { %vm257_vm0 = vcmask 130048   ;;  %vm715_vm5 = vcmask 31744   ;;  %s2937_s1 = inlined_call_operand.vmem [shape: bf16[1,16,4], index: 1, kind: input, shape index: {}]   ;;  %s2938_s0 = inlined_call_operand.vmem [shape: bf16[1,512,16], index: 0, kind: input, shape index: {}]   ;;  %s2939_s2 = inlined_call_operand.vmem [shape: f32[1,4], index: 2, kind: input, shape index: {}]   ;;  %s2940_s3 = inlined_call_operand.vmem [shape: f32[1,4], index: 3, kind: input, shape index: {}]   ;;  %s2941_s4 = inlined_call_operand.vmem [shape: f32[1,4], index: 4, kind: input, shape index: {}]   ;;  %s2942_s5 = inlined_call_operand.vmem [shape: bf16[1,512,4], index: 5, kind: output, shape index: {}]  }
   0x1   :  { %v1530_v0 = vld [vmem:[%s2937_s1] sm:$0xff]  ;;  %v1499_v3 = vld [vmem:[%s2938_s0 + $0x8] sm:$0xff]  ;;  %v1500_v6 = vld [vmem:[%s2938_s0 + $0x10] sm:$0xff] }
   0x2   :  { %v1498_v1 = vld [vmem:[%s2938_s0] sm:$0xff]  ;;  %361 = vmatpush.bf16.msra.mxu0 %v1530_v0  ;;  %1531 = vmatpush.bf16.msra.mxu1 %v1530_v0  ;;  %v1507_v4 = vld [vmem:[%s2938_s0 + $0x48] sm:$0xff]  ;;  %v1508_v7 = vld [vmem:[%s2938_s0 + $0x50] sm:$0xff] }
   0x3   :  { %v1506_v2 = vld [vmem:[%s2938_s0 + $0x40] sm:$0xff]  ;;  %1532 = vmatpush.bf16.msra.mxu2 %v1530_v0  ;;  %1533 = vmatpush.bf16.msra.mxu3 %v1530_v0  ;;  %v1515_v8 = vld [vmem:[%s2938_s0 + $0x88] sm:$0xff]  ;;  %v1501_v9 = vld [vmem:[%s2938_s0 + $0x18] sm:$0xff] }
   0x4   :  { %v1514_v5 = vld [vmem:[%s2938_s0 + $0x80] sm:$0xff]  ;;  %v1509_v10 = vld [vmem:[%s2938_s0 + $0x58] sm:$0xff]  ;;  %v1516_v11 = vld [vmem:[%s2938_s0 + $0x90] sm:$0xff] }
   0x5   :  { %1466 = vmatmul.msk.bf16.vlgmr.msra.gmra.mxu0 %vm257_vm0, %v1498_v1  ;;  %1474 = vmatmul.msk.bf16.vlgmr.msra.gmra.mxu1 %vm257_vm0, %v1506_v2  ;;  %v1522_v12 = vld [vmem:[%s2938_s0 + $0xc0] sm:$0xff]  ;;  %v1517_v15 = vld [vmem:[%s2938_s0 + $0x98] sm:$0xff]  ;;  %v1523_v16 = vld [vmem:[%s2938_s0 + $0xc8] sm:$0xff] }
   0x6   :  { %1482 = vmatmul.msk.bf16.vlgmr.msra.gmra.mxu2 %vm257_vm0, %v1514_v5  ;;  %1490 = vmatmul.msk.bf16.vlgmr.msra.gmra.mxu3 %vm257_vm0, %v1522_v12  ;;  %v1502_v13 = vld [vmem:[%s2938_s0 + $0x20] sm:$0xff]  ;;  %v1503_v17 = vld [vmem:[%s2938_s0 + $0x28] sm:$0xff]  ;;  %v1524_v20 = vld [vmem:[%s2938_s0 + $0xd0] sm:$0xff] }
   0x7   :  { %v1510_v14 = vld [vmem:[%s2938_s0 + $0x60] sm:$0xff]  ;;  %v1511_v18 = vld [vmem:[%s2938_s0 + $0x68] sm:$0xff]  ;;  %v1504_v21 = vld [vmem:[%s2938_s0 + $0x30] sm:$0xff] }
   0x8   :  { %v1518_v19 = vld [vmem:[%s2938_s0 + $0xa0] sm:$0xff]  ;;  %v1512_v22 = vld [vmem:[%s2938_s0 + $0x70] sm:$0xff]  ;;  %v1519_v23 = vld [vmem:[%s2938_s0 + $0xa8] sm:$0xff] }
   0x9   :  { %v1525_v24 = vld [vmem:[%s2938_s0 + $0xd8] sm:$0xff]  ;;  %v1520_v27 = vld [vmem:[%s2938_s0 + $0xb0] sm:$0xff]  ;;  %v1526_v28 = vld [vmem:[%s2938_s0 + $0xe0] sm:$0xff] }
   0xa   :  { %v1505_v25 = vld [vmem:[%s2938_s0 + $0x38] sm:$0xff]  ;;  %v1527_v32 = vld [vmem:[%s2938_s0 + $0xe8] sm:$0xff]  ;;  %v1528_v37 = vld [vmem:[%s2938_s0 + $0xf0] sm:$0xff] }
   0xb   :  { %v1513_v26 = vld [vmem:[%s2938_s0 + $0x78] sm:$0xff]  ;;  %v1732_v57 = vld [vmem:[%s2939_s2] ss:$0 sm:$0xff] }
   0xc   :  { %v1521_v31 = vld [vmem:[%s2938_s0 + $0xb8] sm:$0xff] }
   0xd   :  { %v1529_v43 = vld [vmem:[%s2938_s0 + $0xf8] sm:$0xff] }
  0x15   :  { %1467 = vmatmul.msk.bf16.gmra.mxu0 %vm257_vm0, %v1499_v3  ;;  %1475 = vmatmul.msk.bf16.gmra.mxu1 %vm257_vm0, %v1507_v4 }
  0x16   :  { %1483 = vmatmul.msk.bf16.gmra.mxu2 %vm257_vm0, %v1515_v8  ;;  %1491 = vmatmul.msk.bf16.gmra.mxu3 %vm257_vm0, %v1523_v16 }
  0x25   :  { %1468 = vmatmul.msk.bf16.gmra.mxu0 %vm257_vm0, %v1500_v6  ;;  %1476 = vmatmul.msk.bf16.gmra.mxu1 %vm257_vm0, %v1508_v7 }
  0x26   :  { %1484 = vmatmul.msk.bf16.gmra.mxu2 %vm257_vm0, %v1516_v11  ;;  %1492 = vmatmul.msk.bf16.gmra.mxu3 %vm257_vm0, %v1524_v20 }
  0x35   :  { %1469 = vmatmul.msk.bf16.gmra.mxu0 %vm257_vm0, %v1501_v9  ;;  %1477 = vmatmul.msk.bf16.gmra.mxu1 %vm257_vm0, %v1509_v10 }
  0x36   :  { %1485 = vmatmul.msk.bf16.gmra.mxu2 %vm257_vm0, %v1517_v15  ;;  %1493 = vmatmul.msk.bf16.gmra.mxu3 %vm257_vm0, %v1525_v24 }
  0x45   :  { %1470 = vmatmul.msk.bf16.gmra.mxu0 %vm257_vm0, %v1502_v13  ;;  %1478 = vmatmul.msk.bf16.gmra.mxu1 %vm257_vm0, %v1510_v14 }
  0x46   :  { %1486 = vmatmul.msk.bf16.gmra.mxu2 %vm257_vm0, %v1518_v19  ;;  %1494 = vmatmul.msk.bf16.gmra.mxu3 %vm257_vm0, %v1526_v28 }
  0x55   :  { %1471 = vmatmul.msk.bf16.gmra.mxu0 %vm257_vm0, %v1503_v17  ;;  %1479 = vmatmul.msk.bf16.gmra.mxu1 %vm257_vm0, %v1511_v18 }
  0x56   :  { %1487 = vmatmul.msk.bf16.gmra.mxu2 %vm257_vm0, %v1519_v23  ;;  %1495 = vmatmul.msk.bf16.gmra.mxu3 %vm257_vm0, %v1527_v32 }
  0x65   :  { %1472 = vmatmul.msk.bf16.gmra.mxu0 %vm257_vm0, %v1504_v21  ;;  %1480 = vmatmul.msk.bf16.gmra.mxu1 %vm257_vm0, %v1512_v22 }
  0x66   :  { %1488 = vmatmul.msk.bf16.gmra.mxu2 %vm257_vm0, %v1520_v27  ;;  %1496 = vmatmul.msk.bf16.gmra.mxu3 %vm257_vm0, %v1528_v37 }
  0x75   :  { %1473 = vmatmul.msk.bf16.gmra.mxu0 %vm257_vm0, %v1505_v25  ;;  %1481 = vmatmul.msk.bf16.gmra.mxu1 %vm257_vm0, %v1513_v26 }
  0x76   :  { %1489 = vmatmul.msk.bf16.gmra.mxu2 %vm257_vm0, %v1521_v31  ;;  %1497 = vmatmul.msk.bf16.gmra.mxu3 %vm257_vm0, %v1529_v43 }
  0x82   :  { %v363_v29 = vpop.f32.mrf.mxu0  ;;  %v403_v30 = vpop.f32.mrf.mxu1 }
  0x83   :  { %v364_v58 = vadd.f32 %v1732_v57, %v363_v29  ;;  %v404_v61 = vadd.f32 %v1732_v57, %v403_v30 }
  0x85   :  { %v587_v1 = vmul.f32 0.25, %v364_v58  ;;  %vm523_vm1 = vcmp.ge.f32.partialorder %v364_v58, 0.0  ;;  %v603_v4 = vmul.f32 0.25, %v404_v61  ;;  %vm539_vm2 = vcmp.ge.f32.partialorder %v404_v61, 0.0 }
  0x87   :  { %v1747_v7 = vsel %vm523_vm1, %v364_v58, %v587_v1  ;;  %v1752_v11 = vsel %vm539_vm2, %v404_v61, %v603_v4 }
  0x88   :  { %2967 = vst [vmem:[#allocation2_spill] sm:$0xff] %v1752_v11  ;;  %v850_v15 = vmul.f32 %v1747_v7, %v1747_v7  ;;  %v866_v18 = vmul.f32 %v1752_v11, %v1752_v11  ;;  %v716_v21 = vsel %vm715_vm5, %v1747_v7, 0.0  ;;  %v1784_v30 = vsel %vm715_vm5, %v1752_v11, 0.0 }
  0x89   :  { %v1695_v38 = vpop.f32.mrf.mxu2  ;;  %v1719_v52 = vpop.f32.mrf.mxu3 }
  0x8a   :  { %v365_v33 = vpop.f32.mrf.mxu0  ;;  %v405_v34 = vpop.f32.mrf.mxu1  ;;  %v914_v29 = vsel %vm715_vm5, %v850_v15, 0.0 }
  0x8b   :  { %v366_v62 = vadd.f32 %v1732_v57, %v365_v33  ;;  %v406_v0 = vadd.f32 %v1732_v57, %v405_v34  ;;  %v1789_v33 = vsel %vm715_vm5, %v866_v18, 0.0 }
  0x8d   :  { %v588_v5 = vmul.f32 0.25, %v366_v62  ;;  %vm524_vm3 = vcmp.ge.f32.partialorder %v366_v62, 0.0  ;;  %v604_v6 = vmul.f32 0.25, %v406_v0  ;;  %vm540_vm4 = vcmp.ge.f32.partialorder %v406_v0, 0.0 }
  0x8f   :  { %v1754_v12 = vsel %vm524_vm3, %v366_v62, %v588_v5  ;;  %v1761_v16 = vsel %vm540_vm4, %v406_v0, %v604_v6 }
  0x90   :  { %2968 = vst [vmem:[#allocation3_spill] sm:$0xff] %v1761_v16  ;;  %v851_v22 = vmul.f32 %v1754_v12, %v1754_v12  ;;  %v717_v24 = vsel %vm715_vm5, %v1754_v12, 0.0  ;;  %v867_v26 = vmul.f32 %v1761_v16, %v1761_v16 }
  0x91   :  { %v1702_v44 = vpop.f32.mrf.mxu2  ;;  %v1727_v56 = vpop.f32.mrf.mxu3 }
  0x92   :  { %v368_v35 = vpop.f32.mrf.mxu0  ;;  %v408_v36 = vpop.f32.mrf.mxu1  ;;  %v915_v37 = vsel %vm715_vm5, %v851_v22, 0.0  ;;  %v1805_v43 = vsel %vm715_vm5, %v867_v26, 0.0 }
  0x93   :  { %v369_v3 = vadd.f32 %v1732_v57, %v368_v35  ;;  %v409_v8 = vadd.f32 %v1732_v57, %v408_v36  ;;  %v718_v36 = vadd.f32 %v717_v24, %v716_v21 }
  0x95   :  { %v589_v10 = vmul.f32 0.25, %v369_v3  ;;  %vm525_vm6 = vcmp.ge.f32.partialorder %v369_v3, 0.0  ;;  %v605_v19 = vmul.f32 0.25, %v409_v8  ;;  %vm541_vm7 = vcmp.ge.f32.partialorder %v409_v8, 0.0 }
  0x97   :  { %v1772_v23 = vsel %vm525_vm6, %v369_v3, %v589_v10  ;;  %v1791_v34 = vsel %vm541_vm7, %v409_v8, %v605_v19  ;;  %v916_v3 = vadd.f32 %v915_v37, %v914_v29 }
  0x98   :  { %v852_v32 = vmul.f32 %v1772_v23, %v1772_v23  ;;  %2969 = vst [vmem:[#allocation4_spill] sm:$0xff] %v1791_v34  ;;  %v868_v62 = vmul.f32 %v1791_v34, %v1791_v34  ;;  %v1820_v5 = vsel %vm715_vm5, %v1791_v34, 0.0 }
  0x99   :  { %v1709_v47 = vpop.f32.mrf.mxu2  ;;  %v1744_v2 = vpop.f32.mrf.mxu3 }
  0x9a   :  { %v370_v39 = vpop.f32.mrf.mxu0  ;;  %v410_v40 = vpop.f32.mrf.mxu1  ;;  %v917_v4 = vsel %vm715_vm5, %v852_v32, 0.0  ;;  %v1837_v21 = vsel %vm715_vm5, %v868_v62, 0.0 }
  0x9b   :  { %v371_v13 = vadd.f32 %v1732_v57, %v370_v39  ;;  %v411_v17 = vadd.f32 %v1732_v57, %v410_v40  ;;  %v1798_v39 = vsel %vm715_vm5, %v1761_v16, 0.0  ;;  %v444_v40 = vadd.f32 %v1732_v57, %v1695_v38 }
  0x9c   :  { %v719_v38 = vsel %vm715_vm5, %v1772_v23, 0.0  ;;  %v918_v24 = vadd.f32 %v917_v4, %v916_v3 }
  0x9d   :  { %v590_v25 = vmul.f32 0.25, %v371_v13  ;;  %vm526_vm8 = vcmp.ge.f32.partialorder %v371_v13, 0.0  ;;  %v606_v31 = vmul.f32 0.25, %v411_v17  ;;  %vm542_vm9 = vcmp.ge.f32.partialorder %v411_v17, 0.0 }
  0x9e   :  { %vm555_vm11 = vcmp.ge.f32.partialorder %v444_v40, 0.0  ;;  %v720_v19 = vadd.f32 %v719_v38, %v718_v36  ;;  %v1866_v38 = vadd.f32 %v1732_v57, %v1702_v44 }
  0x9f   :  { %v1811_v0 = vsel %vm542_vm9, %v411_v17, %v606_v31 }
  0xa0   :  { %2971 = vst [vmem:[#allocation6_spill] sm:$0xff] %v1811_v0  ;;  %v869_v15 = vmul.f32 %v1811_v0, %v1811_v0  ;;  %vm556_vm2 = vcmp.ge.f32.partialorder %v1866_v38, 0.0 }
  0xa1   :  { %v1715_v50 = vpop.f32.mrf.mxu2  ;;  %v1779_v28 = vpop.f32.mrf.mxu3 }
  0xa2   :  { %v373_v41 = vpop.f32.mrf.mxu0  ;;  %v1697_v42 = vpop.f32.mrf.mxu1 }
  0xa3   :  { %v374_v27 = vadd.f32 %v1732_v57, %v373_v41  ;;  %v1802_v41 = vsel %vm526_vm8, %v371_v13, %v590_v25  ;;  %v1841_v25 = vsel %vm715_vm5, %v1811_v0, 0.0 }
  0xa4   :  { %2970 = vst [vmem:[#allocation5_spill] sm:$0xff] %v1802_v41  ;;  %v721_v6 = vsel %vm715_vm5, %v1802_v41, 0.0  ;;  %v853_v8 = vmul.f32 %v1802_v41, %v1802_v41 }
  0xa5   :  { %v591_v58 = vmul.f32 0.25, %v374_v27  ;;  %vm527_vm10 = vcmp.ge.f32.partialorder %v374_v27, 0.0 }
  0xa6   :  { %v919_v31 = vsel %vm715_vm5, %v853_v8, 0.0 }
  0xa7   :  { %v1828_v10 = vsel %vm527_vm10, %v374_v27, %v591_v58  ;;  %v1856_v58 = vsel %vm715_vm5, %v869_v15, 0.0  ;;  %v920_v8 = vadd.f32 %v919_v31, %v918_v24 }
  0xa8   :  { %2972 = vst [vmem:[#allocation7_spill] sm:$0xff] %v1828_v10  ;;  %v854_v32 = vmul.f32 %v1828_v10, %v1828_v10 }
  0xa9   :  { %v1725_v55 = vpop.f32.mrf.mxu2  ;;  %v1845_v29 = vpop.f32.mrf.mxu3 }
  0xaa   :  { %v1705_v45 = vpop.f32.mrf.mxu0  ;;  %v1707_v46 = vpop.f32.mrf.mxu1 }
  0xab   :  { %v376_v61 = vadd.f32 %v1732_v57, %v1705_v45 }
  0xad   :  { %v592_v13 = vmul.f32 0.25, %v376_v61  ;;  %vm528_vm12 = vcmp.ge.f32.partialorder %v376_v61, 0.0 }
  0xaf   :  { %v1853_v37 = vsel %vm528_vm12, %v376_v61, %v592_v13  ;;  %v723_v61 = vsel %vm715_vm5, %v1828_v10, 0.0 }
  0xb0   :  { %2974 = vst [vmem:[#allocation9_spill] sm:$0xff] %v1853_v37  ;;  %v855_v44 = vmul.f32 %v1853_v37, %v1853_v37 }
  0xb1   :  { %v1741_v63 = vpop.f32.mrf.mxu2 }
  0xb2   :  { %v1711_v48 = vpop.f32.mrf.mxu0  ;;  %v1713_v49 = vpop.f32.mrf.mxu1 }
  0xb3   :  { %v379_v1 = vadd.f32 %v1732_v57, %v1711_v48  ;;  %v619_v48 = vmul.f32 0.25, %v444_v40 }
  0xb5   :  { %v593_v22 = vmul.f32 0.25, %v379_v1  ;;  %vm529_vm13 = vcmp.ge.f32.partialorder %v379_v1, 0.0  ;;  %v1851_v36 = vsel %vm555_vm11, %v444_v40, %v619_v48 }
  0xb6   :  { %2973 = vst [vmem:[#allocation8_spill] sm:$0xff] %v1851_v36  ;;  %v1874_v4 = vsel %vm715_vm5, %v1851_v36, 0.0 }
  0xb7   :  { %v1862_v3 = vsel %vm529_vm13, %v379_v1, %v593_v22  ;;  %v725_v22 = vsel %vm715_vm5, %v1853_v37, 0.0 }
  0xb8   :  { %2975 = vst [vmem:[#allocation10_spill] sm:$0xff] %v1862_v3  ;;  %v856_v48 = vmul.f32 %v1862_v3, %v1862_v3 }
  0xb9   :  { %v1766_v20 = vpop.f32.mrf.mxu2 }
  0xba   :  { %v1717_v51 = vpop.f32.mrf.mxu0  ;;  %v1721_v53 = vpop.f32.mrf.mxu1 }
  0xbb   :  { %v381_v17 = vadd.f32 %v1732_v57, %v1717_v51  ;;  %v722_v51 = vadd.f32 %v721_v6, %v720_v19  ;;  %v921_v6 = vsel %vm715_vm5, %v854_v32, 0.0  ;;  %v1897_v32 = vmul.f32 0.25, %v1866_v38 }
  0xbc   :  { %v922_v31 = vadd.f32 %v921_v6, %v920_v8 }
  0xbd   :  { %v594_v62 = vmul.f32 0.25, %v381_v17  ;;  %vm530_vm14 = vcmp.ge.f32.partialorder %v381_v17, 0.0  ;;  %v724_v24 = vadd.f32 %v723_v61, %v722_v51  ;;  %v1914_v51 = vpop.f32.mrf.mxu3 }
  0xbf   :  { %v1890_v15 = vsel %vm530_vm14, %v381_v17, %v594_v62  ;;  %v923_v62 = vsel %vm715_vm5, %v855_v44, 0.0  ;;  %v726_v10 = vadd.f32 %v725_v22, %v724_v24 }
  0xc0   :  { %2976 = vst [vmem:[#allocation11_spill] sm:$0xff] %v1890_v15  ;;  %v857_v16 = vmul.f32 %v1890_v15, %v1890_v15  ;;  %v729_v8 = vsel %vm715_vm5, %v1890_v15, 0.0 }
  0xc1   :  { %v1834_v18 = vpop.f32.mrf.mxu2 }
  0xc2   :  { %v1723_v54 = vpop.f32.mrf.mxu0  ;;  %v1737_v60 = vpop.f32.mrf.mxu1  ;;  %v927_v24 = vsel %vm715_vm5, %v857_v16, 0.0 }
  0xc3   :  { %v384_v26 = vadd.f32 %v1732_v57, %v1723_v54  ;;  %v1860_v54 = vadd.f32 %v1732_v57, %v1697_v42  ;;  %v1878_v42 = vmul.f32 %v1851_v36, %v1851_v36 }
  0xc5   :  { %v595_v1 = vmul.f32 0.25, %v384_v26  ;;  %vm531_vm15 = vcmp.ge.f32.partialorder %v384_v26, 0.0  ;;  %v1888_v13 = vmul.f32 0.25, %v1860_v54  ;;  %vm543_vm1 = vcmp.ge.f32.partialorder %v1860_v54, 0.0 }
  0xc7   :  { %v1901_v0 = vsel %vm531_vm15, %v384_v26, %v595_v1  ;;  %v925_v26 = vsel %vm715_vm5, %v856_v48, 0.0  ;;  %v1925_v48 = vadd.f32 %v1732_v57, %v1707_v46 }
  0xc8   :  { %v858_v61 = vmul.f32 %v1901_v0, %v1901_v0 }
  0xc9   :  { %v1903_v17 = vpop.f32.mrf.mxu2  ;;  %vm544_vm9 = vcmp.ge.f32.partialorder %v1925_v48, 0.0 }
  0xca   :  { %v1735_v59 = vpop.f32.mrf.mxu0  ;;  %v1757_v14 = vpop.f32.mrf.mxu1 }
  0xcb   :  { %v386_v40 = vadd.f32 %v1732_v57, %v1735_v59 }
  0xcd   :  { %v596_v36 = vmul.f32 0.25, %v386_v40  ;;  %vm532_vm0 = vcmp.ge.f32.partialorder %v386_v40, 0.0 }
  0xcf   :  { %v1918_v1 = vsel %vm532_vm0, %v386_v40, %v596_v36  ;;  %v731_v40 = vsel %vm715_vm5, %v1901_v0, 0.0 }
  0xd0   :  { %2977 = vst [vmem:[#allocation12_spill] sm:$0xff] %v1918_v1 }
  0xd2   :  { %v1750_v9 = vpop.f32.mrf.mxu0  ;;  %v1822_v45 = vpop.f32.mrf.mxu1 }
  0xd3   :  { %v389_v59 = vadd.f32 %v1732_v57, %v1750_v9 }
  0xd5   :  { %v597_v11 = vmul.f32 0.25, %v389_v59  ;;  %vm533_vm3 = vcmp.ge.f32.partialorder %v389_v59, 0.0 }
  0xda   :  { %v1793_v35 = vpop.f32.mrf.mxu0  ;;  %v1892_v19 = vpop.f32.mrf.mxu1 }
  0xdb   :  { %v391_v9 = vadd.f32 %v1732_v57, %v1793_v35  ;;  %v727_v35 = vsel %vm715_vm5, %v1862_v3, 0.0  ;;  %v1928_v3 = vsel %vm533_vm3, %v389_v59, %v597_v11  ;;  %v733_v11 = vsel %vm715_vm5, %v1918_v1, 0.0 }
  0xdc   :  { %v728_v22 = vadd.f32 %v727_v35, %v726_v10  ;;  %v860_v16 = vmul.f32 %v1928_v3, %v1928_v3 }
  0xdd   :  { %v598_v6 = vmul.f32 0.25, %v391_v9  ;;  %vm534_vm4 = vcmp.ge.f32.partialorder %v391_v9, 0.0 }
  0xdf   :  { %v1935_v46 = vsel %vm534_vm4, %v391_v9, %v598_v6 }
  0xe2   :  { %v393_v27 = vpop.f32.mrf.mxu0  ;;  %v1941_v35 = vpop.f32.mrf.mxu1 }
  0xe3   :  { %v394_v37 = vadd.f32 %v1732_v57, %v393_v27  ;;  %v924_v27 = vadd.f32 %v923_v62, %v922_v31  ;;  %v730_v31 = vadd.f32 %v729_v8, %v728_v22  ;;  %v929_v62 = vsel %vm715_vm5, %v858_v61, 0.0 }
  0xe4   :  { %v735_v22 = vsel %vm715_vm5, %v1928_v3, 0.0 }
  0xe5   :  { %v599_v41 = vmul.f32 0.25, %v394_v37  ;;  %v926_v36 = vadd.f32 %v925_v26, %v924_v27  ;;  %vm535_vm6 = vcmp.ge.f32.partialorder %v394_v37, 0.0  ;;  %v732_v26 = vadd.f32 %v731_v40, %v730_v31 }
  0xe6   :  { %v449_v27 = vadd.f32 %v1732_v57, %v1709_v47 }
  0xe7   :  { %v928_v10 = vadd.f32 %v927_v24, %v926_v36  ;;  %v1945_v8 = vsel %vm535_vm6, %v394_v37, %v599_v41  ;;  %v861_v24 = vmul.f32 %v1935_v46, %v1935_v46  ;;  %v1953_v36 = vpop.f32.mrf.mxu2  ;;  %v1961_v41 = vsel %vm543_vm1, %v1860_v54, %v1888_v13 }
  0xe8   :  { %2978 = vst [vmem:[#allocation13_spill] sm:$0xff] %v1945_v8  ;;  %v933_v37 = vsel %vm715_vm5, %v860_v16, 0.0  ;;  %v862_v31 = vmul.f32 %v1945_v8, %v1945_v8  ;;  %vm557_vm10 = vcmp.ge.f32.partialorder %v449_v27, 0.0 }
  0xe9   :  { %v930_v61 = vadd.f32 %v929_v62, %v928_v10  ;;  %2980 = vst [vmem:[#allocation15_spill] sm:$0xff] %v1961_v41  ;;  %v1968_v62 = vpop.f32.mrf.mxu3  ;;  %v935_v13 = vsel %vm715_vm5, %v861_v24, 0.0 }
  0xea   :  { %v395_v34 = vpop.f32.mrf.mxu0 }
  0xeb   :  { %v396_v44 = vadd.f32 %v1732_v57, %v395_v34  ;;  %v859_v34 = vmul.f32 %v1918_v1, %v1918_v1  ;;  %v734_v1 = vadd.f32 %v733_v11, %v732_v26  ;;  %v739_v11 = vsel %vm715_vm5, %v1945_v8, 0.0 }
  0xed   :  { %v600_v15 = vmul.f32 0.25, %v396_v44  ;;  %vm536_vm7 = vcmp.ge.f32.partialorder %v396_v44, 0.0  ;;  %v931_v6 = vsel %vm715_vm5, %v859_v34, 0.0  ;;  %v737_v34 = vsel %vm715_vm5, %v1935_v46, 0.0 }
  0xee   :  { %v736_v10 = vadd.f32 %v735_v22, %v734_v1  ;;  %v937_v1 = vsel %vm715_vm5, %v862_v31, 0.0  ;;  %v419_v22 = vadd.f32 %v1732_v57, %v1713_v49 }
  0xef   :  { %v1955_v40 = vsel %vm536_vm7, %v396_v44, %v600_v15  ;;  %v1974_v15 = vsel %vm556_vm2, %v1866_v38, %v1897_v32  ;;  %v932_v44 = vadd.f32 %v931_v6, %v930_v61  ;;  %v621_v32 = vmul.f32 0.25, %v449_v27 }
  0xf0   :  { %2979 = vst [vmem:[#allocation14_spill] sm:$0xff] %v1955_v40  ;;  %v863_v16 = vmul.f32 %v1955_v40, %v1955_v40  ;;  %v738_v38 = vadd.f32 %v737_v34, %v736_v10  ;;  %v1997_v34 = vsel %vm715_vm5, %v1878_v42, 0.0  ;;  %v2002_v10 = vpop.f32.mrf.mxu1  ;;  %v883_v42 = vmul.f32 %v1974_v15, %v1974_v15 }
  0xf1   :  { %2981 = vst [vmem:[#allocation16_spill] sm:$0xff] %v1974_v15  ;;  %v934_v26 = vadd.f32 %v933_v37, %v932_v44  ;;  %v870_v37 = vmul.f32 %v1961_v41, %v1961_v41  ;;  %vm545_vm12 = vcmp.ge.f32.partialorder %v419_v22, 0.0 }
  0xf2   :  { %v398_v59 = vpop.f32.mrf.mxu0  ;;  %v939_v31 = vsel %vm715_vm5, %v863_v16, 0.0 }
  0xf3   :  { %v399_v9 = vadd.f32 %v1732_v57, %v398_v59  ;;  %v608_v59 = vmul.f32 0.25, %v1925_v48  ;;  %v936_v24 = vadd.f32 %v935_v13, %v934_v26  ;;  %v2012_v26 = vsel %vm557_vm10, %v449_v27, %v621_v32  ;;  %v2025_v32 = vpop.f32.mrf.mxu3 }
  0xf4   :  { %2982 = vst [vmem:[#allocation17_spill] sm:$0xff] %v2012_v26 }
  0xf5   :  { %vm537_vm8 = vcmp.ge.f32.partialorder %v399_v9, 0.0  ;;  %v601_v47 = vmul.f32 0.25, %v399_v9 }
  0xf7   :  { %v1976_v54 = vsel %vm537_vm8, %v399_v9, %v601_v47  ;;  %v741_v9 = vsel %vm715_vm5, %v1955_v40, 0.0  ;;  %v740_v47 = vadd.f32 %v739_v11, %v738_v38  ;;  %v938_v40 = vadd.f32 %v937_v1, %v936_v24  ;;  %v2015_v38 = vpop.f32.mrf.mxu2 }
  0xf8   :  { %v864_v61 = vmul.f32 %v1976_v54, %v1976_v54  ;;  %v743_v44 = vsel %vm715_vm5, %v1976_v54, 0.0  ;;  %v2007_v11 = vsel %vm544_vm9, %v1925_v48, %v608_v59  ;;  %v451_v48 = vadd.f32 %v1732_v57, %v1715_v50 }
  0xf9   :  { %v742_v49 = vadd.f32 %v741_v9, %v740_v47  ;;  %v940_v1 = vadd.f32 %v939_v31, %v938_v40  ;;  %v421_v40 = vadd.f32 %v1732_v57, %v1721_v53  ;;  %v953_v31 = vsel %vm715_vm5, %v870_v37, 0.0 }
  0xfa   :  { %v400_v6 = vpop.f32.mrf.mxu0  ;;  %v941_v16 = vsel %vm715_vm5, %v864_v61, 0.0  ;;  %v755_v61 = vsel %vm715_vm5, %v1961_v41, 0.0  ;;  %v871_v50 = vmul.f32 %v2007_v11, %v2007_v11  ;;  %v884_v41 = vmul.f32 %v2012_v26, %v2012_v26 }
  0xfb   :  { %v401_v8 = vadd.f32 %v1732_v57, %v400_v6  ;;  %v609_v6 = vmul.f32 0.25, %v419_v22  ;;  %v744_v9 = vadd.f32 %v743_v44, %v742_v49  ;;  %v2036_v44 = vsel %vm715_vm5, %v1974_v15, 0.0 }
  0xfc   :  { %v757_v37 = vsel %vm715_vm5, %v2007_v11, 0.0  ;;  %v610_v15 = vmul.f32 0.25, %v421_v40  ;;  %vm558_vm13 = vcmp.ge.f32.partialorder %v451_v48, 0.0  ;;  %vm546_vm14 = vcmp.ge.f32.partialorder %v421_v40, 0.0 }
  0xfd   :  { %vm538_vm11 = vcmp.ge.f32.partialorder %v401_v8, 0.0  ;;  %v602_v13 = vmul.f32 0.25, %v401_v8 }
  0xff   :  { %v2017_v24 = vsel %vm538_vm11, %v401_v8, %v602_v13  ;;  %v942_v8 = vadd.f32 %v941_v16, %v940_v1  ;;  %v2039_v13 = vsel %vm545_vm12, %v419_v22, %v609_v6  ;;  %v2047_v1 = vsel %vm715_vm5, %v883_v42, 0.0 }
 0x100   :  { %v745_v59 = vsel %vm715_vm5, %v2017_v24, 0.0  ;;  %v865_v27 = vmul.f32 %v2017_v24, %v2017_v24  ;;  %v426_v42 = vadd.f32 %v1732_v57, %v1757_v14  ;;  %v429_v14 = vadd.f32 %v1732_v57, %v1822_v45  ;;  %v2086_v45 = vpop.f32.mrf.mxu3 }
 0x101   :  { %v746_v47 = vadd.f32 %v745_v59, %v744_v9  ;;  %v622_v9 = vmul.f32 0.25, %v451_v48  ;;  %v424_v59 = vadd.f32 %v1732_v57, %v1737_v60  ;;  %v2063_v60 = vsel %vm715_vm5, %v884_v41, 0.0 }
 0x102   :  { %v943_v49 = vsel %vm715_vm5, %v865_v27, 0.0  ;;  %v955_v27 = vsel %vm715_vm5, %v871_v50, 0.0  ;;  %v759_v50 = vsel %vm715_vm5, %v2039_v13, 0.0  ;;  %vm548_vm0 = vcmp.ge.f32.partialorder %v426_v42, 0.0 }
 0x103   :  { %v748_v53 = vadd.f32 %v1784_v30, %v746_v47  ;;  %v944_v16 = vadd.f32 %v943_v49, %v942_v8  ;;  %v872_v30 = vmul.f32 %v2039_v13, %v2039_v13  ;;  %v438_v8 = vpop.f32.mrf.mxu1  ;;  %v2060_v47 = vsel %vm715_vm5, %v2012_v26, 0.0 }
 0x104   :  { %v2069_v49 = vsel %vm558_vm13, %v451_v48, %v622_v9  ;;  %v2075_v26 = vsel %vm546_vm14, %v421_v40, %v610_v15  ;;  %vm547_vm15 = vcmp.ge.f32.partialorder %v424_v59, 0.0  ;;  %v612_v48 = vmul.f32 0.25, %v426_v42 }
 0x105   :  { %v750_v22 = vadd.f32 %v1798_v39, %v748_v53  ;;  %v946_v6 = vadd.f32 %v1789_v33, %v944_v16  ;;  %2983 = vst [vmem:[#allocation18_spill] sm:$0xff] %v2069_v49  ;;  %v611_v53 = vmul.f32 0.25, %v424_v59  ;;  %v2073_v16 = vpop.f32.mrf.mxu2  ;;  %v431_v9 = vadd.f32 %v1732_v57, %v1892_v19 }
 0x106   :  { %2984 = vst [vmem:[#allocation19_spill] sm:$0xff] %v2075_v26  ;;  %v2090_v15 = vsel %vm715_vm5, %v2069_v49, 0.0  ;;  %v873_v40 = vmul.f32 %v2075_v26, %v2075_v26  ;;  %v613_v19 = vmul.f32 0.25, %v429_v14  ;;  %vm549_vm1 = vcmp.ge.f32.partialorder %v429_v14, 0.0 }
 0x107   :  { %v752_v39 = vadd.f32 %v1820_v5, %v750_v22  ;;  %v948_v33 = vadd.f32 %v1805_v43, %v946_v6  ;;  %v957_v43 = vsel %vm715_vm5, %v872_v30, 0.0  ;;  %v2082_v22 = vadd.f32 %v1732_v57, %v1725_v55 }
 0x108   :  { %v2097_v55 = vmul.f32 %v2069_v49, %v2069_v49  ;;  %v2099_v6 = vsel %vm547_vm15, %v424_v59, %v611_v53  ;;  %v434_v30 = vadd.f32 %v1732_v57, %v1941_v35  ;;  %vm550_vm2 = vcmp.ge.f32.partialorder %v431_v9, 0.0 }
 0x109   :  { %v754_v41 = vadd.f32 %v1841_v25, %v752_v39  ;;  %v950_v5 = vadd.f32 %v1837_v21, %v948_v33  ;;  %2985 = vst [vmem:[#allocation20_spill] sm:$0xff] %v2099_v6  ;;  %v436_v53 = vadd.f32 %v1732_v57, %v2002_v10  ;;  %v761_v35 = vsel %vm715_vm5, %v2075_v26, 0.0 }
 0x10a   :  { %v763_v10 = vsel %vm715_vm5, %v2099_v6, 0.0  ;;  %vm559_vm3 = vcmp.ge.f32.partialorder %v2082_v22, 0.0  ;;  %vm551_vm4 = vcmp.ge.f32.partialorder %v434_v30, 0.0 }
 0x10b   :  { %v756_v25 = vadd.f32 %v755_v61, %v754_v41  ;;  %v952_v21 = vadd.f32 %v1856_v58, %v950_v5  ;;  %v2104_v61 = vmul.f32 0.25, %v2082_v22  ;;  %v2108_v58 = vadd.f32 %v1732_v57, %v1719_v52  ;;  %v440_v52 = vpop.f32.mrf.mxu1 }
 0x10c   :  { %v2110_v41 = vsel %vm548_vm0, %v426_v42, %v612_v48  ;;  %v614_v5 = vmul.f32 0.25, %v431_v9  ;;  %v615_v42 = vmul.f32 0.25, %v434_v30  ;;  %vm552_vm6 = vcmp.ge.f32.partialorder %v436_v53, 0.0 }
 0x10d   :  { %v758_v39 = vadd.f32 %v757_v37, %v756_v25  ;;  %v954_v33 = vadd.f32 %v953_v31, %v952_v21  ;;  %2986 = vst [vmem:[#allocation21_spill] sm:$0xff] %v2110_v41  ;;  %v959_v31 = vsel %vm715_vm5, %v873_v40, 0.0  ;;  %v874_v37 = vmul.f32 %v2099_v6, %v2099_v6 }
 0x10e   :  { %v2119_v25 = vsel %vm549_vm1, %v429_v14, %v613_v19  ;;  %v2128_v40 = vsel %vm550_vm2, %v431_v9, %v614_v5  ;;  %v2130_v14 = vpop.f32.mrf.mxu2  ;;  %v616_v19 = vmul.f32 0.25, %v436_v53  ;;  %v2140_v9 = vsel %vm551_vm4, %v434_v30, %v615_v42 }
 0x10f   :  { %v956_v59 = vadd.f32 %v955_v27, %v954_v33  ;;  %v760_v49 = vadd.f32 %v759_v50, %v758_v39  ;;  %v439_v27 = vadd.f32 %v1732_v57, %v438_v8  ;;  %v875_v50 = vmul.f32 %v2110_v41, %v2110_v41 }
 0x110   :  { %v961_v8 = vsel %vm715_vm5, %v874_v37, 0.0  ;;  %v765_v33 = vsel %vm715_vm5, %v2110_v41, 0.0  ;;  %v877_v37 = vmul.f32 %v2128_v40, %v2128_v40  ;;  %v769_v42 = vsel %vm715_vm5, %v2128_v40, 0.0 }
 0x111   :  { %v762_v48 = vadd.f32 %v761_v35, %v760_v49  ;;  %v958_v21 = vadd.f32 %v957_v43, %v956_v59  ;;  %v441_v43 = vadd.f32 %v1732_v57, %v440_v52  ;;  %v876_v59 = vmul.f32 %v2119_v25, %v2119_v25  ;;  %v2138_v35 = vpop.f32.mrf.mxu3 }
 0x112   :  { %v617_v26 = vmul.f32 0.25, %v439_v27  ;;  %v767_v52 = vsel %vm715_vm5, %v2119_v25, 0.0  ;;  %vm553_vm7 = vcmp.ge.f32.partialorder %v439_v27, 0.0  ;;  %vm571_vm9 = vcmp.ge.f32.partialorder %v2108_v58, 0.0 }
 0x113   :  { %v764_v39 = vadd.f32 %v763_v10, %v762_v48  ;;  %v960_v49 = vadd.f32 %v959_v31, %v958_v21  ;;  %v963_v31 = vsel %vm715_vm5, %v875_v50, 0.0  ;;  %v2147_v48 = vsel %vm552_vm6, %v436_v53, %v616_v19 }
 0x114   :  { %v618_v41 = vmul.f32 0.25, %v441_v43  ;;  %v965_v30 = vsel %vm715_vm5, %v876_v59, 0.0  ;;  %v878_v50 = vmul.f32 %v2140_v9, %v2140_v9  ;;  %vm554_vm8 = vcmp.ge.f32.partialorder %v441_v43, 0.0 }
 0x115   :  { %v766_v5 = vadd.f32 %v765_v33, %v764_v39  ;;  %v962_v6 = vadd.f32 %v961_v8, %v960_v49  ;;  %v2155_v8 = vsel %vm553_vm7, %v439_v27, %v617_v26  ;;  %v635_v53 = vmul.f32 0.25, %v2108_v58 }
 0x116   :  { %v771_v19 = vsel %vm715_vm5, %v2140_v9, 0.0  ;;  %v879_v33 = vmul.f32 %v2147_v48, %v2147_v48  ;;  %v456_v59 = vadd.f32 %v1732_v57, %v1741_v63  ;;  %v2169_v26 = vsel %vm715_vm5, %v2097_v55, 0.0 }
 0x117   :  { %v768_v21 = vadd.f32 %v767_v52, %v766_v5  ;;  %v964_v10 = vadd.f32 %v963_v31, %v962_v6  ;;  %v967_v6 = vsel %vm715_vm5, %v877_v37, 0.0  ;;  %v2165_v52 = vsel %vm554_vm8, %v441_v43, %v618_v41 }
 0x118   :  { %2987 = vst [vmem:[#allocation22_spill] sm:$0xff] %v2165_v52  ;;  %v969_v27 = vsel %vm715_vm5, %v878_v50, 0.0  ;;  %v773_v37 = vsel %vm715_vm5, %v2147_v48, 0.0  ;;  %v2182_v63 = vsel %vm559_vm3, %v2082_v22, %v2104_v61  ;;  %v486_v55 = vadd.f32 %v1732_v57, %v1727_v56 }
 0x119   :  { %v770_v39 = vadd.f32 %v769_v42, %v768_v21  ;;  %v966_v49 = vadd.f32 %v965_v30, %v964_v10  ;;  %v880_v21 = vmul.f32 %v2155_v8, %v2155_v8  ;;  %v2176_v10 = vpop.f32.mrf.mxu2  ;;  %v2189_v30 = vsel %vm571_vm9, %v2108_v58, %v635_v53  ;;  %v2196_v22 = vpop.f32.mrf.mxu3 }
 0x11a   :  { %v971_v42 = vsel %vm715_vm5, %v879_v33, 0.0  ;;  %v775_v50 = vsel %vm715_vm5, %v2155_v8, 0.0  ;;  %v624_v61 = vmul.f32 0.25, %v456_v59  ;;  %v459_v56 = vadd.f32 %v1732_v57, %v1766_v20 }
 0x11b   :  { %v772_v5 = vadd.f32 %v771_v19, %v770_v39  ;;  %v968_v31 = vadd.f32 %v967_v6, %v966_v49  ;;  %v881_v39 = vmul.f32 %v2165_v52, %v2165_v52  ;;  %v886_v58 = vmul.f32 %v2182_v63, %v2182_v63 }
 0x11c   :  { %vm560_vm10 = vcmp.ge.f32.partialorder %v456_v59, 0.0  ;;  %v973_v53 = vsel %vm715_vm5, %v880_v21, 0.0  ;;  %v777_v19 = vsel %vm715_vm5, %v2165_v52, 0.0  ;;  %v636_v33 = vmul.f32 0.25, %v486_v55 }
 0x11d   :  { %v774_v41 = vadd.f32 %v773_v37, %v772_v5  ;;  %v970_v43 = vadd.f32 %v969_v27, %v968_v31  ;;  %v461_v5 = vadd.f32 %v1732_v57, %v1834_v18  ;;  %v787_v20 = vsel %vm715_vm5, %v2182_v63, 0.0 }
 0x11e   :  { %v898_v37 = vmul.f32 %v2189_v30, %v2189_v30  ;;  %vm572_vm11 = vcmp.ge.f32.partialorder %v486_v55, 0.0  ;;  %v625_v21 = vmul.f32 0.25, %v459_v56  ;;  %v985_v52 = vsel %vm715_vm5, %v886_v58, 0.0 }
 0x11f   :  { %v972_v49 = vadd.f32 %v971_v42, %v970_v43  ;;  %v776_v6 = vadd.f32 %v775_v50, %v774_v41  ;;  %v975_v41 = vsel %vm715_vm5, %v881_v39, 0.0  ;;  %v2212_v43 = vsel %vm560_vm10, %v456_v59, %v624_v61 }
 0x120   :  { %v2218_v18 = vsel %vm715_vm5, %v2189_v30, 0.0  ;;  %vm561_vm12 = vcmp.ge.f32.partialorder %v459_v56, 0.0  ;;  %v887_v61 = vmul.f32 %v2212_v43, %v2212_v43  ;;  %vm562_vm13 = vcmp.ge.f32.partialorder %v461_v5, 0.0 }
 0x121   :  { %v974_v31 = vadd.f32 %v973_v53, %v972_v49  ;;  %v778_v27 = vadd.f32 %v777_v19, %v776_v6  ;;  %v464_v49 = vadd.f32 %v1732_v57, %v1903_v17  ;;  %v2222_v6 = vsel %vm572_vm11, %v486_v55, %v636_v33  ;;  %v478_v19 = vpop.f32.mrf.mxu2 }
 0x122   :  { %2988 = vst [vmem:[#allocation23_spill] sm:$0xff] %v2222_v6  ;;  %v626_v53 = vmul.f32 0.25, %v461_v5  ;;  %v466_v58 = vadd.f32 %v1732_v57, %v1953_v36  ;;  %v2237_v17 = vadd.f32 %v1732_v57, %v1744_v2  ;;  %v789_v55 = vsel %vm715_vm5, %v2212_v43, 0.0 }
 0x123   :  { %v780_v42 = vadd.f32 %v1874_v4, %v778_v27  ;;  %v976_v50 = vadd.f32 %v975_v41, %v974_v31  ;;  %v2227_v4 = vsel %vm715_vm5, %v898_v37, 0.0  ;;  %v2233_v31 = vsel %vm561_vm12, %v459_v56, %v625_v21  ;;  %v2249_v56 = vpop.f32.mrf.mxu3 }
 0x124   :  { %v2245_v33 = vsel %vm715_vm5, %v2222_v6, 0.0  ;;  %v627_v27 = vmul.f32 0.25, %v464_v49  ;;  %v469_v36 = vadd.f32 %v1732_v57, %v2015_v38  ;;  %v2251_v37 = vsel %vm562_vm13, %v461_v5, %v626_v53 }
 0x125   :  { %v782_v59 = vadd.f32 %v2036_v44, %v780_v42  ;;  %v978_v39 = vadd.f32 %v1997_v34, %v976_v50  ;;  %vm563_vm14 = vcmp.ge.f32.partialorder %v464_v49, 0.0  ;;  %v888_v41 = vmul.f32 %v2233_v31, %v2233_v31 }
 0x126   :  { %v628_v21 = vmul.f32 0.25, %v466_v58  ;;  %v471_v42 = vadd.f32 %v1732_v57, %v2073_v16  ;;  %v2261_v38 = vmul.f32 0.25, %v2237_v17  ;;  %vm564_vm15 = vcmp.ge.f32.partialorder %v466_v58, 0.0 }
 0x127   :  { %v784_v44 = vadd.f32 %v2060_v47, %v782_v59  ;;  %v980_v34 = vadd.f32 %v2047_v1, %v978_v39  ;;  %v987_v47 = vsel %vm715_vm5, %v887_v61, 0.0  ;;  %v2268_v53 = vsel %vm563_vm14, %v464_v49, %v627_v27 }
 0x128   :  { %v629_v59 = vmul.f32 0.25, %v469_v36  ;;  %vm565_vm0 = vcmp.ge.f32.partialorder %v469_v36, 0.0  ;;  %v474_v16 = vadd.f32 %v1732_v57, %v2130_v14  ;;  %vm566_vm1 = vcmp.ge.f32.partialorder %v471_v42, 0.0 }
 0x129   :  { %v786_v2 = vadd.f32 %v2090_v15, %v784_v44  ;;  %v982_v1 = vadd.f32 %v2063_v60, %v980_v34  ;;  %v791_v15 = vsel %vm715_vm5, %v2233_v31, 0.0  ;;  %v889_v60 = vmul.f32 %v2251_v37, %v2251_v37 }
 0x12a   :  { %v989_v44 = vsel %vm715_vm5, %v888_v41, 0.0  ;;  %v630_v34 = vmul.f32 0.25, %v471_v42  ;;  %v476_v27 = vadd.f32 %v1732_v57, %v2176_v10  ;;  %vm573_vm2 = vcmp.ge.f32.partialorder %v2237_v17, 0.0 }
 0x12b   :  { %v788_v5 = vadd.f32 %v787_v20, %v786_v2  ;;  %v984_v50 = vadd.f32 %v2169_v26, %v982_v1  ;;  %v2275_v26 = vadd.f32 %v1732_v57, %v1779_v28  ;;  %v2277_v20 = vsel %vm564_vm15, %v466_v58, %v628_v21  ;;  %v480_v28 = vpop.f32.mrf.mxu2 }
 0x12c   :  { %v991_v14 = vsel %vm715_vm5, %v889_v60, 0.0  ;;  %v2286_v1 = vsel %vm565_vm0, %v469_v36, %v629_v59  ;;  %v631_v21 = vmul.f32 0.25, %v474_v16  ;;  %v795_v10 = vsel %vm715_vm5, %v2268_v53, 0.0  ;;  %v2297_v36 = vpop.f32.mrf.mxu3 }
 0x12d   :  { %v986_v39 = vadd.f32 %v985_v52, %v984_v50  ;;  %v790_v61 = vadd.f32 %v789_v55, %v788_v5  ;;  %v793_v52 = vsel %vm715_vm5, %v2251_v37, 0.0  ;;  %v890_v55 = vmul.f32 %v2268_v53, %v2268_v53 }
 0x12e   :  { %v479_v5 = vadd.f32 %v1732_v57, %v478_v19  ;;  %v2295_v50 = vsel %vm566_vm1, %v471_v42, %v630_v34  ;;  %vm567_vm3 = vcmp.ge.f32.partialorder %v474_v16, 0.0  ;;  %v632_v59 = vmul.f32 0.25, %v476_v27 }
 0x12f   :  { %v792_v2 = vadd.f32 %v791_v15, %v790_v61  ;;  %v988_v49 = vadd.f32 %v987_v47, %v986_v39  ;;  %v891_v47 = vmul.f32 %v2277_v20, %v2277_v20  ;;  %v481_v39 = vadd.f32 %v1732_v57, %v480_v28 }
 0x130   :  { %v993_v19 = vsel %vm715_vm5, %v890_v55, 0.0  ;;  %v797_v61 = vsel %vm715_vm5, %v2277_v20, 0.0  ;;  %vm568_vm4 = vcmp.ge.f32.partialorder %v476_v27, 0.0  ;;  %v2305_v34 = vsel %vm567_vm3, %v474_v16, %v631_v21 }
 0x131   :  { %v794_v58 = vadd.f32 %v793_v52, %v792_v2  ;;  %v990_v41 = vadd.f32 %v989_v44, %v988_v49  ;;  %v892_v44 = vmul.f32 %v2286_v1, %v2286_v1  ;;  %v633_v49 = vmul.f32 0.25, %v479_v5 }
 0x132   :  { %v995_v52 = vsel %vm715_vm5, %v891_v47, 0.0  ;;  %v893_v55 = vmul.f32 %v2295_v50, %v2295_v50  ;;  %vm569_vm6 = vcmp.ge.f32.partialorder %v479_v5, 0.0  ;;  %v801_v16 = vsel %vm715_vm5, %v2295_v50, 0.0 }
 0x133   :  { %v796_v15 = vadd.f32 %v795_v10, %v794_v58  ;;  %v992_v60 = vadd.f32 %v991_v14, %v990_v41  ;;  %v799_v14 = vsel %vm715_vm5, %v2286_v1, 0.0  ;;  %v2312_v41 = vsel %vm568_vm4, %v476_v27, %v632_v59 }
 0x134   :  { %v634_v10 = vmul.f32 0.25, %v481_v39  ;;  %v894_v21 = vmul.f32 %v2305_v34, %v2305_v34  ;;  %vm570_vm7 = vcmp.ge.f32.partialorder %v481_v39, 0.0  ;;  %vm574_vm8 = vcmp.ge.f32.partialorder %v2275_v26, 0.0 }
 0x135   :  { %v798_v2 = vadd.f32 %v797_v61, %v796_v15  ;;  %v994_v42 = vadd.f32 %v993_v19, %v992_v60  ;;  %v997_v15 = vsel %vm715_vm5, %v892_v44, 0.0  ;;  %v2320_v19 = vsel %vm569_vm6, %v479_v5, %v633_v49 }
 0x136   :  { %v638_v61 = vmul.f32 0.25, %v2275_v26  ;;  %v999_v27 = vsel %vm715_vm5, %v893_v55, 0.0  ;;  %v803_v59 = vsel %vm715_vm5, %v2305_v34, 0.0  ;;  %v895_v44 = vmul.f32 %v2312_v41, %v2312_v41 }
 0x137   :  { %v800_v28 = vadd.f32 %v799_v14, %v798_v2  ;;  %v996_v58 = vadd.f32 %v995_v52, %v994_v42  ;;  %v494_v2 = vadd.f32 %v1732_v57, %v1845_v29  ;;  %v2330_v14 = vsel %vm570_vm7, %v481_v39, %v634_v10 }
 0x138   :  { %v899_v5 = vmul.f32 %v2222_v6, %v2222_v6  ;;  %v1001_v49 = vsel %vm715_vm5, %v894_v21, 0.0  ;;  %v805_v55 = vsel %vm715_vm5, %v2312_v41, 0.0  ;;  %v2345_v29 = vsel %vm573_vm2, %v2237_v17, %v2261_v38 }
 0x139   :  { %v802_v47 = vadd.f32 %v801_v16, %v800_v28  ;;  %v998_v60 = vadd.f32 %v997_v15, %v996_v58  ;;  %v896_v28 = vmul.f32 %v2320_v19, %v2320_v19  ;;  %v2339_v58 = vpop.f32.mrf.mxu3  ;;  %v496_v39 = vadd.f32 %v1732_v57, %v1914_v51 }
 0x13a   :  { %v2352_v16 = vsel %vm574_vm8, %v2275_v26, %v638_v61  ;;  %v1003_v21 = vsel %vm715_vm5, %v895_v44, 0.0  ;;  %v639_v17 = vmul.f32 0.25, %v494_v2  ;;  %v499_v38 = vadd.f32 %v1732_v57, %v1968_v62 }
 0x13b   :  { %v1000_v42 = vadd.f32 %v999_v27, %v998_v60  ;;  %v804_v52 = vadd.f32 %v803_v59, %v802_v47  ;;  %v807_v47 = vsel %vm715_vm5, %v2320_v19, 0.0  ;;  %v897_v60 = vmul.f32 %v2330_v14, %v2330_v14 }
 0x13c   :  { %v900_v59 = vmul.f32 %v2345_v29, %v2345_v29  ;;  %vm575_vm9 = vcmp.ge.f32.partialorder %v494_v2, 0.0  ;;  %v1005_v26 = vsel %vm715_vm5, %v896_v28, 0.0  ;;  %v809_v61 = vsel %vm715_vm5, %v2330_v14, 0.0 }
 0x13d   :  { %v1002_v10 = vadd.f32 %v1001_v49, %v1000_v42  ;;  %v806_v15 = vadd.f32 %v805_v55, %v804_v52  ;;  %v640_v44 = vmul.f32 0.25, %v496_v39  ;;  %v501_v42 = vadd.f32 %v1732_v57, %v2025_v32 }
 0x13e   :  { %v1011_v55 = vsel %vm715_vm5, %v899_v5, 0.0  ;;  %v901_v62 = vmul.f32 %v2352_v16, %v2352_v16  ;;  %vm576_vm10 = vcmp.ge.f32.partialorder %v496_v39, 0.0  ;;  %v641_v28 = vmul.f32 0.25, %v499_v38 }
 0x13f   :  { %v1004_v51 = vadd.f32 %v1003_v21, %v1002_v10  ;;  %v808_v27 = vadd.f32 %v807_v47, %v806_v15  ;;  %v1007_v10 = vsel %vm715_vm5, %v897_v60, 0.0  ;;  %v2372_v15 = vsel %vm575_vm9, %v494_v2, %v639_v17 }
 0x140   :  { %v815_v6 = vsel %vm715_vm5, %v2345_v29, 0.0  ;;  %v1013_v32 = vsel %vm715_vm5, %v900_v59, 0.0  ;;  %vm577_vm11 = vcmp.ge.f32.partialorder %v499_v38, 0.0  ;;  %v504_v5 = vadd.f32 %v1732_v57, %v2086_v45  ;;  %v1537_v59 = vld [vmem:[%s2939_s2] ss:$0 sm:$0xff] }
 0x141   :  { %v1006_v52 = vadd.f32 %v1005_v26, %v1004_v51  ;;  %v810_v49 = vadd.f32 %v809_v61, %v808_v27  ;;  %v2380_v51 = vsel %vm576_vm10, %v496_v39, %v640_v44  ;;  %v642_v27 = vmul.f32 0.25, %v501_v42  ;;  %v518_v45 = vpop.f32.mrf.mxu3 }
 0x142   :  { %v902_v17 = vmul.f32 %v2372_v15, %v2372_v15  ;;  %vm578_vm12 = vcmp.ge.f32.partialorder %v501_v42, 0.0  ;;  %v506_v57 = vadd.f32 %v1537_v59, %v2138_v35  ;;  %v1015_v39 = vsel %vm715_vm5, %v901_v62, 0.0 }
 0x143   :  { %v812_v21 = vadd.f32 %v2218_v18, %v810_v49  ;;  %v1008_v47 = vadd.f32 %v1007_v10, %v1006_v52  ;;  %v817_v18 = vsel %vm715_vm5, %v2352_v16, 0.0  ;;  %v2393_v26 = vsel %vm577_vm11, %v499_v38, %v641_v28 }
 0x144   :  { %v819_v61 = vsel %vm715_vm5, %v2372_v15, 0.0  ;;  %v903_v44 = vmul.f32 %v2380_v51, %v2380_v51  ;;  %v643_v52 = vmul.f32 0.25, %v504_v5  ;;  %v509_v49 = vadd.f32 %v1537_v59, %v2196_v22 }
 0x145   :  { %v814_v60 = vadd.f32 %v2245_v33, %v812_v21  ;;  %v1010_v2 = vadd.f32 %v2227_v4, %v1008_v47  ;;  %v2400_v10 = vsel %vm578_vm12, %v501_v42, %v642_v27  ;;  %vm579_vm13 = vcmp.ge.f32.partialorder %v504_v5, 0.0 }
 0x146   :  { %v1017_v62 = vsel %vm715_vm5, %v902_v17, 0.0  ;;  %v644_v38 = vmul.f32 0.25, %v506_v57  ;;  %v821_v28 = vsel %vm715_vm5, %v2380_v51, 0.0  ;;  %vm580_vm14 = vcmp.ge.f32.partialorder %v506_v57, 0.0 }
 0x147   :  { %v816_v33 = vadd.f32 %v815_v6, %v814_v60  ;;  %v1012_v4 = vadd.f32 %v1011_v55, %v1010_v2  ;;  %v904_v6 = vmul.f32 %v2393_v26, %v2393_v26  ;;  %v511_v55 = vadd.f32 %v1537_v59, %v2249_v56 }
 0x148   :  { %v1019_v22 = vsel %vm715_vm5, %v903_v44, 0.0  ;;  %v905_v42 = vmul.f32 %v2400_v10, %v2400_v10  ;;  %v645_v27 = vmul.f32 0.25, %v509_v49  ;;  %vm581_vm15 = vcmp.ge.f32.partialorder %v509_v49, 0.0 }
 0x149   :  { %v818_v35 = vadd.f32 %v817_v18, %v816_v33  ;;  %v1014_v21 = vadd.f32 %v1013_v32, %v1012_v4  ;;  %v2411_v32 = vsel %vm579_vm13, %v504_v5, %v643_v52  ;;  %v514_v17 = vadd.f32 %v1537_v59, %v2297_v36 }
 0x14a   :  { %v823_v56 = vsel %vm715_vm5, %v2393_v26, 0.0  ;;  %v1021_v33 = vsel %vm715_vm5, %v904_v6, 0.0  ;;  %v2417_v4 = vsel %vm580_vm14, %v506_v57, %v644_v38  ;;  %vm582_vm0 = vcmp.ge.f32.partialorder %v511_v55, 0.0 }
 0x14b   :  { %v820_v47 = vadd.f32 %v819_v61, %v818_v35  ;;  %v1016_v60 = vadd.f32 %v1015_v39, %v1014_v21  ;;  %v646_v39 = vmul.f32 0.25, %v511_v55  ;;  %v516_v5 = vadd.f32 %v1537_v59, %v2339_v58 }
 0x14c   :  { %v825_v52 = vsel %vm715_vm5, %v2400_v10, 0.0  ;;  %v1023_v35 = vsel %vm715_vm5, %v905_v42, 0.0  ;;  %v906_v36 = vmul.f32 %v2411_v32, %v2411_v32  ;;  %v2425_v21 = vsel %vm581_vm15, %v509_v49, %v645_v27 }
 0x14d   :  { %v1018_v2 = vadd.f32 %v1017_v62, %v1016_v60  ;;  %v822_v18 = vadd.f32 %v821_v28, %v820_v47  ;;  %v520_v62 = vpop.f32.mrf.mxu3  ;;  %v647_v38 = vmul.f32 0.25, %v514_v17  ;;  %v519_v28 = vadd.f32 %v1537_v59, %v518_v45 }
 0x14e   :  { %v827_v47 = vsel %vm715_vm5, %v2411_v32, 0.0  ;;  %v907_v58 = vmul.f32 %v2417_v4, %v2417_v4  ;;  %v2431_v60 = vsel %vm582_vm0, %v511_v55, %v646_v39  ;;  %vm583_vm1 = vcmp.ge.f32.partialorder %v514_v17, 0.0 }
 0x14f   :  { %v824_v61 = vadd.f32 %v823_v56, %v822_v18  ;;  %v1020_v44 = vadd.f32 %v1019_v22, %v1018_v2  ;;  %v648_v2 = vmul.f32 0.25, %v516_v5  ;;  %v521_v18 = vadd.f32 %v1537_v59, %v520_v62 }
 0x150   :  { %v1025_v49 = vsel %vm715_vm5, %v906_v36, 0.0  ;;  %v829_v27 = vsel %vm715_vm5, %v2417_v4, 0.0  ;;  %v908_v45 = vmul.f32 %v2425_v21, %v2425_v21  ;;  %vm584_vm2 = vcmp.ge.f32.partialorder %v516_v5, 0.0 }
 0x151   :  { %v826_v6 = vadd.f32 %v825_v52, %v824_v61  ;;  %v1022_v57 = vadd.f32 %v1021_v33, %v1020_v44  ;;  %v2438_v61 = vsel %vm583_vm1, %v514_v17, %v647_v38  ;;  %v649_v55 = vmul.f32 0.25, %v519_v28 }
 0x152   :  { %v1027_v39 = vsel %vm715_vm5, %v907_v58, 0.0  ;;  %v831_v44 = vsel %vm715_vm5, %v2425_v21, 0.0  ;;  %v909_v59 = vmul.f32 %v2431_v60, %v2431_v60  ;;  %vm585_vm3 = vcmp.ge.f32.partialorder %v519_v28, 0.0 }
 0x153   :  { %v828_v22 = vadd.f32 %v827_v47, %v826_v6  ;;  %v1024_v42 = vadd.f32 %v1023_v35, %v1022_v57  ;;  %v2445_v36 = vsel %vm584_vm2, %v516_v5, %v648_v2  ;;  %v650_v62 = vmul.f32 0.25, %v521_v18 }
 0x154   :  { %2989 = vst [vmem:[#allocation24_spill] sm:$0xff] %v2445_v36  ;;  %v1029_v6 = vsel %vm715_vm5, %v908_v45, 0.0  ;;  %v833_v17 = vsel %vm715_vm5, %v2431_v60, 0.0  ;;  %v910_v57 = vmul.f32 %v2438_v61, %v2438_v61  ;;  %vm586_vm4 = vcmp.ge.f32.partialorder %v521_v18, 0.0 }
 0x155   :  { %v830_v56 = vadd.f32 %v829_v27, %v828_v22  ;;  %v1026_v33 = vadd.f32 %v1025_v49, %v1024_v42  ;;  %v2452_v58 = vsel %vm585_vm3, %v519_v28, %v649_v55  ;;  %v1031_v22 = vsel %vm715_vm5, %v909_v59, 0.0 }
 0x156   :  { %2990 = vst [vmem:[#allocation25_spill] sm:$0xff] %v2452_v58  ;;  %v835_v5 = vsel %vm715_vm5, %v2438_v61, 0.0  ;;  %v911_v42 = vmul.f32 %v2445_v36, %v2445_v36  ;;  %v2459_v27 = vsel %vm586_vm4, %v521_v18, %v650_v62  ;;  %v1033_v45 = vsel %vm715_vm5, %v910_v57, 0.0 }
 0x157   :  { %v832_v52 = vadd.f32 %v831_v44, %v830_v56  ;;  %v1028_v35 = vadd.f32 %v1027_v39, %v1026_v33  ;;  %v837_v56 = vsel %vm715_vm5, %v2445_v36, 0.0  ;;  %v912_v28 = vmul.f32 %v2452_v58, %v2452_v58 }
 0x158   :  { %v1035_v39 = vsel %vm715_vm5, %v911_v42, 0.0  ;;  %v839_v44 = vsel %vm715_vm5, %v2452_v58, 0.0  ;;  %v913_v59 = vmul.f32 %v2459_v27, %v2459_v27  ;;  %v841_v62 = vsel %vm715_vm5, %v2459_v27, 0.0 }
 0x159   :  { %v834_v38 = vadd.f32 %v833_v17, %v832_v52  ;;  %v1030_v47 = vadd.f32 %v1029_v6, %v1028_v35  ;;  %v1037_v35 = vsel %vm715_vm5, %v912_v28, 0.0  ;;  %vm1265_vm8 = vcmask 27648  }
 0x15a   :  { %v1039_v57 = vsel %vm715_vm5, %v913_v59, 0.0 }
 0x15b   :  { %v1032_v2 = vadd.f32 %v1031_v22, %v1030_v47  ;;  %v836_v49 = vadd.f32 %v835_v5, %v834_v38 }
 0x15d   :  { %v1034_v33 = vadd.f32 %v1033_v45, %v1032_v2  ;;  %v838_v55 = vadd.f32 %v837_v56, %v836_v49 }
 0x15f   :  { %v1036_v18 = vadd.f32 %v1035_v39, %v1034_v33  ;;  %v840_v52 = vadd.f32 %v839_v44, %v838_v55 }
 0x161   :  { %v1038_v6 = vadd.f32 %v1037_v35, %v1036_v18  ;;  %v842_v17 = vadd.f32 %v841_v62, %v840_v52 }
 0x163   :  { %v843_v38 = vrot.slane %v842_v17, 4  ;;  %v1040_v47 = vadd.f32 %v1039_v57, %v1038_v6 }
 0x165   :  { %v844_v22 = vadd.f32 %v843_v38, %v842_v17  ;;  %v1041_v5 = vrot.slane %v1040_v47, 4 }
 0x167   :  { %v845_v42 = vrot.slane %v844_v22, 2  ;;  %v1042_v2 = vadd.f32 %v1041_v5, %v1040_v47 }
 0x169   :  { %v846_v49 = vadd.f32 %v845_v42, %v844_v22  ;;  %v1043_v45 = vrot.slane %v1042_v2, 2  ;;  %v1064_v22 = vld [vmem:[%s2940_s3] sm:$0x1] }
 0x16b   :  { %v847_v56 = vrot.slane %v846_v49, 1  ;;  %v1044_v33 = vadd.f32 %v1043_v45, %v1042_v2 }
 0x16d   :  { %v848_v55 = vadd.f32 %v847_v56, %v846_v49  ;;  %v1045_v39 = vrot.slane %v1044_v33, 1 }
 0x16f   :  { %v1046_v28 = vadd.f32 %v1045_v39, %v1044_v33  ;;  %v1048_v44 = vmul.f32 0.001953125, %v848_v55  ;;  %v2991_v55 = vld [vmem:[#allocation5_spill] sm:$0xff] }
 0x171   :  { %v1049_v58 = vmul.f32 0.001953125, %v1046_v28  ;;  %v1050_v36 = vmul.f32 %v1048_v44, %v1048_v44  ;;  %v2992_v28 = vld [vmem:[#allocation7_spill] sm:$0xff] }
 0x173   :  { %v1051_v18 = vsub.f32 %v1049_v58, %v1050_v36  ;;  %v1066_v36 = vld [vmem:[%s2941_s4] sm:$0x1] }
 0x175   :  { %v1052_v52 = vmax.f32 %v1051_v18, 0.0 }
 0x177   :  { %v1053_v35 = vadd.f32 1e-05, %v1052_v52 }
 0x179   :  { %1535 = vrsqrt.f32 %v1053_v35  ;;  %vm1060_vm6 = vweird.f32 %v1053_v35 }
 0x17f   :  { %v1536_v59 = vpop.eup %1535 }
 0x180   :  { %v1055_v62 = vmul.f32 %v1536_v59, %v1053_v35  ;;  %vm1061_vm5 = vweird.f32 %v1536_v59 }
 0x181   :  { %vm1062_vm7 = vmor %vm1060_vm6, %vm1061_vm5 }
 0x182   :  { %v1056_v6 = vmul.f32 %v1536_v59, %v1055_v62  ;;  %v2994_v62 = vld [vmem:[#allocation10_spill] sm:$0xff] }
 0x184   :  { %v1057_v17 = vmul.f32 0.5, %v1056_v6 }
 0x186   :  { %v1058_v57 = vsub.f32 1.5, %v1057_v17  ;;  %v2995_v17 = vld [vmem:[#allocation11_spill] sm:$0xff] }
 0x188   :  { %v1059_v38 = vmul.f32 %v1536_v59, %v1058_v57 }
 0x18a   :  { %v1063_v47 = vsel %vm1062_vm7, %v1536_v59, %v1059_v38  ;;  %v2993_v59 = vld [vmem:[#allocation9_spill] sm:$0xff] }
 0x18b   :  { %v1065_v5 = vmul.f32 %v1064_v22, %v1063_v47 }
 0x18d   :  { %v1067_v42 = vmul.f32 %v1065_v5, %v1048_v44  ;;  %v2481_v2 = vperm.slane %v1065_v5, 0 }
 0x18f   :  { %v1068_v58 = vsub.f32 %v1066_v36, %v1067_v42  ;;  %v1070_v45 = vmul.f32 %v2481_v2, %v1747_v7  ;;  %v1071_v56 = vmul.f32 %v2481_v2, %v1754_v12  ;;  %v1072_v33 = vmul.f32 %v2481_v2, %v1772_v23 }
 0x190   :  { %v1073_v39 = vmul.f32 %v2481_v2, %v2991_v55  ;;  %v1074_v44 = vmul.f32 %v2481_v2, %v2992_v28  ;;  %v1075_v7 = vmul.f32 %v2481_v2, %v2993_v59  ;;  %v1133_v12 = vmul.f32 %v2481_v2, %v2459_v27 }
 0x191   :  { %v2483_v49 = vperm.slane %v1068_v58, 0  ;;  %v1076_v6 = vmul.f32 %v2481_v2, %v2994_v62  ;;  %v1077_v57 = vmul.f32 %v2481_v2, %v2995_v17  ;;  %v1078_v47 = vmul.f32 %v2481_v2, %v1901_v0 }
 0x192   :  { %v1080_v0 = vmul.f32 %v2481_v2, %v1928_v3  ;;  %v2997_v3 = vld [vmem:[#allocation13_spill] sm:$0xff] }
 0x193   :  { %v1137_v18 = vadd.f32 %v2483_v49, %v1070_v45  ;;  %v1138_v52 = vadd.f32 %v2483_v49, %v1071_v56  ;;  %v1139_v35 = vadd.f32 %v2483_v49, %v1072_v33  ;;  %v1140_v23 = vadd.f32 %v2483_v49, %v1073_v39  ;;  %v2996_v45 = vld [vmem:[#allocation12_spill] sm:$0xff] }
 0x194   :  { %v1141_v38 = vadd.f32 %v2483_v49, %v1074_v44  ;;  %v1142_v22 = vadd.f32 %v2483_v49, %v1075_v7  ;;  %v2512_v5 = vadd.f32 %v2483_v49, %v1133_v12  ;;  %v1143_v27 = vadd.f32 %v2483_v49, %v1076_v6 }
 0x195   :  { %v1201_v42 = vpack.c.bf16 %v1137_v18, %v1137_v18  ;;  %v1202_v36 = vpack.c.bf16 %v1138_v52, %v1138_v52  ;;  %v1203_v58 = vpack.c.bf16 %v1139_v35, %v1139_v35  ;;  %v1079_v56 = vmul.f32 %v2481_v2, %v2996_v45 }
 0x196   :  { %v1144_v33 = vadd.f32 %v2483_v49, %v1077_v57  ;;  %v1204_v55 = vpack.c.bf16 %v1140_v23, %v1140_v23  ;;  %v1145_v39 = vadd.f32 %v2483_v49, %v1078_v47  ;;  %v1205_v28 = vpack.c.bf16 %v1141_v38, %v1141_v38 }
 0x197   :  { %1266 = vst.msk [vmem:[%s2942_s5] sm:$0xf] %vm1265_vm8, %v1201_v42  ;;  %v1081_v44 = vmul.f32 %v2481_v2, %v1935_v46  ;;  %v1146_v18 = vadd.f32 %v2483_v49, %v1079_v56  ;;  %v1206_v52 = vpack.c.bf16 %v1142_v22, %v1142_v22  ;;  %v1082_v35 = vmul.f32 %v2481_v2, %v2997_v3  ;;  %v2998_v46 = vld [vmem:[#allocation14_spill] sm:$0xff]  ;;  %v3003_v3 = vld [vmem:[#allocation15_spill] sm:$0xff] }
 0x198   :  { %1267 = vst.msk [vmem:[%s2942_s5 + $0x4] sm:$0xf] %vm1265_vm8, %v1202_v36  ;;  %v1147_v59 = vadd.f32 %v2483_v49, %v1080_v0  ;;  %v1207_v7 = vpack.c.bf16 %v1143_v27, %v1143_v27  ;;  %v1083_v12 = vmul.f32 %v2481_v2, %v2998_v46  ;;  %v1208_v62 = vpack.c.bf16 %v1144_v33, %v1144_v33  ;;  %v3001_v33 = vld [vmem:[#allocation4_spill] sm:$0xff] }
 0x199   :  { %1268 = vst.msk [vmem:[%s2942_s5 + $0x8] sm:$0xf] %vm1265_vm8, %v1203_v58  ;;  %v1148_v23 = vadd.f32 %v2483_v49, %v1081_v44  ;;  %v1084_v6 = vmul.f32 %v2481_v2, %v1976_v54  ;;  %v1149_v17 = vadd.f32 %v2483_v49, %v1082_v35  ;;  %v1209_v57 = vpack.c.bf16 %v1145_v39, %v1145_v39  ;;  %v2999_v54 = vld [vmem:[#allocation2_spill] sm:$0xff] }
 0x19a   :  { %1269 = vst.msk [vmem:[%s2942_s5 + $0xc] sm:$0xf] %vm1265_vm8, %v1204_v55  ;;  %v1085_v38 = vmul.f32 %v2481_v2, %v2017_v24  ;;  %v1150_v47 = vadd.f32 %v2483_v49, %v1083_v12  ;;  %v1210_v22 = vpack.c.bf16 %v1146_v18, %v1146_v18  ;;  %v1086_v27 = vmul.f32 %v2481_v2, %v2999_v54  ;;  %v3000_v24 = vld [vmem:[#allocation3_spill] sm:$0xff] }
 0x19b   :  { %1270 = vst.msk [vmem:[%s2942_s5 + $0x10] sm:$0xf] %vm1265_vm8, %v1205_v28  ;;  %v1151_v42 = vadd.f32 %v2483_v49, %v1084_v6  ;;  %v1211_v36 = vpack.c.bf16 %v1147_v59, %v1147_v59  ;;  %v1087_v58 = vmul.f32 %v2481_v2, %v3000_v24  ;;  %v1212_v56 = vpack.c.bf16 %v1148_v23, %v1148_v23  ;;  %v3002_v28 = vld [vmem:[#allocation6_spill] sm:$0xff] }
 0x19c   :  { %1271 = vst.msk [vmem:[%s2942_s5 + $0x14] sm:$0xf] %vm1265_vm8, %v1206_v52  ;;  %v1152_v45 = vadd.f32 %v2483_v49, %v1085_v38  ;;  %v1088_v55 = vmul.f32 %v2481_v2, %v3001_v33  ;;  %v1153_v0 = vadd.f32 %v2483_v49, %v1086_v27  ;;  %v1213_v39 = vpack.c.bf16 %v1149_v17, %v1149_v17 }
 0x19d   :  { %1272 = vst.msk [vmem:[%s2942_s5 + $0x18] sm:$0xf] %vm1265_vm8, %v1207_v7  ;;  %v1089_v44 = vmul.f32 %v2481_v2, %v3002_v28  ;;  %v1154_v18 = vadd.f32 %v2483_v49, %v1087_v58  ;;  %v1214_v52 = vpack.c.bf16 %v1150_v47, %v1150_v47  ;;  %v1090_v35 = vmul.f32 %v2481_v2, %v3003_v3 }
 0x19e   :  { %1273 = vst.msk [vmem:[%s2942_s5 + $0x1c] sm:$0xf] %vm1265_vm8, %v1208_v62  ;;  %v1155_v59 = vadd.f32 %v2483_v49, %v1088_v55  ;;  %v1215_v7 = vpack.c.bf16 %v1151_v42, %v1151_v42  ;;  %v1091_v46 = vmul.f32 %v2481_v2, %v2007_v11  ;;  %v1216_v23 = vpack.c.bf16 %v1152_v45, %v1152_v45  ;;  %v3004_v11 = vld [vmem:[#allocation19_spill] sm:$0xff]  ;;  %v3006_v42 = vld [vmem:[#allocation21_spill] sm:$0xff] }
 0x19f   :  { %1274 = vst.msk [vmem:[%s2942_s5 + $0x20] sm:$0xf] %vm1265_vm8, %v1209_v57  ;;  %v1156_v12 = vadd.f32 %v2483_v49, %v1089_v44  ;;  %v1092_v62 = vmul.f32 %v2481_v2, %v2039_v13  ;;  %v1157_v6 = vadd.f32 %v2483_v49, %v1090_v35  ;;  %v1217_v17 = vpack.c.bf16 %v1153_v0, %v1153_v0  ;;  %v3005_v13 = vld [vmem:[#allocation20_spill] sm:$0xff] }
 0x1a0   :  { %1275 = vst.msk [vmem:[%s2942_s5 + $0x24] sm:$0xf] %vm1265_vm8, %v1210_v22  ;;  %v1093_v57 = vmul.f32 %v2481_v2, %v3004_v11  ;;  %v1158_v38 = vadd.f32 %v2483_v49, %v1091_v46  ;;  %v1218_v47 = vpack.c.bf16 %v1154_v18, %v1154_v18  ;;  %v1094_v22 = vmul.f32 %v2481_v2, %v3005_v13 }
 0x1a1   :  { %1276 = vst.msk [vmem:[%s2942_s5 + $0x28] sm:$0xf] %vm1265_vm8, %v1211_v36  ;;  %v1159_v54 = vadd.f32 %v2483_v49, %v1092_v62  ;;  %v1219_v27 = vpack.c.bf16 %v1155_v59, %v1155_v59  ;;  %v1095_v36 = vmul.f32 %v2481_v2, %v3006_v42  ;;  %v1220_v58 = vpack.c.bf16 %v1156_v12, %v1156_v12 }
 0x1a2   :  { %1277 = vst.msk [vmem:[%s2942_s5 + $0x2c] sm:$0xf] %vm1265_vm8, %v1212_v56  ;;  %v1160_v24 = vadd.f32 %v2483_v49, %v1093_v57  ;;  %v1096_v45 = vmul.f32 %v2481_v2, %v2119_v25  ;;  %v1161_v56 = vadd.f32 %v2483_v49, %v1094_v22  ;;  %v1221_v33 = vpack.c.bf16 %v1157_v6, %v1157_v6  ;;  %v3009_v6 = vld [vmem:[#allocation16_spill] sm:$0xff] }
 0x1a3   :  { %1278 = vst.msk [vmem:[%s2942_s5 + $0x30] sm:$0xf] %vm1265_vm8, %v1213_v39  ;;  %v1097_v55 = vmul.f32 %v2481_v2, %v2128_v40  ;;  %v1162_v0 = vadd.f32 %v2483_v49, %v1095_v36  ;;  %v1222_v39 = vpack.c.bf16 %v1158_v38, %v1158_v38  ;;  %v1098_v25 = vmul.f32 %v2481_v2, %v2140_v9  ;;  %v3010_v38 = vld [vmem:[#allocation17_spill] sm:$0xff] }
 0x1a4   :  { %1279 = vst.msk [vmem:[%s2942_s5 + $0x34] sm:$0xf] %vm1265_vm8, %v1214_v52  ;;  %v1163_v28 = vadd.f32 %v2483_v49, %v1096_v45  ;;  %v1223_v44 = vpack.c.bf16 %v1159_v54, %v1159_v54  ;;  %v1099_v40 = vmul.f32 %v2481_v2, %v2147_v48  ;;  %v1224_v52 = vpack.c.bf16 %v1160_v24, %v1160_v24  ;;  %v3007_v48 = vld [vmem:[#allocation22_spill] sm:$0xff] }
 0x1a5   :  { %1280 = vst.msk [vmem:[%s2942_s5 + $0x38] sm:$0xf] %vm1265_vm8, %v1215_v7  ;;  %v1164_v18 = vadd.f32 %v2483_v49, %v1097_v55  ;;  %v1100_v9 = vmul.f32 %v2481_v2, %v2155_v8  ;;  %v1165_v3 = vadd.f32 %v2483_v49, %v1098_v25  ;;  %v1225_v35 = vpack.c.bf16 %v1161_v56, %v1161_v56  ;;  %v3008_v8 = vld [vmem:[#allocation8_spill] sm:$0xff]  ;;  %v3011_v54 = vld [vmem:[#allocation18_spill] sm:$0xff] }
 0x1a6   :  { %1281 = vst.msk [vmem:[%s2942_s5 + $0x3c] sm:$0xf] %vm1265_vm8, %v1216_v23  ;;  %v1101_v59 = vmul.f32 %v2481_v2, %v3007_v48  ;;  %v1166_v7 = vadd.f32 %v2483_v49, %v1099_v40  ;;  %v1226_v46 = vpack.c.bf16 %v1162_v0, %v1162_v0  ;;  %v1102_v12 = vmul.f32 %v2481_v2, %v3008_v8 }
 0x1a7   :  { %1282 = vst.msk [vmem:[%s2942_s5 + $0x40] sm:$0xf] %vm1265_vm8, %v1217_v17  ;;  %v1167_v23 = vadd.f32 %v2483_v49, %v1100_v9  ;;  %v1227_v62 = vpack.c.bf16 %v1163_v28, %v1163_v28  ;;  %v1103_v17 = vmul.f32 %v2481_v2, %v3009_v6  ;;  %v1228_v57 = vpack.c.bf16 %v1164_v18, %v1164_v18 }
 0x1a8   :  { %1283 = vst.msk [vmem:[%s2942_s5 + $0x44] sm:$0xf] %vm1265_vm8, %v1218_v47  ;;  %v1168_v11 = vadd.f32 %v2483_v49, %v1101_v59  ;;  %v1104_v47 = vmul.f32 %v2481_v2, %v3010_v38  ;;  %v1169_v13 = vadd.f32 %v2483_v49, %v1102_v12  ;;  %v1229_v22 = vpack.c.bf16 %v1165_v3, %v1165_v3 }
 0x1a9   :  { %1284 = vst.msk [vmem:[%s2942_s5 + $0x48] sm:$0xf] %vm1265_vm8, %v1219_v27  ;;  %v1105_v27 = vmul.f32 %v2481_v2, %v3011_v54  ;;  %v1170_v42 = vadd.f32 %v2483_v49, %v1103_v17  ;;  %v1230_v36 = vpack.c.bf16 %v1166_v7, %v1166_v7  ;;  %v1106_v24 = vmul.f32 %v2481_v2, %v2182_v63 }
 0x1aa   :  { %1285 = vst.msk [vmem:[%s2942_s5 + $0x4c] sm:$0xf] %vm1265_vm8, %v1220_v58  ;;  %v1171_v58 = vadd.f32 %v2483_v49, %v1104_v47  ;;  %v1231_v45 = vpack.c.bf16 %v1167_v23, %v1167_v23  ;;  %v1107_v56 = vmul.f32 %v2481_v2, %v2212_v43  ;;  %v1232_v55 = vpack.c.bf16 %v1168_v11, %v1168_v11 }
 0x1ab   :  { %1286 = vst.msk [vmem:[%s2942_s5 + $0x50] sm:$0xf] %vm1265_vm8, %v1221_v33  ;;  %v1172_v33 = vadd.f32 %v2483_v49, %v1105_v27  ;;  %v1108_v63 = vmul.f32 %v2481_v2, %v2233_v31  ;;  %v1173_v0 = vadd.f32 %v2483_v49, %v1106_v24  ;;  %v1109_v43 = vmul.f32 %v2481_v2, %v2251_v37 }
 0x1ac   :  { %1287 = vst.msk [vmem:[%s2942_s5 + $0x54] sm:$0xf] %vm1265_vm8, %v1222_v39  ;;  %v1233_v39 = vpack.c.bf16 %v1169_v13, %v1169_v13  ;;  %v1174_v25 = vadd.f32 %v2483_v49, %v1107_v56  ;;  %v1234_v28 = vpack.c.bf16 %v1170_v42, %v1170_v42  ;;  %v1110_v31 = vmul.f32 %v2481_v2, %v2268_v53 }
 0x1ad   :  { %1288 = vst.msk [vmem:[%s2942_s5 + $0x58] sm:$0xf] %vm1265_vm8, %v1223_v44  ;;  %v1175_v44 = vadd.f32 %v2483_v49, %v1108_v63  ;;  %v1235_v40 = vpack.c.bf16 %v1171_v58, %v1171_v58  ;;  %v1111_v37 = vmul.f32 %v2481_v2, %v2277_v20  ;;  %v1176_v18 = vadd.f32 %v2483_v49, %v1109_v43 }
 0x1ae   :  { %1289 = vst.msk [vmem:[%s2942_s5 + $0x5c] sm:$0xf] %vm1265_vm8, %v1224_v52  ;;  %v1236_v52 = vpack.c.bf16 %v1172_v33, %v1172_v33  ;;  %v1112_v53 = vmul.f32 %v2481_v2, %v2286_v1  ;;  %v1177_v9 = vadd.f32 %v2483_v49, %v1110_v31  ;;  %v1237_v3 = vpack.c.bf16 %v1173_v0, %v1173_v0 }
 0x1af   :  { %1290 = vst.msk [vmem:[%s2942_s5 + $0x60] sm:$0xf] %vm1265_vm8, %v1225_v35  ;;  %v1113_v20 = vmul.f32 %v2481_v2, %v2295_v50  ;;  %v1178_v35 = vadd.f32 %v2483_v49, %v1111_v37  ;;  %v1238_v48 = vpack.c.bf16 %v1174_v25, %v1174_v25  ;;  %v1114_v1 = vmul.f32 %v2481_v2, %v2305_v34 }
 0x1b0   :  { %1291 = vst.msk [vmem:[%s2942_s5 + $0x64] sm:$0xf] %vm1265_vm8, %v1226_v46  ;;  %v1179_v59 = vadd.f32 %v2483_v49, %v1112_v53  ;;  %v1239_v7 = vpack.c.bf16 %v1175_v44, %v1175_v44  ;;  %v1115_v50 = vmul.f32 %v2481_v2, %v2312_v41  ;;  %v1240_v8 = vpack.c.bf16 %v1176_v18, %v1176_v18 }
 0x1b1   :  { %1292 = vst.msk [vmem:[%s2942_s5 + $0x68] sm:$0xf] %vm1265_vm8, %v1227_v62  ;;  %v1180_v46 = vadd.f32 %v2483_v49, %v1113_v20  ;;  %v1116_v34 = vmul.f32 %v2481_v2, %v2320_v19  ;;  %v1181_v12 = vadd.f32 %v2483_v49, %v1114_v1  ;;  %v1241_v23 = vpack.c.bf16 %v1177_v9, %v1177_v9 }
 0x1b2   :  { %1293 = vst.msk [vmem:[%s2942_s5 + $0x6c] sm:$0xf] %vm1265_vm8, %v1228_v57  ;;  %v1117_v41 = vmul.f32 %v2481_v2, %v2330_v14  ;;  %v1182_v62 = vadd.f32 %v2483_v49, %v1115_v50  ;;  %v1242_v6 = vpack.c.bf16 %v1178_v35, %v1178_v35  ;;  %v1118_v19 = vmul.f32 %v2481_v2, %v2189_v30  ;;  %v3012_v14 = vld [vmem:[#allocation23_spill] sm:$0xff] }
 0x1b3   :  { %1294 = vst.msk [vmem:[%s2942_s5 + $0x70] sm:$0xf] %vm1265_vm8, %v1229_v22  ;;  %v1183_v17 = vadd.f32 %v2483_v49, %v1116_v34  ;;  %v1243_v11 = vpack.c.bf16 %v1179_v59, %v1179_v59  ;;  %v1119_v57 = vmul.f32 %v2481_v2, %v3012_v14  ;;  %v1244_v47 = vpack.c.bf16 %v1180_v46, %v1180_v46 }
 0x1b4   :  { %1295 = vst.msk [vmem:[%s2942_s5 + $0x74] sm:$0xf] %vm1265_vm8, %v1230_v36  ;;  %v1184_v38 = vadd.f32 %v2483_v49, %v1117_v41  ;;  %v1120_v30 = vmul.f32 %v2481_v2, %v2345_v29  ;;  %v1185_v13 = vadd.f32 %v2483_v49, %v1118_v19  ;;  %v1245_v22 = vpack.c.bf16 %v1181_v12, %v1181_v12 }
 0x1b5   :  { %1296 = vst.msk [vmem:[%s2942_s5 + $0x78] sm:$0xf] %vm1265_vm8, %v1231_v45  ;;  %v1121_v54 = vmul.f32 %v2481_v2, %v2352_v16  ;;  %v1186_v27 = vadd.f32 %v2483_v49, %v1119_v57  ;;  %v1246_v42 = vpack.c.bf16 %v1182_v62, %v1182_v62  ;;  %v1122_v29 = vmul.f32 %v2481_v2, %v2372_v15 }
 0x1b6   :  { %1297 = vst.msk [vmem:[%s2942_s5 + $0x7c] sm:$0xf] %vm1265_vm8, %v1232_v55  ;;  %v1187_v36 = vadd.f32 %v2483_v49, %v1120_v30  ;;  %v1247_v24 = vpack.c.bf16 %v1183_v17, %v1183_v17  ;;  %v1123_v16 = vmul.f32 %v2481_v2, %v2380_v51  ;;  %v1248_v45 = vpack.c.bf16 %v1184_v38, %v1184_v38 }
 0x1b7   :  { %1298 = vst.msk [vmem:[%s2942_s5 + $0x80] sm:$0xf] %vm1265_vm8, %v1233_v39  ;;  %v1188_v58 = vadd.f32 %v2483_v49, %v1121_v54  ;;  %v1124_v15 = vmul.f32 %v2481_v2, %v2393_v26  ;;  %v1189_v56 = vadd.f32 %v2483_v49, %v1122_v29  ;;  %v1249_v33 = vpack.c.bf16 %v1185_v13, %v1185_v13 }
 0x1b8   :  { %1299 = vst.msk [vmem:[%s2942_s5 + $0x84] sm:$0xf] %vm1265_vm8, %v1234_v28  ;;  %v1125_v51 = vmul.f32 %v2481_v2, %v2400_v10  ;;  %v1190_v55 = vadd.f32 %v2483_v49, %v1123_v16  ;;  %v1250_v63 = vpack.c.bf16 %v1186_v27, %v1186_v27  ;;  %v1126_v26 = vmul.f32 %v2481_v2, %v2411_v32 }
 0x1b9   :  { %1300 = vst.msk [vmem:[%s2942_s5 + $0x88] sm:$0xf] %vm1265_vm8, %v1235_v40  ;;  %v1191_v0 = vadd.f32 %v2483_v49, %v1124_v15  ;;  %v1251_v39 = vpack.c.bf16 %v1187_v36, %v1187_v36  ;;  %v1127_v10 = vmul.f32 %v2481_v2, %v2417_v4  ;;  %v1252_v25 = vpack.c.bf16 %v1188_v58, %v1188_v58 }
 0x1ba   :  { %1301 = vst.msk [vmem:[%s2942_s5 + $0x8c] sm:$0xf] %vm1265_vm8, %v1236_v52  ;;  %v1192_v43 = vadd.f32 %v2483_v49, %v1125_v51  ;;  %v1128_v32 = vmul.f32 %v2481_v2, %v2425_v21  ;;  %v1193_v28 = vadd.f32 %v2483_v49, %v1126_v26  ;;  %v1253_v31 = vpack.c.bf16 %v1189_v56, %v1189_v56 }
 0x1bb   :  { %1302 = vst.msk [vmem:[%s2942_s5 + $0x90] sm:$0xf] %vm1265_vm8, %v1237_v3  ;;  %v1129_v4 = vmul.f32 %v2481_v2, %v2431_v60  ;;  %v1194_v44 = vadd.f32 %v2483_v49, %v1127_v10  ;;  %v1254_v40 = vpack.c.bf16 %v1190_v55, %v1190_v55  ;;  %v1130_v21 = vmul.f32 %v2481_v2, %v2438_v61  ;;  %v3013_v60 = vld [vmem:[#allocation24_spill] sm:$0xff]  ;;  %v3014_v61 = vld [vmem:[#allocation25_spill] sm:$0xff] }
 0x1bc   :  { %1303 = vst.msk [vmem:[%s2942_s5 + $0x94] sm:$0xf] %vm1265_vm8, %v1238_v48  ;;  %v1195_v37 = vadd.f32 %v2483_v49, %v1128_v32  ;;  %v1255_v18 = vpack.c.bf16 %v1191_v0, %v1191_v0  ;;  %v1131_v52 = vmul.f32 %v2481_v2, %v3013_v60  ;;  %v1256_v9 = vpack.c.bf16 %v1192_v43, %v1192_v43 }
 0x1bd   :  { %1304 = vst.msk [vmem:[%s2942_s5 + $0x98] sm:$0xf] %vm1265_vm8, %v1239_v7  ;;  %v1196_v53 = vadd.f32 %v2483_v49, %v1129_v4  ;;  %v1132_v3 = vmul.f32 %v2481_v2, %v3014_v61  ;;  %v1197_v20 = vadd.f32 %v2483_v49, %v1130_v21  ;;  %v1257_v35 = vpack.c.bf16 %v1193_v28, %v1193_v28 }
 0x1be   :  { %1305 = vst.msk [vmem:[%s2942_s5 + $0x9c] sm:$0xf] %vm1265_vm8, %v1240_v8  ;;  %v1198_v48 = vadd.f32 %v2483_v49, %v1131_v52  ;;  %v1258_v1 = vpack.c.bf16 %v1194_v44, %v1194_v44  ;;  %v1259_v7 = vpack.c.bf16 %v1195_v37, %v1195_v37  ;;  %v1264_v8 = vpack.c.bf16 %v2512_v5, %v2512_v5 }
 0x1bf   :  { %1306 = vst.msk [vmem:[%s2942_s5 + $0xa0] sm:$0xf] %vm1265_vm8, %v1241_v23  ;;  %v1199_v59 = vadd.f32 %v2483_v49, %v1132_v3  ;;  %v1260_v2 = vpack.c.bf16 %v1196_v53, %v1196_v53  ;;  %v1261_v50 = vpack.c.bf16 %v1197_v20, %v1197_v20 }
 0x1c0   :  { %1307 = vst.msk [vmem:[%s2942_s5 + $0xa4] sm:$0xf] %vm1265_vm8, %v1242_v6  ;;  %v1262_v46 = vpack.c.bf16 %v1198_v48, %v1198_v48 }
 0x1c1   :  { %1308 = vst.msk [vmem:[%s2942_s5 + $0xa8] sm:$0xf] %vm1265_vm8, %v1243_v11  ;;  %v1263_v49 = vpack.c.bf16 %v1199_v59, %v1199_v59 }
 0x1c2   :  { %1309 = vst.msk [vmem:[%s2942_s5 + $0xac] sm:$0xf] %vm1265_vm8, %v1244_v47 }
 0x1c3   :  { %1310 = vst.msk [vmem:[%s2942_s5 + $0xb0] sm:$0xf] %vm1265_vm8, %v1245_v22 }
 0x1c4   :  { %1311 = vst.msk [vmem:[%s2942_s5 + $0xb4] sm:$0xf] %vm1265_vm8, %v1246_v42 }
 0x1c5   :  { %1312 = vst.msk [vmem:[%s2942_s5 + $0xb8] sm:$0xf] %vm1265_vm8, %v1247_v24 }
 0x1c6   :  { %1313 = vst.msk [vmem:[%s2942_s5 + $0xbc] sm:$0xf] %vm1265_vm8, %v1248_v45 }
 0x1c7   :  { %1314 = vst.msk [vmem:[%s2942_s5 + $0xc0] sm:$0xf] %vm1265_vm8, %v1249_v33 }
 0x1c8   :  { %1315 = vst.msk [vmem:[%s2942_s5 + $0xc4] sm:$0xf] %vm1265_vm8, %v1250_v63 }
 0x1c9   :  { %1316 = vst.msk [vmem:[%s2942_s5 + $0xc8] sm:$0xf] %vm1265_vm8, %v1251_v39 }
 0x1ca   :  { %1317 = vst.msk [vmem:[%s2942_s5 + $0xcc] sm:$0xf] %vm1265_vm8, %v1252_v25 }
 0x1cb   :  { %1318 = vst.msk [vmem:[%s2942_s5 + $0xd0] sm:$0xf] %vm1265_vm8, %v1253_v31 }
 0x1cc   :  { %1319 = vst.msk [vmem:[%s2942_s5 + $0xd4] sm:$0xf] %vm1265_vm8, %v1254_v40 }
 0x1cd   :  { %1320 = vst.msk [vmem:[%s2942_s5 + $0xd8] sm:$0xf] %vm1265_vm8, %v1255_v18 }
 0x1ce   :  { %1321 = vst.msk [vmem:[%s2942_s5 + $0xdc] sm:$0xf] %vm1265_vm8, %v1256_v9 }
 0x1cf   :  { %1322 = vst.msk [vmem:[%s2942_s5 + $0xe0] sm:$0xf] %vm1265_vm8, %v1257_v35 }
 0x1d0   :  { %1323 = vst.msk [vmem:[%s2942_s5 + $0xe4] sm:$0xf] %vm1265_vm8, %v1258_v1 }
 0x1d1   :  { %1324 = vst.msk [vmem:[%s2942_s5 + $0xe8] sm:$0xf] %vm1265_vm8, %v1259_v7 }
 0x1d2   :  { %1325 = vst.msk [vmem:[%s2942_s5 + $0xec] sm:$0xf] %vm1265_vm8, %v1260_v2 }
 0x1d3   :  { %1326 = vst.msk [vmem:[%s2942_s5 + $0xf0] sm:$0xf] %vm1265_vm8, %v1261_v50 }
 0x1d4   :  { %1327 = vst.msk [vmem:[%s2942_s5 + $0xf4] sm:$0xf] %vm1265_vm8, %v1262_v46 }
 0x1d5   :  { %1328 = vst.msk [vmem:[%s2942_s5 + $0xf8] sm:$0xf] %vm1265_vm8, %v1263_v49 }
 0x1d6   :  { %1329 = vst.msk [vmem:[%s2942_s5 + $0xfc] sm:$0xf] %vm1265_vm8, %v1264_v8 }

// kernel: cae_forward.10
= control target key start
LH: loop header
LB: loop body
LE: loop exit
PB: predicated region body
PF: predicated region fallthrough
CT: control target
= control target key end

     0   :  { %vm113_vm0 = vcmask 523264   ;;  %vm235_vm5 = vcmask 64512   ;;  %s803_s1 = inlined_call_operand.vmem [shape: bf16[1,64,8], index: 1, kind: input, shape index: {}]   ;;  %s804_s2 = inlined_call_operand.vmem [shape: f32[1,8], index: 2, kind: input, shape index: {}]   ;;  %s805_s0 = inlined_call_operand.vmem [shape: bf16[1,128,64], index: 0, kind: input, shape index: {}]   ;;  %s806_s3 = inlined_call_operand.vmem [shape: f32[1,8], index: 3, kind: input, shape index: {}]   ;;  %s807_s4 = inlined_call_operand.vmem [shape: f32[1,8], index: 4, kind: input, shape index: {}]   ;;  %s808_s5 = inlined_call_operand.vmem [shape: bf16[1,128,8], index: 5, kind: output, shape index: {}]  }
   0x1   :  { %v489_v0 = vld [vmem:[%s803_s1 + $0x18] sm:$0xff]  ;;  %v488_v1 = vld [vmem:[%s803_s1 + $0x10] sm:$0xff]  ;;  %v487_v2 = vld [vmem:[%s803_s1 + $0x8] sm:$0xff] }
   0x2   :  { %142 = vmatpush.bf16.msra.mxu0 %v489_v0  ;;  %490 = vmatpush.bf16.msra.mxu1 %v489_v0  ;;  %v486_v3 = vld [vmem:[%s803_s1] sm:$0xff]  ;;  %v480_v5 = vld [vmem:[%s805_s0 + $0x10] sm:$0xff]  ;;  %v479_v8 = vld [vmem:[%s805_s0 + $0x8] sm:$0xff] }
   0x3   :  { %491 = vmatpush.bf16.msra.mxu2 %v489_v0  ;;  %492 = vmatpush.bf16.msra.mxu3 %v489_v0  ;;  %v478_v4 = vld [vmem:[%s805_s0] sm:$0xff]  ;;  %v484_v7 = vld [vmem:[%s805_s0 + $0x30] sm:$0xff]  ;;  %v481_v9 = vld [vmem:[%s805_s0 + $0x18] sm:$0xff] }
   0x4   :  { %v482_v6 = vld [vmem:[%s805_s0 + $0x20] sm:$0xff]  ;;  %v483_v10 = vld [vmem:[%s805_s0 + $0x28] sm:$0xff]  ;;  %v485_v11 = vld [vmem:[%s805_s0 + $0x38] sm:$0xff] }
   0x5   :  { %v582_v14 = vld [vmem:[%s804_s2] ss:$0 sm:$0xff] }
   0x6   :  { %143 = vmatpush.bf16.msra.mxu0 %v488_v1  ;;  %493 = vmatpush.bf16.msra.mxu1 %v488_v1 }
   0x7   :  { %494 = vmatpush.bf16.msra.mxu2 %v488_v1  ;;  %495 = vmatpush.bf16.msra.mxu3 %v488_v1 }
   0xa   :  { %144 = vmatpush.bf16.msra.mxu0 %v487_v2  ;;  %496 = vmatpush.bf16.msra.mxu1 %v487_v2 }
   0xb   :  { %497 = vmatpush.bf16.msra.mxu2 %v487_v2  ;;  %498 = vmatpush.bf16.msra.mxu3 %v487_v2 }
   0xe   :  { %145 = vmatpush.bf16.msra.mxu0 %v486_v3  ;;  %499 = vmatpush.bf16.msra.mxu1 %v486_v3 }
   0xf   :  { %500 = vmatpush.bf16.msra.mxu2 %v486_v3  ;;  %501 = vmatpush.bf16.msra.mxu3 %v486_v3 }
  0x11   :  { %470 = vmatmul.msk.bf16.vlgmr.msra.gmra.mxu0 %vm113_vm0, %v478_v4  ;;  %472 = vmatmul.msk.bf16.vlgmr.msra.gmra.mxu1 %vm113_vm0, %v480_v5 }
  0x12   :  { %474 = vmatmul.msk.bf16.vlgmr.msra.gmra.mxu2 %vm113_vm0, %v482_v6  ;;  %476 = vmatmul.msk.bf16.vlgmr.msra.gmra.mxu3 %vm113_vm0, %v484_v7 }
  0x21   :  { %471 = vmatmul.msk.bf16.gmra.mxu0 %vm113_vm0, %v479_v8  ;;  %473 = vmatmul.msk.bf16.gmra.mxu1 %vm113_vm0, %v481_v9 }
  0x22   :  { %475 = vmatmul.msk.bf16.gmra.mxu2 %vm113_vm0, %v483_v10  ;;  %477 = vmatmul.msk.bf16.gmra.mxu3 %vm113_vm0, %v485_v11 }
  0x8e   :  { %v147_v12 = vpop.f32.mrf.mxu0  ;;  %v157_v13 = vpop.f32.mrf.mxu1 }
  0x8f   :  { %v148_v19 = vadd.f32 %v582_v14, %v147_v12  ;;  %v158_v20 = vadd.f32 %v582_v14, %v157_v13 }
  0x91   :  { %v203_v22 = vmul.f32 0.25, %v148_v19  ;;  %vm187_vm1 = vcmp.ge.f32.partialorder %v148_v19, 0.0  ;;  %v207_v23 = vmul.f32 0.25, %v158_v20  ;;  %vm191_vm2 = vcmp.ge.f32.partialorder %v158_v20, 0.0 }
  0x93   :  { %v587_v28 = vsel %vm187_vm1, %v148_v19, %v203_v22  ;;  %v590_v30 = vsel %vm191_vm2, %v158_v20, %v207_v23 }
  0x94   :  { %v274_v35 = vmul.f32 %v587_v28, %v587_v28  ;;  %v278_v36 = vmul.f32 %v590_v30, %v590_v30  ;;  %v236_v41 = vsel %vm235_vm5, %v587_v28, 0.0  ;;  %v243_v45 = vsel %vm235_vm5, %v590_v30, 0.0 }
  0x95   :  { %v167_v15 = vpop.f32.mrf.mxu2  ;;  %v177_v16 = vpop.f32.mrf.mxu3 }
  0x96   :  { %v149_v17 = vpop.f32.mrf.mxu0  ;;  %v159_v18 = vpop.f32.mrf.mxu1  ;;  %v168_v38 = vadd.f32 %v582_v14, %v167_v15  ;;  %v290_v44 = vsel %vm235_vm5, %v274_v35, 0.0  ;;  %v297_v50 = vsel %vm235_vm5, %v278_v36, 0.0  ;;  %v618_v51 = vadd.f32 %v582_v14, %v177_v16 }
  0x97   :  { %v150_v21 = vadd.f32 %v582_v14, %v149_v17  ;;  %v160_v31 = vadd.f32 %v582_v14, %v159_v18 }
  0x98   :  { %vm195_vm7 = vcmp.ge.f32.partialorder %v168_v38, 0.0  ;;  %v211_v60 = vmul.f32 0.25, %v168_v38  ;;  %vm199_vm11 = vcmp.ge.f32.partialorder %v618_v51, 0.0  ;;  %v215_v13 = vmul.f32 0.25, %v618_v51 }
  0x99   :  { %v204_v24 = vmul.f32 0.25, %v150_v21  ;;  %vm188_vm3 = vcmp.ge.f32.partialorder %v150_v21, 0.0  ;;  %v208_v40 = vmul.f32 0.25, %v160_v31  ;;  %vm192_vm6 = vcmp.ge.f32.partialorder %v160_v31, 0.0 }
  0x9a   :  { %v647_v20 = vsel %vm195_vm7, %v168_v38, %v211_v60 }
  0x9b   :  { %v595_v33 = vsel %vm188_vm3, %v150_v21, %v204_v24  ;;  %v623_v55 = vsel %vm192_vm6, %v160_v31, %v208_v40 }
  0x9c   :  { %v275_v39 = vmul.f32 %v595_v33, %v595_v33  ;;  %v237_v46 = vsel %vm235_vm5, %v595_v33, 0.0  ;;  %v279_v4 = vmul.f32 %v623_v55, %v623_v55  ;;  %v245_v21 = vsel %vm235_vm5, %v623_v55, 0.0 }
  0x9d   :  { %v169_v25 = vpop.f32.mrf.mxu2  ;;  %v593_v32 = vpop.f32.mrf.mxu3  ;;  %v238_v57 = vadd.f32 %v237_v46, %v236_v41  ;;  %v251_v46 = vsel %vm235_vm5, %v647_v20, 0.0 }
  0x9e   :  { %v152_v26 = vpop.f32.mrf.mxu0  ;;  %v162_v27 = vpop.f32.mrf.mxu1  ;;  %v291_v54 = vsel %vm235_vm5, %v275_v39, 0.0  ;;  %v170_v61 = vadd.f32 %v582_v14, %v169_v25  ;;  %v299_v23 = vsel %vm235_vm5, %v279_v4, 0.0  ;;  %v282_v39 = vmul.f32 %v647_v20, %v647_v20 }
  0x9f   :  { %v153_v29 = vadd.f32 %v582_v14, %v152_v26  ;;  %v163_v42 = vadd.f32 %v582_v14, %v162_v27  ;;  %v292_v0 = vadd.f32 %v291_v54, %v290_v44 }
  0xa0   :  { %v212_v12 = vmul.f32 0.25, %v170_v61  ;;  %vm196_vm12 = vcmp.ge.f32.partialorder %v170_v61, 0.0 }
  0xa1   :  { %vm189_vm4 = vcmp.ge.f32.partialorder %v153_v29, 0.0  ;;  %v205_v34 = vmul.f32 0.25, %v153_v29  ;;  %v209_v58 = vmul.f32 0.25, %v163_v42  ;;  %vm193_vm9 = vcmp.ge.f32.partialorder %v163_v42, 0.0 }
  0xa3   :  { %v601_v37 = vsel %vm189_vm4, %v153_v29, %v205_v34  ;;  %v637_v8 = vsel %vm193_vm9, %v163_v42, %v209_v58  ;;  %v180_v29 = vadd.f32 %v582_v14, %v593_v32  ;;  %v660_v34 = vsel %vm196_vm12, %v170_v61, %v212_v12 }
  0xa4   :  { %v276_v47 = vmul.f32 %v601_v37, %v601_v37  ;;  %v239_v56 = vsel %vm235_vm5, %v601_v37, 0.0  ;;  %v280_v22 = vmul.f32 %v637_v8, %v637_v8  ;;  %v247_v27 = vsel %vm235_vm5, %v637_v8, 0.0 }
  0xa5   :  { %v172_v43 = vpop.f32.mrf.mxu2  ;;  %v182_v63 = vpop.f32.mrf.mxu3  ;;  %v240_v1 = vadd.f32 %v239_v56, %v238_v57  ;;  %v305_v56 = vsel %vm235_vm5, %v282_v39, 0.0  ;;  %v253_v57 = vsel %vm235_vm5, %v660_v34, 0.0  ;;  %vm200_vm15 = vcmp.ge.f32.partialorder %v180_v29, 0.0 }
  0xa6   :  { %v154_v48 = vpop.f32.mrf.mxu0  ;;  %v164_v49 = vpop.f32.mrf.mxu1  ;;  %v293_v62 = vsel %vm235_vm5, %v276_v47, 0.0  ;;  %v173_v9 = vadd.f32 %v582_v14, %v172_v43  ;;  %v301_v40 = vsel %vm235_vm5, %v280_v22, 0.0  ;;  %v283_v47 = vmul.f32 %v660_v34, %v660_v34 }
  0xa7   :  { %v155_v52 = vadd.f32 %v582_v14, %v154_v48  ;;  %v165_v53 = vadd.f32 %v582_v14, %v164_v49  ;;  %v294_v7 = vadd.f32 %v293_v62, %v292_v0  ;;  %v216_v48 = vmul.f32 0.25, %v180_v29 }
  0xa8   :  { %v213_v24 = vmul.f32 0.25, %v173_v9  ;;  %vm197_vm13 = vcmp.ge.f32.partialorder %v173_v9, 0.0 }
  0xa9   :  { %vm190_vm8 = vcmp.ge.f32.partialorder %v155_v52, 0.0  ;;  %v206_v59 = vmul.f32 0.25, %v155_v52  ;;  %v210_v3 = vmul.f32 0.25, %v165_v53  ;;  %vm194_vm10 = vcmp.ge.f32.partialorder %v165_v53, 0.0 }
  0xaa   :  { %v667_v43 = vsel %vm197_vm13, %v173_v9, %v213_v24 }
  0xab   :  { %v629_v2 = vsel %vm190_vm8, %v155_v52, %v206_v59  ;;  %v643_v18 = vsel %vm194_vm10, %v165_v53, %v210_v3  ;;  %v284_v58 = vmul.f32 %v667_v43, %v667_v43  ;;  %v686_v59 = vsel %vm199_vm11, %v618_v51, %v215_v13 }
  0xac   :  { %v241_v5 = vsel %vm235_vm5, %v629_v2, 0.0  ;;  %v277_v6 = vmul.f32 %v629_v2, %v629_v2  ;;  %v281_v31 = vmul.f32 %v643_v18, %v643_v18  ;;  %v249_v41 = vsel %vm235_vm5, %v643_v18, 0.0 }
  0xad   :  { %v242_v10 = vadd.f32 %v241_v5, %v240_v1  ;;  %v174_v11 = vpop.f32.mrf.mxu2  ;;  %v184_v42 = vpop.f32.mrf.mxu3  ;;  %v693_v1 = vsel %vm200_vm15, %v180_v29, %v216_v48  ;;  %v286_v51 = vmul.f32 %v686_v59, %v686_v59  ;;  %v259_v12 = vsel %vm235_vm5, %v686_v59, 0.0 }
  0xae   :  { %v295_v15 = vsel %vm235_vm5, %v277_v6, 0.0  ;;  %v175_v19 = vadd.f32 %v582_v14, %v174_v11  ;;  %v303_v49 = vsel %vm235_vm5, %v281_v31, 0.0  ;;  %v185_v54 = vadd.f32 %v582_v14, %v184_v42 }
  0xaf   :  { %v244_v16 = vadd.f32 %v243_v45, %v242_v10  ;;  %v296_v17 = vadd.f32 %v295_v15, %v294_v7  ;;  %v183_v45 = vadd.f32 %v582_v14, %v182_v63  ;;  %v307_v63 = vsel %vm235_vm5, %v283_v47, 0.0 }
  0xb0   :  { %v214_v38 = vmul.f32 0.25, %v175_v19  ;;  %vm198_vm14 = vcmp.ge.f32.partialorder %v175_v19, 0.0  ;;  %v255_v14 = vsel %vm235_vm5, %v667_v43, 0.0  ;;  %v218_v5 = vmul.f32 0.25, %v185_v54 }
  0xb1   :  { %v298_v25 = vadd.f32 %v297_v50, %v296_v17  ;;  %v246_v26 = vadd.f32 %v245_v21, %v244_v16  ;;  %v217_v62 = vmul.f32 0.25, %v183_v45  ;;  %vm201_vm0 = vcmp.ge.f32.partialorder %v183_v45, 0.0 }
  0xb2   :  { %v675_v53 = vsel %vm198_vm14, %v175_v19, %v214_v38  ;;  %v309_v6 = vsel %vm235_vm5, %v284_v58, 0.0  ;;  %vm202_vm1 = vcmp.ge.f32.partialorder %v185_v54, 0.0  ;;  %v287_v13 = vmul.f32 %v693_v1, %v693_v1 }
  0xb3   :  { %v248_v35 = vadd.f32 %v247_v27, %v246_v26  ;;  %v300_v36 = vadd.f32 %v299_v23, %v298_v25  ;;  %v285_v0 = vmul.f32 %v675_v53, %v675_v53  ;;  %v257_v7 = vsel %vm235_vm5, %v675_v53, 0.0 }
  0xb4   :  { %v700_v11 = vsel %vm201_vm0, %v183_v45, %v217_v62  ;;  %v234_v19 = vsel %vm202_vm1, %v185_v54, %v218_v5  ;;  %v313_v21 = vsel %vm235_vm5, %v286_v51, 0.0  ;;  %v261_v22 = vsel %vm235_vm5, %v693_v1, 0.0 }
  0xb5   :  { %v250_v32 = vadd.f32 %v249_v41, %v248_v35  ;;  %v302_v44 = vadd.f32 %v301_v40, %v300_v36  ;;  %v311_v15 = vsel %vm235_vm5, %v285_v0, 0.0  ;;  %v288_v23 = vmul.f32 %v700_v11, %v700_v11 }
  0xb6   :  { %v315_v26 = vsel %vm235_vm5, %v287_v13, 0.0  ;;  %v263_v27 = vsel %vm235_vm5, %v700_v11, 0.0  ;;  %v289_v29 = vmul.f32 %v234_v19, %v234_v19  ;;  %v265_v38 = vsel %vm235_vm5, %v234_v19, 0.0 }
  0xb7   :  { %v252_v50 = vadd.f32 %v251_v46, %v250_v32  ;;  %v304_v52 = vadd.f32 %v303_v49, %v302_v44  ;;  %v317_v36 = vsel %vm235_vm5, %v288_v23, 0.0 }
  0xb8   :  { %v319_v41 = vsel %vm235_vm5, %v289_v29, 0.0  ;;  %vm401_vm5 = vcmask 60416  }
  0xb9   :  { %v306_v60 = vadd.f32 %v305_v56, %v304_v52  ;;  %v254_v61 = vadd.f32 %v253_v57, %v252_v50 }
  0xbb   :  { %v256_v3 = vadd.f32 %v255_v14, %v254_v61  ;;  %v308_v4 = vadd.f32 %v307_v63, %v306_v60 }
  0xbd   :  { %v258_v9 = vadd.f32 %v257_v7, %v256_v3  ;;  %v310_v10 = vadd.f32 %v309_v6, %v308_v4  ;;  %v344_v7 = vld [vmem:[%s806_s3] sm:$0x1] }
  0xbf   :  { %v260_v16 = vadd.f32 %v259_v12, %v258_v9  ;;  %v312_v17 = vadd.f32 %v311_v15, %v310_v10  ;;  %v346_v12 = vld [vmem:[%s807_s4] sm:$0x1] }
  0xc1   :  { %v314_v24 = vadd.f32 %v313_v21, %v312_v17  ;;  %v262_v25 = vadd.f32 %v261_v22, %v260_v16 }
  0xc3   :  { %v264_v31 = vadd.f32 %v263_v27, %v262_v25  ;;  %v316_v35 = vadd.f32 %v315_v26, %v314_v24 }
  0xc5   :  { %v318_v39 = vadd.f32 %v317_v36, %v316_v35  ;;  %v266_v40 = vadd.f32 %v265_v38, %v264_v31 }
  0xc7   :  { %v267_v42 = vrot.slane %v266_v40, 4  ;;  %v320_v32 = vadd.f32 %v319_v41, %v318_v39 }
  0xc9   :  { %v268_v44 = vadd.f32 %v267_v42, %v266_v40  ;;  %v321_v45 = vrot.slane %v320_v32, 4 }
  0xcb   :  { %v269_v46 = vrot.slane %v268_v44, 2  ;;  %v322_v47 = vadd.f32 %v321_v45, %v320_v32 }
  0xcd   :  { %v270_v48 = vadd.f32 %v269_v46, %v268_v44  ;;  %v323_v49 = vrot.slane %v322_v47, 2 }
  0xcf   :  { %v271_v50 = vrot.slane %v270_v48, 1  ;;  %v324_v52 = vadd.f32 %v323_v49, %v322_v47 }
  0xd1   :  { %v272_v54 = vadd.f32 %v271_v50, %v270_v48  ;;  %v325_v56 = vrot.slane %v324_v52, 1 }
  0xd3   :  { %v326_v57 = vadd.f32 %v325_v56, %v324_v52  ;;  %v328_v58 = vmul.f32 0.0078125, %v272_v54 }
  0xd5   :  { %v329_v60 = vmul.f32 0.0078125, %v326_v57  ;;  %v330_v61 = vmul.f32 %v328_v58, %v328_v58 }
  0xd7   :  { %v331_v62 = vsub.f32 %v329_v60, %v330_v61 }
  0xd9   :  { %v332_v63 = vmax.f32 %v331_v62, 0.0 }
  0xdb   :  { %v333_v14 = vadd.f32 1e-05, %v332_v63 }
  0xdd   :  { %503 = vrsqrt.f32 %v333_v14  ;;  %vm340_vm3 = vweird.f32 %v333_v14 }
  0xe3   :  { %v504_v0 = vpop.eup %503 }
  0xe4   :  { %v335_v3 = vmul.f32 %v504_v0, %v333_v14  ;;  %vm341_vm2 = vweird.f32 %v504_v0 }
  0xe5   :  { %vm342_vm4 = vmor %vm340_vm3, %vm341_vm2 }
  0xe6   :  { %v336_v4 = vmul.f32 %v504_v0, %v335_v3 }
  0xe8   :  { %v337_v5 = vmul.f32 0.5, %v336_v4 }
  0xea   :  { %v338_v51 = vsub.f32 1.5, %v337_v5 }
  0xec   :  { %v339_v6 = vmul.f32 %v504_v0, %v338_v51 }
  0xee   :  { %v343_v9 = vsel %vm342_vm4, %v504_v0, %v339_v6 }
  0xef   :  { %v345_v10 = vmul.f32 %v344_v7, %v343_v9 }
  0xf1   :  { %v347_v13 = vmul.f32 %v345_v10, %v328_v58  ;;  %v349_v15 = vperm.slane %v345_v10, 0 }
  0xf3   :  { %v348_v16 = vsub.f32 %v346_v12, %v347_v13  ;;  %v350_v17 = vmul.f32 %v349_v15, %v587_v28  ;;  %v351_v21 = vmul.f32 %v349_v15, %v595_v33  ;;  %v352_v22 = vmul.f32 %v349_v15, %v601_v37 }
  0xf4   :  { %v365_v23 = vmul.f32 %v349_v15, %v234_v19  ;;  %v353_v25 = vmul.f32 %v349_v15, %v629_v2  ;;  %v354_v26 = vmul.f32 %v349_v15, %v590_v30  ;;  %v355_v35 = vmul.f32 %v349_v15, %v623_v55 }
  0xf5   :  { %v367_v24 = vperm.slane %v348_v16, 0  ;;  %v356_v38 = vmul.f32 %v349_v15, %v637_v8  ;;  %v357_v28 = vmul.f32 %v349_v15, %v643_v18  ;;  %v358_v33 = vmul.f32 %v349_v15, %v647_v20 }
  0xf6   :  { %v359_v42 = vmul.f32 %v349_v15, %v660_v34  ;;  %v360_v55 = vmul.f32 %v349_v15, %v667_v43  ;;  %v361_v18 = vmul.f32 %v349_v15, %v675_v53  ;;  %v362_v34 = vmul.f32 %v349_v15, %v686_v59 }
  0xf7   :  { %v369_v27 = vadd.f32 %v367_v24, %v350_v17  ;;  %v370_v29 = vadd.f32 %v367_v24, %v351_v21  ;;  %v371_v31 = vadd.f32 %v367_v24, %v352_v22  ;;  %v372_v36 = vadd.f32 %v367_v24, %v353_v25 }
  0xf8   :  { %v373_v39 = vadd.f32 %v367_v24, %v354_v26  ;;  %v374_v37 = vadd.f32 %v367_v24, %v355_v35  ;;  %v384_v19 = vadd.f32 %v367_v24, %v365_v23  ;;  %v375_v40 = vadd.f32 %v367_v24, %v356_v38 }
  0xf9   :  { %v385_v2 = vpack.c.bf16 %v369_v27, %v369_v27  ;;  %v386_v41 = vpack.c.bf16 %v370_v29, %v370_v29  ;;  %v387_v30 = vpack.c.bf16 %v371_v31, %v371_v31  ;;  %v376_v32 = vadd.f32 %v367_v24, %v357_v28 }
  0xfa   :  { %v388_v44 = vpack.c.bf16 %v372_v36, %v372_v36  ;;  %v377_v45 = vadd.f32 %v367_v24, %v358_v33  ;;  %v389_v8 = vpack.c.bf16 %v373_v39, %v373_v39  ;;  %v378_v20 = vadd.f32 %v367_v24, %v359_v42 }
  0xfb   :  { %402 = vst.msk [vmem:[%s808_s5] sm:$0xf] %vm401_vm5, %v385_v2  ;;  %v390_v46 = vpack.c.bf16 %v374_v37, %v374_v37  ;;  %v379_v47 = vadd.f32 %v367_v24, %v360_v55  ;;  %v391_v43 = vpack.c.bf16 %v375_v40, %v375_v40  ;;  %v363_v48 = vmul.f32 %v349_v15, %v693_v1 }
  0xfc   :  { %403 = vst.msk [vmem:[%s808_s5 + $0x4] sm:$0xf] %vm401_vm5, %v386_v41  ;;  %v380_v49 = vadd.f32 %v367_v24, %v361_v18  ;;  %v392_v53 = vpack.c.bf16 %v376_v32, %v376_v32  ;;  %v364_v50 = vmul.f32 %v349_v15, %v700_v11  ;;  %v381_v52 = vadd.f32 %v367_v24, %v362_v34 }
  0xfd   :  { %404 = vst.msk [vmem:[%s808_s5 + $0x8] sm:$0xf] %vm401_vm5, %v387_v30  ;;  %v393_v59 = vpack.c.bf16 %v377_v45, %v377_v45  ;;  %v382_v54 = vadd.f32 %v367_v24, %v363_v48  ;;  %v394_v56 = vpack.c.bf16 %v378_v20, %v378_v20  ;;  %v395_v57 = vpack.c.bf16 %v379_v47, %v379_v47 }
  0xfe   :  { %405 = vst.msk [vmem:[%s808_s5 + $0xc] sm:$0xf] %vm401_vm5, %v388_v44  ;;  %v383_v1 = vadd.f32 %v367_v24, %v364_v50  ;;  %v396_v11 = vpack.c.bf16 %v380_v49, %v380_v49  ;;  %v397_v58 = vpack.c.bf16 %v381_v52, %v381_v52  ;;  %v400_v62 = vpack.c.bf16 %v384_v19, %v384_v19 }
  0xff   :  { %406 = vst.msk [vmem:[%s808_s5 + $0x10] sm:$0xf] %vm401_vm5, %v389_v8  ;;  %v398_v60 = vpack.c.bf16 %v382_v54, %v382_v54 }
 0x100   :  { %407 = vst.msk [vmem:[%s808_s5 + $0x14] sm:$0xf] %vm401_vm5, %v390_v46  ;;  %v399_v61 = vpack.c.bf16 %v383_v1, %v383_v1 }
 0x101   :  { %408 = vst.msk [vmem:[%s808_s5 + $0x18] sm:$0xf] %vm401_vm5, %v391_v43 }
 0x102   :  { %409 = vst.msk [vmem:[%s808_s5 + $0x1c] sm:$0xf] %vm401_vm5, %v392_v53 }
 0x103   :  { %410 = vst.msk [vmem:[%s808_s5 + $0x20] sm:$0xf] %vm401_vm5, %v393_v59 }
 0x104   :  { %411 = vst.msk [vmem:[%s808_s5 + $0x24] sm:$0xf] %vm401_vm5, %v394_v56 }
 0x105   :  { %412 = vst.msk [vmem:[%s808_s5 + $0x28] sm:$0xf] %vm401_vm5, %v395_v57 }
 0x106   :  { %413 = vst.msk [vmem:[%s808_s5 + $0x2c] sm:$0xf] %vm401_vm5, %v396_v11 }
 0x107   :  { %414 = vst.msk [vmem:[%s808_s5 + $0x30] sm:$0xf] %vm401_vm5, %v397_v58 }
 0x108   :  { %415 = vst.msk [vmem:[%s808_s5 + $0x34] sm:$0xf] %vm401_vm5, %v398_v60 }
 0x109   :  { %416 = vst.msk [vmem:[%s808_s5 + $0x38] sm:$0xf] %vm401_vm5, %v399_v61 }
 0x10a   :  { %417 = vst.msk [vmem:[%s808_s5 + $0x3c] sm:$0xf] %vm401_vm5, %v400_v62 }

// kernel: cae_forward.11
= control target key start
LH: loop header
LB: loop body
LE: loop exit
PB: predicated region body
PF: predicated region fallthrough
CT: control target
= control target key end

     0   :  { %vm135_vm2 = vcmask 130048   ;;  %vm205_vm8 = vcmask 125952   ;;  %s376_s1 = inlined_call_operand.vmem [shape: bf16[1,128,16], index: 1, kind: input, shape index: {}]   ;;  %s377_s2 = inlined_call_operand.vmem [shape: f32[1,16], index: 2, kind: input, shape index: {}]   ;;  %s378_s0 = inlined_call_operand.vmem [shape: bf16[1,32,128], index: 0, kind: input, shape index: {}]   ;;  %s379_s3 = inlined_call_operand.vmem [shape: f32[1,16], index: 3, kind: input, shape index: {}]   ;;  %s380_s4 = inlined_call_operand.vmem [shape: f32[1,16], index: 4, kind: input, shape index: {}]   ;;  %s381_s5 = inlined_call_operand.vmem [shape: bf16[1,32,16], index: 5, kind: output, shape index: {}]  }
   0x1   :  { %v263_v0 = vld [vmem:[%s376_s1 + $0x38] sm:$0xff]  ;;  %v262_v1 = vld [vmem:[%s376_s1 + $0x30] sm:$0xff]  ;;  %v261_v2 = vld [vmem:[%s376_s1 + $0x28] sm:$0xff] }
   0x2   :  { %104 = vmatpush.bf16.msra.mxu0 %v263_v0  ;;  %264 = vmatpush.bf16.msra.mxu1 %v263_v0  ;;  %v260_v3 = vld [vmem:[%s376_s1 + $0x20] sm:$0xff]  ;;  %v259_v4 = vld [vmem:[%s376_s1 + $0x18] sm:$0xff]  ;;  %v258_v5 = vld [vmem:[%s376_s1 + $0x10] sm:$0xff] }
   0x3   :  { %v257_v6 = vld [vmem:[%s376_s1 + $0x8] sm:$0xff]  ;;  %v256_v7 = vld [vmem:[%s376_s1] sm:$0xff] }
   0x4   :  { %v254_v8 = vld [vmem:[%s378_s0] sm:$0xff]  ;;  %v255_v9 = vld [vmem:[%s378_s0 + $0x8] sm:$0xff] }
   0x5   :  { %v272_v10 = vld [vmem:[%s377_s2] ss:$0 sm:$0xff] }
   0x6   :  { %105 = vmatpush.bf16.msra.mxu0 %v262_v1  ;;  %265 = vmatpush.bf16.msra.mxu1 %v262_v1 }
   0xa   :  { %106 = vmatpush.bf16.msra.mxu0 %v261_v2  ;;  %266 = vmatpush.bf16.msra.mxu1 %v261_v2 }
   0xe   :  { %107 = vmatpush.bf16.msra.mxu0 %v260_v3  ;;  %267 = vmatpush.bf16.msra.mxu1 %v260_v3 }
  0x12   :  { %108 = vmatpush.bf16.msra.mxu0 %v259_v4  ;;  %268 = vmatpush.bf16.msra.mxu1 %v259_v4 }
  0x16   :  { %109 = vmatpush.bf16.msra.mxu0 %v258_v5  ;;  %269 = vmatpush.bf16.msra.mxu1 %v258_v5  ;;  %v184_v5 = vld [vmem:[%s379_s3] sm:$0x1] }
  0x1a   :  { %110 = vmatpush.bf16.msra.mxu0 %v257_v6  ;;  %270 = vmatpush.bf16.msra.mxu1 %v257_v6 }
  0x1e   :  { %111 = vmatpush.bf16.msra.mxu0 %v256_v7  ;;  %271 = vmatpush.bf16.msra.mxu1 %v256_v7 }
  0x21   :  { %112 = vmatmul.bf16.vlgmr.msra.gmra.mxu0 %v254_v8  ;;  %117 = vmatmul.bf16.vlgmr.msra.gmra.mxu1 %v255_v9  ;;  %v186_v8 = vld [vmem:[%s380_s4] sm:$0x1] }
  0x9e   :  { %v113_v11 = vpop.f32.mrf.mxu0  ;;  %v118_v12 = vpop.f32.mrf.mxu1 }
  0x9f   :  { %v114_v13 = vadd.f32 %v272_v10, %v113_v11  ;;  %v119_v14 = vadd.f32 %v272_v10, %v118_v12 }
  0xa1   :  { %v127_v15 = vmul.f32 0.25, %v114_v13  ;;  %vm123_vm0 = vcmp.ge.f32.partialorder %v114_v13, 0.0  ;;  %v129_v16 = vmul.f32 0.25, %v119_v14  ;;  %vm125_vm1 = vcmp.ge.f32.partialorder %v119_v14, 0.0 }
  0xa3   :  { %v338_v19 = vsel %vm123_vm0, %v114_v13, %v127_v15  ;;  %v340_v22 = vsel %vm125_vm1, %v119_v14, %v129_v16 }
  0xa4   :  { %v150_v25 = vmul.f32 %v338_v19, %v338_v19  ;;  %v136_v28 = vsel %vm135_vm2, %v338_v19, 0.0  ;;  %v152_v29 = vmul.f32 %v340_v22, %v340_v22  ;;  %v139_v34 = vsel %vm135_vm2, %v340_v22, 0.0 }
  0xa6   :  { %v115_v17 = vpop.f32.mrf.mxu0  ;;  %v120_v18 = vpop.f32.mrf.mxu1  ;;  %v154_v33 = vsel %vm135_vm2, %v150_v25, 0.0  ;;  %v157_v39 = vsel %vm135_vm2, %v152_v29, 0.0 }
  0xa7   :  { %v116_v20 = vadd.f32 %v272_v10, %v115_v17  ;;  %v121_v21 = vadd.f32 %v272_v10, %v120_v18 }
  0xa9   :  { %vm124_vm3 = vcmp.ge.f32.partialorder %v116_v20, 0.0  ;;  %v128_v23 = vmul.f32 0.25, %v116_v20  ;;  %vm126_vm4 = vcmp.ge.f32.partialorder %v121_v21, 0.0  ;;  %v130_v24 = vmul.f32 0.25, %v121_v21 }
  0xab   :  { %v132_v26 = vsel %vm124_vm3, %v116_v20, %v128_v23  ;;  %v134_v27 = vsel %vm126_vm4, %v121_v21, %v130_v24 }
  0xac   :  { %v137_v30 = vsel %vm135_vm2, %v132_v26, 0.0  ;;  %v151_v31 = vmul.f32 %v132_v26, %v132_v26  ;;  %v153_v36 = vmul.f32 %v134_v27, %v134_v27  ;;  %v141_v40 = vsel %vm135_vm2, %v134_v27, 0.0 }
  0xad   :  { %v138_v32 = vadd.f32 %v137_v30, %v136_v28 }
  0xae   :  { %v155_v35 = vsel %vm135_vm2, %v151_v31, 0.0  ;;  %v159_v43 = vsel %vm135_vm2, %v153_v36, 0.0 }
  0xaf   :  { %v156_v37 = vadd.f32 %v155_v35, %v154_v33  ;;  %v140_v38 = vadd.f32 %v139_v34, %v138_v32 }
  0xb1   :  { %v142_v41 = vadd.f32 %v141_v40, %v140_v38  ;;  %v158_v42 = vadd.f32 %v157_v39, %v156_v37 }
  0xb3   :  { %v143_v44 = vrot.slane %v142_v41, 4  ;;  %v160_v45 = vadd.f32 %v159_v43, %v158_v42 }
  0xb5   :  { %v144_v46 = vadd.f32 %v143_v44, %v142_v41  ;;  %v161_v47 = vrot.slane %v160_v45, 4 }
  0xb7   :  { %v145_v48 = vrot.slane %v144_v46, 2  ;;  %v162_v49 = vadd.f32 %v161_v47, %v160_v45 }
  0xb9   :  { %v146_v50 = vadd.f32 %v145_v48, %v144_v46  ;;  %v163_v51 = vrot.slane %v162_v49, 2 }
  0xbb   :  { %v147_v52 = vrot.slane %v146_v50, 1  ;;  %v164_v53 = vadd.f32 %v163_v51, %v162_v49 }
  0xbd   :  { %v148_v54 = vadd.f32 %v147_v52, %v146_v50  ;;  %v165_v55 = vrot.slane %v164_v53, 1 }
  0xbf   :  { %v166_v56 = vadd.f32 %v165_v55, %v164_v53  ;;  %v168_v57 = vmul.f32 0.03125, %v148_v54 }
  0xc1   :  { %v169_v58 = vmul.f32 0.03125, %v166_v56  ;;  %v170_v59 = vmul.f32 %v168_v57, %v168_v57 }
  0xc3   :  { %v171_v60 = vsub.f32 %v169_v58, %v170_v59 }
  0xc5   :  { %v172_v61 = vmax.f32 %v171_v60, 0.0 }
  0xc7   :  { %v173_v62 = vadd.f32 1e-05, %v172_v61 }
  0xc9   :  { %273 = vrsqrt.f32 %v173_v62  ;;  %vm180_vm6 = vweird.f32 %v173_v62 }
  0xcf   :  { %v274_v63 = vpop.eup %273 }
  0xd0   :  { %v175_v0 = vmul.f32 %v274_v63, %v173_v62  ;;  %vm181_vm5 = vweird.f32 %v274_v63 }
  0xd1   :  { %vm182_vm7 = vmor %vm180_vm6, %vm181_vm5 }
  0xd2   :  { %v176_v1 = vmul.f32 %v274_v63, %v175_v0 }
  0xd4   :  { %v177_v2 = vmul.f32 0.5, %v176_v1 }
  0xd6   :  { %v178_v3 = vsub.f32 1.5, %v177_v2 }
  0xd8   :  { %v179_v4 = vmul.f32 %v274_v63, %v178_v3 }
  0xda   :  { %v183_v6 = vsel %vm182_vm7, %v274_v63, %v179_v4 }
  0xdb   :  { %v185_v7 = vmul.f32 %v184_v5, %v183_v6 }
  0xdd   :  { %v187_v9 = vmul.f32 %v185_v7, %v168_v57  ;;  %v189_v10 = vperm.slane %v185_v7, 0 }
  0xdf   :  { %v188_v11 = vsub.f32 %v186_v8, %v187_v9  ;;  %v190_v12 = vmul.f32 %v189_v10, %v338_v19  ;;  %v191_v13 = vmul.f32 %v189_v10, %v132_v26  ;;  %v192_v14 = vmul.f32 %v189_v10, %v340_v22 }
  0xe0   :  { %v193_v15 = vmul.f32 %v189_v10, %v134_v27 }
  0xe1   :  { %v195_v16 = vperm.slane %v188_v11, 0 }
  0xe3   :  { %v197_v17 = vadd.f32 %v195_v16, %v190_v12  ;;  %v198_v18 = vadd.f32 %v195_v16, %v191_v13  ;;  %v199_v20 = vadd.f32 %v195_v16, %v192_v14  ;;  %v200_v21 = vadd.f32 %v195_v16, %v193_v15 }
  0xe5   :  { %v201_v23 = vpack.c.bf16 %v197_v17, %v197_v17  ;;  %v202_v24 = vpack.c.bf16 %v198_v18, %v198_v18  ;;  %v203_v25 = vpack.c.bf16 %v199_v20, %v199_v20  ;;  %v204_v28 = vpack.c.bf16 %v200_v21, %v200_v21 }
  0xe7   :  { %206 = vst.msk [vmem:[%s381_s5] sm:$0xf] %vm205_vm8, %v201_v23 }
  0xe8   :  { %207 = vst.msk [vmem:[%s381_s5 + $0x4] sm:$0xf] %vm205_vm8, %v202_v24 }
  0xe9   :  { %208 = vst.msk [vmem:[%s381_s5 + $0x8] sm:$0xf] %vm205_vm8, %v203_v25 }
  0xea   :  { %209 = vst.msk [vmem:[%s381_s5 + $0xc] sm:$0xf] %vm205_vm8, %v204_v28 }

// kernel: cae_forward.12
= control target key start
LH: loop header
LB: loop body
LE: loop exit
PB: predicated region body
PF: predicated region fallthrough
CT: control target
= control target key end

     0   :  { %vm189_vm1 = vcmask 261120   ;;  %vm235_vm5 = vcmask 257024   ;;  %s417_s1 = inlined_call_operand.vmem [shape: bf16[1,256,32], index: 1, kind: input, shape index: {}]   ;;  %s418_s2 = inlined_call_operand.vmem [shape: f32[1,32], index: 2, kind: input, shape index: {}]   ;;  %s419_s0 = inlined_call_operand.vmem [shape: bf16[1,8,256], index: 0, kind: input, shape index: {}]   ;;  %s420_s3 = inlined_call_operand.vmem [shape: f32[1,32], index: 3, kind: input, shape index: {}]   ;;  %s421_s4 = inlined_call_operand.vmem [shape: f32[1,32], index: 4, kind: input, shape index: {}]   ;;  %s422_s5 = inlined_call_operand.vmem [shape: bf16[1,8,32], index: 5, kind: output, shape index: {}]  }
   0x1   :  { %v312_v0 = vld [vmem:[%s417_s1 + $0x38] sm:$0xff]  ;;  %v311_v2 = vld [vmem:[%s417_s1 + $0x30] sm:$0xff]  ;;  %v310_v4 = vld [vmem:[%s417_s1 + $0x28] sm:$0xff] }
   0x2   :  { %v320_v1 = vld [vmem:[%s417_s1 + $0x78] sm:$0xff]  ;;  %160 = vmatpush.bf16.msra.mxu0 %v312_v0  ;;  %v319_v3 = vld [vmem:[%s417_s1 + $0x70] sm:$0xff]  ;;  %v318_v5 = vld [vmem:[%s417_s1 + $0x68] sm:$0xff] }
   0x3   :  { %173 = vmatpush.bf16.msra.mxu1 %v320_v1  ;;  %v309_v6 = vld [vmem:[%s417_s1 + $0x20] sm:$0xff]  ;;  %v308_v8 = vld [vmem:[%s417_s1 + $0x18] sm:$0xff]  ;;  %v307_v10 = vld [vmem:[%s417_s1 + $0x10] sm:$0xff] }
   0x4   :  { %v317_v7 = vld [vmem:[%s417_s1 + $0x60] sm:$0xff]  ;;  %v316_v9 = vld [vmem:[%s417_s1 + $0x58] sm:$0xff]  ;;  %v315_v11 = vld [vmem:[%s417_s1 + $0x50] sm:$0xff] }
   0x5   :  { %v306_v12 = vld [vmem:[%s417_s1 + $0x8] sm:$0xff]  ;;  %v20_v14 = vld [vmem:[%s419_s0] sm:$0xff] }
   0x6   :  { %161 = vmatpush.bf16.msra.mxu0 %v311_v2  ;;  %v314_v13 = vld [vmem:[%s417_s1 + $0x48] sm:$0xff]  ;;  %v58_v15 = vunpack.c.l.b16 %v20_v14  ;;  %v59_v16 = vunpack.c.h.b16 %v20_v14  ;;  %v305_v17 = vld [vmem:[%s417_s1] sm:$0xff] }
   0x7   :  { %174 = vmatpush.bf16.msra.mxu1 %v319_v3  ;;  %v313_v18 = vld [vmem:[%s417_s1 + $0x40] sm:$0xff] }
   0x8   :  { %v60_v19 = vpack.c.b16 %v58_v15, %v58_v15  ;;  %v61_v20 = vpack.c.b16 %v59_v16, %v59_v16  ;;  %v321_v21 = vld [vmem:[%s418_s2] ss:$0 sm:$0xff] }
   0x9   :  { %v223_v57 = vld [vmem:[%s420_s3] sm:$0x1] }
   0xa   :  { %162 = vmatpush.bf16.msra.mxu0 %v310_v4  ;;  %v225_v60 = vld [vmem:[%s421_s4] sm:$0x1] }
   0xb   :  { %175 = vmatpush.bf16.msra.mxu1 %v318_v5 }
   0xe   :  { %163 = vmatpush.bf16.msra.mxu0 %v309_v6 }
   0xf   :  { %176 = vmatpush.bf16.msra.mxu1 %v317_v7 }
  0x12   :  { %164 = vmatpush.bf16.msra.mxu0 %v308_v8 }
  0x13   :  { %177 = vmatpush.bf16.msra.mxu1 %v316_v9 }
  0x16   :  { %165 = vmatpush.bf16.msra.mxu0 %v307_v10 }
  0x17   :  { %178 = vmatpush.bf16.msra.mxu1 %v315_v11 }
  0x1a   :  { %166 = vmatpush.bf16.msra.mxu0 %v306_v12 }
  0x1b   :  { %179 = vmatpush.bf16.msra.mxu1 %v314_v13 }
  0x1e   :  { %167 = vmatpush.bf16.msra.mxu0 %v305_v17 }
  0x1f   :  { %180 = vmatpush.bf16.msra.mxu1 %v313_v18 }
  0x21   :  { %168 = vmatmul.bf16.vlgmr.msra.gmra.mxu0 %v60_v19 }
  0x22   :  { %181 = vmatmul.bf16.vlgmr.msra.gmra.mxu1 %v61_v20 }
  0x9e   :  { %v169_v22 = vpop.f32.mrf.mxu0 }
  0x9f   :  { %v182_v23 = vpop.f32.mrf.mxu1  ;;  %v170_v24 = vadd.f32 %v321_v21, %v169_v22 }
  0xa1   :  { %v183_v25 = vadd.f32 %v182_v23, %v170_v24 }
  0xa3   :  { %vm186_vm0 = vcmp.ge.f32.partialorder %v183_v25, 0.0  ;;  %v187_v26 = vmul.f32 0.25, %v183_v25 }
  0xa5   :  { %v188_v27 = vsel %vm186_vm0, %v183_v25, %v187_v26 }
  0xa6   :  { %v190_v28 = vsel %vm189_vm1, %v188_v27, 0.0  ;;  %v198_v29 = vmul.f32 %v188_v27, %v188_v27  ;;  %v171_v30 = vpop.f32.mrf.mxu0 }
  0xa7   :  { %v184_v31 = vpop.f32.mrf.mxu1  ;;  %v191_v32 = vrot.slane %v190_v28, 4 }
  0xa8   :  { %v199_v33 = vsel %vm189_vm1, %v198_v29, 0.0 }
  0xa9   :  { %v192_v34 = vadd.f32 %v191_v32, %v190_v28  ;;  %v200_v35 = vrot.slane %v199_v33, 4 }
  0xab   :  { %v193_v36 = vrot.slane %v192_v34, 2  ;;  %v201_v37 = vadd.f32 %v200_v35, %v199_v33 }
  0xad   :  { %v194_v38 = vadd.f32 %v193_v36, %v192_v34  ;;  %v202_v39 = vrot.slane %v201_v37, 2 }
  0xaf   :  { %v195_v40 = vrot.slane %v194_v38, 1  ;;  %v203_v41 = vadd.f32 %v202_v39, %v201_v37 }
  0xb1   :  { %v196_v42 = vadd.f32 %v195_v40, %v194_v38  ;;  %v204_v43 = vrot.slane %v203_v41, 1 }
  0xb3   :  { %v205_v44 = vadd.f32 %v204_v43, %v203_v41  ;;  %v207_v45 = vmul.f32 0.125, %v196_v42 }
  0xb5   :  { %v208_v46 = vmul.f32 0.125, %v205_v44  ;;  %v209_v47 = vmul.f32 %v207_v45, %v207_v45 }
  0xb7   :  { %v210_v48 = vsub.f32 %v208_v46, %v209_v47 }
  0xb9   :  { %v211_v49 = vmax.f32 %v210_v48, 0.0 }
  0xbb   :  { %v212_v50 = vadd.f32 1e-05, %v211_v49 }
  0xbd   :  { %322 = vrsqrt.f32 %v212_v50  ;;  %vm219_vm3 = vweird.f32 %v212_v50 }
  0xc3   :  { %v323_v51 = vpop.eup %322 }
  0xc4   :  { %v214_v52 = vmul.f32 %v323_v51, %v212_v50  ;;  %vm220_vm2 = vweird.f32 %v323_v51 }
  0xc5   :  { %vm221_vm4 = vmor %vm219_vm3, %vm220_vm2 }
  0xc6   :  { %v215_v53 = vmul.f32 %v323_v51, %v214_v52 }
  0xc8   :  { %v216_v54 = vmul.f32 0.5, %v215_v53 }
  0xca   :  { %v217_v55 = vsub.f32 1.5, %v216_v54 }
  0xcc   :  { %v218_v56 = vmul.f32 %v323_v51, %v217_v55 }
  0xce   :  { %v222_v58 = vsel %vm221_vm4, %v323_v51, %v218_v56 }
  0xcf   :  { %v224_v59 = vmul.f32 %v223_v57, %v222_v58 }
  0xd1   :  { %v226_v61 = vmul.f32 %v224_v59, %v207_v45  ;;  %v228_v62 = vperm.slane %v224_v59, 0 }
  0xd3   :  { %v227_v63 = vsub.f32 %v225_v60, %v226_v61  ;;  %v229_v0 = vmul.f32 %v228_v62, %v188_v27 }
  0xd5   :  { %v231_v1 = vperm.slane %v227_v63, 0 }
  0xd7   :  { %v233_v2 = vadd.f32 %v231_v1, %v229_v0 }
  0xd9   :  { %v234_v3 = vpack.c.bf16 %v233_v2, %v233_v2 }
  0xdb   :  { %236 = vst.msk [vmem:[%s422_s5] sm:$0xf] %vm235_vm5, %v234_v3 }

// kernel: cae_forward.13
= control target key start
LH: loop header
LB: loop body
LE: loop exit
PB: predicated region body
PF: predicated region fallthrough
CT: control target
= control target key end

     0   :  { %vm118_vm1 = vcmask 254976   ;;  %vm181_vm5 = vcmask 261120   ;;  %vm201_vm7 = vcmask 1041408   ;;  %s412_s1 = inlined_call_operand.vmem [shape: bf16[128,32], index: 1, kind: input, shape index: {}]   ;;  %s413_s2 = inlined_call_operand.vmem [shape: f32[1,32], index: 2, kind: input, shape index: {}]   ;;  %s414_s0 = inlined_call_operand.vmem [shape: bf16[2,128], index: 0, kind: input, shape index: {}]   ;;  %s415_s4 = inlined_call_operand.vmem [shape: f32[1,32], index: 4, kind: input, shape index: {}]   ;;  %s416_s6 = inlined_call_operand.vmem [shape: f32[1,128], index: 6, kind: input, shape index: {}]   ;;  %s417_s8 = inlined_call_operand.vmem [shape: f32[1,128], index: 8, kind: input, shape index: {}]   ;;  %s418_s5 = inlined_call_operand.vmem [shape: bf16[32,128], index: 5, kind: input, shape index: {}]   ;;  %s419_s3 = inlined_call_operand.vmem [shape: f32[1,32], index: 3, kind: input, shape index: {}]   ;;  %s420_s7 = inlined_call_operand.vmem [shape: f32[1,128], index: 7, kind: input, shape index: {}]   ;;  %s421_s9 = inlined_call_operand.vmem [shape: bf16[2,128], index: 9, kind: output, shape index: {}]  }
   0x1   :  { %v297_v0 = vld [vmem:[%s412_s1 + $0x38] sm:$0xff]  ;;  %v296_v1 = vld [vmem:[%s412_s1 + $0x30] sm:$0xff]  ;;  %v295_v2 = vld [vmem:[%s412_s1 + $0x28] sm:$0xff] }
   0x2   :  { %102 = vmatpush.bf16.msra.mxu0 %v297_v0  ;;  %v294_v3 = vld [vmem:[%s412_s1 + $0x20] sm:$0xff]  ;;  %v293_v4 = vld [vmem:[%s412_s1 + $0x18] sm:$0xff]  ;;  %v292_v5 = vld [vmem:[%s412_s1 + $0x10] sm:$0xff] }
   0x3   :  { %v291_v6 = vld [vmem:[%s412_s1 + $0x8] sm:$0xff]  ;;  %v290_v7 = vld [vmem:[%s412_s1] sm:$0xff] }
   0x4   :  { %v33_v8 = vld [vmem:[%s414_s0] sm:$0x1]  ;;  %v299_v13 = vld [vmem:[%s418_s5 + $0x8] sm:$0xff] }
   0x5   :  { %v300_v9 = vld [vmem:[%s413_s2] ss:$0 sm:$0xff]  ;;  %191 = vmatpush.bf16.msra.mxu1 %v299_v13 }
   0x6   :  { %103 = vmatpush.bf16.msra.mxu0 %v296_v1  ;;  %v298_v17 = vld [vmem:[%s418_s5] sm:$0xff] }
   0x7   :  { %v150_v44 = vld [vmem:[%s419_s3] sm:$0x1] }
   0x8   :  { %v301_v49 = vld [vmem:[%s415_s4] ss:$0 sm:$0xff] }
   0x9   :  { %192 = vmatpush.bf16.msra.mxu1 %v298_v17  ;;  %v302_v53 = vld [vmem:[%s416_s6] ss:$0 sm:$0xff] }
   0xa   :  { %104 = vmatpush.bf16.msra.mxu0 %v295_v2 }
   0xe   :  { %105 = vmatpush.bf16.msra.mxu0 %v294_v3 }
  0x12   :  { %106 = vmatpush.bf16.msra.mxu0 %v293_v4 }
  0x16   :  { %107 = vmatpush.bf16.msra.mxu0 %v292_v5 }
  0x1a   :  { %108 = vmatpush.bf16.msra.mxu0 %v291_v6 }
  0x1e   :  { %109 = vmatpush.bf16.msra.mxu0 %v290_v7 }
  0x21   :  { %110 = vmatmul.bf16.vlgmr.msra.gmra.mxu0 %v33_v8 }
  0x9e   :  { %v111_v10 = vpop.f32.mrf.mxu0 }
  0x9f   :  { %v112_v11 = vadd.f32 %v300_v9, %v111_v10 }
  0xa1   :  { %vm115_vm0 = vcmp.ge.f32.partialorder %v112_v11, 0.0  ;;  %v116_v12 = vmul.f32 0.25, %v112_v11 }
  0xa3   :  { %v117_v14 = vsel %vm115_vm0, %v112_v11, %v116_v12 }
  0xa4   :  { %v119_v15 = vsel %vm118_vm1, %v117_v14, 0.0  ;;  %v127_v16 = vmul.f32 %v117_v14, %v117_v14 }
  0xa5   :  { %v120_v18 = vrot.slane %v119_v15, 4 }
  0xa6   :  { %v128_v19 = vsel %vm118_vm1, %v127_v16, 0.0  ;;  %v113_v20 = vpop.f32.mrf.mxu0 }
  0xa7   :  { %v121_v21 = vadd.f32 %v120_v18, %v119_v15  ;;  %v129_v22 = vrot.slane %v128_v19, 4 }
  0xa9   :  { %v122_v23 = vrot.slane %v121_v21, 2  ;;  %v130_v24 = vadd.f32 %v129_v22, %v128_v19  ;;  %v233_v22 = vld [vmem:[%s420_s7] sm:$0x1] }
  0xab   :  { %v123_v25 = vadd.f32 %v122_v23, %v121_v21  ;;  %v131_v26 = vrot.slane %v130_v24, 2 }
  0xad   :  { %v124_v27 = vrot.slane %v123_v25, 1  ;;  %v132_v28 = vadd.f32 %v131_v26, %v130_v24 }
  0xaf   :  { %v125_v29 = vadd.f32 %v124_v27, %v123_v25  ;;  %v133_v30 = vrot.slane %v132_v28, 1  ;;  %v303_v27 = vld [vmem:[%s417_s8] ss:$0 sm:$0xff] }
  0xb1   :  { %v126_v31 = vmul.f32 0.5, %v125_v29  ;;  %v134_v32 = vadd.f32 %v133_v30, %v132_v28 }
  0xb3   :  { %v135_v33 = vmul.f32 0.5, %v134_v32  ;;  %v136_v34 = vmul.f32 %v126_v31, %v126_v31  ;;  %v152_v47 = vsub.f32 %v117_v14, %v126_v31 }
  0xb5   :  { %v137_v35 = vsub.f32 %v135_v33, %v136_v34 }
  0xb7   :  { %v138_v36 = vmax.f32 %v137_v35, 0.0 }
  0xb9   :  { %v139_v37 = vadd.f32 1e-05, %v138_v36 }
  0xbb   :  { %304 = vrsqrt.f32 %v139_v37  ;;  %vm146_vm3 = vweird.f32 %v139_v37 }
  0xc1   :  { %v305_v38 = vpop.eup %304 }
  0xc2   :  { %v141_v39 = vmul.f32 %v305_v38, %v139_v37  ;;  %vm147_vm2 = vweird.f32 %v305_v38 }
  0xc3   :  { %vm148_vm4 = vmor %vm146_vm3, %vm147_vm2 }
  0xc4   :  { %v142_v40 = vmul.f32 %v305_v38, %v141_v39 }
  0xc6   :  { %v143_v41 = vmul.f32 0.5, %v142_v40 }
  0xc8   :  { %v144_v42 = vsub.f32 1.5, %v143_v41 }
  0xca   :  { %v145_v43 = vmul.f32 %v305_v38, %v144_v42 }
  0xcc   :  { %v149_v45 = vsel %vm148_vm4, %v305_v38, %v145_v43 }
  0xcd   :  { %v151_v46 = vmul.f32 %v150_v44, %v149_v45 }
  0xcf   :  { %v153_v48 = vperm.slane %v151_v46, 0 }
  0xd1   :  { %v154_v50 = vmul.f32 %v153_v48, %v152_v47 }
  0xd3   :  { %v159_v51 = vadd.f32 %v301_v49, %v154_v50 }
  0xd5   :  { %v160_v52 = vpack.c.bf16 %v159_v51, %v159_v51 }
  0xd7   :  { %289 = vmatmul.msk.bf16.vlgmr.msra.gmra.mxu1 %vm181_vm5, %v160_v52 }
 0x154   :  { %v194_v54 = vpop.f32.mrf.mxu1 }
 0x155   :  { %v195_v55 = vadd.f32 %v302_v53, %v194_v54 }
 0x157   :  { %vm198_vm6 = vcmp.ge.f32.partialorder %v195_v55, 0.0  ;;  %v199_v56 = vmul.f32 0.25, %v195_v55 }
 0x159   :  { %v200_v57 = vsel %vm198_vm6, %v195_v55, %v199_v56 }
 0x15a   :  { %v202_v58 = vsel %vm201_vm7, %v200_v57, 0.0  ;;  %v210_v59 = vmul.f32 %v200_v57, %v200_v57 }
 0x15b   :  { %v203_v60 = vrot.slane %v202_v58, 4 }
 0x15c   :  { %v211_v61 = vsel %vm201_vm7, %v210_v59, 0.0  ;;  %v196_v62 = vpop.f32.mrf.mxu1 }
 0x15d   :  { %v204_v63 = vadd.f32 %v203_v60, %v202_v58  ;;  %v212_v0 = vrot.slane %v211_v61, 4 }
 0x15f   :  { %v205_v1 = vrot.slane %v204_v63, 2  ;;  %v213_v2 = vadd.f32 %v212_v0, %v211_v61 }
 0x161   :  { %v206_v3 = vadd.f32 %v205_v1, %v204_v63  ;;  %v214_v4 = vrot.slane %v213_v2, 2 }
 0x163   :  { %v207_v5 = vrot.slane %v206_v3, 1  ;;  %v215_v6 = vadd.f32 %v214_v4, %v213_v2 }
 0x165   :  { %v208_v7 = vadd.f32 %v207_v5, %v206_v3  ;;  %v216_v8 = vrot.slane %v215_v6, 1 }
 0x167   :  { %v209_v9 = vmul.f32 0.5, %v208_v7  ;;  %v217_v10 = vadd.f32 %v216_v8, %v215_v6 }
 0x169   :  { %v218_v11 = vmul.f32 0.5, %v217_v10  ;;  %v219_v12 = vmul.f32 %v209_v9, %v209_v9  ;;  %v235_v25 = vsub.f32 %v200_v57, %v209_v9 }
 0x16b   :  { %v220_v13 = vsub.f32 %v218_v11, %v219_v12 }
 0x16d   :  { %v221_v14 = vmax.f32 %v220_v13, 0.0 }
 0x16f   :  { %v222_v15 = vadd.f32 1e-05, %v221_v14 }
 0x171   :  { %306 = vrsqrt.f32 %v222_v15  ;;  %vm229_vm9 = vweird.f32 %v222_v15 }
 0x177   :  { %v307_v16 = vpop.eup %306 }
 0x178   :  { %v224_v17 = vmul.f32 %v307_v16, %v222_v15  ;;  %vm230_vm8 = vweird.f32 %v307_v16 }
 0x179   :  { %vm231_vm10 = vmor %vm229_vm9, %vm230_vm8 }
 0x17a   :  { %v225_v18 = vmul.f32 %v307_v16, %v224_v17 }
 0x17c   :  { %v226_v19 = vmul.f32 0.5, %v225_v18 }
 0x17e   :  { %v227_v20 = vsub.f32 1.5, %v226_v19 }
 0x180   :  { %v228_v21 = vmul.f32 %v307_v16, %v227_v20 }
 0x182   :  { %v232_v23 = vsel %vm231_vm10, %v307_v16, %v228_v21 }
 0x183   :  { %v234_v24 = vmul.f32 %v233_v22, %v232_v23 }
 0x185   :  { %v236_v26 = vperm.slane %v234_v24, 0 }
 0x187   :  { %v237_v28 = vmul.f32 %v236_v26, %v235_v25 }
 0x189   :  { %v242_v29 = vadd.f32 %v303_v27, %v237_v28 }
 0x18b   :  { %v243_v30 = vpack.c.bf16 %v242_v29, %v242_v29 }
 0x18d   :  { %244 = vst [vmem:[%s421_s9] sm:$0x1] %v243_v30 }

// kernel: cae_forward.14
= control target key start
LH: loop header
LB: loop body
LE: loop exit
PB: predicated region body
PF: predicated region fallthrough
CT: control target
= control target key end

     0   :  { %vm105_vm0 = vcmask 130048   ;;  %vm451_vm8 = vcmask 125952   ;;  %s880_s1 = inlined_call_operand.vmem [shape: bf16[4,128,16], index: 1, kind: input, shape index: {}]   ;;  %s881_s2 = inlined_call_operand.vmem [shape: f32[1,16], index: 2, kind: input, shape index: {}]   ;;  %s882_s0 = inlined_call_operand.vmem [shape: bf16[4,8,128], index: 0, kind: input, shape index: {}]   ;;  %s883_s3 = inlined_call_operand.vmem [shape: f32[1,16], index: 3, kind: input, shape index: {}]   ;;  %s884_s4 = inlined_call_operand.vmem [shape: f32[1,16], index: 4, kind: input, shape index: {}]   ;;  %s885_s5 = inlined_call_operand.vmem [shape: bf16[4,8,16], index: 5, kind: output, shape index: {}]  }
   0x1   :  { %v661_v0 = vld [vmem:[%s880_s1 + $0x38] sm:$0xff]  ;;  %v660_v4 = vld [vmem:[%s880_s1 + $0x30] sm:$0xff]  ;;  %v659_v8 = vld [vmem:[%s880_s1 + $0x28] sm:$0xff] }
   0x2   :  { %v669_v1 = vld [vmem:[%s880_s1 + $0x78] sm:$0xff]  ;;  %89 = vmatpush.bf16.msra.mxu0 %v661_v0  ;;  %v668_v5 = vld [vmem:[%s880_s1 + $0x70] sm:$0xff]  ;;  %v667_v9 = vld [vmem:[%s880_s1 + $0x68] sm:$0xff] }
   0x3   :  { %v677_v2 = vld [vmem:[%s880_s1 + $0xb8] sm:$0xff]  ;;  %190 = vmatpush.bf16.msra.mxu1 %v669_v1  ;;  %v676_v6 = vld [vmem:[%s880_s1 + $0xb0] sm:$0xff]  ;;  %v675_v10 = vld [vmem:[%s880_s1 + $0xa8] sm:$0xff] }
   0x4   :  { %v685_v3 = vld [vmem:[%s880_s1 + $0xf8] sm:$0xff]  ;;  %290 = vmatpush.bf16.msra.mxu2 %v677_v2  ;;  %v684_v7 = vld [vmem:[%s880_s1 + $0xf0] sm:$0xff]  ;;  %v683_v11 = vld [vmem:[%s880_s1 + $0xe8] sm:$0xff] }
   0x5   :  { %390 = vmatpush.bf16.msra.mxu3 %v685_v3  ;;  %v658_v12 = vld [vmem:[%s880_s1 + $0x20] sm:$0xff]  ;;  %v657_v16 = vld [vmem:[%s880_s1 + $0x18] sm:$0xff]  ;;  %v656_v20 = vld [vmem:[%s880_s1 + $0x10] sm:$0xff] }
   0x6   :  { %90 = vmatpush.bf16.msra.mxu0 %v660_v4  ;;  %v666_v13 = vld [vmem:[%s880_s1 + $0x60] sm:$0xff]  ;;  %v665_v17 = vld [vmem:[%s880_s1 + $0x58] sm:$0xff]  ;;  %v664_v21 = vld [vmem:[%s880_s1 + $0x50] sm:$0xff] }
   0x7   :  { %191 = vmatpush.bf16.msra.mxu1 %v668_v5  ;;  %v674_v14 = vld [vmem:[%s880_s1 + $0xa0] sm:$0xff]  ;;  %v673_v18 = vld [vmem:[%s880_s1 + $0x98] sm:$0xff]  ;;  %v672_v22 = vld [vmem:[%s880_s1 + $0x90] sm:$0xff] }
   0x8   :  { %291 = vmatpush.bf16.msra.mxu2 %v676_v6  ;;  %v682_v15 = vld [vmem:[%s880_s1 + $0xe0] sm:$0xff]  ;;  %v681_v19 = vld [vmem:[%s880_s1 + $0xd8] sm:$0xff]  ;;  %v680_v23 = vld [vmem:[%s880_s1 + $0xd0] sm:$0xff] }
   0x9   :  { %391 = vmatpush.bf16.msra.mxu3 %v684_v7  ;;  %v655_v24 = vld [vmem:[%s880_s1 + $0x8] sm:$0xff]  ;;  %v654_v28 = vld [vmem:[%s880_s1] sm:$0xff] }
   0xa   :  { %91 = vmatpush.bf16.msra.mxu0 %v659_v8  ;;  %v663_v25 = vld [vmem:[%s880_s1 + $0x48] sm:$0xff]  ;;  %v662_v29 = vld [vmem:[%s880_s1 + $0x40] sm:$0xff] }
   0xb   :  { %192 = vmatpush.bf16.msra.mxu1 %v667_v9  ;;  %v671_v26 = vld [vmem:[%s880_s1 + $0x88] sm:$0xff]  ;;  %v670_v30 = vld [vmem:[%s880_s1 + $0x80] sm:$0xff] }
   0xc   :  { %292 = vmatpush.bf16.msra.mxu2 %v675_v10  ;;  %v679_v27 = vld [vmem:[%s880_s1 + $0xc8] sm:$0xff]  ;;  %v678_v31 = vld [vmem:[%s880_s1 + $0xc0] sm:$0xff] }
   0xd   :  { %392 = vmatpush.bf16.msra.mxu3 %v683_v11  ;;  %v20_v32 = vld [vmem:[%s882_s0] sm:$0xf]  ;;  %v504_v33 = vld [vmem:[%s882_s0 + $0x4] sm:$0xf]  ;;  %v553_v34 = vld [vmem:[%s882_s0 + $0x8] sm:$0xf] }
   0xe   :  { %92 = vmatpush.bf16.msra.mxu0 %v658_v12  ;;  %v602_v35 = vld [vmem:[%s882_s0 + $0xc] sm:$0xf]  ;;  %v686_v36 = vld [vmem:[%s881_s2] ss:$0 sm:$0xff] }
   0xf   :  { %193 = vmatpush.bf16.msra.mxu1 %v666_v13 }
  0x10   :  { %293 = vmatpush.bf16.msra.mxu2 %v674_v14 }
  0x11   :  { %393 = vmatpush.bf16.msra.mxu3 %v682_v15 }
  0x12   :  { %93 = vmatpush.bf16.msra.mxu0 %v657_v16 }
  0x13   :  { %194 = vmatpush.bf16.msra.mxu1 %v665_v17 }
  0x14   :  { %294 = vmatpush.bf16.msra.mxu2 %v673_v18 }
  0x15   :  { %394 = vmatpush.bf16.msra.mxu3 %v681_v19 }
  0x16   :  { %94 = vmatpush.bf16.msra.mxu0 %v656_v20 }
  0x17   :  { %195 = vmatpush.bf16.msra.mxu1 %v664_v21 }
  0x18   :  { %295 = vmatpush.bf16.msra.mxu2 %v672_v22 }
  0x19   :  { %395 = vmatpush.bf16.msra.mxu3 %v680_v23 }
  0x1a   :  { %95 = vmatpush.bf16.msra.mxu0 %v655_v24 }
  0x1b   :  { %196 = vmatpush.bf16.msra.mxu1 %v663_v25 }
  0x1c   :  { %296 = vmatpush.bf16.msra.mxu2 %v671_v26 }
  0x1d   :  { %396 = vmatpush.bf16.msra.mxu3 %v679_v27 }
  0x1e   :  { %96 = vmatpush.bf16.msra.mxu0 %v654_v28 }
  0x1f   :  { %197 = vmatpush.bf16.msra.mxu1 %v662_v29 }
  0x20   :  { %297 = vmatpush.bf16.msra.mxu2 %v670_v30 }
  0x21   :  { %397 = vmatpush.bf16.msra.mxu3 %v678_v31  ;;  %97 = vmatmul.bf16.vlgmr.msra.gmra.mxu0 %v20_v32 }
  0x22   :  { %198 = vmatmul.bf16.vlgmr.msra.gmra.mxu1 %v504_v33 }
  0x23   :  { %298 = vmatmul.bf16.vlgmr.msra.gmra.mxu2 %v553_v34 }
  0x24   :  { %398 = vmatmul.bf16.vlgmr.msra.gmra.mxu3 %v602_v35 }
  0x9e   :  { %v98_v37 = vpop.f32.mrf.mxu0 }
  0x9f   :  { %v199_v38 = vpop.f32.mrf.mxu1  ;;  %v99_v39 = vadd.f32 %v686_v36, %v98_v37 }
  0xa0   :  { %v200_v40 = vadd.f32 %v686_v36, %v199_v38 }
  0xa1   :  { %vm102_vm1 = vcmp.ge.f32.partialorder %v99_v39, 0.0  ;;  %v103_v41 = vmul.f32 0.25, %v99_v39 }
  0xa2   :  { %vm203_vm2 = vcmp.ge.f32.partialorder %v200_v40, 0.0  ;;  %v204_v42 = vmul.f32 0.25, %v200_v40 }
  0xa3   :  { %v830_v43 = vsel %vm102_vm1, %v99_v39, %v103_v41 }
  0xa4   :  { %v832_v44 = vsel %vm203_vm2, %v200_v40, %v204_v42  ;;  %v106_v45 = vsel %vm105_vm0, %v830_v43, 0.0  ;;  %v114_v46 = vmul.f32 %v830_v43, %v830_v43 }
  0xa5   :  { %v206_v47 = vsel %vm105_vm0, %v832_v44, 0.0  ;;  %v214_v48 = vmul.f32 %v832_v44, %v832_v44  ;;  %v107_v49 = vrot.slane %v106_v45, 4 }
  0xa6   :  { %v207_v50 = vrot.slane %v206_v47, 4  ;;  %v299_v51 = vpop.f32.mrf.mxu2  ;;  %v115_v53 = vsel %vm105_vm0, %v114_v46, 0.0  ;;  %v100_v57 = vpop.f32.mrf.mxu0 }
  0xa7   :  { %v399_v52 = vpop.f32.mrf.mxu3  ;;  %v215_v54 = vsel %vm105_vm0, %v214_v48, 0.0  ;;  %v300_v55 = vadd.f32 %v686_v36, %v299_v51  ;;  %v201_v58 = vpop.f32.mrf.mxu1  ;;  %v108_v59 = vadd.f32 %v107_v49, %v106_v45  ;;  %v116_v60 = vrot.slane %v115_v53, 4 }
  0xa8   :  { %v400_v56 = vadd.f32 %v686_v36, %v399_v52  ;;  %v208_v61 = vadd.f32 %v207_v50, %v206_v47  ;;  %v216_v62 = vrot.slane %v215_v54, 4 }
  0xa9   :  { %vm303_vm3 = vcmp.ge.f32.partialorder %v300_v55, 0.0  ;;  %v304_v63 = vmul.f32 0.25, %v300_v55  ;;  %v109_v1 = vrot.slane %v108_v59, 2  ;;  %v117_v2 = vadd.f32 %v116_v60, %v115_v53 }
  0xaa   :  { %vm403_vm4 = vcmp.ge.f32.partialorder %v400_v56, 0.0  ;;  %v404_v0 = vmul.f32 0.25, %v400_v56  ;;  %v209_v3 = vrot.slane %v208_v61, 2  ;;  %v217_v4 = vadd.f32 %v216_v62, %v215_v54 }
  0xab   :  { %v844_v5 = vsel %vm303_vm3, %v300_v55, %v304_v63  ;;  %v110_v7 = vadd.f32 %v109_v1, %v108_v59  ;;  %v118_v8 = vrot.slane %v117_v2, 2 }
  0xac   :  { %v846_v6 = vsel %vm403_vm4, %v400_v56, %v404_v0  ;;  %v210_v9 = vadd.f32 %v209_v3, %v208_v61  ;;  %v218_v10 = vrot.slane %v217_v4, 2  ;;  %v306_v11 = vsel %vm105_vm0, %v844_v5, 0.0 }
  0xad   :  { %v314_v12 = vmul.f32 %v844_v5, %v844_v5  ;;  %v406_v13 = vsel %vm105_vm0, %v846_v6, 0.0  ;;  %v414_v14 = vmul.f32 %v846_v6, %v846_v6  ;;  %v119_v15 = vadd.f32 %v118_v8, %v117_v2 }
  0xae   :  { %v219_v16 = vadd.f32 %v218_v10, %v217_v4  ;;  %v301_v17 = vpop.f32.mrf.mxu2  ;;  %v307_v19 = vrot.slane %v306_v11, 4  ;;  %v407_v21 = vrot.slane %v406_v13, 4  ;;  %v111_v23 = vrot.slane %v110_v7, 1 }
  0xaf   :  { %v401_v18 = vpop.f32.mrf.mxu3  ;;  %v315_v20 = vsel %vm105_vm0, %v314_v12, 0.0  ;;  %v415_v22 = vsel %vm105_vm0, %v414_v14, 0.0  ;;  %v211_v24 = vrot.slane %v210_v9, 1  ;;  %v120_v29 = vrot.slane %v119_v15, 1  ;;  %v441_v14 = vld [vmem:[%s884_s4] sm:$0x1] }
  0xb0   :  { %v308_v25 = vadd.f32 %v307_v19, %v306_v11  ;;  %v316_v26 = vrot.slane %v315_v20, 4  ;;  %v408_v27 = vadd.f32 %v407_v21, %v406_v13  ;;  %v416_v28 = vrot.slane %v415_v22, 4  ;;  %v439_v11 = vld [vmem:[%s883_s3] sm:$0x1] }
  0xb1   :  { %v220_v30 = vrot.slane %v219_v16, 1  ;;  %v112_v35 = vadd.f32 %v111_v23, %v110_v7  ;;  %v212_v36 = vadd.f32 %v211_v24, %v210_v9  ;;  %v121_v41 = vadd.f32 %v120_v29, %v119_v15 }
  0xb2   :  { %v309_v31 = vrot.slane %v308_v25, 2  ;;  %v317_v32 = vadd.f32 %v316_v26, %v315_v20  ;;  %v409_v33 = vrot.slane %v408_v27, 2  ;;  %v417_v34 = vadd.f32 %v416_v28, %v415_v22 }
  0xb3   :  { %v221_v42 = vadd.f32 %v220_v30, %v219_v16  ;;  %v213_v49 = vadd.f32 %v212_v36, %v112_v35 }
  0xb4   :  { %v310_v37 = vadd.f32 %v309_v31, %v308_v25  ;;  %v318_v38 = vrot.slane %v317_v32, 2  ;;  %v410_v39 = vadd.f32 %v409_v33, %v408_v27  ;;  %v418_v40 = vrot.slane %v417_v34, 2 }
  0xb5   :  { %v222_v53 = vadd.f32 %v221_v42, %v121_v41 }
  0xb6   :  { %v311_v45 = vrot.slane %v310_v37, 1  ;;  %v319_v46 = vadd.f32 %v318_v38, %v317_v32  ;;  %v411_v47 = vrot.slane %v410_v39, 1  ;;  %v419_v48 = vadd.f32 %v418_v40, %v417_v34 }
  0xb8   :  { %v312_v50 = vadd.f32 %v311_v45, %v310_v37  ;;  %v320_v51 = vrot.slane %v319_v46, 1  ;;  %v420_v52 = vrot.slane %v419_v48, 1  ;;  %v412_v56 = vadd.f32 %v411_v47, %v410_v39 }
  0xba   :  { %v313_v54 = vadd.f32 %v312_v50, %v213_v49  ;;  %v321_v55 = vadd.f32 %v320_v51, %v319_v46  ;;  %v421_v59 = vadd.f32 %v420_v52, %v419_v48 }
  0xbc   :  { %v322_v57 = vadd.f32 %v321_v55, %v222_v53  ;;  %v413_v58 = vadd.f32 %v412_v56, %v313_v54 }
  0xbe   :  { %v422_v60 = vadd.f32 %v421_v59, %v322_v57  ;;  %v423_v61 = vmul.f32 0.03125, %v413_v58 }
  0xc0   :  { %v424_v62 = vmul.f32 0.03125, %v422_v60  ;;  %v425_v63 = vmul.f32 %v423_v61, %v423_v61 }
  0xc2   :  { %v426_v0 = vsub.f32 %v424_v62, %v425_v63 }
  0xc4   :  { %v427_v1 = vmax.f32 %v426_v0, 0.0 }
  0xc6   :  { %v428_v2 = vadd.f32 1e-05, %v427_v1 }
  0xc8   :  { %687 = vrsqrt.f32 %v428_v2  ;;  %vm435_vm6 = vweird.f32 %v428_v2 }
  0xce   :  { %v688_v3 = vpop.eup %687 }
  0xcf   :  { %v430_v4 = vmul.f32 %v688_v3, %v428_v2  ;;  %vm436_vm5 = vweird.f32 %v688_v3 }
  0xd0   :  { %vm437_vm7 = vmor %vm435_vm6, %vm436_vm5 }
  0xd1   :  { %v431_v7 = vmul.f32 %v688_v3, %v430_v4 }
  0xd3   :  { %v432_v8 = vmul.f32 0.5, %v431_v7 }
  0xd5   :  { %v433_v9 = vsub.f32 1.5, %v432_v8 }
  0xd7   :  { %v434_v10 = vmul.f32 %v688_v3, %v433_v9 }
  0xd9   :  { %v438_v12 = vsel %vm437_vm7, %v688_v3, %v434_v10 }
  0xda   :  { %v440_v13 = vmul.f32 %v439_v11, %v438_v12 }
  0xdc   :  { %v442_v15 = vmul.f32 %v440_v13, %v423_v61  ;;  %v444_v16 = vperm.slane %v440_v13, 0 }
  0xde   :  { %v443_v17 = vsub.f32 %v441_v14, %v442_v15  ;;  %v445_v18 = vmul.f32 %v444_v16, %v830_v43  ;;  %v453_v20 = vmul.f32 %v444_v16, %v832_v44  ;;  %v458_v21 = vmul.f32 %v444_v16, %v844_v5 }
  0xdf   :  { %v463_v22 = vmul.f32 %v444_v16, %v846_v6 }
  0xe0   :  { %v447_v19 = vperm.slane %v443_v17, 0 }
  0xe2   :  { %v449_v23 = vadd.f32 %v447_v19, %v445_v18  ;;  %v454_v24 = vadd.f32 %v453_v20, %v447_v19  ;;  %v459_v25 = vadd.f32 %v458_v21, %v447_v19  ;;  %v464_v26 = vadd.f32 %v463_v22, %v447_v19 }
  0xe4   :  { %v450_v27 = vpack.c.bf16 %v449_v23, %v449_v23  ;;  %v455_v28 = vpack.c.bf16 %v454_v24, %v454_v24  ;;  %v460_v29 = vpack.c.bf16 %v459_v25, %v459_v25  ;;  %v465_v30 = vpack.c.bf16 %v464_v26, %v464_v26 }
  0xe6   :  { %452 = vst.msk [vmem:[%s885_s5] sm:$0xf] %vm451_vm8, %v450_v27 }
  0xe7   :  { %651 = vst.msk [vmem:[%s885_s5 + $0x4] sm:$0xf] %vm451_vm8, %v455_v28 }
  0xe8   :  { %652 = vst.msk [vmem:[%s885_s5 + $0x8] sm:$0xf] %vm451_vm8, %v460_v29 }
  0xe9   :  { %653 = vst.msk [vmem:[%s885_s5 + $0xc] sm:$0xf] %vm451_vm8, %v465_v30 }

// kernel: cae_forward.15
= control target key start
LH: loop header
LB: loop body
LE: loop exit
PB: predicated region body
PF: predicated region fallthrough
CT: control target
= control target key end

     0   :  { %vm71_vm0 = vcmask 523264   ;;  %vm109_vm6 = vcmask 64512   ;;  %s1099_s1 = inlined_call_operand.vmem [shape: bf16[4,64,8], index: 1, kind: input, shape index: {}]   ;;  %s1100_s2 = inlined_call_operand.vmem [shape: f32[1,8], index: 2, kind: input, shape index: {}]   ;;  %s1101_s0 = inlined_call_operand.vmem [shape: bf16[4,32,64], index: 0, kind: input, shape index: {}]   ;;  %s1102_s3 = inlined_call_operand.vmem [shape: f32[1,8], index: 3, kind: input, shape index: {}]   ;;  %s1103_s4 = inlined_call_operand.vmem [shape: f32[1,8], index: 4, kind: input, shape index: {}]   ;;  %s1104_s5 = inlined_call_operand.vmem [shape: bf16[4,32,8], index: 5, kind: output, shape index: {}]  }
   0x1   :  { %v747_v0 = vld [vmem:[%s1099_s1 + $0x18] sm:$0xff]  ;;  %v746_v4 = vld [vmem:[%s1099_s1 + $0x10] sm:$0xff]  ;;  %v745_v8 = vld [vmem:[%s1099_s1 + $0x8] sm:$0xff] }
   0x2   :  { %v753_v1 = vld [vmem:[%s1099_s1 + $0x38] sm:$0xff]  ;;  %82 = vmatpush.bf16.msra.mxu0 %v747_v0  ;;  %v752_v5 = vld [vmem:[%s1099_s1 + $0x30] sm:$0xff]  ;;  %v751_v9 = vld [vmem:[%s1099_s1 + $0x28] sm:$0xff] }
   0x3   :  { %v759_v2 = vld [vmem:[%s1099_s1 + $0x58] sm:$0xff]  ;;  %200 = vmatpush.bf16.msra.mxu1 %v753_v1  ;;  %v758_v6 = vld [vmem:[%s1099_s1 + $0x50] sm:$0xff]  ;;  %v757_v10 = vld [vmem:[%s1099_s1 + $0x48] sm:$0xff] }
   0x4   :  { %v765_v3 = vld [vmem:[%s1099_s1 + $0x78] sm:$0xff]  ;;  %317 = vmatpush.bf16.msra.mxu2 %v759_v2  ;;  %v764_v7 = vld [vmem:[%s1099_s1 + $0x70] sm:$0xff]  ;;  %v763_v11 = vld [vmem:[%s1099_s1 + $0x68] sm:$0xff] }
   0x5   :  { %434 = vmatpush.bf16.msra.mxu3 %v765_v3  ;;  %v744_v12 = vld [vmem:[%s1099_s1] sm:$0xff]  ;;  %v748_v17 = vld [vmem:[%s1101_s0 + $0x10] sm:$0xff]  ;;  %v743_v20 = vld [vmem:[%s1101_s0 + $0x8] sm:$0xff] }
   0x6   :  { %83 = vmatpush.bf16.msra.mxu0 %v746_v4  ;;  %v750_v13 = vld [vmem:[%s1099_s1 + $0x20] sm:$0xff]  ;;  %v760_v19 = vld [vmem:[%s1101_s0 + $0x30] sm:$0xff]  ;;  %v749_v21 = vld [vmem:[%s1101_s0 + $0x18] sm:$0xff] }
   0x7   :  { %201 = vmatpush.bf16.msra.mxu1 %v752_v5  ;;  %v756_v14 = vld [vmem:[%s1099_s1 + $0x40] sm:$0xff]  ;;  %v755_v22 = vld [vmem:[%s1101_s0 + $0x28] sm:$0xff]  ;;  %v761_v23 = vld [vmem:[%s1101_s0 + $0x38] sm:$0xff] }
   0x8   :  { %318 = vmatpush.bf16.msra.mxu2 %v758_v6  ;;  %v762_v15 = vld [vmem:[%s1099_s1 + $0x60] sm:$0xff] }
   0x9   :  { %435 = vmatpush.bf16.msra.mxu3 %v764_v7  ;;  %v742_v16 = vld [vmem:[%s1101_s0] sm:$0xff] }
   0xa   :  { %84 = vmatpush.bf16.msra.mxu0 %v745_v8  ;;  %v754_v18 = vld [vmem:[%s1101_s0 + $0x20] sm:$0xff] }
   0xb   :  { %202 = vmatpush.bf16.msra.mxu1 %v751_v9  ;;  %v882_v24 = vld [vmem:[%s1100_s2] ss:$0 sm:$0xff] }
   0xc   :  { %319 = vmatpush.bf16.msra.mxu2 %v757_v10 }
   0xd   :  { %436 = vmatpush.bf16.msra.mxu3 %v763_v11 }
   0xe   :  { %85 = vmatpush.bf16.msra.mxu0 %v744_v12 }
   0xf   :  { %203 = vmatpush.bf16.msra.mxu1 %v750_v13 }
  0x10   :  { %320 = vmatpush.bf16.msra.mxu2 %v756_v14 }
  0x11   :  { %437 = vmatpush.bf16.msra.mxu3 %v762_v15  ;;  %614 = vmatmul.msk.bf16.vlgmr.msra.gmra.mxu0 %vm71_vm0, %v742_v16 }
  0x12   :  { %652 = vmatmul.msk.bf16.vlgmr.msra.gmra.mxu1 %vm71_vm0, %v748_v17 }
  0x13   :  { %690 = vmatmul.msk.bf16.vlgmr.msra.gmra.mxu2 %vm71_vm0, %v754_v18 }
  0x14   :  { %728 = vmatmul.msk.bf16.vlgmr.msra.gmra.mxu3 %vm71_vm0, %v760_v19 }
  0x21   :  { %615 = vmatmul.msk.bf16.gmra.mxu0 %vm71_vm0, %v743_v20 }
  0x22   :  { %653 = vmatmul.msk.bf16.gmra.mxu1 %vm71_vm0, %v749_v21 }
  0x23   :  { %691 = vmatmul.msk.bf16.gmra.mxu2 %vm71_vm0, %v755_v22 }
  0x24   :  { %729 = vmatmul.msk.bf16.gmra.mxu3 %vm71_vm0, %v761_v23 }
  0x8e   :  { %v87_v25 = vpop.f32.mrf.mxu0 }
  0x8f   :  { %v205_v26 = vpop.f32.mrf.mxu1  ;;  %v88_v27 = vadd.f32 %v882_v24, %v87_v25 }
  0x90   :  { %v206_v28 = vadd.f32 %v882_v24, %v205_v26 }
  0x91   :  { %v101_v29 = vmul.f32 0.25, %v88_v27  ;;  %vm97_vm1 = vcmp.ge.f32.partialorder %v88_v27, 0.0 }
  0x92   :  { %v219_v30 = vmul.f32 0.25, %v206_v28  ;;  %vm215_vm2 = vcmp.ge.f32.partialorder %v206_v28, 0.0 }
  0x93   :  { %v886_v31 = vsel %vm97_vm1, %v88_v27, %v101_v29 }
  0x94   :  { %v890_v38 = vsel %vm215_vm2, %v206_v28, %v219_v30  ;;  %v124_v41 = vmul.f32 %v886_v31, %v886_v31  ;;  %v110_v50 = vsel %vm109_vm6, %v886_v31, 0.0 }
  0x95   :  { %v241_v46 = vmul.f32 %v890_v38, %v890_v38  ;;  %v227_v52 = vsel %vm109_vm6, %v890_v38, 0.0 }
  0x96   :  { %v322_v32 = vpop.f32.mrf.mxu2  ;;  %v89_v36 = vpop.f32.mrf.mxu0  ;;  %v128_v51 = vsel %vm109_vm6, %v124_v41, 0.0 }
  0x97   :  { %v439_v33 = vpop.f32.mrf.mxu3  ;;  %v323_v34 = vadd.f32 %v882_v24, %v322_v32  ;;  %v207_v37 = vpop.f32.mrf.mxu1  ;;  %v90_v39 = vadd.f32 %v882_v24, %v89_v36  ;;  %v245_v56 = vsel %vm109_vm6, %v241_v46, 0.0 }
  0x98   :  { %v440_v35 = vadd.f32 %v882_v24, %v439_v33  ;;  %v208_v40 = vadd.f32 %v882_v24, %v207_v37 }
  0x99   :  { %vm332_vm3 = vcmp.ge.f32.partialorder %v323_v34, 0.0  ;;  %v336_v42 = vmul.f32 0.25, %v323_v34  ;;  %vm98_vm4 = vcmp.ge.f32.partialorder %v90_v39, 0.0  ;;  %v102_v44 = vmul.f32 0.25, %v90_v39 }
  0x9a   :  { %v453_v43 = vmul.f32 0.25, %v440_v35  ;;  %vm216_vm5 = vcmp.ge.f32.partialorder %v208_v40, 0.0  ;;  %v220_v45 = vmul.f32 0.25, %v208_v40  ;;  %vm449_vm7 = vcmp.ge.f32.partialorder %v440_v35, 0.0 }
  0x9b   :  { %v898_v47 = vsel %vm332_vm3, %v323_v34, %v336_v42  ;;  %v900_v48 = vsel %vm98_vm4, %v90_v39, %v102_v44 }
  0x9c   :  { %v902_v49 = vsel %vm216_vm5, %v208_v40, %v220_v45  ;;  %v909_v53 = vsel %vm449_vm7, %v440_v35, %v453_v43  ;;  %v344_v57 = vsel %vm109_vm6, %v898_v47, 0.0  ;;  %v125_v58 = vmul.f32 %v900_v48, %v900_v48 }
  0x9d   :  { %v358_v62 = vmul.f32 %v898_v47, %v898_v47  ;;  %v242_v63 = vmul.f32 %v902_v49, %v902_v49  ;;  %v475_v2 = vmul.f32 %v909_v53, %v909_v53  ;;  %v111_v3 = vsel %vm109_vm6, %v900_v48, 0.0 }
  0x9e   :  { %v324_v54 = vpop.f32.mrf.mxu2  ;;  %v92_v60 = vpop.f32.mrf.mxu0  ;;  %v228_v5 = vsel %vm109_vm6, %v902_v49, 0.0  ;;  %v129_v7 = vsel %vm109_vm6, %v125_v58, 0.0  ;;  %v461_v16 = vsel %vm109_vm6, %v909_v53, 0.0  ;;  %v112_v20 = vadd.f32 %v111_v3, %v110_v50 }
  0x9f   :  { %v441_v55 = vpop.f32.mrf.mxu3  ;;  %v325_v59 = vadd.f32 %v882_v24, %v324_v54  ;;  %v210_v61 = vpop.f32.mrf.mxu1  ;;  %v93_v1 = vadd.f32 %v882_v24, %v92_v60  ;;  %v246_v11 = vsel %vm109_vm6, %v242_v63, 0.0  ;;  %v362_v15 = vsel %vm109_vm6, %v358_v62, 0.0 }
  0xa0   :  { %v442_v0 = vadd.f32 %v882_v24, %v441_v55  ;;  %v211_v10 = vadd.f32 %v882_v24, %v210_v61  ;;  %v479_v19 = vsel %vm109_vm6, %v475_v2, 0.0  ;;  %v229_v21 = vadd.f32 %v228_v5, %v227_v52 }
  0xa1   :  { %vm333_vm8 = vcmp.ge.f32.partialorder %v325_v59, 0.0  ;;  %v337_v4 = vmul.f32 0.25, %v325_v59  ;;  %vm99_vm10 = vcmp.ge.f32.partialorder %v93_v1, 0.0  ;;  %v103_v9 = vmul.f32 0.25, %v93_v1 }
  0xa2   :  { %vm450_vm9 = vcmp.ge.f32.partialorder %v442_v0, 0.0  ;;  %v454_v6 = vmul.f32 0.25, %v442_v0  ;;  %v130_v26 = vadd.f32 %v129_v7, %v128_v51  ;;  %v247_v27 = vadd.f32 %v246_v11, %v245_v56 }
  0xa3   :  { %v930_v8 = vsel %vm333_vm8, %v325_v59, %v337_v4  ;;  %v945_v18 = vsel %vm99_vm10, %v93_v1, %v103_v9  ;;  %vm217_vm11 = vcmp.ge.f32.partialorder %v211_v10, 0.0  ;;  %v221_v33 = vmul.f32 0.25, %v211_v10 }
  0xa4   :  { %v345_v12 = vsel %vm109_vm6, %v930_v8, 0.0  ;;  %v359_v13 = vmul.f32 %v930_v8, %v930_v8  ;;  %v938_v14 = vsel %vm450_vm9, %v442_v0, %v454_v6  ;;  %v126_v22 = vmul.f32 %v945_v18, %v945_v18 }
  0xa5   :  { %v476_v17 = vmul.f32 %v938_v14, %v938_v14  ;;  %v346_v28 = vadd.f32 %v345_v12, %v344_v57  ;;  %v462_v32 = vsel %vm109_vm6, %v938_v14, 0.0  ;;  %v113_v37 = vsel %vm109_vm6, %v945_v18, 0.0 }
  0xa6   :  { %v327_v23 = vpop.f32.mrf.mxu2  ;;  %v94_v29 = vpop.f32.mrf.mxu0  ;;  %v363_v30 = vsel %vm109_vm6, %v359_v13, 0.0  ;;  %v131_v41 = vsel %vm109_vm6, %v126_v22, 0.0  ;;  %v960_v42 = vsel %vm217_vm11, %v211_v10, %v221_v33  ;;  %v463_v55 = vadd.f32 %v462_v32, %v461_v16 }
  0xa7   :  { %v444_v25 = vpop.f32.mrf.mxu3  ;;  %v328_v34 = vadd.f32 %v882_v24, %v327_v23  ;;  %v212_v35 = vpop.f32.mrf.mxu1  ;;  %v480_v36 = vsel %vm109_vm6, %v476_v17, 0.0  ;;  %v95_v40 = vadd.f32 %v882_v24, %v94_v29  ;;  %v243_v44 = vmul.f32 %v960_v42, %v960_v42 }
  0xa8   :  { %v445_v39 = vadd.f32 %v882_v24, %v444_v25  ;;  %v213_v46 = vadd.f32 %v882_v24, %v212_v35  ;;  %v230_v50 = vsel %vm109_vm6, %v960_v42, 0.0  ;;  %v364_v54 = vadd.f32 %v363_v30, %v362_v15 }
  0xa9   :  { %vm334_vm12 = vcmp.ge.f32.partialorder %v328_v34, 0.0  ;;  %v338_v43 = vmul.f32 0.25, %v328_v34  ;;  %vm100_vm14 = vcmp.ge.f32.partialorder %v95_v40, 0.0  ;;  %v104_v52 = vmul.f32 0.25, %v95_v40 }
  0xaa   :  { %vm451_vm13 = vcmp.ge.f32.partialorder %v445_v39, 0.0  ;;  %v455_v45 = vmul.f32 0.25, %v445_v39  ;;  %v248_v56 = vsel %vm109_vm6, %v243_v44, 0.0  ;;  %v481_v58 = vadd.f32 %v480_v36, %v479_v19 }
  0xab   :  { %v967_v51 = vsel %vm334_vm12, %v328_v34, %v338_v43  ;;  %v114_v59 = vadd.f32 %v113_v37, %v112_v20  ;;  %v132_v63 = vadd.f32 %v131_v41, %v130_v26  ;;  %v231_v0 = vadd.f32 %v230_v50, %v229_v21 }
  0xac   :  { %v347_v57 = vsel %vm109_vm6, %v967_v51, 0.0  ;;  %v360_v60 = vmul.f32 %v967_v51, %v967_v51  ;;  %v974_v61 = vsel %vm451_vm13, %v445_v39, %v455_v45  ;;  %v249_v1 = vadd.f32 %v248_v56, %v247_v27 }
  0xad   :  { %v976_v2 = vsel %vm100_vm14, %v95_v40, %v104_v52  ;;  %v348_v4 = vadd.f32 %v347_v57, %v346_v28  ;;  %vm218_vm15 = vcmp.ge.f32.partialorder %v213_v46, 0.0  ;;  %v464_v7 = vsel %vm109_vm6, %v974_v61, 0.0 }
  0xae   :  { %v329_v62 = vpop.f32.mrf.mxu2  ;;  %v115_v5 = vsel %vm109_vm6, %v976_v2, 0.0  ;;  %v127_v6 = vmul.f32 %v976_v2, %v976_v2  ;;  %v222_v10 = vmul.f32 0.25, %v213_v46  ;;  %v365_v12 = vsel %vm109_vm6, %v360_v60, 0.0 }
  0xaf   :  { %v446_v3 = vpop.f32.mrf.mxu3  ;;  %v116_v9 = vadd.f32 %v115_v5, %v114_v59  ;;  %v330_v11 = vadd.f32 %v882_v24, %v329_v62  ;;  %v477_v13 = vmul.f32 %v974_v61, %v974_v61  ;;  %v366_v29 = vadd.f32 %v365_v12, %v364_v54 }
  0xb0   :  { %v133_v15 = vsel %vm109_vm6, %v127_v6, 0.0  ;;  %v447_v16 = vadd.f32 %v882_v24, %v446_v3  ;;  %v990_v20 = vsel %vm218_vm15, %v213_v46, %v222_v10  ;;  %v465_v30 = vadd.f32 %v464_v7, %v463_v55 }
  0xb1   :  { %v117_v17 = vrot.slane %v116_v9, 4  ;;  %v134_v19 = vadd.f32 %v133_v15, %v132_v63  ;;  %vm335_vm0 = vcmp.ge.f32.partialorder %v330_v11, 0.0  ;;  %v232_v21 = vsel %vm109_vm6, %v990_v20, 0.0 }
  0xb2   :  { %v244_v22 = vmul.f32 %v990_v20, %v990_v20  ;;  %v339_v23 = vmul.f32 0.25, %v330_v11  ;;  %vm452_vm1 = vcmp.ge.f32.partialorder %v447_v16, 0.0  ;;  %v233_v27 = vadd.f32 %v232_v21, %v231_v0 }
  0xb3   :  { %v118_v25 = vadd.f32 %v117_v17, %v116_v9  ;;  %v135_v26 = vrot.slane %v134_v19, 4  ;;  %v456_v28 = vmul.f32 0.25, %v447_v16  ;;  %v482_v37 = vsel %vm109_vm6, %v477_v13, 0.0 }
  0xb4   :  { %v250_v24 = vsel %vm109_vm6, %v244_v22, 0.0  ;;  %v997_v32 = vsel %vm335_vm0, %v330_v11, %v339_v23  ;;  %v234_v35 = vrot.slane %v233_v27, 4  ;;  %v483_v56 = vadd.f32 %v482_v37, %v481_v58 }
  0xb5   :  { %v119_v33 = vrot.slane %v118_v25, 2  ;;  %v136_v34 = vadd.f32 %v135_v26, %v134_v19  ;;  %v251_v36 = vadd.f32 %v250_v24, %v249_v1  ;;  %v349_v39 = vsel %vm109_vm6, %v997_v32, 0.0 }
  0xb6   :  { %v361_v40 = vmul.f32 %v997_v32, %v997_v32  ;;  %v1005_v41 = vsel %vm452_vm1, %v447_v16, %v456_v28  ;;  %v235_v45 = vadd.f32 %v234_v35, %v233_v27  ;;  %v350_v50 = vadd.f32 %v349_v39, %v348_v4 }
  0xb7   :  { %v120_v43 = vadd.f32 %v119_v33, %v118_v25  ;;  %v137_v44 = vrot.slane %v136_v34, 2  ;;  %v252_v46 = vrot.slane %v251_v36, 4  ;;  %v466_v54 = vsel %vm109_vm6, %v1005_v41, 0.0 }
  0xb8   :  { %v367_v52 = vsel %vm109_vm6, %v361_v40, 0.0  ;;  %v478_v55 = vmul.f32 %v1005_v41, %v1005_v41  ;;  %v236_v59 = vrot.slane %v235_v45, 2  ;;  %v351_v62 = vrot.slane %v350_v50, 4 }
  0xb9   :  { %v138_v57 = vadd.f32 %v137_v44, %v136_v34  ;;  %v253_v60 = vadd.f32 %v252_v46, %v251_v36  ;;  %v368_v63 = vadd.f32 %v367_v52, %v366_v29  ;;  %v467_v0 = vadd.f32 %v466_v54, %v465_v30 }
  0xba   :  { %v484_v1 = vsel %vm109_vm6, %v478_v55, 0.0  ;;  %v121_v3 = vrot.slane %v120_v43, 1  ;;  %v237_v5 = vadd.f32 %v236_v59, %v235_v45  ;;  %v352_v6 = vadd.f32 %v351_v62, %v350_v50 }
  0xbb   :  { %v254_v4 = vrot.slane %v253_v60, 2  ;;  %v369_v7 = vrot.slane %v368_v63, 4  ;;  %v468_v9 = vrot.slane %v467_v0, 4  ;;  %v485_v10 = vadd.f32 %v484_v1, %v483_v56 }
  0xbc   :  { %v139_v11 = vrot.slane %v138_v57, 1  ;;  %v238_v12 = vrot.slane %v237_v5, 1  ;;  %v353_v15 = vrot.slane %v352_v6, 2  ;;  %v122_v19 = vadd.f32 %v121_v3, %v120_v43 }
  0xbd   :  { %v255_v13 = vadd.f32 %v254_v4, %v253_v60  ;;  %v370_v58 = vadd.f32 %v369_v7, %v368_v63  ;;  %v469_v16 = vadd.f32 %v468_v9, %v467_v0  ;;  %v486_v17 = vrot.slane %v485_v10, 4  ;;  %v509_v9 = vld [vmem:[%s1102_s3] sm:$0x1] }
  0xbe   :  { %v239_v21 = vadd.f32 %v238_v12, %v237_v5  ;;  %v354_v23 = vadd.f32 %v353_v15, %v352_v6  ;;  %v140_v28 = vadd.f32 %v139_v11, %v138_v57  ;;  %v511_v12 = vld [vmem:[%s1103_s4] sm:$0x1]  ;;  %vm530_vm5 = vcmask 60416  }
  0xbf   :  { %v256_v22 = vrot.slane %v255_v13, 1  ;;  %v371_v25 = vrot.slane %v370_v58, 2  ;;  %v470_v26 = vrot.slane %v469_v16, 2  ;;  %v487_v27 = vadd.f32 %v486_v17, %v485_v10 }
  0xc0   :  { %v355_v30 = vrot.slane %v354_v23, 1  ;;  %v240_v35 = vadd.f32 %v239_v21, %v122_v19 }
  0xc1   :  { %v257_v29 = vadd.f32 %v256_v22, %v255_v13  ;;  %v372_v24 = vadd.f32 %v371_v25, %v370_v58  ;;  %v471_v33 = vadd.f32 %v470_v26, %v469_v16  ;;  %v488_v34 = vrot.slane %v487_v27, 2 }
  0xc2   :  { %v356_v36 = vadd.f32 %v355_v30, %v354_v23 }
  0xc3   :  { %v373_v37 = vrot.slane %v372_v24, 1  ;;  %v472_v39 = vrot.slane %v471_v33, 1  ;;  %v489_v40 = vadd.f32 %v488_v34, %v487_v27  ;;  %v258_v44 = vadd.f32 %v257_v29, %v140_v28 }
  0xc4   :  { %v357_v45 = vadd.f32 %v356_v36, %v240_v35 }
  0xc5   :  { %v374_v43 = vadd.f32 %v373_v37, %v372_v24  ;;  %v473_v46 = vadd.f32 %v472_v39, %v471_v33  ;;  %v490_v50 = vrot.slane %v489_v40, 1 }
  0xc7   :  { %v375_v52 = vadd.f32 %v374_v43, %v258_v44  ;;  %v474_v54 = vadd.f32 %v473_v46, %v357_v45  ;;  %v491_v55 = vadd.f32 %v490_v50, %v489_v40 }
  0xc9   :  { %v492_v56 = vadd.f32 %v491_v55, %v375_v52  ;;  %v493_v57 = vmul.f32 0.0078125, %v474_v54 }
  0xcb   :  { %v494_v59 = vmul.f32 0.0078125, %v492_v56  ;;  %v495_v60 = vmul.f32 %v493_v57, %v493_v57 }
  0xcd   :  { %v496_v62 = vsub.f32 %v494_v59, %v495_v60 }
  0xcf   :  { %v497_v63 = vmax.f32 %v496_v62, 0.0 }
  0xd1   :  { %v498_v0 = vadd.f32 1e-05, %v497_v63 }
  0xd3   :  { %767 = vrsqrt.f32 %v498_v0  ;;  %vm505_vm3 = vweird.f32 %v498_v0 }
  0xd9   :  { %v768_v1 = vpop.eup %767 }
  0xda   :  { %v500_v3 = vmul.f32 %v768_v1, %v498_v0  ;;  %vm506_vm2 = vweird.f32 %v768_v1 }
  0xdb   :  { %vm507_vm4 = vmor %vm505_vm3, %vm506_vm2 }
  0xdc   :  { %v501_v5 = vmul.f32 %v768_v1, %v500_v3 }
  0xde   :  { %v502_v4 = vmul.f32 0.5, %v501_v5 }
  0xe0   :  { %v503_v6 = vsub.f32 1.5, %v502_v4 }
  0xe2   :  { %v504_v7 = vmul.f32 %v768_v1, %v503_v6 }
  0xe4   :  { %v508_v10 = vsel %vm507_vm4, %v768_v1, %v504_v7 }
  0xe5   :  { %v510_v11 = vmul.f32 %v509_v9, %v508_v10 }
  0xe7   :  { %v512_v13 = vmul.f32 %v510_v11, %v493_v57  ;;  %v514_v15 = vperm.slane %v510_v11, 0 }
  0xe9   :  { %v513_v58 = vsub.f32 %v511_v12, %v512_v13  ;;  %v515_v16 = vmul.f32 %v514_v15, %v886_v31  ;;  %v536_v17 = vmul.f32 %v514_v15, %v902_v49  ;;  %v516_v19 = vmul.f32 %v514_v15, %v900_v48 }
  0xea   :  { %v517_v21 = vmul.f32 %v514_v15, %v945_v18  ;;  %v518_v22 = vmul.f32 %v514_v15, %v976_v2  ;;  %v535_v25 = vmul.f32 %v514_v15, %v890_v38  ;;  %v537_v26 = vmul.f32 %v514_v15, %v960_v42 }
  0xeb   :  { %v520_v23 = vperm.slane %v513_v58, 0  ;;  %v555_v27 = vmul.f32 %v514_v15, %v997_v32  ;;  %v538_v49 = vmul.f32 %v514_v15, %v990_v20  ;;  %v552_v18 = vmul.f32 %v514_v15, %v898_v47 }
  0xec   :  { %v553_v42 = vmul.f32 %v514_v15, %v930_v8  ;;  %v554_v20 = vmul.f32 %v514_v15, %v967_v51  ;;  %v572_v44 = vmul.f32 %v514_v15, %v1005_v41  ;;  %v569_v51 = vmul.f32 %v514_v15, %v909_v53 }
  0xed   :  { %v522_v28 = vadd.f32 %v520_v23, %v515_v16  ;;  %v523_v29 = vadd.f32 %v520_v23, %v516_v19  ;;  %v524_v30 = vadd.f32 %v520_v23, %v517_v21  ;;  %v525_v31 = vadd.f32 %v520_v23, %v518_v22 }
  0xee   :  { %v539_v24 = vadd.f32 %v535_v25, %v520_v23  ;;  %v540_v48 = vadd.f32 %v536_v17, %v520_v23  ;;  %v541_v35 = vadd.f32 %v537_v26, %v520_v23  ;;  %v542_v38 = vadd.f32 %v538_v49, %v520_v23 }
  0xef   :  { %v526_v33 = vpack.c.bf16 %v522_v28, %v522_v28  ;;  %v527_v2 = vpack.c.bf16 %v523_v29, %v523_v29  ;;  %v528_v34 = vpack.c.bf16 %v524_v30, %v524_v30  ;;  %v529_v36 = vpack.c.bf16 %v525_v31, %v525_v31 }
  0xf0   :  { %v543_v32 = vpack.c.bf16 %v539_v24, %v539_v24  ;;  %v556_v37 = vadd.f32 %v552_v18, %v520_v23  ;;  %v559_v39 = vadd.f32 %v555_v27, %v520_v23  ;;  %v544_v47 = vpack.c.bf16 %v540_v48, %v540_v48 }
  0xf1   :  { %531 = vst.msk [vmem:[%s1104_s5] sm:$0xf] %vm530_vm5, %v526_v33  ;;  %v557_v40 = vadd.f32 %v553_v42, %v520_v23  ;;  %v545_v8 = vpack.c.bf16 %v541_v35, %v541_v35  ;;  %v558_v45 = vadd.f32 %v554_v20, %v520_v23  ;;  %v546_v43 = vpack.c.bf16 %v542_v38, %v542_v38 }
  0xf2   :  { %532 = vst.msk [vmem:[%s1104_s5 + $0x4] sm:$0xf] %vm530_vm5, %v527_v2  ;;  %v570_v46 = vmul.f32 %v514_v15, %v938_v14  ;;  %v576_v50 = vadd.f32 %v572_v44, %v520_v23  ;;  %v560_v41 = vpack.c.bf16 %v556_v37, %v556_v37  ;;  %v571_v52 = vmul.f32 %v514_v15, %v974_v61 }
  0xf3   :  { %533 = vst.msk [vmem:[%s1104_s5 + $0x8] sm:$0xf] %vm530_vm5, %v528_v34  ;;  %v573_v54 = vadd.f32 %v569_v51, %v520_v23  ;;  %v561_v53 = vpack.c.bf16 %v557_v40, %v557_v40  ;;  %v562_v14 = vpack.c.bf16 %v558_v45, %v558_v45  ;;  %v563_v61 = vpack.c.bf16 %v559_v39, %v559_v39 }
  0xf4   :  { %534 = vst.msk [vmem:[%s1104_s5 + $0xc] sm:$0xf] %vm530_vm5, %v529_v36  ;;  %v574_v55 = vadd.f32 %v570_v46, %v520_v23  ;;  %v575_v56 = vadd.f32 %v571_v52, %v520_v23  ;;  %v580_v62 = vpack.c.bf16 %v576_v50, %v576_v50 }
  0xf5   :  { %730 = vst.msk [vmem:[%s1104_s5 + $0x10] sm:$0xf] %vm530_vm5, %v543_v32  ;;  %v577_v57 = vpack.c.bf16 %v573_v54, %v573_v54 }
  0xf6   :  { %731 = vst.msk [vmem:[%s1104_s5 + $0x14] sm:$0xf] %vm530_vm5, %v544_v47  ;;  %v578_v59 = vpack.c.bf16 %v574_v55, %v574_v55  ;;  %v579_v60 = vpack.c.bf16 %v575_v56, %v575_v56 }
  0xf7   :  { %732 = vst.msk [vmem:[%s1104_s5 + $0x18] sm:$0xf] %vm530_vm5, %v545_v8 }
  0xf8   :  { %733 = vst.msk [vmem:[%s1104_s5 + $0x1c] sm:$0xf] %vm530_vm5, %v546_v43 }
  0xf9   :  { %734 = vst.msk [vmem:[%s1104_s5 + $0x20] sm:$0xf] %vm530_vm5, %v560_v41 }
  0xfa   :  { %735 = vst.msk [vmem:[%s1104_s5 + $0x24] sm:$0xf] %vm530_vm5, %v561_v53 }
  0xfb   :  { %736 = vst.msk [vmem:[%s1104_s5 + $0x28] sm:$0xf] %vm530_vm5, %v562_v14 }
  0xfc   :  { %737 = vst.msk [vmem:[%s1104_s5 + $0x2c] sm:$0xf] %vm530_vm5, %v563_v61 }
  0xfd   :  { %738 = vst.msk [vmem:[%s1104_s5 + $0x30] sm:$0xf] %vm530_vm5, %v577_v57 }
  0xfe   :  { %739 = vst.msk [vmem:[%s1104_s5 + $0x34] sm:$0xf] %vm530_vm5, %v578_v59 }
  0xff   :  { %740 = vst.msk [vmem:[%s1104_s5 + $0x38] sm:$0xf] %vm530_vm5, %v579_v60 }
 0x100   :  { %741 = vst.msk [vmem:[%s1104_s5 + $0x3c] sm:$0xf] %vm530_vm5, %v580_v62 }

// kernel: cae_forward.16
= control target key start
LH: loop header
LB: loop body
LE: loop exit
PB: predicated region body
PF: predicated region fallthrough
CT: control target
= control target key end

     0   :  { %vm97_vm0 = vcmask 261120   ;;  %vm219_vm6 = vcmask 31744   ;;  %s2976_s1 = inlined_call_operand.vmem [shape: bf16[4,32,4], index: 1, kind: input, shape index: {}]   ;;  %s2977_s0 = inlined_call_operand.vmem [shape: bf16[4,128,32], index: 0, kind: input, shape index: {}]   ;;  %s2978_s2 = inlined_call_operand.vmem [shape: f32[1,4], index: 2, kind: input, shape index: {}]   ;;  %s2979_s3 = inlined_call_operand.vmem [shape: f32[1,4], index: 3, kind: input, shape index: {}]   ;;  %s2980_s4 = inlined_call_operand.vmem [shape: f32[1,4], index: 4, kind: input, shape index: {}]   ;;  %s2981_s5 = inlined_call_operand.vmem [shape: bf16[4,128,4], index: 5, kind: output, shape index: {}]  }
   0x1   :  { %v1771_v0 = vld [vmem:[%s2976_s1 + $0x8] sm:$0xff]  ;;  %v1781_v1 = vld [vmem:[%s2976_s1 + $0x18] sm:$0xff]  ;;  %v1770_v4 = vld [vmem:[%s2976_s1] sm:$0xff] }
   0x2   :  { %v1791_v2 = vld [vmem:[%s2976_s1 + $0x28] sm:$0xff]  ;;  %v1801_v3 = vld [vmem:[%s2976_s1 + $0x38] sm:$0xff]  ;;  %128 = vmatpush.bf16.msra.mxu0 %v1771_v0  ;;  %416 = vmatpush.bf16.msra.mxu1 %v1781_v1  ;;  %v1780_v5 = vld [vmem:[%s2976_s1 + $0x10] sm:$0xff] }
   0x3   :  { %703 = vmatpush.bf16.msra.mxu2 %v1791_v2  ;;  %990 = vmatpush.bf16.msra.mxu3 %v1801_v3  ;;  %v1790_v6 = vld [vmem:[%s2976_s1 + $0x20] sm:$0xff]  ;;  %v1800_v7 = vld [vmem:[%s2976_s1 + $0x30] sm:$0xff]  ;;  %v1763_v12 = vld [vmem:[%s2977_s0 + $0x8] sm:$0xff] }
   0x4   :  { %v1762_v8 = vld [vmem:[%s2977_s0] sm:$0xff]  ;;  %v1773_v13 = vld [vmem:[%s2977_s0 + $0x48] sm:$0xff]  ;;  %v1764_v16 = vld [vmem:[%s2977_s0 + $0x10] sm:$0xff] }
   0x5   :  { %v1772_v9 = vld [vmem:[%s2977_s0 + $0x40] sm:$0xff]  ;;  %v1783_v14 = vld [vmem:[%s2977_s0 + $0x88] sm:$0xff]  ;;  %v1774_v17 = vld [vmem:[%s2977_s0 + $0x50] sm:$0xff] }
   0x6   :  { %129 = vmatpush.bf16.msra.mxu0 %v1770_v4  ;;  %417 = vmatpush.bf16.msra.mxu1 %v1780_v5  ;;  %v1782_v10 = vld [vmem:[%s2977_s0 + $0x80] sm:$0xff]  ;;  %v1793_v15 = vld [vmem:[%s2977_s0 + $0xc8] sm:$0xff]  ;;  %v1784_v18 = vld [vmem:[%s2977_s0 + $0x90] sm:$0xff] }
   0x7   :  { %v1792_v11 = vld [vmem:[%s2977_s0 + $0xc0] sm:$0xff]  ;;  %704 = vmatpush.bf16.msra.mxu2 %v1790_v6  ;;  %991 = vmatpush.bf16.msra.mxu3 %v1800_v7  ;;  %v1794_v19 = vld [vmem:[%s2977_s0 + $0xd0] sm:$0xff]  ;;  %v1765_v20 = vld [vmem:[%s2977_s0 + $0x18] sm:$0xff] }
   0x8   :  { %v1775_v21 = vld [vmem:[%s2977_s0 + $0x58] sm:$0xff]  ;;  %v1766_v24 = vld [vmem:[%s2977_s0 + $0x20] sm:$0xff]  ;;  %v1767_v28 = vld [vmem:[%s2977_s0 + $0x28] sm:$0xff] }
   0x9   :  { %1502 = vmatmul.msk.bf16.vlgmr.msra.gmra.mxu0 %vm97_vm0, %v1762_v8  ;;  %1570 = vmatmul.msk.bf16.vlgmr.msra.gmra.mxu1 %vm97_vm0, %v1772_v9  ;;  %v1785_v22 = vld [vmem:[%s2977_s0 + $0x98] sm:$0xff]  ;;  %v1776_v25 = vld [vmem:[%s2977_s0 + $0x60] sm:$0xff]  ;;  %v1777_v29 = vld [vmem:[%s2977_s0 + $0x68] sm:$0xff] }
   0xa   :  { %1638 = vmatmul.msk.bf16.vlgmr.msra.gmra.mxu2 %vm97_vm0, %v1782_v10  ;;  %1706 = vmatmul.msk.bf16.vlgmr.msra.gmra.mxu3 %vm97_vm0, %v1792_v11  ;;  %v1795_v23 = vld [vmem:[%s2977_s0 + $0xd8] sm:$0xff]  ;;  %v1786_v26 = vld [vmem:[%s2977_s0 + $0xa0] sm:$0xff]  ;;  %v1787_v30 = vld [vmem:[%s2977_s0 + $0xa8] sm:$0xff] }
   0xb   :  { %v1796_v27 = vld [vmem:[%s2977_s0 + $0xe0] sm:$0xff]  ;;  %v1797_v31 = vld [vmem:[%s2977_s0 + $0xe8] sm:$0xff]  ;;  %v1768_v32 = vld [vmem:[%s2977_s0 + $0x30] sm:$0xff] }
   0xc   :  { %v1778_v33 = vld [vmem:[%s2977_s0 + $0x70] sm:$0xff]  ;;  %v1769_v36 = vld [vmem:[%s2977_s0 + $0x38] sm:$0xff]  ;;  %v1991_v40 = vld [vmem:[%s2978_s2] ss:$0 sm:$0xff] }
   0xd   :  { %v1788_v34 = vld [vmem:[%s2977_s0 + $0xb0] sm:$0xff]  ;;  %v1779_v37 = vld [vmem:[%s2977_s0 + $0x78] sm:$0xff] }
   0xe   :  { %v1798_v35 = vld [vmem:[%s2977_s0 + $0xf0] sm:$0xff]  ;;  %v1789_v38 = vld [vmem:[%s2977_s0 + $0xb8] sm:$0xff] }
   0xf   :  { %v1799_v39 = vld [vmem:[%s2977_s0 + $0xf8] sm:$0xff] }
  0x19   :  { %1503 = vmatmul.msk.bf16.gmra.mxu0 %vm97_vm0, %v1763_v12  ;;  %1571 = vmatmul.msk.bf16.gmra.mxu1 %vm97_vm0, %v1773_v13 }
  0x1a   :  { %1639 = vmatmul.msk.bf16.gmra.mxu2 %vm97_vm0, %v1783_v14  ;;  %1707 = vmatmul.msk.bf16.gmra.mxu3 %vm97_vm0, %v1793_v15 }
  0x29   :  { %1504 = vmatmul.msk.bf16.gmra.mxu0 %vm97_vm0, %v1764_v16  ;;  %1572 = vmatmul.msk.bf16.gmra.mxu1 %vm97_vm0, %v1774_v17 }
  0x2a   :  { %1640 = vmatmul.msk.bf16.gmra.mxu2 %vm97_vm0, %v1784_v18  ;;  %1708 = vmatmul.msk.bf16.gmra.mxu3 %vm97_vm0, %v1794_v19 }
  0x39   :  { %1505 = vmatmul.msk.bf16.gmra.mxu0 %vm97_vm0, %v1765_v20  ;;  %1573 = vmatmul.msk.bf16.gmra.mxu1 %vm97_vm0, %v1775_v21 }
  0x3a   :  { %1641 = vmatmul.msk.bf16.gmra.mxu2 %vm97_vm0, %v1785_v22  ;;  %1709 = vmatmul.msk.bf16.gmra.mxu3 %vm97_vm0, %v1795_v23 }
  0x49   :  { %1506 = vmatmul.msk.bf16.gmra.mxu0 %vm97_vm0, %v1766_v24  ;;  %1574 = vmatmul.msk.bf16.gmra.mxu1 %vm97_vm0, %v1776_v25 }
  0x4a   :  { %1642 = vmatmul.msk.bf16.gmra.mxu2 %vm97_vm0, %v1786_v26  ;;  %1710 = vmatmul.msk.bf16.gmra.mxu3 %vm97_vm0, %v1796_v27 }
  0x59   :  { %1507 = vmatmul.msk.bf16.gmra.mxu0 %vm97_vm0, %v1767_v28  ;;  %1575 = vmatmul.msk.bf16.gmra.mxu1 %vm97_vm0, %v1777_v29 }
  0x5a   :  { %1643 = vmatmul.msk.bf16.gmra.mxu2 %vm97_vm0, %v1787_v30  ;;  %1711 = vmatmul.msk.bf16.gmra.mxu3 %vm97_vm0, %v1797_v31 }
  0x69   :  { %1508 = vmatmul.msk.bf16.gmra.mxu0 %vm97_vm0, %v1768_v32  ;;  %1576 = vmatmul.msk.bf16.gmra.mxu1 %vm97_vm0, %v1778_v33 }
  0x6a   :  { %1644 = vmatmul.msk.bf16.gmra.mxu2 %vm97_vm0, %v1788_v34  ;;  %1712 = vmatmul.msk.bf16.gmra.mxu3 %vm97_vm0, %v1798_v35 }
  0x79   :  { %1509 = vmatmul.msk.bf16.gmra.mxu0 %vm97_vm0, %v1769_v36  ;;  %1577 = vmatmul.msk.bf16.gmra.mxu1 %vm97_vm0, %v1779_v37 }
  0x7a   :  { %1645 = vmatmul.msk.bf16.gmra.mxu2 %vm97_vm0, %v1789_v38  ;;  %1713 = vmatmul.msk.bf16.gmra.mxu3 %vm97_vm0, %v1799_v39 }
  0x86   :  { %v131_v41 = vpop.f32.mrf.mxu0  ;;  %v419_v42 = vpop.f32.mrf.mxu1 }
  0x87   :  { %v132_v43 = vadd.f32 %v1991_v40, %v131_v41  ;;  %v420_v44 = vadd.f32 %v1991_v40, %v419_v42 }
  0x89   :  { %v187_v45 = vmul.f32 0.25, %v132_v43  ;;  %vm171_vm1 = vcmp.ge.f32.partialorder %v132_v43, 0.0  ;;  %v475_v46 = vmul.f32 0.25, %v420_v44  ;;  %vm459_vm2 = vcmp.ge.f32.partialorder %v420_v44, 0.0 }
  0x8b   :  { %v1995_v47 = vsel %vm171_vm1, %v132_v43, %v187_v45  ;;  %v1999_v54 = vsel %vm459_vm2, %v420_v44, %v475_v46 }
  0x8c   :  { %v258_v57 = vmul.f32 %v1995_v47, %v1995_v47  ;;  %v545_v62 = vmul.f32 %v1999_v54, %v1999_v54  ;;  %v220_v2 = vsel %vm219_vm6, %v1995_v47, 0.0  ;;  %v507_v4 = vsel %vm219_vm6, %v1999_v54, 0.0 }
  0x8d   :  { %v706_v48 = vpop.f32.mrf.mxu2  ;;  %v993_v49 = vpop.f32.mrf.mxu3 }
  0x8e   :  { %v707_v50 = vadd.f32 %v1991_v40, %v706_v48  ;;  %v994_v51 = vadd.f32 %v1991_v40, %v993_v49  ;;  %v133_v52 = vpop.f32.mrf.mxu0  ;;  %v421_v53 = vpop.f32.mrf.mxu1  ;;  %v274_v3 = vsel %vm219_vm6, %v258_v57, 0.0  ;;  %v561_v8 = vsel %vm219_vm6, %v545_v62, 0.0 }
  0x8f   :  { %v134_v55 = vadd.f32 %v1991_v40, %v133_v52  ;;  %v422_v56 = vadd.f32 %v1991_v40, %v421_v53 }
  0x90   :  { %vm746_vm3 = vcmp.ge.f32.partialorder %v707_v50, 0.0  ;;  %v762_v58 = vmul.f32 0.25, %v707_v50  ;;  %v1049_v59 = vmul.f32 0.25, %v994_v51  ;;  %vm1033_vm7 = vcmp.ge.f32.partialorder %v994_v51, 0.0 }
  0x91   :  { %vm172_vm4 = vcmp.ge.f32.partialorder %v134_v55, 0.0  ;;  %v188_v60 = vmul.f32 0.25, %v134_v55  ;;  %vm460_vm5 = vcmp.ge.f32.partialorder %v422_v56, 0.0  ;;  %v476_v61 = vmul.f32 0.25, %v422_v56 }
  0x92   :  { %v2007_v63 = vsel %vm746_vm3, %v707_v50, %v762_v58  ;;  %v2018_v5 = vsel %vm1033_vm7, %v994_v51, %v1049_v59 }
  0x93   :  { %3016 = vst [vmem:[#allocation2_spill] sm:$0xff] %v2007_v63  ;;  %v2009_v0 = vsel %vm172_vm4, %v134_v55, %v188_v60  ;;  %v2011_v1 = vsel %vm460_vm5, %v422_v56, %v476_v61  ;;  %v794_v9 = vsel %vm219_vm6, %v2007_v63, 0.0  ;;  %v832_v14 = vmul.f32 %v2007_v63, %v2007_v63 }
  0x94   :  { %3017 = vst [vmem:[#allocation3_spill] sm:$0xff] %v2018_v5  ;;  %v259_v10 = vmul.f32 %v2009_v0, %v2009_v0  ;;  %v546_v15 = vmul.f32 %v2011_v1, %v2011_v1  ;;  %v1119_v18 = vmul.f32 %v2018_v5, %v2018_v5  ;;  %v221_v19 = vsel %vm219_vm6, %v2009_v0, 0.0 }
  0x95   :  { %v708_v6 = vpop.f32.mrf.mxu2  ;;  %v995_v7 = vpop.f32.mrf.mxu3  ;;  %v508_v21 = vsel %vm219_vm6, %v2011_v1, 0.0  ;;  %v848_v31 = vsel %vm219_vm6, %v832_v14, 0.0  ;;  %v1081_v32 = vsel %vm219_vm6, %v2018_v5, 0.0  ;;  %v222_v36 = vadd.f32 %v221_v19, %v220_v2 }
  0x96   :  { %v709_v11 = vadd.f32 %v1991_v40, %v708_v6  ;;  %v136_v12 = vpop.f32.mrf.mxu0  ;;  %v424_v13 = vpop.f32.mrf.mxu1  ;;  %v996_v16 = vadd.f32 %v1991_v40, %v995_v7  ;;  %v275_v23 = vsel %vm219_vm6, %v259_v10, 0.0  ;;  %v562_v27 = vsel %vm219_vm6, %v546_v15, 0.0 }
  0x97   :  { %v137_v17 = vadd.f32 %v1991_v40, %v136_v12  ;;  %v425_v26 = vadd.f32 %v1991_v40, %v424_v13  ;;  %v1135_v35 = vsel %vm219_vm6, %v1119_v18, 0.0  ;;  %v509_v37 = vadd.f32 %v508_v21, %v507_v4 }
  0x98   :  { %vm747_vm8 = vcmp.ge.f32.partialorder %v709_v11, 0.0  ;;  %v763_v20 = vmul.f32 0.25, %v709_v11  ;;  %vm1034_vm9 = vcmp.ge.f32.partialorder %v996_v16, 0.0  ;;  %v1050_v22 = vmul.f32 0.25, %v996_v16 }
  0x99   :  { %vm173_vm10 = vcmp.ge.f32.partialorder %v137_v17, 0.0  ;;  %v189_v25 = vmul.f32 0.25, %v137_v17  ;;  %v276_v42 = vadd.f32 %v275_v23, %v274_v3  ;;  %v563_v43 = vadd.f32 %v562_v27, %v561_v8 }
  0x9a   :  { %v2039_v24 = vsel %vm747_vm8, %v709_v11, %v763_v20  ;;  %v2047_v30 = vsel %vm1034_vm9, %v996_v16, %v1050_v22  ;;  %vm461_vm11 = vcmp.ge.f32.partialorder %v425_v26, 0.0  ;;  %v477_v50 = vmul.f32 0.25, %v425_v26 }
  0x9b   :  { %3018 = vst [vmem:[#allocation4_spill] sm:$0xff] %v2039_v24  ;;  %v795_v28 = vsel %vm219_vm6, %v2039_v24, 0.0  ;;  %v833_v29 = vmul.f32 %v2039_v24, %v2039_v24  ;;  %v1120_v33 = vmul.f32 %v2047_v30, %v2047_v30  ;;  %v2054_v34 = vsel %vm173_vm10, %v137_v17, %v189_v25 }
  0x9c   :  { %3019 = vst [vmem:[#allocation5_spill] sm:$0xff] %v2047_v30  ;;  %v260_v38 = vmul.f32 %v2054_v34, %v2054_v34  ;;  %v796_v44 = vadd.f32 %v795_v28, %v794_v9  ;;  %v1082_v49 = vsel %vm219_vm6, %v2047_v30, 0.0  ;;  %v223_v53 = vsel %vm219_vm6, %v2054_v34, 0.0 }
  0x9d   :  { %v711_v39 = vpop.f32.mrf.mxu2  ;;  %v998_v41 = vpop.f32.mrf.mxu3  ;;  %v849_v48 = vsel %vm219_vm6, %v833_v29, 0.0  ;;  %v1136_v52 = vsel %vm219_vm6, %v1120_v33, 0.0  ;;  %v2069_v58 = vsel %vm461_vm11, %v425_v26, %v477_v50  ;;  %v1083_v11 = vadd.f32 %v1082_v49, %v1081_v32 }
  0x9e   :  { %v138_v45 = vpop.f32.mrf.mxu0  ;;  %v426_v46 = vpop.f32.mrf.mxu1  ;;  %v712_v51 = vadd.f32 %v1991_v40, %v711_v39  ;;  %v999_v55 = vadd.f32 %v1991_v40, %v998_v41  ;;  %v277_v57 = vsel %vm219_vm6, %v260_v38, 0.0  ;;  %v547_v60 = vmul.f32 %v2069_v58, %v2069_v58 }
  0x9f   :  { %v139_v56 = vadd.f32 %v1991_v40, %v138_v45  ;;  %v427_v62 = vadd.f32 %v1991_v40, %v426_v46  ;;  %v510_v2 = vsel %vm219_vm6, %v2069_v58, 0.0  ;;  %v850_v10 = vadd.f32 %v849_v48, %v848_v31 }
  0xa0   :  { %vm748_vm12 = vcmp.ge.f32.partialorder %v712_v51, 0.0  ;;  %v764_v59 = vmul.f32 0.25, %v712_v51  ;;  %vm1035_vm13 = vcmp.ge.f32.partialorder %v999_v55, 0.0  ;;  %v1051_v61 = vmul.f32 0.25, %v999_v55 }
  0xa1   :  { %vm174_vm14 = vcmp.ge.f32.partialorder %v139_v56, 0.0  ;;  %v190_v4 = vmul.f32 0.25, %v139_v56  ;;  %v564_v6 = vsel %vm219_vm6, %v547_v60, 0.0  ;;  %v224_v12 = vadd.f32 %v223_v53, %v222_v36 }
  0xa2   :  { %v2076_v3 = vsel %vm748_vm12, %v712_v51, %v764_v59  ;;  %v2083_v9 = vsel %vm1035_vm13, %v999_v55, %v1051_v61  ;;  %v1137_v16 = vadd.f32 %v1136_v52, %v1135_v35  ;;  %v278_v17 = vadd.f32 %v277_v57, %v276_v42 }
  0xa3   :  { %3020 = vst [vmem:[#allocation6_spill] sm:$0xff] %v2076_v3  ;;  %v797_v7 = vsel %vm219_vm6, %v2076_v3, 0.0  ;;  %v834_v8 = vmul.f32 %v2076_v3, %v2076_v3  ;;  %v1121_v13 = vmul.f32 %v2083_v9, %v2083_v9  ;;  %v511_v18 = vadd.f32 %v510_v2, %v509_v37 }
  0xa4   :  { %3021 = vst [vmem:[#allocation7_spill] sm:$0xff] %v2083_v9  ;;  %v2087_v19 = vsel %vm174_vm14, %v139_v56, %v190_v4  ;;  %v565_v22 = vadd.f32 %v564_v6, %v563_v43  ;;  %v798_v23 = vadd.f32 %v797_v7, %v796_v44  ;;  %vm462_vm15 = vcmp.ge.f32.partialorder %v427_v62, 0.0 }
  0xa5   :  { %v713_v14 = vpop.f32.mrf.mxu2  ;;  %v1000_v15 = vpop.f32.mrf.mxu3  ;;  %v261_v25 = vmul.f32 %v2087_v19, %v2087_v19  ;;  %v851_v26 = vsel %vm219_vm6, %v834_v8, 0.0  ;;  %v1084_v27 = vsel %vm219_vm6, %v2083_v9, 0.0  ;;  %v478_v28 = vmul.f32 0.25, %v427_v62 }
  0xa6   :  { %v141_v20 = vpop.f32.mrf.mxu0  ;;  %v429_v21 = vpop.f32.mrf.mxu1  ;;  %v714_v29 = vadd.f32 %v1991_v40, %v713_v14  ;;  %v1138_v31 = vsel %vm219_vm6, %v1121_v13, 0.0  ;;  %v225_v32 = vsel %vm219_vm6, %v2087_v19, 0.0  ;;  %v1001_v33 = vadd.f32 %v1991_v40, %v1000_v15 }
  0xa7   :  { %v142_v35 = vadd.f32 %v1991_v40, %v141_v20  ;;  %v279_v36 = vsel %vm219_vm6, %v261_v25, 0.0  ;;  %v2101_v37 = vsel %vm462_vm15, %v427_v62, %v478_v28  ;;  %v430_v42 = vadd.f32 %v1991_v40, %v429_v21 }
  0xa8   :  { %vm749_vm0 = vcmp.ge.f32.partialorder %v714_v29, 0.0  ;;  %v765_v38 = vmul.f32 0.25, %v714_v29  ;;  %v548_v39 = vmul.f32 %v2101_v37, %v2101_v37  ;;  %vm1036_vm1 = vcmp.ge.f32.partialorder %v1001_v33, 0.0 }
  0xa9   :  { %v1052_v41 = vmul.f32 0.25, %v1001_v33  ;;  %v512_v43 = vsel %vm219_vm6, %v2101_v37, 0.0  ;;  %vm175_vm2 = vcmp.ge.f32.partialorder %v142_v35, 0.0  ;;  %v191_v45 = vmul.f32 0.25, %v142_v35 }
  0xaa   :  { %v2108_v44 = vsel %vm749_vm0, %v714_v29, %v765_v38  ;;  %v566_v46 = vsel %vm219_vm6, %v548_v39, 0.0  ;;  %v852_v53 = vadd.f32 %v851_v26, %v850_v10  ;;  %v1085_v55 = vadd.f32 %v1084_v27, %v1083_v11 }
  0xab   :  { %3022 = vst [vmem:[#allocation8_spill] sm:$0xff] %v2108_v44  ;;  %v799_v48 = vsel %vm219_vm6, %v2108_v44, 0.0  ;;  %v835_v49 = vmul.f32 %v2108_v44, %v2108_v44  ;;  %v2115_v50 = vsel %vm1036_vm1, %v1001_v33, %v1052_v41  ;;  %v1139_v56 = vadd.f32 %v1138_v31, %v1137_v16 }
  0xac   :  { %3023 = vst [vmem:[#allocation9_spill] sm:$0xff] %v2115_v50  ;;  %v1122_v57 = vmul.f32 %v2115_v50, %v2115_v50  ;;  %v226_v61 = vadd.f32 %v225_v32, %v224_v12  ;;  %v280_v62 = vadd.f32 %v279_v36, %v278_v17  ;;  %v513_v2 = vadd.f32 %v512_v43, %v511_v18 }
  0xad   :  { %v716_v51 = vpop.f32.mrf.mxu2  ;;  %v1003_v52 = vpop.f32.mrf.mxu3  ;;  %v2120_v4 = vsel %vm175_vm2, %v142_v35, %v191_v45  ;;  %v567_v6 = vadd.f32 %v566_v46, %v565_v22  ;;  %v800_v7 = vadd.f32 %v799_v48, %v798_v23  ;;  %vm463_vm3 = vcmp.ge.f32.partialorder %v430_v42, 0.0 }
  0xae   :  { %v143_v59 = vpop.f32.mrf.mxu0  ;;  %v431_v60 = vpop.f32.mrf.mxu1  ;;  %v262_v8 = vmul.f32 %v2120_v4, %v2120_v4  ;;  %v853_v10 = vsel %vm219_vm6, %v835_v49, 0.0  ;;  %v1086_v11 = vsel %vm219_vm6, %v2115_v50, 0.0  ;;  %v479_v13 = vmul.f32 0.25, %v430_v42 }
  0xaf   :  { %v717_v14 = vadd.f32 %v1991_v40, %v716_v51  ;;  %v1140_v12 = vsel %vm219_vm6, %v1122_v57, 0.0  ;;  %v227_v15 = vsel %vm219_vm6, %v2120_v4, 0.0  ;;  %v1004_v16 = vadd.f32 %v1991_v40, %v1003_v52 }
  0xb0   :  { %v144_v17 = vadd.f32 %v1991_v40, %v143_v59  ;;  %v281_v18 = vsel %vm219_vm6, %v262_v8, 0.0  ;;  %v2134_v20 = vsel %vm463_vm3, %v430_v42, %v479_v13  ;;  %v432_v25 = vadd.f32 %v1991_v40, %v431_v60 }
  0xb1   :  { %vm750_vm4 = vcmp.ge.f32.partialorder %v717_v14, 0.0  ;;  %v766_v21 = vmul.f32 0.25, %v717_v14  ;;  %v549_v22 = vmul.f32 %v2134_v20, %v2134_v20  ;;  %vm1037_vm5 = vcmp.ge.f32.partialorder %v1004_v16, 0.0 }
  0xb2   :  { %v1053_v23 = vmul.f32 0.25, %v1004_v16  ;;  %v514_v26 = vsel %vm219_vm6, %v2134_v20, 0.0  ;;  %vm176_vm7 = vcmp.ge.f32.partialorder %v144_v17, 0.0  ;;  %v192_v28 = vmul.f32 0.25, %v144_v17 }
  0xb3   :  { %v2141_v27 = vsel %vm750_vm4, %v717_v14, %v766_v21  ;;  %v568_v32 = vsel %vm219_vm6, %v549_v22, 0.0  ;;  %v854_v41 = vadd.f32 %v853_v10, %v852_v53  ;;  %v1087_v42 = vadd.f32 %v1086_v11, %v1085_v55 }
  0xb4   :  { %3024 = vst [vmem:[#allocation10_spill] sm:$0xff] %v2141_v27  ;;  %v801_v33 = vsel %vm219_vm6, %v2141_v27, 0.0  ;;  %v836_v35 = vmul.f32 %v2141_v27, %v2141_v27  ;;  %v2148_v36 = vsel %vm1037_vm5, %v1004_v16, %v1053_v23  ;;  %v1141_v43 = vadd.f32 %v1140_v12, %v1139_v56 }
  0xb5   :  { %v718_v29 = vpop.f32.mrf.mxu2  ;;  %v1005_v31 = vpop.f32.mrf.mxu3  ;;  %3025 = vst [vmem:[#allocation11_spill] sm:$0xff] %v2148_v36  ;;  %v1123_v45 = vmul.f32 %v2148_v36, %v2148_v36  ;;  %v228_v46 = vadd.f32 %v227_v15, %v226_v61  ;;  %v282_v48 = vadd.f32 %v281_v18, %v280_v62  ;;  %v515_v49 = vadd.f32 %v514_v26, %v513_v2 }
  0xb6   :  { %v146_v38 = vpop.f32.mrf.mxu0  ;;  %v434_v39 = vpop.f32.mrf.mxu1  ;;  %v2153_v51 = vsel %vm176_vm7, %v144_v17, %v192_v28  ;;  %v569_v52 = vadd.f32 %v568_v32, %v567_v6  ;;  %v802_v57 = vadd.f32 %v801_v33, %v800_v7  ;;  %vm464_vm8 = vcmp.ge.f32.partialorder %v432_v25, 0.0 }
  0xb7   :  { %v263_v59 = vmul.f32 %v2153_v51, %v2153_v51  ;;  %v855_v60 = vsel %vm219_vm6, %v836_v35, 0.0  ;;  %v1088_v53 = vsel %vm219_vm6, %v2148_v36, 0.0  ;;  %v480_v55 = vmul.f32 0.25, %v432_v25 }
  0xb8   :  { %v719_v56 = vadd.f32 %v1991_v40, %v718_v29  ;;  %v1142_v61 = vsel %vm219_vm6, %v1123_v45, 0.0  ;;  %v229_v62 = vsel %vm219_vm6, %v2153_v51, 0.0  ;;  %v1006_v2 = vadd.f32 %v1991_v40, %v1005_v31 }
  0xb9   :  { %v147_v6 = vadd.f32 %v1991_v40, %v146_v38  ;;  %v283_v7 = vsel %vm219_vm6, %v263_v59, 0.0  ;;  %v2167_v8 = vsel %vm464_vm8, %v432_v25, %v480_v55  ;;  %v435_v14 = vadd.f32 %v1991_v40, %v434_v39 }
  0xba   :  { %vm751_vm9 = vcmp.ge.f32.partialorder %v719_v56, 0.0  ;;  %v767_v10 = vmul.f32 0.25, %v719_v56  ;;  %v550_v11 = vmul.f32 %v2167_v8, %v2167_v8  ;;  %vm1038_vm10 = vcmp.ge.f32.partialorder %v1006_v2, 0.0 }
  0xbb   :  { %v1054_v13 = vmul.f32 0.25, %v1006_v2  ;;  %v516_v16 = vsel %vm219_vm6, %v2167_v8, 0.0  ;;  %vm177_vm11 = vcmp.ge.f32.partialorder %v147_v6, 0.0  ;;  %v193_v18 = vmul.f32 0.25, %v147_v6 }
  0xbc   :  { %v2174_v17 = vsel %vm751_vm9, %v719_v56, %v767_v10  ;;  %v570_v23 = vsel %vm219_vm6, %v550_v11, 0.0  ;;  %v856_v29 = vadd.f32 %v855_v60, %v854_v41  ;;  %v1089_v31 = vadd.f32 %v1088_v53, %v1087_v42 }
  0xbd   :  { %v721_v12 = vpop.f32.mrf.mxu2  ;;  %v1008_v15 = vpop.f32.mrf.mxu3  ;;  %3026 = vst [vmem:[#allocation12_spill] sm:$0xff] %v2174_v17  ;;  %v803_v25 = vsel %vm219_vm6, %v2174_v17, 0.0  ;;  %v837_v26 = vmul.f32 %v2174_v17, %v2174_v17  ;;  %v2181_v28 = vsel %vm1038_vm10, %v1006_v2, %v1054_v13  ;;  %v1143_v32 = vadd.f32 %v1142_v61, %v1141_v43 }
  0xbe   :  { %v148_v21 = vpop.f32.mrf.mxu0  ;;  %v436_v22 = vpop.f32.mrf.mxu1  ;;  %3027 = vst [vmem:[#allocation13_spill] sm:$0xff] %v2181_v28  ;;  %v1124_v33 = vmul.f32 %v2181_v28, %v2181_v28  ;;  %v230_v35 = vadd.f32 %v229_v62, %v228_v46  ;;  %v284_v38 = vadd.f32 %v283_v7, %v282_v48  ;;  %v517_v39 = vadd.f32 %v516_v16, %v515_v49 }
  0xbf   :  { %v2185_v45 = vsel %vm177_vm11, %v147_v6, %v193_v18  ;;  %v571_v59 = vadd.f32 %v570_v23, %v569_v52  ;;  %v804_v55 = vadd.f32 %v803_v25, %v802_v57  ;;  %vm465_vm12 = vcmp.ge.f32.partialorder %v435_v14, 0.0 }
  0xc0   :  { %v264_v56 = vmul.f32 %v2185_v45, %v2185_v45  ;;  %v857_v2 = vsel %vm219_vm6, %v837_v26, 0.0  ;;  %v1090_v41 = vsel %vm219_vm6, %v2181_v28, 0.0  ;;  %v481_v42 = vmul.f32 0.25, %v435_v14 }
  0xc1   :  { %v722_v43 = vadd.f32 %v1991_v40, %v721_v12  ;;  %v1144_v46 = vsel %vm219_vm6, %v1124_v33, 0.0  ;;  %v231_v48 = vsel %vm219_vm6, %v2185_v45, 0.0  ;;  %v1009_v49 = vadd.f32 %v1991_v40, %v1008_v15 }
  0xc2   :  { %v149_v52 = vadd.f32 %v1991_v40, %v148_v21  ;;  %v285_v57 = vsel %vm219_vm6, %v264_v56, 0.0  ;;  %v2199_v60 = vsel %vm465_vm12, %v435_v14, %v481_v42  ;;  %v437_v10 = vadd.f32 %v1991_v40, %v436_v22 }
  0xc3   :  { %vm752_vm13 = vcmp.ge.f32.partialorder %v722_v43, 0.0  ;;  %v768_v53 = vmul.f32 0.25, %v722_v43  ;;  %v551_v6 = vmul.f32 %v2199_v60, %v2199_v60  ;;  %vm1039_vm14 = vcmp.ge.f32.partialorder %v1009_v49, 0.0 }
  0xc4   :  { %v1055_v7 = vmul.f32 0.25, %v1009_v49  ;;  %v518_v12 = vsel %vm219_vm6, %v2199_v60, 0.0  ;;  %vm178_vm15 = vcmp.ge.f32.partialorder %v149_v52, 0.0  ;;  %v194_v14 = vmul.f32 0.25, %v149_v52 }
  0xc5   :  { %v723_v61 = vpop.f32.mrf.mxu2  ;;  %v1010_v62 = vpop.f32.mrf.mxu3  ;;  %v2206_v15 = vsel %vm752_vm13, %v722_v43, %v768_v53  ;;  %v572_v16 = vsel %vm219_vm6, %v551_v6, 0.0  ;;  %v858_v22 = vadd.f32 %v857_v2, %v856_v29  ;;  %v1091_v25 = vadd.f32 %v1090_v41, %v1089_v31 }
  0xc6   :  { %v151_v11 = vpop.f32.mrf.mxu0  ;;  %v439_v13 = vpop.f32.mrf.mxu1  ;;  %3028 = vst [vmem:[#allocation14_spill] sm:$0xff] %v2206_v15  ;;  %v805_v18 = vsel %vm219_vm6, %v2206_v15, 0.0  ;;  %v838_v21 = vmul.f32 %v2206_v15, %v2206_v15  ;;  %v2213_v23 = vsel %vm1039_vm14, %v1009_v49, %v1055_v7  ;;  %v1145_v26 = vadd.f32 %v1144_v46, %v1143_v32 }
  0xc7   :  { %3029 = vst [vmem:[#allocation15_spill] sm:$0xff] %v2213_v23  ;;  %v1125_v33 = vmul.f32 %v2213_v23, %v2213_v23  ;;  %v232_v56 = vadd.f32 %v231_v48, %v230_v35  ;;  %v286_v42 = vadd.f32 %v285_v57, %v284_v38  ;;  %v519_v43 = vadd.f32 %v518_v12, %v517_v39 }
  0xc8   :  { %v2217_v53 = vsel %vm178_vm15, %v149_v52, %v194_v14  ;;  %v573_v6 = vadd.f32 %v572_v16, %v571_v59  ;;  %v806_v28 = vadd.f32 %v805_v18, %v804_v55  ;;  %vm466_vm0 = vcmp.ge.f32.partialorder %v437_v10, 0.0 }
  0xc9   :  { %v265_v36 = vmul.f32 %v2217_v53, %v2217_v53  ;;  %v859_v49 = vsel %vm219_vm6, %v838_v21, 0.0  ;;  %v1092_v29 = vsel %vm219_vm6, %v2213_v23, 0.0  ;;  %v482_v31 = vmul.f32 0.25, %v437_v10 }
  0xca   :  { %v724_v32 = vadd.f32 %v1991_v40, %v723_v61  ;;  %v1146_v35 = vsel %vm219_vm6, %v1125_v33, 0.0  ;;  %v233_v38 = vsel %vm219_vm6, %v2217_v53, 0.0  ;;  %v1011_v39 = vadd.f32 %v1991_v40, %v1010_v62 }
  0xcb   :  { %v152_v59 = vadd.f32 %v1991_v40, %v151_v11  ;;  %v287_v41 = vsel %vm219_vm6, %v265_v36, 0.0  ;;  %v2231_v46 = vsel %vm466_vm0, %v437_v10, %v482_v31  ;;  %v440_v7 = vadd.f32 %v1991_v40, %v439_v13 }
  0xcc   :  { %vm753_vm1 = vcmp.ge.f32.partialorder %v724_v32, 0.0  ;;  %v769_v48 = vmul.f32 0.25, %v724_v32  ;;  %v552_v57 = vmul.f32 %v2231_v46, %v2231_v46  ;;  %vm1040_vm2 = vcmp.ge.f32.partialorder %v1011_v39, 0.0 }
  0xcd   :  { %v726_v55 = vpop.f32.mrf.mxu2  ;;  %v1013_v2 = vpop.f32.mrf.mxu3  ;;  %v1056_v61 = vmul.f32 0.25, %v1011_v39  ;;  %v520_v62 = vsel %vm219_vm6, %v2231_v46, 0.0  ;;  %vm179_vm3 = vcmp.ge.f32.partialorder %v152_v59, 0.0  ;;  %v195_v36 = vmul.f32 0.25, %v152_v59 }
  0xce   :  { %v153_v52 = vpop.f32.mrf.mxu0  ;;  %v441_v12 = vpop.f32.mrf.mxu1  ;;  %v2238_v11 = vsel %vm753_vm1, %v724_v32, %v769_v48  ;;  %v574_v10 = vsel %vm219_vm6, %v552_v57, 0.0  ;;  %v860_v21 = vadd.f32 %v859_v49, %v858_v22  ;;  %v1093_v13 = vadd.f32 %v1092_v29, %v1091_v25 }
  0xcf   :  { %3030 = vst [vmem:[#allocation16_spill] sm:$0xff] %v2238_v11  ;;  %v807_v14 = vsel %vm219_vm6, %v2238_v11, 0.0  ;;  %v839_v16 = vmul.f32 %v2238_v11, %v2238_v11  ;;  %v2245_v18 = vsel %vm1040_vm2, %v1011_v39, %v1056_v61  ;;  %v1147_v33 = vadd.f32 %v1146_v35, %v1145_v26 }
  0xd0   :  { %3031 = vst [vmem:[#allocation17_spill] sm:$0xff] %v2245_v18  ;;  %v1126_v31 = vmul.f32 %v2245_v18, %v2245_v18  ;;  %v234_v32 = vadd.f32 %v233_v38, %v232_v56  ;;  %v288_v48 = vadd.f32 %v287_v41, %v286_v42  ;;  %v521_v23 = vadd.f32 %v520_v62, %v519_v43 }
  0xd1   :  { %v2249_v50 = vsel %vm179_vm3, %v152_v59, %v195_v36  ;;  %v575_v57 = vadd.f32 %v574_v10, %v573_v6  ;;  %v808_v9 = vadd.f32 %v807_v14, %v806_v28  ;;  %vm467_vm4 = vcmp.ge.f32.partialorder %v440_v7, 0.0 }
  0xd2   :  { %v266_v30 = vmul.f32 %v2249_v50, %v2249_v50  ;;  %v861_v39 = vsel %vm219_vm6, %v839_v16, 0.0  ;;  %v1094_v22 = vsel %vm219_vm6, %v2245_v18, 0.0  ;;  %v483_v25 = vmul.f32 0.25, %v440_v7 }
  0xd3   :  { %v727_v26 = vadd.f32 %v1991_v40, %v726_v55  ;;  %v1148_v56 = vsel %vm219_vm6, %v1126_v31, 0.0  ;;  %v235_v42 = vsel %vm219_vm6, %v2249_v50, 0.0  ;;  %v1014_v28 = vadd.f32 %v1991_v40, %v1013_v2 }
  0xd4   :  { %v154_v43 = vadd.f32 %v1991_v40, %v153_v52  ;;  %v289_v29 = vsel %vm219_vm6, %v266_v30, 0.0  ;;  %v2263_v35 = vsel %vm467_vm4, %v440_v7, %v483_v25  ;;  %v442_v61 = vadd.f32 %v1991_v40, %v441_v12 }
  0xd5   :  { %v728_v49 = vpop.f32.mrf.mxu2  ;;  %v1015_v6 = vpop.f32.mrf.mxu3  ;;  %vm754_vm5 = vcmp.ge.f32.partialorder %v727_v26, 0.0  ;;  %v770_v38 = vmul.f32 0.25, %v727_v26  ;;  %v553_v55 = vmul.f32 %v2263_v35, %v2263_v35  ;;  %vm1041_vm7 = vcmp.ge.f32.partialorder %v1014_v28, 0.0 }
  0xd6   :  { %v156_v59 = vpop.f32.mrf.mxu0  ;;  %v1057_v41 = vmul.f32 0.25, %v1014_v28  ;;  %v522_v2 = vsel %vm219_vm6, %v2263_v35, 0.0  ;;  %vm180_vm8 = vcmp.ge.f32.partialorder %v154_v43, 0.0  ;;  %v196_v52 = vmul.f32 0.25, %v154_v43  ;;  %v444_v30 = vpop.f32.mrf.mxu1 }
  0xd7   :  { %v2270_v62 = vsel %vm754_vm5, %v727_v26, %v770_v38  ;;  %v576_v7 = vsel %vm219_vm6, %v553_v55, 0.0  ;;  %v862_v16 = vadd.f32 %v861_v39, %v860_v21  ;;  %v1095_v12 = vadd.f32 %v1094_v22, %v1093_v13 }
  0xd8   :  { %3032 = vst [vmem:[#allocation18_spill] sm:$0xff] %v2270_v62  ;;  %v809_v36 = vsel %vm219_vm6, %v2270_v62, 0.0  ;;  %v840_v10 = vmul.f32 %v2270_v62, %v2270_v62  ;;  %v2277_v14 = vsel %vm1041_vm7, %v1014_v28, %v1057_v41  ;;  %v1149_v31 = vadd.f32 %v1148_v56, %v1147_v33 }
  0xd9   :  { %3033 = vst [vmem:[#allocation19_spill] sm:$0xff] %v2277_v14  ;;  %v1127_v25 = vmul.f32 %v2277_v14, %v2277_v14  ;;  %v236_v26 = vadd.f32 %v235_v42, %v234_v32  ;;  %v290_v38 = vadd.f32 %v289_v29, %v288_v48  ;;  %v523_v18 = vadd.f32 %v522_v2, %v521_v23 }
  0xda   :  { %v2281_v5 = vsel %vm180_vm8, %v154_v43, %v196_v52  ;;  %v577_v55 = vadd.f32 %v576_v7, %v575_v57  ;;  %v810_v11 = vadd.f32 %v809_v36, %v808_v9  ;;  %vm468_vm9 = vcmp.ge.f32.partialorder %v442_v61, 0.0 }
  0xdb   :  { %v267_v15 = vmul.f32 %v2281_v5, %v2281_v5  ;;  %v863_v28 = vsel %vm219_vm6, %v840_v10, 0.0  ;;  %v1096_v21 = vsel %vm219_vm6, %v2277_v14, 0.0  ;;  %v484_v13 = vmul.f32 0.25, %v442_v61 }
  0xdc   :  { %v729_v33 = vadd.f32 %v1991_v40, %v728_v49  ;;  %v1150_v32 = vsel %vm219_vm6, %v1127_v25, 0.0  ;;  %v237_v23 = vsel %vm219_vm6, %v2281_v5, 0.0  ;;  %v1016_v48 = vadd.f32 %v1991_v40, %v1015_v6 }
  0xdd   :  { %v157_v9 = vadd.f32 %v1991_v40, %v156_v59  ;;  %v731_v57 = vpop.f32.mrf.mxu2  ;;  %v291_v39 = vsel %vm219_vm6, %v267_v15, 0.0  ;;  %v2295_v22 = vsel %vm468_vm9, %v442_v61, %v484_v13  ;;  %v1018_v42 = vpop.f32.mrf.mxu3  ;;  %v445_v29 = vadd.f32 %v1991_v40, %v444_v30 }
  0xde   :  { %vm755_vm10 = vcmp.ge.f32.partialorder %v729_v33, 0.0  ;;  %v771_v56 = vmul.f32 0.25, %v729_v33  ;;  %v554_v49 = vmul.f32 %v2295_v22, %v2295_v22  ;;  %vm1042_vm11 = vcmp.ge.f32.partialorder %v1016_v48, 0.0  ;;  %v158_v41 = vpop.f32.mrf.mxu0  ;;  %v446_v36 = vpop.f32.mrf.mxu1 }
  0xdf   :  { %v1058_v43 = vmul.f32 0.25, %v1016_v48  ;;  %v524_v6 = vsel %vm219_vm6, %v2295_v22, 0.0  ;;  %vm181_vm12 = vcmp.ge.f32.partialorder %v157_v9, 0.0  ;;  %v197_v15 = vmul.f32 0.25, %v157_v9 }
  0xe0   :  { %v2302_v59 = vsel %vm755_vm10, %v729_v33, %v771_v56  ;;  %v578_v61 = vsel %vm219_vm6, %v554_v49, 0.0  ;;  %v864_v30 = vadd.f32 %v863_v28, %v862_v16  ;;  %v1097_v10 = vadd.f32 %v1096_v21, %v1095_v12 }
  0xe1   :  { %3034 = vst [vmem:[#allocation20_spill] sm:$0xff] %v2302_v59  ;;  %v811_v2 = vsel %vm219_vm6, %v2302_v59, 0.0  ;;  %v841_v52 = vmul.f32 %v2302_v59, %v2302_v59  ;;  %v2309_v7 = vsel %vm1042_vm11, %v1016_v48, %v1058_v43  ;;  %v1151_v25 = vadd.f32 %v1150_v32, %v1149_v31 }
  0xe2   :  { %3035 = vst [vmem:[#allocation21_spill] sm:$0xff] %v2309_v7  ;;  %v1128_v13 = vmul.f32 %v2309_v7, %v2309_v7  ;;  %v238_v33 = vadd.f32 %v237_v23, %v236_v26  ;;  %v292_v56 = vadd.f32 %v291_v39, %v290_v38  ;;  %v525_v14 = vadd.f32 %v524_v6, %v523_v18 }
  0xe3   :  { %v2313_v62 = vsel %vm181_vm12, %v157_v9, %v197_v15  ;;  %v579_v49 = vadd.f32 %v578_v61, %v577_v55  ;;  %v812_v17 = vadd.f32 %v811_v2, %v810_v11  ;;  %vm469_vm13 = vcmp.ge.f32.partialorder %v445_v29, 0.0 }
  0xe4   :  { %v268_v27 = vmul.f32 %v2313_v62, %v2313_v62  ;;  %v865_v48 = vsel %vm219_vm6, %v841_v52, 0.0  ;;  %v1098_v16 = vsel %vm219_vm6, %v2309_v7, 0.0  ;;  %v485_v12 = vmul.f32 0.25, %v445_v29 }
  0xe5   :  { %v732_v31 = vadd.f32 %v1991_v40, %v731_v57  ;;  %v1152_v26 = vsel %vm219_vm6, %v1128_v13, 0.0  ;;  %v239_v18 = vsel %vm219_vm6, %v2313_v62, 0.0  ;;  %v1019_v38 = vadd.f32 %v1991_v40, %v1018_v42  ;;  %v733_v32 = vpop.f32.mrf.mxu2  ;;  %v1020_v39 = vpop.f32.mrf.mxu3 }
  0xe6   :  { %v159_v11 = vadd.f32 %v1991_v40, %v158_v41  ;;  %v293_v55 = vsel %vm219_vm6, %v268_v27, 0.0  ;;  %v2327_v28 = vsel %vm469_vm13, %v445_v29, %v485_v12  ;;  %v447_v57 = vadd.f32 %v1991_v40, %v446_v36  ;;  %v161_v29 = vpop.f32.mrf.mxu0  ;;  %v449_v12 = vpop.f32.mrf.mxu1 }
  0xe7   :  { %vm756_vm14 = vcmp.ge.f32.partialorder %v732_v31, 0.0  ;;  %v772_v21 = vmul.f32 0.25, %v732_v31  ;;  %v555_v23 = vmul.f32 %v2327_v28, %v2327_v28  ;;  %vm1043_vm15 = vcmp.ge.f32.partialorder %v1019_v38, 0.0 }
  0xe8   :  { %v1059_v9 = vmul.f32 0.25, %v1019_v38  ;;  %v526_v42 = vsel %vm219_vm6, %v2327_v28, 0.0  ;;  %vm182_vm0 = vcmp.ge.f32.partialorder %v159_v11, 0.0  ;;  %v198_v27 = vmul.f32 0.25, %v159_v11 }
  0xe9   :  { %v2334_v43 = vsel %vm756_vm14, %v732_v31, %v772_v21  ;;  %v580_v41 = vsel %vm219_vm6, %v555_v23, 0.0  ;;  %v866_v2 = vadd.f32 %v865_v48, %v864_v30  ;;  %v1099_v52 = vadd.f32 %v1098_v16, %v1097_v10 }
  0xea   :  { %3036 = vst [vmem:[#allocation22_spill] sm:$0xff] %v2334_v43  ;;  %v813_v6 = vsel %vm219_vm6, %v2334_v43, 0.0  ;;  %v842_v15 = vmul.f32 %v2334_v43, %v2334_v43  ;;  %v2341_v61 = vsel %vm1043_vm15, %v1019_v38, %v1059_v9  ;;  %v1153_v36 = vadd.f32 %v1152_v26, %v1151_v25 }
  0xeb   :  { %3037 = vst [vmem:[#allocation23_spill] sm:$0xff] %v2341_v61  ;;  %v1129_v13 = vmul.f32 %v2341_v61, %v2341_v61  ;;  %v240_v31 = vadd.f32 %v239_v18, %v238_v33  ;;  %v294_v21 = vadd.f32 %v293_v55, %v292_v56  ;;  %v527_v7 = vadd.f32 %v526_v42, %v525_v14 }
  0xec   :  { %v2345_v59 = vsel %vm182_vm0, %v159_v11, %v198_v27  ;;  %v581_v23 = vadd.f32 %v580_v41, %v579_v49  ;;  %v814_v44 = vadd.f32 %v813_v6, %v812_v17  ;;  %vm470_vm1 = vcmp.ge.f32.partialorder %v447_v57, 0.0 }
  0xed   :  { %v269_v3 = vmul.f32 %v2345_v59, %v2345_v59  ;;  %v867_v38 = vsel %vm219_vm6, %v842_v15, 0.0  ;;  %v1100_v30 = vsel %vm219_vm6, %v2341_v61, 0.0  ;;  %v486_v10 = vmul.f32 0.25, %v447_v57  ;;  %v736_v55 = vpop.f32.mrf.mxu2 }
  0xee   :  { %v734_v25 = vadd.f32 %v1991_v40, %v733_v32  ;;  %v1154_v33 = vsel %vm219_vm6, %v1129_v13, 0.0  ;;  %v241_v14 = vsel %vm219_vm6, %v2345_v59, 0.0  ;;  %v1021_v56 = vadd.f32 %v1991_v40, %v1020_v39  ;;  %v163_v41 = vpop.f32.mrf.mxu0 }
  0xef   :  { %v162_v17 = vadd.f32 %v1991_v40, %v161_v29  ;;  %v295_v49 = vsel %vm219_vm6, %v269_v3, 0.0  ;;  %v2359_v48 = vsel %vm470_vm1, %v447_v57, %v486_v10  ;;  %v450_v11 = vadd.f32 %v1991_v40, %v449_v12  ;;  %v1023_v3 = vpop.f32.mrf.mxu3 }
  0xf0   :  { %vm757_vm2 = vcmp.ge.f32.partialorder %v734_v25, 0.0  ;;  %v773_v16 = vmul.f32 0.25, %v734_v25  ;;  %v556_v26 = vmul.f32 %v2359_v48, %v2359_v48  ;;  %vm1044_vm3 = vcmp.ge.f32.partialorder %v1021_v56, 0.0 }
  0xf1   :  { %v1060_v18 = vmul.f32 0.25, %v1021_v56  ;;  %v528_v32 = vsel %vm219_vm6, %v2359_v48, 0.0  ;;  %vm183_vm4 = vcmp.ge.f32.partialorder %v162_v17, 0.0  ;;  %v199_v39 = vmul.f32 0.25, %v162_v17 }
  0xf2   :  { %v2366_v9 = vsel %vm757_vm2, %v734_v25, %v773_v16  ;;  %v582_v57 = vsel %vm219_vm6, %v556_v26, 0.0  ;;  %v868_v6 = vadd.f32 %v867_v38, %v866_v2  ;;  %v1101_v15 = vadd.f32 %v1100_v30, %v1099_v52  ;;  %v451_v26 = vpop.f32.mrf.mxu1 }
  0xf3   :  { %3038 = vst [vmem:[#allocation24_spill] sm:$0xff] %v2366_v9  ;;  %v815_v42 = vsel %vm219_vm6, %v2366_v9, 0.0  ;;  %v843_v27 = vmul.f32 %v2366_v9, %v2366_v9  ;;  %v2373_v29 = vsel %vm1044_vm3, %v1021_v56, %v1060_v18  ;;  %v1155_v13 = vadd.f32 %v1154_v33, %v1153_v36 }
  0xf4   :  { %3039 = vst [vmem:[#allocation25_spill] sm:$0xff] %v2373_v29  ;;  %v1130_v12 = vmul.f32 %v2373_v29, %v2373_v29  ;;  %v242_v10 = vadd.f32 %v241_v14, %v240_v31  ;;  %v296_v25 = vadd.f32 %v295_v49, %v294_v21  ;;  %v529_v16 = vadd.f32 %v528_v32, %v527_v7 }
  0xf5   :  { %v2377_v61 = vsel %vm183_vm4, %v162_v17, %v199_v39  ;;  %v583_v43 = vadd.f32 %v582_v57, %v581_v23  ;;  %v816_v24 = vadd.f32 %v815_v42, %v814_v44  ;;  %vm471_vm5 = vcmp.ge.f32.partialorder %v450_v11, 0.0  ;;  %v738_v32 = vpop.f32.mrf.mxu2 }
  0xf6   :  { %v270_v9 = vmul.f32 %v2377_v61, %v2377_v61  ;;  %v869_v56 = vsel %vm219_vm6, %v843_v27, 0.0  ;;  %v1102_v2 = vsel %vm219_vm6, %v2373_v29, 0.0  ;;  %v487_v52 = vmul.f32 0.25, %v450_v11 }
  0xf7   :  { %v737_v36 = vadd.f32 %v1991_v40, %v736_v55  ;;  %v1156_v31 = vsel %vm219_vm6, %v1130_v12, 0.0  ;;  %v243_v7 = vsel %vm219_vm6, %v2377_v61, 0.0  ;;  %v1024_v21 = vadd.f32 %v1991_v40, %v1023_v3  ;;  %v1025_v57 = vpop.f32.mrf.mxu3  ;;  %v166_v12 = vpop.f32.mrf.mxu0 }
  0xf8   :  { %v164_v44 = vadd.f32 %v1991_v40, %v163_v41  ;;  %v297_v23 = vsel %vm219_vm6, %v270_v9, 0.0  ;;  %v2391_v38 = vsel %vm471_vm5, %v450_v11, %v487_v52  ;;  %v452_v17 = vadd.f32 %v1991_v40, %v451_v26 }
  0xf9   :  { %3040 = vst [vmem:[#allocation26_spill] sm:$0xff] %v2391_v38  ;;  %vm758_vm7 = vcmp.ge.f32.partialorder %v737_v36, 0.0  ;;  %v774_v30 = vmul.f32 0.25, %v737_v36  ;;  %v557_v33 = vmul.f32 %v2391_v38, %v2391_v38  ;;  %vm1045_vm8 = vcmp.ge.f32.partialorder %v1024_v21, 0.0 }
  0xfa   :  { %v1061_v14 = vmul.f32 0.25, %v1024_v21  ;;  %v530_v49 = vsel %vm219_vm6, %v2391_v38, 0.0  ;;  %vm184_vm9 = vcmp.ge.f32.partialorder %v164_v44, 0.0  ;;  %v200_v55 = vmul.f32 0.25, %v164_v44 }
  0xfb   :  { %v2398_v18 = vsel %vm758_vm7, %v737_v36, %v774_v30  ;;  %v584_v11 = vsel %vm219_vm6, %v557_v33, 0.0  ;;  %v870_v40 = vadd.f32 %v869_v56, %v868_v6  ;;  %v1103_v42 = vadd.f32 %v1102_v2, %v1101_v15 }
  0xfc   :  { %3041 = vst [vmem:[#allocation27_spill] sm:$0xff] %v2398_v18  ;;  %v817_v9 = vsel %vm219_vm6, %v2398_v18, 0.0  ;;  %v844_v39 = vmul.f32 %v2398_v18, %v2398_v18  ;;  %v2405_v3 = vsel %vm1045_vm8, %v1024_v21, %v1061_v14  ;;  %v1157_v27 = vadd.f32 %v1156_v31, %v1155_v13  ;;  %v454_v14 = vpop.f32.mrf.mxu1 }
  0xfd   :  { %3042 = vst [vmem:[#allocation28_spill] sm:$0xff] %v2405_v3  ;;  %v1131_v41 = vmul.f32 %v2405_v3, %v2405_v3  ;;  %v244_v26 = vadd.f32 %v243_v7, %v242_v10  ;;  %v298_v52 = vadd.f32 %v297_v23, %v296_v25  ;;  %v531_v36 = vadd.f32 %v530_v49, %v529_v16  ;;  %v2420_v10 = vld [vmem:[%s2978_s2] ss:$0 sm:$0xff] }
  0xfe   :  { %v2410_v30 = vsel %vm184_vm9, %v164_v44, %v200_v55  ;;  %v585_v33 = vadd.f32 %v584_v11, %v583_v43  ;;  %v818_v29 = vadd.f32 %v817_v9, %v816_v24  ;;  %vm472_vm10 = vcmp.ge.f32.partialorder %v452_v17, 0.0 }
  0xff   :  { %v271_v21 = vmul.f32 %v2410_v30, %v2410_v30  ;;  %v871_v6 = vsel %vm219_vm6, %v844_v39, 0.0  ;;  %v1104_v15 = vsel %vm219_vm6, %v2405_v3, 0.0  ;;  %v488_v13 = vmul.f32 0.25, %v452_v17  ;;  %v168_v63 = vpop.f32.mrf.mxu0 }
 0x100   :  { %v739_v25 = vadd.f32 %v2420_v10, %v738_v32  ;;  %v1158_v24 = vsel %vm219_vm6, %v1131_v41, 0.0  ;;  %v245_v43 = vsel %vm219_vm6, %v2410_v30, 0.0  ;;  %v1026_v16 = vadd.f32 %v2420_v10, %v1025_v57  ;;  %v741_v41 = vpop.f32.mrf.mxu2 }
 0x101   :  { %v167_v56 = vadd.f32 %v2420_v10, %v166_v12  ;;  %v299_v2 = vsel %vm219_vm6, %v271_v21, 0.0  ;;  %v2429_v31 = vsel %vm472_vm10, %v452_v17, %v488_v13  ;;  %v455_v49 = vadd.f32 %v2420_v10, %v454_v14 }
 0x102   :  { %3043 = vst [vmem:[#allocation29_spill] sm:$0xff] %v2429_v31  ;;  %vm759_vm11 = vcmp.ge.f32.partialorder %v739_v25, 0.0  ;;  %v775_v7 = vmul.f32 0.25, %v739_v25  ;;  %v558_v44 = vmul.f32 %v2429_v31, %v2429_v31  ;;  %vm1046_vm12 = vcmp.ge.f32.partialorder %v1026_v16, 0.0 }
 0x103   :  { %v1062_v23 = vmul.f32 0.25, %v1026_v16  ;;  %v532_v55 = vsel %vm219_vm6, %v2429_v31, 0.0  ;;  %vm185_vm13 = vcmp.ge.f32.partialorder %v167_v56, 0.0  ;;  %v201_v11 = vmul.f32 0.25, %v167_v56 }
 0x104   :  { %v2436_v32 = vsel %vm759_vm11, %v739_v25, %v775_v7  ;;  %v586_v9 = vsel %vm219_vm6, %v558_v44, 0.0  ;;  %v872_v12 = vadd.f32 %v871_v6, %v870_v40  ;;  %v1105_v21 = vadd.f32 %v1104_v15, %v1103_v42  ;;  %v1028_v25 = vpop.f32.mrf.mxu3 }
 0x105   :  { %3044 = vst [vmem:[#allocation30_spill] sm:$0xff] %v2436_v32  ;;  %v819_v17 = vsel %vm219_vm6, %v2436_v32, 0.0  ;;  %v845_v39 = vmul.f32 %v2436_v32, %v2436_v32  ;;  %v2443_v57 = vsel %vm1046_vm12, %v1026_v16, %v1062_v23  ;;  %v1159_v14 = vadd.f32 %v1158_v24, %v1157_v27 }
 0x106   :  { %3045 = vst [vmem:[#allocation31_spill] sm:$0xff] %v2443_v57  ;;  %v1132_v13 = vmul.f32 %v2443_v57, %v2443_v57  ;;  %v246_v7 = vadd.f32 %v245_v43, %v244_v26  ;;  %v300_v3 = vadd.f32 %v299_v2, %v298_v52  ;;  %v533_v18 = vadd.f32 %v532_v55, %v531_v36  ;;  %v456_v26 = vpop.f32.mrf.mxu1 }
 0x107   :  { %v2447_v44 = vsel %vm185_vm13, %v167_v56, %v201_v11  ;;  %v587_v31 = vadd.f32 %v586_v9, %v585_v33  ;;  %v820_v38 = vadd.f32 %v819_v17, %v818_v29  ;;  %vm473_vm14 = vcmp.ge.f32.partialorder %v455_v49, 0.0 }
 0x108   :  { %v272_v16 = vmul.f32 %v2447_v44, %v2447_v44  ;;  %v873_v40 = vsel %vm219_vm6, %v845_v39, 0.0  ;;  %v1106_v42 = vsel %vm219_vm6, %v2443_v57, 0.0  ;;  %v489_v27 = vmul.f32 0.25, %v455_v49 }
 0x109   :  { %v742_v6 = vadd.f32 %v2420_v10, %v741_v41  ;;  %v1160_v52 = vsel %vm219_vm6, %v1132_v13, 0.0  ;;  %v247_v36 = vsel %vm219_vm6, %v2447_v44, 0.0  ;;  %v1029_v29 = vadd.f32 %v2420_v10, %v1028_v25 }
 0x10a   :  { %v169_v33 = vadd.f32 %v2420_v10, %v168_v63  ;;  %v301_v15 = vsel %vm219_vm6, %v272_v16, 0.0  ;;  %v2461_v24 = vsel %vm473_vm14, %v455_v49, %v489_v27  ;;  %v457_v23 = vadd.f32 %v2420_v10, %v456_v26  ;;  %v743_v27 = vpop.f32.mrf.mxu2 }
 0x10b   :  { %vm760_vm15 = vcmp.ge.f32.partialorder %v742_v6, 0.0  ;;  %v776_v43 = vmul.f32 0.25, %v742_v6  ;;  %v559_v56 = vmul.f32 %v2461_v24, %v2461_v24  ;;  %vm1047_vm0 = vcmp.ge.f32.partialorder %v1029_v29, 0.0 }
 0x10c   :  { %v1063_v2 = vmul.f32 0.25, %v1029_v29  ;;  %v534_v55 = vsel %vm219_vm6, %v2461_v24, 0.0  ;;  %vm186_vm1 = vcmp.ge.f32.partialorder %v169_v33, 0.0  ;;  %v202_v63 = vmul.f32 0.25, %v169_v33 }
 0x10d   :  { %v2468_v11 = vsel %vm760_vm15, %v742_v6, %v776_v43  ;;  %v874_v9 = vadd.f32 %v873_v40, %v872_v12  ;;  %v1107_v17 = vadd.f32 %v1106_v42, %v1105_v21  ;;  %v588_v49 = vsel %vm219_vm6, %v559_v56, 0.0  ;;  %v1030_v12 = vpop.f32.mrf.mxu3 }
 0x10e   :  { %3046 = vst [vmem:[#allocation32_spill] sm:$0xff] %v2468_v11  ;;  %v821_v39 = vsel %vm219_vm6, %v2468_v11, 0.0  ;;  %v1161_v41 = vadd.f32 %v1160_v52, %v1159_v14  ;;  %v248_v13 = vadd.f32 %v247_v36, %v246_v7  ;;  %v846_v25 = vmul.f32 %v2468_v11, %v2468_v11 }
 0x10f   :  { %v2475_v16 = vsel %vm1047_vm0, %v1029_v29, %v1063_v2  ;;  %v302_v26 = vadd.f32 %v301_v15, %v300_v3  ;;  %v535_v6 = vadd.f32 %v534_v55, %v533_v18  ;;  %v589_v43 = vadd.f32 %v588_v49, %v587_v31 }
 0x110   :  { %3047 = vst [vmem:[#allocation33_spill] sm:$0xff] %v2475_v16  ;;  %v2477_v57 = vsel %vm186_vm1, %v169_v33, %v202_v63  ;;  %v822_v21 = vadd.f32 %v821_v39, %v820_v38  ;;  %vm474_vm2 = vcmp.ge.f32.partialorder %v457_v23, 0.0  ;;  %v1108_v7 = vsel %vm219_vm6, %v2475_v16, 0.0 }
 0x111   :  { %v249_v40 = vsel %vm219_vm6, %v2477_v57, 0.0  ;;  %v273_v14 = vmul.f32 %v2477_v57, %v2477_v57  ;;  %v490_v52 = vmul.f32 0.25, %v457_v23  ;;  %v744_v3 = vadd.f32 %v2420_v10, %v743_v27 }
 0x112   :  { %v250_v42 = vadd.f32 %v249_v40, %v248_v13  ;;  %v875_v18 = vsel %vm219_vm6, %v846_v25, 0.0  ;;  %v1133_v31 = vmul.f32 %v2475_v16, %v2475_v16  ;;  %v1031_v36 = vadd.f32 %v2420_v10, %v1030_v12 }
 0x113   :  { %v303_v38 = vsel %vm219_vm6, %v273_v14, 0.0  ;;  %v2491_v15 = vsel %vm474_vm2, %v457_v23, %v490_v52  ;;  %vm761_vm3 = vcmp.ge.f32.partialorder %v744_v3, 0.0  ;;  %v777_v55 = vmul.f32 0.25, %v744_v3 }
 0x114   :  { %v251_v29 = vrot.slane %v250_v42, 4  ;;  %v304_v33 = vadd.f32 %v303_v38, %v302_v26  ;;  %v536_v56 = vsel %vm219_vm6, %v2491_v15, 0.0  ;;  %v560_v2 = vmul.f32 %v2491_v15, %v2491_v15 }
 0x115   :  { %vm1048_vm4 = vcmp.ge.f32.partialorder %v1031_v36, 0.0  ;;  %v537_v39 = vadd.f32 %v536_v56, %v535_v6  ;;  %v1064_v13 = vmul.f32 0.25, %v1031_v36  ;;  %v876_v25 = vadd.f32 %v875_v18, %v874_v9 }
 0x116   :  { %v252_v63 = vadd.f32 %v251_v29, %v250_v42  ;;  %v305_v49 = vrot.slane %v304_v33, 4  ;;  %v1109_v27 = vadd.f32 %v1108_v7, %v1107_v17  ;;  %v590_v10 = vsel %vm219_vm6, %v560_v2, 0.0 }
 0x117   :  { %v2498_v26 = vsel %vm761_vm3, %v744_v3, %v777_v55  ;;  %v538_v40 = vrot.slane %v537_v39, 4  ;;  %v591_v14 = vadd.f32 %v590_v10, %v589_v43  ;;  %v1162_v52 = vsel %vm219_vm6, %v1133_v31, 0.0 }
 0x118   :  { %3048 = vst [vmem:[#allocation34_spill] sm:$0xff] %v2498_v26  ;;  %v253_v23 = vrot.slane %v252_v63, 2  ;;  %v306_v12 = vadd.f32 %v305_v49, %v304_v33  ;;  %v823_v38 = vsel %vm219_vm6, %v2498_v26, 0.0  ;;  %v847_v42 = vmul.f32 %v2498_v26, %v2498_v26 }
 0x119   :  { %v2506_v6 = vsel %vm1048_vm4, %v1031_v36, %v1064_v13  ;;  %v539_v7 = vadd.f32 %v538_v40, %v537_v39  ;;  %v592_v3 = vrot.slane %v591_v14, 4  ;;  %v824_v18 = vadd.f32 %v823_v38, %v822_v21 }
 0x11a   :  { %3049 = vst [vmem:[#allocation35_spill] sm:$0xff] %v2506_v6  ;;  %v254_v9 = vadd.f32 %v253_v23, %v252_v63  ;;  %v307_v17 = vrot.slane %v306_v12, 2  ;;  %v877_v29 = vsel %vm219_vm6, %v847_v42, 0.0  ;;  %v1110_v43 = vsel %vm219_vm6, %v2506_v6, 0.0 }
 0x11b   :  { %v1134_v31 = vmul.f32 %v2506_v6, %v2506_v6  ;;  %v1163_v33 = vadd.f32 %v1162_v52, %v1161_v41  ;;  %v540_v2 = vrot.slane %v539_v7, 2  ;;  %v593_v55 = vadd.f32 %v592_v3, %v591_v14 }
 0x11c   :  { %v308_v56 = vadd.f32 %v307_v17, %v306_v12  ;;  %v825_v49 = vrot.slane %v824_v18, 4  ;;  %v878_v36 = vadd.f32 %v877_v29, %v876_v25  ;;  %v1111_v13 = vadd.f32 %v1110_v43, %v1109_v27 }
 0x11d   :  { %v1164_v63 = vsel %vm219_vm6, %v1134_v31, 0.0  ;;  %v255_v39 = vrot.slane %v254_v9, 1  ;;  %v541_v10 = vadd.f32 %v540_v2, %v539_v7  ;;  %v594_v21 = vrot.slane %v593_v55, 2 }
 0x11e   :  { %v826_v23 = vadd.f32 %v825_v49, %v824_v18  ;;  %v879_v40 = vrot.slane %v878_v36, 4  ;;  %v1112_v38 = vrot.slane %v1111_v13, 4  ;;  %v1165_v42 = vadd.f32 %v1164_v63, %v1163_v33 }
 0x11f   :  { %v309_v16 = vrot.slane %v308_v56, 1  ;;  %v542_v26 = vrot.slane %v541_v10, 1  ;;  %v595_v11 = vadd.f32 %v594_v21, %v593_v55  ;;  %v256_v14 = vadd.f32 %v255_v39, %v254_v9 }
 0x120   :  { %v827_v32 = vrot.slane %v826_v23, 2  ;;  %v880_v41 = vadd.f32 %v879_v40, %v878_v36  ;;  %v1113_v12 = vadd.f32 %v1112_v38, %v1111_v13  ;;  %v1166_v52 = vrot.slane %v1165_v42, 4 }
 0x121   :  { %v543_v17 = vadd.f32 %v542_v26, %v541_v10  ;;  %v596_v25 = vrot.slane %v595_v11, 1  ;;  %v310_v7 = vadd.f32 %v309_v16, %v308_v56  ;;  %vm1246_vm8 = vcmask 27648  }
 0x122   :  { %v828_v27 = vadd.f32 %v827_v32, %v826_v23  ;;  %v881_v3 = vrot.slane %v880_v41, 2  ;;  %v1114_v29 = vrot.slane %v1113_v12, 2  ;;  %v1167_v43 = vadd.f32 %v1166_v52, %v1165_v42 }
 0x123   :  { %v597_v31 = vadd.f32 %v596_v25, %v595_v11  ;;  %v544_v63 = vadd.f32 %v543_v17, %v256_v14 }
 0x124   :  { %v829_v18 = vrot.slane %v828_v27, 1  ;;  %v882_v2 = vadd.f32 %v881_v3, %v880_v41  ;;  %v1115_v49 = vadd.f32 %v1114_v29, %v1113_v12  ;;  %v1168_v33 = vrot.slane %v1167_v43, 2  ;;  %v1189_v3 = vld [vmem:[%s2979_s3] sm:$0x1] }
 0x125   :  { %v598_v13 = vadd.f32 %v597_v31, %v310_v7  ;;  %v1191_v7 = vld [vmem:[%s2980_s4] sm:$0x1] }
 0x126   :  { %v830_v6 = vadd.f32 %v829_v18, %v828_v27  ;;  %v883_v55 = vrot.slane %v882_v2, 1  ;;  %v1116_v21 = vrot.slane %v1115_v49, 1  ;;  %v1169_v36 = vadd.f32 %v1168_v33, %v1167_v43 }
 0x128   :  { %v831_v40 = vadd.f32 %v830_v6, %v544_v63  ;;  %v884_v9 = vadd.f32 %v883_v55, %v882_v2  ;;  %v1117_v26 = vadd.f32 %v1116_v21, %v1115_v49  ;;  %v1170_v39 = vrot.slane %v1169_v36, 1 }
 0x12a   :  { %v885_v32 = vadd.f32 %v884_v9, %v598_v13  ;;  %v1118_v10 = vadd.f32 %v1117_v26, %v831_v40  ;;  %v1171_v23 = vadd.f32 %v1170_v39, %v1169_v36 }
 0x12c   :  { %v1172_v38 = vadd.f32 %v1171_v23, %v885_v32  ;;  %v1173_v16 = vmul.f32 0.001953125, %v1118_v10 }
 0x12e   :  { %v1174_v11 = vmul.f32 0.001953125, %v1172_v38  ;;  %v1175_v56 = vmul.f32 %v1173_v16, %v1173_v16 }
 0x130   :  { %v1176_v42 = vsub.f32 %v1174_v11, %v1175_v56 }
 0x132   :  { %v1177_v41 = vmax.f32 %v1176_v42, 0.0 }
 0x134   :  { %v1178_v12 = vadd.f32 1e-05, %v1177_v41 }
 0x136   :  { %1803 = vrsqrt.f32 %v1178_v12  ;;  %vm1185_vm5 = vweird.f32 %v1178_v12 }
 0x13c   :  { %v1804_v52 = vpop.eup %1803 }
 0x13d   :  { %v1180_v14 = vmul.f32 %v1804_v52, %v1178_v12  ;;  %vm1186_vm6 = vweird.f32 %v1804_v52 }
 0x13e   :  { %vm1187_vm7 = vmor %vm1185_vm5, %vm1186_vm6 }
 0x13f   :  { %v1181_v17 = vmul.f32 %v1804_v52, %v1180_v14 }
 0x141   :  { %v1182_v25 = vmul.f32 0.5, %v1181_v17 }
 0x143   :  { %v1183_v27 = vsub.f32 1.5, %v1182_v25 }
 0x145   :  { %v1184_v6 = vmul.f32 %v1804_v52, %v1183_v27 }
 0x147   :  { %v1188_v29 = vsel %vm1187_vm7, %v1804_v52, %v1184_v6 }
 0x148   :  { %v1190_v43 = vmul.f32 %v1189_v3, %v1188_v29 }
 0x14a   :  { %v1192_v31 = vmul.f32 %v1190_v43, %v1173_v16  ;;  %v2520_v2 = vperm.slane %v1190_v43, 0 }
 0x14c   :  { %v1193_v18 = vsub.f32 %v1191_v7, %v1192_v31  ;;  %v1195_v49 = vmul.f32 %v2520_v2, %v1995_v47  ;;  %v1196_v33 = vmul.f32 %v2520_v2, %v2009_v0  ;;  %v1197_v63 = vmul.f32 %v2520_v2, %v2054_v34 }
 0x14d   :  { %v1198_v21 = vmul.f32 %v2520_v2, %v2087_v19  ;;  %v1199_v36 = vmul.f32 %v2520_v2, %v2120_v4  ;;  %v1200_v0 = vmul.f32 %v2520_v2, %v2153_v51  ;;  %v1201_v34 = vmul.f32 %v2520_v2, %v2185_v45 }
 0x14e   :  { %v2528_v55 = vperm.slane %v1193_v18, 0  ;;  %v1202_v19 = vmul.f32 %v2520_v2, %v2217_v53  ;;  %v1203_v4 = vmul.f32 %v2520_v2, %v2249_v50  ;;  %v1204_v38 = vmul.f32 %v2520_v2, %v2281_v5 }
 0x14f   :  { %v1205_v53 = vmul.f32 %v2520_v2, %v2313_v62  ;;  %v1206_v56 = vmul.f32 %v2520_v2, %v2345_v59  ;;  %v1207_v62 = vmul.f32 %v2520_v2, %v2377_v61  ;;  %v1208_v59 = vmul.f32 %v2520_v2, %v2410_v30 }
 0x150   :  { %v1214_v13 = vadd.f32 %v2528_v55, %v1195_v49  ;;  %v1215_v40 = vadd.f32 %v2528_v55, %v1196_v33  ;;  %v1216_v47 = vadd.f32 %v2528_v55, %v1197_v63  ;;  %v1217_v9 = vadd.f32 %v2528_v55, %v1198_v21 }
 0x151   :  { %v1218_v26 = vadd.f32 %v2528_v55, %v1199_v36  ;;  %v1219_v39 = vadd.f32 %v2528_v55, %v1200_v0  ;;  %v1220_v32 = vadd.f32 %v2528_v55, %v1201_v34  ;;  %v1221_v45 = vadd.f32 %v2528_v55, %v1202_v19 }
 0x152   :  { %v1230_v10 = vpack.c.bf16 %v1214_v13, %v1214_v13  ;;  %v1231_v51 = vpack.c.bf16 %v1215_v40, %v1215_v40  ;;  %v1232_v23 = vpack.c.bf16 %v1216_v47, %v1216_v47  ;;  %v1233_v16 = vpack.c.bf16 %v1217_v9, %v1217_v9 }
 0x153   :  { %v1222_v11 = vadd.f32 %v2528_v55, %v1203_v4  ;;  %v1234_v50 = vpack.c.bf16 %v1218_v26, %v1218_v26  ;;  %v1223_v42 = vadd.f32 %v2528_v55, %v1204_v38  ;;  %v1235_v5 = vpack.c.bf16 %v1219_v39, %v1219_v39 }
 0x154   :  { %1247 = vst.msk [vmem:[%s2981_s5] sm:$0xf] %vm1246_vm8, %v1230_v10  ;;  %v1224_v41 = vadd.f32 %v2528_v55, %v1205_v53  ;;  %v1236_v12 = vpack.c.bf16 %v1220_v32, %v1220_v32  ;;  %v1225_v52 = vadd.f32 %v2528_v55, %v1206_v56  ;;  %v1237_v14 = vpack.c.bf16 %v1221_v45, %v1221_v45 }
 0x155   :  { %1248 = vst.msk [vmem:[%s2981_s5 + $0x4] sm:$0xf] %vm1246_vm8, %v1231_v51  ;;  %v1209_v61 = vmul.f32 %v2520_v2, %v2447_v44  ;;  %v1226_v17 = vadd.f32 %v2528_v55, %v1207_v62  ;;  %v1238_v25 = vpack.c.bf16 %v1222_v11, %v1222_v11  ;;  %v1210_v30 = vmul.f32 %v2520_v2, %v2477_v57 }
 0x156   :  { %1249 = vst.msk [vmem:[%s2981_s5 + $0x8] sm:$0xf] %vm1246_vm8, %v1232_v23  ;;  %v1227_v27 = vadd.f32 %v2528_v55, %v1208_v59  ;;  %v1239_v6 = vpack.c.bf16 %v1223_v42, %v1223_v42  ;;  %v1240_v3 = vpack.c.bf16 %v1224_v41, %v1224_v41  ;;  %v1263_v29 = vmul.f32 %v2520_v2, %v1999_v54  ;;  %v3052_v59 = vld [vmem:[#allocation2_spill] sm:$0xff] }
 0x157   :  { %1250 = vst.msk [vmem:[%s2981_s5 + $0xc] sm:$0xf] %vm1246_vm8, %v1233_v16  ;;  %v1228_v44 = vadd.f32 %v2528_v55, %v1209_v61  ;;  %v1229_v57 = vadd.f32 %v2528_v55, %v1210_v30  ;;  %v1241_v43 = vpack.c.bf16 %v1225_v52, %v1225_v52  ;;  %v1264_v7 = vmul.f32 %v2520_v2, %v2011_v1  ;;  %v3053_v61 = vld [vmem:[#allocation4_spill] sm:$0xff]  ;;  %v3054_v30 = vld [vmem:[#allocation6_spill] sm:$0xff] }
 0x158   :  { %1251 = vst.msk [vmem:[%s2981_s5 + $0x10] sm:$0xf] %vm1246_vm8, %v1234_v50  ;;  %v1242_v31 = vpack.c.bf16 %v1226_v17, %v1226_v17  ;;  %v1265_v54 = vmul.f32 %v2520_v2, %v2069_v58  ;;  %v1279_v18 = vadd.f32 %v1263_v29, %v2528_v55  ;;  %v1243_v49 = vpack.c.bf16 %v1227_v27, %v1227_v27 }
 0x159   :  { %1252 = vst.msk [vmem:[%s2981_s5 + $0x14] sm:$0xf] %vm1246_vm8, %v1235_v5  ;;  %v1266_v1 = vmul.f32 %v2520_v2, %v2101_v37  ;;  %v1280_v33 = vadd.f32 %v1264_v7, %v2528_v55  ;;  %v1244_v63 = vpack.c.bf16 %v1228_v44, %v1228_v44  ;;  %v1267_v58 = vmul.f32 %v2520_v2, %v2134_v20  ;;  %v3056_v7 = vld [vmem:[#allocation10_spill] sm:$0xff] }
 0x15a   :  { %1253 = vst.msk [vmem:[%s2981_s5 + $0x18] sm:$0xf] %vm1246_vm8, %v1236_v12  ;;  %v1281_v21 = vadd.f32 %v1265_v54, %v2528_v55  ;;  %v1245_v36 = vpack.c.bf16 %v1229_v57, %v1229_v57  ;;  %v1268_v37 = vmul.f32 %v2520_v2, %v2167_v8  ;;  %v1269_v20 = vmul.f32 %v2520_v2, %v2199_v60 }
 0x15b   :  { %1254 = vst.msk [vmem:[%s2981_s5 + $0x1c] sm:$0xf] %vm1246_vm8, %v1237_v14  ;;  %v1282_v13 = vadd.f32 %v1266_v1, %v2528_v55  ;;  %v1283_v40 = vadd.f32 %v1267_v58, %v2528_v55  ;;  %v1295_v47 = vpack.c.bf16 %v1279_v18, %v1279_v18  ;;  %v1270_v8 = vmul.f32 %v2520_v2, %v2231_v46 }
 0x15c   :  { %1255 = vst.msk [vmem:[%s2981_s5 + $0x20] sm:$0xf] %vm1246_vm8, %v1238_v25  ;;  %v1284_v0 = vadd.f32 %v1268_v37, %v2528_v55  ;;  %v1296_v9 = vpack.c.bf16 %v1280_v33, %v1280_v33  ;;  %v1271_v60 = vmul.f32 %v2520_v2, %v2263_v35  ;;  %v1285_v34 = vadd.f32 %v1269_v20, %v2528_v55  ;;  %v3059_v37 = vld [vmem:[#allocation16_spill] sm:$0xff] }
 0x15d   :  { %1256 = vst.msk [vmem:[%s2981_s5 + $0x24] sm:$0xf] %vm1246_vm8, %v1239_v6  ;;  %v1297_v26 = vpack.c.bf16 %v1281_v21, %v1281_v21  ;;  %v1272_v46 = vmul.f32 %v2520_v2, %v2295_v22  ;;  %v1286_v19 = vadd.f32 %v1270_v8, %v2528_v55  ;;  %v1298_v4 = vpack.c.bf16 %v1282_v13, %v1282_v13 }
 0x15e   :  { %1257 = vst.msk [vmem:[%s2981_s5 + $0x28] sm:$0xf] %vm1246_vm8, %v1240_v3  ;;  %v1273_v39 = vmul.f32 %v2520_v2, %v2327_v28  ;;  %v1287_v32 = vadd.f32 %v1271_v60, %v2528_v55  ;;  %v1299_v35 = vpack.c.bf16 %v1283_v40, %v1283_v40  ;;  %v1274_v10 = vmul.f32 %v2520_v2, %v2359_v48  ;;  %v3050_v28 = vld [vmem:[#allocation26_spill] sm:$0xff]  ;;  %v3051_v48 = vld [vmem:[#allocation29_spill] sm:$0xff]  ;;  %v3055_v3 = vld [vmem:[#allocation8_spill] sm:$0xff] }
 0x15f   :  { %1258 = vst.msk [vmem:[%s2981_s5 + $0x2c] sm:$0xf] %vm1246_vm8, %v1241_v43  ;;  %v1288_v51 = vadd.f32 %v1272_v46, %v2528_v55  ;;  %v1300_v22 = vpack.c.bf16 %v1284_v0, %v1284_v0  ;;  %v1275_v23 = vmul.f32 %v2520_v2, %v3050_v28  ;;  %v1301_v45 = vpack.c.bf16 %v1285_v34, %v1285_v34  ;;  %v3061_v60 = vld [vmem:[#allocation35_spill] sm:$0xff] }
 0x160   :  { %1259 = vst.msk [vmem:[%s2981_s5 + $0x30] sm:$0xf] %vm1246_vm8, %v1242_v31  ;;  %v1289_v38 = vadd.f32 %v1273_v39, %v2528_v55  ;;  %v1276_v16 = vmul.f32 %v2520_v2, %v3051_v48  ;;  %v1290_v53 = vadd.f32 %v1274_v10, %v2528_v55  ;;  %v1302_v11 = vpack.c.bf16 %v1286_v19, %v1286_v19  ;;  %v3063_v39 = vld [vmem:[#allocation22_spill] sm:$0xff] }
 0x161   :  { %1260 = vst.msk [vmem:[%s2981_s5 + $0x34] sm:$0xf] %vm1246_vm8, %v1243_v49  ;;  %v1277_v50 = vmul.f32 %v2520_v2, %v2461_v24  ;;  %v1291_v56 = vadd.f32 %v1275_v23, %v2528_v55  ;;  %v1303_v42 = vpack.c.bf16 %v1287_v32, %v1287_v32  ;;  %v1278_v5 = vmul.f32 %v2520_v2, %v2491_v15  ;;  %v3057_v49 = vld [vmem:[#allocation12_spill] sm:$0xff] }
 0x162   :  { %1261 = vst.msk [vmem:[%s2981_s5 + $0x38] sm:$0xf] %vm1246_vm8, %v1244_v63  ;;  %v1292_v62 = vadd.f32 %v1276_v16, %v2528_v55  ;;  %v1304_v41 = vpack.c.bf16 %v1288_v51, %v1288_v51  ;;  %v1305_v12 = vpack.c.bf16 %v1289_v38, %v1289_v38  ;;  %v1328_v52 = vmul.f32 %v2520_v2, %v3052_v59  ;;  %v3058_v63 = vld [vmem:[#allocation14_spill] sm:$0xff] }
 0x163   :  { %1262 = vst.msk [vmem:[%s2981_s5 + $0x3c] sm:$0xf] %vm1246_vm8, %v1245_v36  ;;  %v1293_v24 = vadd.f32 %v1277_v50, %v2528_v55  ;;  %v1294_v15 = vadd.f32 %v1278_v5, %v2528_v55  ;;  %v1306_v14 = vpack.c.bf16 %v1290_v53, %v1290_v53  ;;  %v1329_v17 = vmul.f32 %v2520_v2, %v3053_v61  ;;  %v3067_v5 = vld [vmem:[#allocation32_spill] sm:$0xff] }
 0x164   :  { %1714 = vst.msk [vmem:[%s2981_s5 + $0x40] sm:$0xf] %vm1246_vm8, %v1295_v47  ;;  %v1307_v25 = vpack.c.bf16 %v1291_v56, %v1291_v56  ;;  %v1330_v27 = vmul.f32 %v2520_v2, %v3054_v30  ;;  %v1344_v6 = vadd.f32 %v1328_v52, %v2528_v55  ;;  %v1308_v44 = vpack.c.bf16 %v1292_v62, %v1292_v62  ;;  %v3060_v47 = vld [vmem:[#allocation18_spill] sm:$0xff] }
 0x165   :  { %1715 = vst.msk [vmem:[%s2981_s5 + $0x44] sm:$0xf] %vm1246_vm8, %v1296_v9  ;;  %v1331_v29 = vmul.f32 %v2520_v2, %v3055_v3  ;;  %v1345_v57 = vadd.f32 %v1329_v17, %v2528_v55  ;;  %v1309_v43 = vpack.c.bf16 %v1293_v24, %v1293_v24  ;;  %v1332_v31 = vmul.f32 %v2520_v2, %v3056_v7  ;;  %v3069_v17 = vld [vmem:[#allocation3_spill] sm:$0xff] }
 0x166   :  { %1716 = vst.msk [vmem:[%s2981_s5 + $0x48] sm:$0xf] %vm1246_vm8, %v1297_v26  ;;  %v1346_v54 = vadd.f32 %v1330_v27, %v2528_v55  ;;  %v1310_v18 = vpack.c.bf16 %v1294_v15, %v1294_v15  ;;  %v1333_v1 = vmul.f32 %v2520_v2, %v3057_v49  ;;  %v1334_v58 = vmul.f32 %v2520_v2, %v3058_v63  ;;  %v3062_v26 = vld [vmem:[#allocation20_spill] sm:$0xff] }
 0x167   :  { %1717 = vst.msk [vmem:[%s2981_s5 + $0x4c] sm:$0xf] %vm1246_vm8, %v1298_v4  ;;  %v1347_v33 = vadd.f32 %v1331_v29, %v2528_v55  ;;  %v1348_v21 = vadd.f32 %v1332_v31, %v2528_v55  ;;  %v1360_v36 = vpack.c.bf16 %v1344_v6, %v1344_v6  ;;  %v1335_v13 = vmul.f32 %v2520_v2, %v3059_v37  ;;  %v3070_v6 = vld [vmem:[#allocation5_spill] sm:$0xff]  ;;  %v3071_v29 = vld [vmem:[#allocation7_spill] sm:$0xff] }
 0x168   :  { %1718 = vst.msk [vmem:[%s2981_s5 + $0x50] sm:$0xf] %vm1246_vm8, %v1299_v35  ;;  %v1349_v20 = vadd.f32 %v1333_v1, %v2528_v55  ;;  %v1361_v40 = vpack.c.bf16 %v1345_v57, %v1345_v57  ;;  %v1336_v8 = vmul.f32 %v2520_v2, %v3060_v47  ;;  %v1350_v0 = vadd.f32 %v1334_v58, %v2528_v55  ;;  %v3072_v31 = vld [vmem:[#allocation9_spill] sm:$0xff]  ;;  %v3073_v1 = vld [vmem:[#allocation11_spill] sm:$0xff] }
 0x169   :  { %1719 = vst.msk [vmem:[%s2981_s5 + $0x54] sm:$0xf] %vm1246_vm8, %v1300_v22  ;;  %v1362_v9 = vpack.c.bf16 %v1346_v54, %v1346_v54  ;;  %v1408_v34 = vmul.f32 %v2520_v2, %v3061_v60  ;;  %v1337_v46 = vmul.f32 %v2520_v2, %v3062_v26  ;;  %v1351_v19 = vadd.f32 %v1335_v13, %v2528_v55  ;;  %v3064_v22 = vld [vmem:[#allocation24_spill] sm:$0xff]  ;;  %v3075_v13 = vld [vmem:[#allocation15_spill] sm:$0xff] }
 0x16a   :  { %1720 = vst.msk [vmem:[%s2981_s5 + $0x58] sm:$0xf] %vm1246_vm8, %v1301_v45  ;;  %v1363_v4 = vpack.c.bf16 %v1347_v33, %v1347_v33  ;;  %v1338_v32 = vmul.f32 %v2520_v2, %v3063_v39  ;;  %v1352_v35 = vadd.f32 %v1336_v8, %v2528_v55  ;;  %v1364_v10 = vpack.c.bf16 %v1348_v21, %v1348_v21  ;;  %v3065_v45 = vld [vmem:[#allocation27_spill] sm:$0xff]  ;;  %v3074_v21 = vld [vmem:[#allocation13_spill] sm:$0xff] }
 0x16b   :  { %1721 = vst.msk [vmem:[%s2981_s5 + $0x5c] sm:$0xf] %vm1246_vm8, %v1302_v11  ;;  %v2786_v51 = vadd.f32 %v1408_v34, %v2528_v55  ;;  %v1339_v28 = vmul.f32 %v2520_v2, %v3064_v22  ;;  %v1353_v23 = vadd.f32 %v1337_v46, %v2528_v55  ;;  %v1365_v38 = vpack.c.bf16 %v1349_v20, %v1349_v20  ;;  %v3066_v11 = vld [vmem:[#allocation30_spill] sm:$0xff]  ;;  %v3076_v8 = vld [vmem:[#allocation17_spill] sm:$0xff]  ;;  %v3077_v34 = vld [vmem:[#allocation19_spill] sm:$0xff] }
 0x16c   :  { %1722 = vst.msk [vmem:[%s2981_s5 + $0x60] sm:$0xf] %vm1246_vm8, %v1303_v42  ;;  %v1340_v48 = vmul.f32 %v2520_v2, %v3065_v45  ;;  %v1354_v16 = vadd.f32 %v1338_v32, %v2528_v55  ;;  %v1366_v53 = vpack.c.bf16 %v1350_v0, %v1350_v0  ;;  %v1341_v50 = vmul.f32 %v2520_v2, %v3066_v11 }
 0x16d   :  { %1723 = vst.msk [vmem:[%s2981_s5 + $0x64] sm:$0xf] %vm1246_vm8, %v1304_v41  ;;  %v1355_v56 = vadd.f32 %v1339_v28, %v2528_v55  ;;  %v1367_v42 = vpack.c.bf16 %v1351_v19, %v1351_v19  ;;  %v1342_v62 = vmul.f32 %v2520_v2, %v3067_v5  ;;  %v1368_v24 = vpack.c.bf16 %v1352_v35, %v1352_v35 }
 0x16e   :  { %1724 = vst.msk [vmem:[%s2981_s5 + $0x68] sm:$0xf] %vm1246_vm8, %v1305_v12  ;;  %v1356_v41 = vadd.f32 %v1340_v48, %v2528_v55  ;;  %v3068_v12 = vld [vmem:[#allocation34_spill] sm:$0xff]  ;;  %v1357_v52 = vadd.f32 %v1341_v50, %v2528_v55  ;;  %v1369_v15 = vpack.c.bf16 %v1353_v23, %v1353_v23  ;;  %v1370_v61 = vpack.c.bf16 %v1354_v16, %v1354_v16 }
 0x16f   :  { %1725 = vst.msk [vmem:[%s2981_s5 + $0x6c] sm:$0xf] %vm1246_vm8, %v1306_v14  ;;  %v1343_v59 = vmul.f32 %v2520_v2, %v3068_v12  ;;  %v1358_v14 = vadd.f32 %v1342_v62, %v2528_v55  ;;  %v1371_v27 = vpack.c.bf16 %v1355_v56, %v1355_v56  ;;  %v1395_v57 = vmul.f32 %v2520_v2, %v3071_v29 }
 0x170   :  { %1726 = vst.msk [vmem:[%s2981_s5 + $0x70] sm:$0xf] %vm1246_vm8, %v1307_v25  ;;  %v1393_v25 = vmul.f32 %v2520_v2, %v3069_v17  ;;  %v1372_v3 = vpack.c.bf16 %v1356_v41, %v1356_v41  ;;  %v1373_v7 = vpack.c.bf16 %v1357_v52, %v1357_v52  ;;  %v1396_v54 = vmul.f32 %v2520_v2, %v3072_v31 }
 0x171   :  { %1727 = vst.msk [vmem:[%s2981_s5 + $0x74] sm:$0xf] %vm1246_vm8, %v1308_v44  ;;  %v1359_v30 = vadd.f32 %v1343_v59, %v2528_v55  ;;  %v1394_v44 = vmul.f32 %v2520_v2, %v3070_v6  ;;  %v1374_v49 = vpack.c.bf16 %v1358_v14, %v1358_v14  ;;  %v1397_v33 = vmul.f32 %v2520_v2, %v3073_v1 }
 0x172   :  { %1728 = vst.msk [vmem:[%s2981_s5 + $0x78] sm:$0xf] %vm1246_vm8, %v1309_v43  ;;  %v1409_v43 = vadd.f32 %v1393_v25, %v2528_v55  ;;  %v1411_v63 = vadd.f32 %v1395_v57, %v2528_v55  ;;  %v1412_v37 = vadd.f32 %v1396_v54, %v2528_v55  ;;  %v1399_v20 = vmul.f32 %v2520_v2, %v3075_v13 }
 0x173   :  { %1729 = vst.msk [vmem:[%s2981_s5 + $0x7c] sm:$0xf] %vm1246_vm8, %v1310_v18  ;;  %v1410_v18 = vadd.f32 %v1394_v44, %v2528_v55  ;;  %v1375_v58 = vpack.c.bf16 %v1359_v30, %v1359_v30  ;;  %v1400_v0 = vmul.f32 %v2520_v2, %v3076_v8  ;;  %v1401_v26 = vmul.f32 %v2520_v2, %v3077_v34 }
 0x174   :  { %1730 = vst.msk [vmem:[%s2981_s5 + $0x80] sm:$0xf] %vm1246_vm8, %v1360_v36  ;;  %v1398_v36 = vmul.f32 %v2520_v2, %v3074_v21  ;;  %v1425_v47 = vpack.c.bf16 %v1409_v43, %v1409_v43  ;;  %v1415_v46 = vadd.f32 %v1399_v20, %v2528_v55  ;;  %v1427_v19 = vpack.c.bf16 %v1411_v63, %v1411_v63 }
 0x175   :  { %1731 = vst.msk [vmem:[%s2981_s5 + $0x84] sm:$0xf] %vm1246_vm8, %v1361_v40  ;;  %v1413_v40 = vadd.f32 %v1397_v33, %v2528_v55  ;;  %v1426_v60 = vpack.c.bf16 %v1410_v18, %v1410_v18  ;;  %v1416_v32 = vadd.f32 %v1400_v0, %v2528_v55  ;;  %v1428_v35 = vpack.c.bf16 %v1412_v37, %v1412_v37 }
 0x176   :  { %1732 = vst.msk [vmem:[%s2981_s5 + $0x88] sm:$0xf] %vm1246_vm8, %v1362_v9  ;;  %v1414_v9 = vadd.f32 %v1398_v36, %v2528_v55  ;;  %v1417_v28 = vadd.f32 %v1401_v26, %v2528_v55  ;;  %v1431_v56 = vpack.c.bf16 %v1415_v46, %v1415_v46 }
 0x177   :  { %1733 = vst.msk [vmem:[%s2981_s5 + $0x8c] sm:$0xf] %vm1246_vm8, %v1363_v4  ;;  %v3078_v4 = vld [vmem:[#allocation21_spill] sm:$0xff]  ;;  %v1429_v23 = vpack.c.bf16 %v1413_v40, %v1413_v40  ;;  %v1432_v41 = vpack.c.bf16 %v1416_v32, %v1416_v32 }
 0x178   :  { %1734 = vst.msk [vmem:[%s2981_s5 + $0x90] sm:$0xf] %vm1246_vm8, %v1364_v10  ;;  %v1402_v39 = vmul.f32 %v2520_v2, %v3078_v4  ;;  %v3079_v10 = vld [vmem:[#allocation23_spill] sm:$0xff]  ;;  %v1430_v16 = vpack.c.bf16 %v1414_v9, %v1414_v9  ;;  %v1433_v52 = vpack.c.bf16 %v1417_v28, %v1417_v28 }
 0x179   :  { %1735 = vst.msk [vmem:[%s2981_s5 + $0x94] sm:$0xf] %vm1246_vm8, %v1365_v38  ;;  %v1403_v22 = vmul.f32 %v2520_v2, %v3079_v10  ;;  %v3080_v38 = vld [vmem:[#allocation25_spill] sm:$0xff] }
 0x17a   :  { %1736 = vst.msk [vmem:[%s2981_s5 + $0x98] sm:$0xf] %vm1246_vm8, %v1366_v53  ;;  %v1404_v45 = vmul.f32 %v2520_v2, %v3080_v38  ;;  %v1418_v48 = vadd.f32 %v1402_v39, %v2528_v55  ;;  %v3081_v53 = vld [vmem:[#allocation28_spill] sm:$0xff] }
 0x17b   :  { %1737 = vst.msk [vmem:[%s2981_s5 + $0x9c] sm:$0xf] %vm1246_vm8, %v1367_v42  ;;  %v1405_v11 = vmul.f32 %v2520_v2, %v3081_v53  ;;  %v1419_v50 = vadd.f32 %v1403_v22, %v2528_v55  ;;  %v3082_v42 = vld [vmem:[#allocation31_spill] sm:$0xff] }
 0x17c   :  { %1738 = vst.msk [vmem:[%s2981_s5 + $0xa0] sm:$0xf] %vm1246_vm8, %v1368_v24  ;;  %v1406_v5 = vmul.f32 %v2520_v2, %v3082_v42  ;;  %v1420_v62 = vadd.f32 %v1404_v45, %v2528_v55  ;;  %v3083_v24 = vld [vmem:[#allocation33_spill] sm:$0xff]  ;;  %v1434_v14 = vpack.c.bf16 %v1418_v48, %v1418_v48 }
 0x17d   :  { %1739 = vst.msk [vmem:[%s2981_s5 + $0xa4] sm:$0xf] %vm1246_vm8, %v1369_v15  ;;  %v1407_v12 = vmul.f32 %v2520_v2, %v3083_v24  ;;  %v1421_v59 = vadd.f32 %v1405_v11, %v2528_v55  ;;  %v1435_v17 = vpack.c.bf16 %v1419_v50, %v1419_v50 }
 0x17e   :  { %1740 = vst.msk [vmem:[%s2981_s5 + $0xa8] sm:$0xf] %vm1246_vm8, %v1370_v61  ;;  %v1422_v15 = vadd.f32 %v1406_v5, %v2528_v55  ;;  %v1436_v2 = vpack.c.bf16 %v1420_v62, %v1420_v62 }
 0x17f   :  { %1741 = vst.msk [vmem:[%s2981_s5 + $0xac] sm:$0xf] %vm1246_vm8, %v1371_v27  ;;  %v1423_v61 = vadd.f32 %v1407_v12, %v2528_v55  ;;  %v1437_v25 = vpack.c.bf16 %v1421_v59, %v1421_v59  ;;  %v1440_v27 = vpack.c.bf16 %v2786_v51, %v2786_v51 }
 0x180   :  { %1742 = vst.msk [vmem:[%s2981_s5 + $0xb0] sm:$0xf] %vm1246_vm8, %v1372_v3  ;;  %v1438_v30 = vpack.c.bf16 %v1422_v15, %v1422_v15 }
 0x181   :  { %1743 = vst.msk [vmem:[%s2981_s5 + $0xb4] sm:$0xf] %vm1246_vm8, %v1373_v7  ;;  %v1439_v55 = vpack.c.bf16 %v1423_v61, %v1423_v61 }
 0x182   :  { %1744 = vst.msk [vmem:[%s2981_s5 + $0xb8] sm:$0xf] %vm1246_vm8, %v1374_v49 }
 0x183   :  { %1745 = vst.msk [vmem:[%s2981_s5 + $0xbc] sm:$0xf] %vm1246_vm8, %v1375_v58 }
 0x184   :  { %1746 = vst.msk [vmem:[%s2981_s5 + $0xc0] sm:$0xf] %vm1246_vm8, %v1425_v47 }
 0x185   :  { %1747 = vst.msk [vmem:[%s2981_s5 + $0xc4] sm:$0xf] %vm1246_vm8, %v1426_v60 }
 0x186   :  { %1748 = vst.msk [vmem:[%s2981_s5 + $0xc8] sm:$0xf] %vm1246_vm8, %v1427_v19 }
 0x187   :  { %1749 = vst.msk [vmem:[%s2981_s5 + $0xcc] sm:$0xf] %vm1246_vm8, %v1428_v35 }
 0x188   :  { %1750 = vst.msk [vmem:[%s2981_s5 + $0xd0] sm:$0xf] %vm1246_vm8, %v1429_v23 }
 0x189   :  { %1751 = vst.msk [vmem:[%s2981_s5 + $0xd4] sm:$0xf] %vm1246_vm8, %v1430_v16 }
 0x18a   :  { %1752 = vst.msk [vmem:[%s2981_s5 + $0xd8] sm:$0xf] %vm1246_vm8, %v1431_v56 }
 0x18b   :  { %1753 = vst.msk [vmem:[%s2981_s5 + $0xdc] sm:$0xf] %vm1246_vm8, %v1432_v41 }
 0x18c   :  { %1754 = vst.msk [vmem:[%s2981_s5 + $0xe0] sm:$0xf] %vm1246_vm8, %v1433_v52 }
 0x18d   :  { %1755 = vst.msk [vmem:[%s2981_s5 + $0xe4] sm:$0xf] %vm1246_vm8, %v1434_v14 }
 0x18e   :  { %1756 = vst.msk [vmem:[%s2981_s5 + $0xe8] sm:$0xf] %vm1246_vm8, %v1435_v17 }
 0x18f   :  { %1757 = vst.msk [vmem:[%s2981_s5 + $0xec] sm:$0xf] %vm1246_vm8, %v1436_v2 }
 0x190   :  { %1758 = vst.msk [vmem:[%s2981_s5 + $0xf0] sm:$0xf] %vm1246_vm8, %v1437_v25 }
 0x191   :  { %1759 = vst.msk [vmem:[%s2981_s5 + $0xf4] sm:$0xf] %vm1246_vm8, %v1438_v30 }
 0x192   :  { %1760 = vst.msk [vmem:[%s2981_s5 + $0xf8] sm:$0xf] %vm1246_vm8, %v1439_v55 }
 0x193   :  { %1761 = vst.msk [vmem:[%s2981_s5 + $0xfc] sm:$0xf] %vm1246_vm8, %v1440_v27 }

// kernel: cae_forward.17
= control target key start
LH: loop header
LB: loop body
LE: loop exit
PB: predicated region body
PF: predicated region fallthrough
CT: control target
= control target key end

     0   :  { %vm253_vm0 = vcmask 130048   ;;  %vm711_vm1 = vcmask 7168   ;;  %s6113_s1 = inlined_call_operand.vmem [shape: bf16[4,16,1], index: 1, kind: input, shape index: {}]   ;;  %s6114_s0 = inlined_call_operand.vmem [shape: bf16[4,512,16], index: 0, kind: input, shape index: {}]   ;;  %s6115_s2 = inlined_call_operand.<no memory space> [shape: f32[1,1], index: 2, kind: input, shape index: {}]   ;;  %s6116_s3 = inlined_call_operand.vmem [shape: f32[4,512,1], index: 3, kind: output, shape index: {}]  }
   0x1   :  { %v4138_v0 = vld [vmem:[%s6113_s1] sm:$0xff]  ;;  %v4171_v1 = vld [vmem:[%s6113_s1 + $0x8] sm:$0xff]  ;;  %v4204_v2 = vld [vmem:[%s6113_s1 + $0x10] sm:$0xff]  ;;  %v8_v28 = vstv %s6115_s2 }
   0x2   :  { %v4237_v3 = vld [vmem:[%s6113_s1 + $0x18] sm:$0xff]  ;;  %v4106_v4 = vld [vmem:[%s6114_s0] sm:$0xff]  ;;  %357 = vmatpush.bf16.msra.mxu0 %v4138_v0  ;;  %1117 = vmatpush.bf16.msra.mxu1 %v4171_v1  ;;  %v4107_v8 = vld [vmem:[%s6114_s0 + $0x8] sm:$0xff]  ;;  %9 = vst [vmem:[#allocation2] sm:$0x1] %v8_v28 }
   0x3   :  { %v4139_v5 = vld [vmem:[%s6114_s0 + $0x100] sm:$0xff]  ;;  %1877 = vmatpush.bf16.msra.mxu2 %v4204_v2  ;;  %2637 = vmatpush.bf16.msra.mxu3 %v4237_v3  ;;  %v4140_v9 = vld [vmem:[%s6114_s0 + $0x108] sm:$0xff]  ;;  %v4108_v12 = vld [vmem:[%s6114_s0 + $0x10] sm:$0xff] }
   0x4   :  { %v4172_v6 = vld [vmem:[%s6114_s0 + $0x200] sm:$0xff]  ;;  %v4173_v10 = vld [vmem:[%s6114_s0 + $0x208] sm:$0xff]  ;;  %v4141_v13 = vld [vmem:[%s6114_s0 + $0x110] sm:$0xff] }
   0x5   :  { %v4205_v7 = vld [vmem:[%s6114_s0 + $0x300] sm:$0xff]  ;;  %3192 = vmatmul.msk.bf16.vlgmr.msra.gmra.mxu0 %vm253_vm0, %v4106_v4  ;;  %3422 = vmatmul.msk.bf16.vlgmr.msra.gmra.mxu1 %vm253_vm0, %v4139_v5  ;;  %v4206_v11 = vld [vmem:[%s6114_s0 + $0x308] sm:$0xff]  ;;  %v4174_v14 = vld [vmem:[%s6114_s0 + $0x210] sm:$0xff] }
   0x6   :  { %3716 = vmatmul.msk.bf16.vlgmr.msra.gmra.mxu2 %vm253_vm0, %v4172_v6  ;;  %4010 = vmatmul.msk.bf16.vlgmr.msra.gmra.mxu3 %vm253_vm0, %v4205_v7  ;;  %v4207_v15 = vld [vmem:[%s6114_s0 + $0x310] sm:$0xff]  ;;  %v4109_v16 = vld [vmem:[%s6114_s0 + $0x18] sm:$0xff]  ;;  %v4110_v20 = vld [vmem:[%s6114_s0 + $0x20] sm:$0xff] }
   0x7   :  { %v4142_v17 = vld [vmem:[%s6114_s0 + $0x118] sm:$0xff]  ;;  %v4143_v21 = vld [vmem:[%s6114_s0 + $0x120] sm:$0xff]  ;;  %v4111_v24 = vld [vmem:[%s6114_s0 + $0x28] sm:$0xff] }
   0x8   :  { %v4175_v18 = vld [vmem:[%s6114_s0 + $0x218] sm:$0xff]  ;;  %v4176_v22 = vld [vmem:[%s6114_s0 + $0x220] sm:$0xff]  ;;  %v4144_v25 = vld [vmem:[%s6114_s0 + $0x128] sm:$0xff] }
   0x9   :  { %v4208_v19 = vld [vmem:[%s6114_s0 + $0x318] sm:$0xff]  ;;  %v4209_v23 = vld [vmem:[%s6114_s0 + $0x320] sm:$0xff]  ;;  %v4177_v26 = vld [vmem:[%s6114_s0 + $0x228] sm:$0xff] }
   0xa   :  { %v4210_v27 = vld [vmem:[%s6114_s0 + $0x328] sm:$0xff]  ;;  %v4112_v29 = vld [vmem:[%s6114_s0 + $0x30] sm:$0xff]  ;;  %v4113_v33 = vld [vmem:[%s6114_s0 + $0x38] sm:$0xff] }
   0xb   :  { %v4145_v30 = vld [vmem:[%s6114_s0 + $0x130] sm:$0xff]  ;;  %v4146_v34 = vld [vmem:[%s6114_s0 + $0x138] sm:$0xff]  ;;  %v4417_v37 = vld [vmem:[#allocation2] ss:$0 sm:$0xff] }
   0xc   :  { %v4178_v31 = vld [vmem:[%s6114_s0 + $0x230] sm:$0xff]  ;;  %v4179_v35 = vld [vmem:[%s6114_s0 + $0x238] sm:$0xff]  ;;  %v4419_v38 = vld [vmem:[#allocation2] ss:$0 sm:$0xff] }
   0xd   :  { %v4211_v32 = vld [vmem:[%s6114_s0 + $0x330] sm:$0xff]  ;;  %v4212_v36 = vld [vmem:[%s6114_s0 + $0x338] sm:$0xff]  ;;  %v4114_v39 = vld [vmem:[%s6114_s0 + $0x40] sm:$0xff] }
   0xe   :  { %v4147_v40 = vld [vmem:[%s6114_s0 + $0x140] sm:$0xff]  ;;  %v4115_v7 = vld [vmem:[%s6114_s0 + $0x48] sm:$0xff] }
   0xf   :  { %v4180_v43 = vld [vmem:[%s6114_s0 + $0x240] sm:$0xff] }
  0x10   :  { %v4213_v44 = vld [vmem:[%s6114_s0 + $0x340] sm:$0xff] }
  0x11   :  { %v4439_v49 = vld [vmem:[#allocation2] ss:$0 sm:$0xff] }
  0x12   :  { %v4441_v50 = vld [vmem:[#allocation2] ss:$0 sm:$0xff] }
  0x15   :  { %3193 = vmatmul.msk.bf16.gmra.mxu0 %vm253_vm0, %v4107_v8  ;;  %3423 = vmatmul.msk.bf16.gmra.mxu1 %vm253_vm0, %v4140_v9  ;;  %v4148_v8 = vld [vmem:[%s6114_s0 + $0x148] sm:$0xff] }
  0x16   :  { %3717 = vmatmul.msk.bf16.gmra.mxu2 %vm253_vm0, %v4173_v10  ;;  %4011 = vmatmul.msk.bf16.gmra.mxu3 %vm253_vm0, %v4206_v11 }
  0x25   :  { %3194 = vmatmul.msk.bf16.gmra.mxu0 %vm253_vm0, %v4108_v12  ;;  %3424 = vmatmul.msk.bf16.gmra.mxu1 %vm253_vm0, %v4141_v13  ;;  %v4181_v13 = vld [vmem:[%s6114_s0 + $0x248] sm:$0xff] }
  0x26   :  { %3718 = vmatmul.msk.bf16.gmra.mxu2 %vm253_vm0, %v4174_v14  ;;  %4012 = vmatmul.msk.bf16.gmra.mxu3 %vm253_vm0, %v4207_v15  ;;  %v4214_v14 = vld [vmem:[%s6114_s0 + $0x348] sm:$0xff] }
  0x35   :  { %3195 = vmatmul.msk.bf16.gmra.mxu0 %vm253_vm0, %v4109_v16  ;;  %3425 = vmatmul.msk.bf16.gmra.mxu1 %vm253_vm0, %v4142_v17 }
  0x36   :  { %3719 = vmatmul.msk.bf16.gmra.mxu2 %vm253_vm0, %v4175_v18  ;;  %4013 = vmatmul.msk.bf16.gmra.mxu3 %vm253_vm0, %v4208_v19 }
  0x45   :  { %3196 = vmatmul.msk.bf16.gmra.mxu0 %vm253_vm0, %v4110_v20  ;;  %3426 = vmatmul.msk.bf16.gmra.mxu1 %vm253_vm0, %v4143_v21 }
  0x46   :  { %3720 = vmatmul.msk.bf16.gmra.mxu2 %vm253_vm0, %v4176_v22  ;;  %4014 = vmatmul.msk.bf16.gmra.mxu3 %vm253_vm0, %v4209_v23 }
  0x55   :  { %3197 = vmatmul.msk.bf16.gmra.mxu0 %vm253_vm0, %v4111_v24  ;;  %3427 = vmatmul.msk.bf16.gmra.mxu1 %vm253_vm0, %v4144_v25 }
  0x56   :  { %3721 = vmatmul.msk.bf16.gmra.mxu2 %vm253_vm0, %v4177_v26  ;;  %4015 = vmatmul.msk.bf16.gmra.mxu3 %vm253_vm0, %v4210_v27 }
  0x65   :  { %3198 = vmatmul.msk.bf16.gmra.mxu0 %vm253_vm0, %v4112_v29  ;;  %3428 = vmatmul.msk.bf16.gmra.mxu1 %vm253_vm0, %v4145_v30 }
  0x66   :  { %3722 = vmatmul.msk.bf16.gmra.mxu2 %vm253_vm0, %v4178_v31  ;;  %4016 = vmatmul.msk.bf16.gmra.mxu3 %vm253_vm0, %v4211_v32 }
  0x75   :  { %3199 = vmatmul.msk.bf16.gmra.mxu0 %vm253_vm0, %v4113_v33  ;;  %3429 = vmatmul.msk.bf16.gmra.mxu1 %vm253_vm0, %v4146_v34 }
  0x76   :  { %3723 = vmatmul.msk.bf16.gmra.mxu2 %vm253_vm0, %v4179_v35  ;;  %4017 = vmatmul.msk.bf16.gmra.mxu3 %vm253_vm0, %v4212_v36 }
  0x82   :  { %v359_v41 = vpop.f32.mrf.mxu0  ;;  %v1119_v42 = vpop.f32.mrf.mxu1 }
  0x83   :  { %v360_v45 = vadd.f32 %v4417_v37, %v359_v41  ;;  %v1120_v46 = vadd.f32 %v4419_v38, %v1119_v42 }
  0x85   :  { %vm519_vm2 = vcmp.ge.f32.partialorder %v360_v45, 0.0  ;;  %v583_v47 = vmul.f32 0.25, %v360_v45  ;;  %vm1279_vm3 = vcmp.ge.f32.partialorder %v1120_v46, 0.0  ;;  %v1343_v48 = vmul.f32 0.25, %v1120_v46  ;;  %3200 = vmatmul.msk.bf16.gmra.mxu0 %vm253_vm0, %v4114_v39  ;;  %3430 = vmatmul.msk.bf16.gmra.mxu1 %vm253_vm0, %v4147_v40 }
  0x86   :  { %3724 = vmatmul.msk.bf16.gmra.mxu2 %vm253_vm0, %v4180_v43  ;;  %4018 = vmatmul.msk.bf16.gmra.mxu3 %vm253_vm0, %v4213_v44 }
  0x87   :  { %v647_v51 = vsel %vm519_vm2, %v360_v45, %v583_v47  ;;  %v1407_v52 = vsel %vm1279_vm3, %v1120_v46, %v1343_v48  ;;  %v4116_v45 = vld [vmem:[%s6114_s0 + $0x50] sm:$0xff] }
  0x88   :  { %712 = vst.msk [vmem:[%s6116_s3] sm:$0xff] %vm711_vm1, %v647_v51  ;;  %v4149_v46 = vld [vmem:[%s6114_s0 + $0x150] sm:$0xff] }
  0x89   :  { %3454 = vst.msk [vmem:[%s6116_s3 + $0x200] sm:$0xff] %vm711_vm1, %v1407_v52  ;;  %v1879_v53 = vpop.f32.mrf.mxu2  ;;  %v2639_v54 = vpop.f32.mrf.mxu3 }
  0x8a   :  { %v1880_v55 = vadd.f32 %v4439_v49, %v1879_v53  ;;  %v2640_v56 = vadd.f32 %v4441_v50, %v2639_v54  ;;  %v361_v57 = vpop.f32.mrf.mxu0  ;;  %v1121_v58 = vpop.f32.mrf.mxu1  ;;  %v4182_v53 = vld [vmem:[%s6114_s0 + $0x250] sm:$0xff] }
  0x8b   :  { %v362_v59 = vadd.f32 %v4417_v37, %v361_v57  ;;  %v1122_v60 = vadd.f32 %v4419_v38, %v1121_v58  ;;  %v4215_v54 = vld [vmem:[%s6114_s0 + $0x350] sm:$0xff] }
  0x8c   :  { %vm2039_vm4 = vcmp.ge.f32.partialorder %v1880_v55, 0.0  ;;  %v2103_v61 = vmul.f32 0.25, %v1880_v55  ;;  %vm2799_vm5 = vcmp.ge.f32.partialorder %v2640_v56, 0.0  ;;  %v2863_v62 = vmul.f32 0.25, %v2640_v56 }
  0x8d   :  { %vm520_vm6 = vcmp.ge.f32.partialorder %v362_v59, 0.0  ;;  %v584_v63 = vmul.f32 0.25, %v362_v59  ;;  %vm1280_vm7 = vcmp.ge.f32.partialorder %v1122_v60, 0.0  ;;  %v1344_v0 = vmul.f32 0.25, %v1122_v60 }
  0x8e   :  { %v2167_v1 = vsel %vm2039_vm4, %v1880_v55, %v2103_v61  ;;  %v2927_v2 = vsel %vm2799_vm5, %v2640_v56, %v2863_v62 }
  0x8f   :  { %3748 = vst.msk [vmem:[%s6116_s3 + $0x400] sm:$0xff] %vm711_vm1, %v2167_v1  ;;  %v648_v3 = vsel %vm520_vm6, %v362_v59, %v584_v63  ;;  %v1408_v4 = vsel %vm1280_vm7, %v1122_v60, %v1344_v0 }
  0x90   :  { %4042 = vst.msk [vmem:[%s6116_s3 + $0x600] sm:$0xff] %vm711_vm1, %v2927_v2 }
  0x91   :  { %713 = vst.msk [vmem:[%s6116_s3 + $0x8] sm:$0xff] %vm711_vm1, %v648_v3  ;;  %v1881_v5 = vpop.f32.mrf.mxu2  ;;  %v2641_v6 = vpop.f32.mrf.mxu3 }
  0x92   :  { %3455 = vst.msk [vmem:[%s6116_s3 + $0x208] sm:$0xff] %vm711_vm1, %v1408_v4  ;;  %v1882_v9 = vadd.f32 %v4439_v49, %v1881_v5  ;;  %v2642_v10 = vadd.f32 %v4441_v50, %v2641_v6  ;;  %v364_v11 = vpop.f32.mrf.mxu0  ;;  %v1124_v12 = vpop.f32.mrf.mxu1 }
  0x93   :  { %v365_v15 = vadd.f32 %v4417_v37, %v364_v11  ;;  %v1125_v16 = vadd.f32 %v4419_v38, %v1124_v12 }
  0x94   :  { %vm2040_vm8 = vcmp.ge.f32.partialorder %v1882_v9, 0.0  ;;  %v2104_v17 = vmul.f32 0.25, %v1882_v9  ;;  %vm2800_vm9 = vcmp.ge.f32.partialorder %v2642_v10, 0.0  ;;  %v2864_v18 = vmul.f32 0.25, %v2642_v10 }
  0x95   :  { %vm521_vm10 = vcmp.ge.f32.partialorder %v365_v15, 0.0  ;;  %v585_v19 = vmul.f32 0.25, %v365_v15  ;;  %vm1281_vm11 = vcmp.ge.f32.partialorder %v1125_v16, 0.0  ;;  %v1345_v20 = vmul.f32 0.25, %v1125_v16  ;;  %3201 = vmatmul.msk.bf16.gmra.mxu0 %vm253_vm0, %v4115_v7  ;;  %3431 = vmatmul.msk.bf16.gmra.mxu1 %vm253_vm0, %v4148_v8 }
  0x96   :  { %v2168_v21 = vsel %vm2040_vm8, %v1882_v9, %v2104_v17  ;;  %v2928_v22 = vsel %vm2800_vm9, %v2642_v10, %v2864_v18  ;;  %3725 = vmatmul.msk.bf16.gmra.mxu2 %vm253_vm0, %v4181_v13  ;;  %4019 = vmatmul.msk.bf16.gmra.mxu3 %vm253_vm0, %v4214_v14 }
  0x97   :  { %3749 = vst.msk [vmem:[%s6116_s3 + $0x408] sm:$0xff] %vm711_vm1, %v2168_v21  ;;  %v649_v23 = vsel %vm521_vm10, %v365_v15, %v585_v19  ;;  %v1409_v24 = vsel %vm1281_vm11, %v1125_v16, %v1345_v20  ;;  %v4117_v19 = vld [vmem:[%s6114_s0 + $0x58] sm:$0xff] }
  0x98   :  { %4043 = vst.msk [vmem:[%s6116_s3 + $0x608] sm:$0xff] %vm711_vm1, %v2928_v22  ;;  %v4150_v20 = vld [vmem:[%s6114_s0 + $0x158] sm:$0xff] }
  0x99   :  { %714 = vst.msk [vmem:[%s6116_s3 + $0x10] sm:$0xff] %vm711_vm1, %v649_v23  ;;  %v1884_v25 = vpop.f32.mrf.mxu2  ;;  %v2644_v26 = vpop.f32.mrf.mxu3 }
  0x9a   :  { %3456 = vst.msk [vmem:[%s6116_s3 + $0x210] sm:$0xff] %vm711_vm1, %v1409_v24  ;;  %v1885_v27 = vadd.f32 %v4439_v49, %v1884_v25  ;;  %v2645_v28 = vadd.f32 %v4441_v50, %v2644_v26  ;;  %v366_v29 = vpop.f32.mrf.mxu0  ;;  %v1126_v30 = vpop.f32.mrf.mxu1  ;;  %v4183_v25 = vld [vmem:[%s6114_s0 + $0x258] sm:$0xff] }
  0x9b   :  { %v367_v31 = vadd.f32 %v4417_v37, %v366_v29  ;;  %v1127_v32 = vadd.f32 %v4419_v38, %v1126_v30  ;;  %v4216_v26 = vld [vmem:[%s6114_s0 + $0x358] sm:$0xff] }
  0x9c   :  { %vm2041_vm12 = vcmp.ge.f32.partialorder %v1885_v27, 0.0  ;;  %v2105_v33 = vmul.f32 0.25, %v1885_v27  ;;  %vm2801_vm13 = vcmp.ge.f32.partialorder %v2645_v28, 0.0  ;;  %v2865_v34 = vmul.f32 0.25, %v2645_v28 }
  0x9d   :  { %vm522_vm14 = vcmp.ge.f32.partialorder %v367_v31, 0.0  ;;  %v586_v35 = vmul.f32 0.25, %v367_v31  ;;  %vm1282_vm15 = vcmp.ge.f32.partialorder %v1127_v32, 0.0  ;;  %v1346_v36 = vmul.f32 0.25, %v1127_v32 }
  0x9e   :  { %v2169_v39 = vsel %vm2041_vm12, %v1885_v27, %v2105_v33  ;;  %v2929_v40 = vsel %vm2801_vm13, %v2645_v28, %v2865_v34 }
  0x9f   :  { %3750 = vst.msk [vmem:[%s6116_s3 + $0x410] sm:$0xff] %vm711_vm1, %v2169_v39  ;;  %v650_v41 = vsel %vm522_vm14, %v367_v31, %v586_v35  ;;  %v1410_v42 = vsel %vm1282_vm15, %v1127_v32, %v1346_v36 }
  0xa0   :  { %4044 = vst.msk [vmem:[%s6116_s3 + $0x610] sm:$0xff] %vm711_vm1, %v2929_v40 }
  0xa1   :  { %715 = vst.msk [vmem:[%s6116_s3 + $0x18] sm:$0xff] %vm711_vm1, %v650_v41  ;;  %v1886_v43 = vpop.f32.mrf.mxu2  ;;  %v2646_v44 = vpop.f32.mrf.mxu3 }
  0xa2   :  { %3457 = vst.msk [vmem:[%s6116_s3 + $0x218] sm:$0xff] %vm711_vm1, %v1410_v42  ;;  %v1887_v47 = vadd.f32 %v4439_v49, %v1886_v43  ;;  %v2647_v48 = vadd.f32 %v4441_v50, %v2646_v44  ;;  %v369_v51 = vpop.f32.mrf.mxu0  ;;  %v1129_v52 = vpop.f32.mrf.mxu1 }
  0xa3   :  { %v370_v55 = vadd.f32 %v4417_v37, %v369_v51  ;;  %v1130_v56 = vadd.f32 %v4419_v38, %v1129_v52 }
  0xa4   :  { %vm2042_vm2 = vcmp.ge.f32.partialorder %v1887_v47, 0.0  ;;  %v2106_v57 = vmul.f32 0.25, %v1887_v47  ;;  %vm2802_vm3 = vcmp.ge.f32.partialorder %v2647_v48, 0.0  ;;  %v2866_v58 = vmul.f32 0.25, %v2647_v48 }
  0xa5   :  { %vm523_vm4 = vcmp.ge.f32.partialorder %v370_v55, 0.0  ;;  %v587_v59 = vmul.f32 0.25, %v370_v55  ;;  %vm1283_vm5 = vcmp.ge.f32.partialorder %v1130_v56, 0.0  ;;  %v1347_v60 = vmul.f32 0.25, %v1130_v56  ;;  %3202 = vmatmul.msk.bf16.gmra.mxu0 %vm253_vm0, %v4116_v45  ;;  %3432 = vmatmul.msk.bf16.gmra.mxu1 %vm253_vm0, %v4149_v46 }
  0xa6   :  { %v2170_v61 = vsel %vm2042_vm2, %v1887_v47, %v2106_v57  ;;  %v2930_v62 = vsel %vm2802_vm3, %v2647_v48, %v2866_v58  ;;  %3726 = vmatmul.msk.bf16.gmra.mxu2 %vm253_vm0, %v4182_v53  ;;  %4020 = vmatmul.msk.bf16.gmra.mxu3 %vm253_vm0, %v4215_v54 }
  0xa7   :  { %3751 = vst.msk [vmem:[%s6116_s3 + $0x418] sm:$0xff] %vm711_vm1, %v2170_v61  ;;  %v651_v63 = vsel %vm523_vm4, %v370_v55, %v587_v59  ;;  %v1411_v0 = vsel %vm1283_vm5, %v1130_v56, %v1347_v60  ;;  %v4118_v59 = vld [vmem:[%s6114_s0 + $0x60] sm:$0xff] }
  0xa8   :  { %4045 = vst.msk [vmem:[%s6116_s3 + $0x618] sm:$0xff] %vm711_vm1, %v2930_v62  ;;  %v4151_v60 = vld [vmem:[%s6114_s0 + $0x160] sm:$0xff] }
  0xa9   :  { %716 = vst.msk [vmem:[%s6116_s3 + $0x20] sm:$0xff] %vm711_vm1, %v651_v63  ;;  %v1889_v1 = vpop.f32.mrf.mxu2  ;;  %v2649_v2 = vpop.f32.mrf.mxu3 }
  0xaa   :  { %3458 = vst.msk [vmem:[%s6116_s3 + $0x220] sm:$0xff] %vm711_vm1, %v1411_v0  ;;  %v1890_v3 = vadd.f32 %v4439_v49, %v1889_v1  ;;  %v2650_v4 = vadd.f32 %v4441_v50, %v2649_v2  ;;  %v371_v5 = vpop.f32.mrf.mxu0  ;;  %v1131_v6 = vpop.f32.mrf.mxu1  ;;  %v4184_v1 = vld [vmem:[%s6114_s0 + $0x260] sm:$0xff] }
  0xab   :  { %v372_v7 = vadd.f32 %v4417_v37, %v371_v5  ;;  %v1132_v8 = vadd.f32 %v4419_v38, %v1131_v6  ;;  %v4217_v2 = vld [vmem:[%s6114_s0 + $0x360] sm:$0xff] }
  0xac   :  { %vm2043_vm6 = vcmp.ge.f32.partialorder %v1890_v3, 0.0  ;;  %v2107_v9 = vmul.f32 0.25, %v1890_v3  ;;  %vm2803_vm7 = vcmp.ge.f32.partialorder %v2650_v4, 0.0  ;;  %v2867_v10 = vmul.f32 0.25, %v2650_v4 }
  0xad   :  { %vm524_vm8 = vcmp.ge.f32.partialorder %v372_v7, 0.0  ;;  %v588_v11 = vmul.f32 0.25, %v372_v7  ;;  %vm1284_vm9 = vcmp.ge.f32.partialorder %v1132_v8, 0.0  ;;  %v1348_v12 = vmul.f32 0.25, %v1132_v8 }
  0xae   :  { %v2171_v13 = vsel %vm2043_vm6, %v1890_v3, %v2107_v9  ;;  %v2931_v14 = vsel %vm2803_vm7, %v2650_v4, %v2867_v10 }
  0xaf   :  { %3752 = vst.msk [vmem:[%s6116_s3 + $0x420] sm:$0xff] %vm711_vm1, %v2171_v13  ;;  %v652_v15 = vsel %vm524_vm8, %v372_v7, %v588_v11  ;;  %v1412_v16 = vsel %vm1284_vm9, %v1132_v8, %v1348_v12 }
  0xb0   :  { %4046 = vst.msk [vmem:[%s6116_s3 + $0x620] sm:$0xff] %vm711_vm1, %v2931_v14 }
  0xb1   :  { %717 = vst.msk [vmem:[%s6116_s3 + $0x28] sm:$0xff] %vm711_vm1, %v652_v15  ;;  %v1891_v17 = vpop.f32.mrf.mxu2  ;;  %v2651_v18 = vpop.f32.mrf.mxu3 }
  0xb2   :  { %3459 = vst.msk [vmem:[%s6116_s3 + $0x228] sm:$0xff] %vm711_vm1, %v1412_v16  ;;  %v1892_v21 = vadd.f32 %v4439_v49, %v1891_v17  ;;  %v2652_v22 = vadd.f32 %v4441_v50, %v2651_v18  ;;  %v374_v23 = vpop.f32.mrf.mxu0  ;;  %v1134_v24 = vpop.f32.mrf.mxu1 }
  0xb3   :  { %v375_v27 = vadd.f32 %v4417_v37, %v374_v23  ;;  %v1135_v28 = vadd.f32 %v4419_v38, %v1134_v24 }
  0xb4   :  { %vm2044_vm10 = vcmp.ge.f32.partialorder %v1892_v21, 0.0  ;;  %v2108_v29 = vmul.f32 0.25, %v1892_v21  ;;  %vm2804_vm11 = vcmp.ge.f32.partialorder %v2652_v22, 0.0  ;;  %v2868_v30 = vmul.f32 0.25, %v2652_v22 }
  0xb5   :  { %vm525_vm12 = vcmp.ge.f32.partialorder %v375_v27, 0.0  ;;  %v589_v31 = vmul.f32 0.25, %v375_v27  ;;  %vm1285_vm13 = vcmp.ge.f32.partialorder %v1135_v28, 0.0  ;;  %v1349_v32 = vmul.f32 0.25, %v1135_v28  ;;  %3203 = vmatmul.msk.bf16.gmra.mxu0 %vm253_vm0, %v4117_v19  ;;  %3433 = vmatmul.msk.bf16.gmra.mxu1 %vm253_vm0, %v4150_v20 }
  0xb6   :  { %v2172_v33 = vsel %vm2044_vm10, %v1892_v21, %v2108_v29  ;;  %v2932_v34 = vsel %vm2804_vm11, %v2652_v22, %v2868_v30  ;;  %3727 = vmatmul.msk.bf16.gmra.mxu2 %vm253_vm0, %v4183_v25  ;;  %4021 = vmatmul.msk.bf16.gmra.mxu3 %vm253_vm0, %v4216_v26 }
  0xb7   :  { %3753 = vst.msk [vmem:[%s6116_s3 + $0x428] sm:$0xff] %vm711_vm1, %v2172_v33  ;;  %v653_v35 = vsel %vm525_vm12, %v375_v27, %v589_v31  ;;  %v1413_v36 = vsel %vm1285_vm13, %v1135_v28, %v1349_v32  ;;  %v4119_v31 = vld [vmem:[%s6114_s0 + $0x68] sm:$0xff] }
  0xb8   :  { %4047 = vst.msk [vmem:[%s6116_s3 + $0x628] sm:$0xff] %vm711_vm1, %v2932_v34  ;;  %v4152_v32 = vld [vmem:[%s6114_s0 + $0x168] sm:$0xff] }
  0xb9   :  { %718 = vst.msk [vmem:[%s6116_s3 + $0x30] sm:$0xff] %vm711_vm1, %v653_v35  ;;  %v1894_v39 = vpop.f32.mrf.mxu2  ;;  %v2654_v40 = vpop.f32.mrf.mxu3 }
  0xba   :  { %3460 = vst.msk [vmem:[%s6116_s3 + $0x230] sm:$0xff] %vm711_vm1, %v1413_v36  ;;  %v1895_v41 = vadd.f32 %v4439_v49, %v1894_v39  ;;  %v2655_v42 = vadd.f32 %v4441_v50, %v2654_v40  ;;  %v376_v43 = vpop.f32.mrf.mxu0  ;;  %v1136_v44 = vpop.f32.mrf.mxu1  ;;  %v4185_v39 = vld [vmem:[%s6114_s0 + $0x268] sm:$0xff] }
  0xbb   :  { %v377_v45 = vadd.f32 %v4417_v37, %v376_v43  ;;  %v1137_v46 = vadd.f32 %v4419_v38, %v1136_v44  ;;  %v4218_v40 = vld [vmem:[%s6114_s0 + $0x368] sm:$0xff] }
  0xbc   :  { %vm2045_vm14 = vcmp.ge.f32.partialorder %v1895_v41, 0.0  ;;  %v2109_v47 = vmul.f32 0.25, %v1895_v41  ;;  %vm2805_vm15 = vcmp.ge.f32.partialorder %v2655_v42, 0.0  ;;  %v2869_v48 = vmul.f32 0.25, %v2655_v42 }
  0xbd   :  { %vm526_vm2 = vcmp.ge.f32.partialorder %v377_v45, 0.0  ;;  %v590_v51 = vmul.f32 0.25, %v377_v45  ;;  %vm1286_vm3 = vcmp.ge.f32.partialorder %v1137_v46, 0.0  ;;  %v1350_v52 = vmul.f32 0.25, %v1137_v46 }
  0xbe   :  { %v2173_v53 = vsel %vm2045_vm14, %v1895_v41, %v2109_v47  ;;  %v2933_v54 = vsel %vm2805_vm15, %v2655_v42, %v2869_v48 }
  0xbf   :  { %3754 = vst.msk [vmem:[%s6116_s3 + $0x430] sm:$0xff] %vm711_vm1, %v2173_v53  ;;  %v654_v55 = vsel %vm526_vm2, %v377_v45, %v590_v51  ;;  %v1414_v56 = vsel %vm1286_vm3, %v1137_v46, %v1350_v52 }
  0xc0   :  { %4048 = vst.msk [vmem:[%s6116_s3 + $0x630] sm:$0xff] %vm711_vm1, %v2933_v54 }
  0xc1   :  { %719 = vst.msk [vmem:[%s6116_s3 + $0x38] sm:$0xff] %vm711_vm1, %v654_v55  ;;  %v1896_v57 = vpop.f32.mrf.mxu2  ;;  %v2656_v58 = vpop.f32.mrf.mxu3 }
  0xc2   :  { %3461 = vst.msk [vmem:[%s6116_s3 + $0x238] sm:$0xff] %vm711_vm1, %v1414_v56  ;;  %v1897_v61 = vadd.f32 %v4439_v49, %v1896_v57  ;;  %v2657_v62 = vadd.f32 %v4441_v50, %v2656_v58  ;;  %v379_v63 = vpop.f32.mrf.mxu0  ;;  %v1139_v0 = vpop.f32.mrf.mxu1 }
  0xc3   :  { %v380_v3 = vadd.f32 %v4417_v37, %v379_v63  ;;  %v1140_v4 = vadd.f32 %v4419_v38, %v1139_v0 }
  0xc4   :  { %vm2046_vm4 = vcmp.ge.f32.partialorder %v1897_v61, 0.0  ;;  %v2110_v5 = vmul.f32 0.25, %v1897_v61  ;;  %vm2806_vm5 = vcmp.ge.f32.partialorder %v2657_v62, 0.0  ;;  %v2870_v6 = vmul.f32 0.25, %v2657_v62 }
  0xc5   :  { %vm527_vm6 = vcmp.ge.f32.partialorder %v380_v3, 0.0  ;;  %v591_v7 = vmul.f32 0.25, %v380_v3  ;;  %vm1287_vm7 = vcmp.ge.f32.partialorder %v1140_v4, 0.0  ;;  %v1351_v8 = vmul.f32 0.25, %v1140_v4  ;;  %3204 = vmatmul.msk.bf16.gmra.mxu0 %vm253_vm0, %v4118_v59  ;;  %3434 = vmatmul.msk.bf16.gmra.mxu1 %vm253_vm0, %v4151_v60 }
  0xc6   :  { %v2174_v9 = vsel %vm2046_vm4, %v1897_v61, %v2110_v5  ;;  %v2934_v10 = vsel %vm2806_vm5, %v2657_v62, %v2870_v6  ;;  %3728 = vmatmul.msk.bf16.gmra.mxu2 %vm253_vm0, %v4184_v1  ;;  %4022 = vmatmul.msk.bf16.gmra.mxu3 %vm253_vm0, %v4217_v2 }
  0xc7   :  { %3755 = vst.msk [vmem:[%s6116_s3 + $0x438] sm:$0xff] %vm711_vm1, %v2174_v9  ;;  %v655_v11 = vsel %vm527_vm6, %v380_v3, %v591_v7  ;;  %v1415_v12 = vsel %vm1287_vm7, %v1140_v4, %v1351_v8  ;;  %v4120_v7 = vld [vmem:[%s6114_s0 + $0x70] sm:$0xff] }
  0xc8   :  { %4049 = vst.msk [vmem:[%s6116_s3 + $0x638] sm:$0xff] %vm711_vm1, %v2934_v10  ;;  %v4153_v8 = vld [vmem:[%s6114_s0 + $0x170] sm:$0xff] }
  0xc9   :  { %720 = vst.msk [vmem:[%s6116_s3 + $0x40] sm:$0xff] %vm711_vm1, %v655_v11  ;;  %v1899_v13 = vpop.f32.mrf.mxu2  ;;  %v2659_v14 = vpop.f32.mrf.mxu3 }
  0xca   :  { %3462 = vst.msk [vmem:[%s6116_s3 + $0x240] sm:$0xff] %vm711_vm1, %v1415_v12  ;;  %v1900_v15 = vadd.f32 %v4439_v49, %v1899_v13  ;;  %v2660_v16 = vadd.f32 %v4441_v50, %v2659_v14  ;;  %v381_v17 = vpop.f32.mrf.mxu0  ;;  %v1141_v18 = vpop.f32.mrf.mxu1  ;;  %v4186_v13 = vld [vmem:[%s6114_s0 + $0x270] sm:$0xff] }
  0xcb   :  { %v382_v19 = vadd.f32 %v4417_v37, %v381_v17  ;;  %v1142_v20 = vadd.f32 %v4419_v38, %v1141_v18  ;;  %v4219_v14 = vld [vmem:[%s6114_s0 + $0x370] sm:$0xff] }
  0xcc   :  { %vm2047_vm8 = vcmp.ge.f32.partialorder %v1900_v15, 0.0  ;;  %v2111_v21 = vmul.f32 0.25, %v1900_v15  ;;  %vm2807_vm9 = vcmp.ge.f32.partialorder %v2660_v16, 0.0  ;;  %v2871_v22 = vmul.f32 0.25, %v2660_v16 }
  0xcd   :  { %vm528_vm10 = vcmp.ge.f32.partialorder %v382_v19, 0.0  ;;  %v592_v23 = vmul.f32 0.25, %v382_v19  ;;  %vm1288_vm11 = vcmp.ge.f32.partialorder %v1142_v20, 0.0  ;;  %v1352_v24 = vmul.f32 0.25, %v1142_v20 }
  0xce   :  { %v2175_v25 = vsel %vm2047_vm8, %v1900_v15, %v2111_v21  ;;  %v2935_v26 = vsel %vm2807_vm9, %v2660_v16, %v2871_v22 }
  0xcf   :  { %3756 = vst.msk [vmem:[%s6116_s3 + $0x440] sm:$0xff] %vm711_vm1, %v2175_v25  ;;  %v656_v27 = vsel %vm528_vm10, %v382_v19, %v592_v23  ;;  %v1416_v28 = vsel %vm1288_vm11, %v1142_v20, %v1352_v24 }
  0xd0   :  { %4050 = vst.msk [vmem:[%s6116_s3 + $0x640] sm:$0xff] %vm711_vm1, %v2935_v26 }
  0xd1   :  { %721 = vst.msk [vmem:[%s6116_s3 + $0x48] sm:$0xff] %vm711_vm1, %v656_v27  ;;  %v1901_v29 = vpop.f32.mrf.mxu2  ;;  %v2661_v30 = vpop.f32.mrf.mxu3 }
  0xd2   :  { %3463 = vst.msk [vmem:[%s6116_s3 + $0x248] sm:$0xff] %vm711_vm1, %v1416_v28  ;;  %v1902_v33 = vadd.f32 %v4439_v49, %v1901_v29  ;;  %v2662_v34 = vadd.f32 %v4441_v50, %v2661_v30  ;;  %v384_v35 = vpop.f32.mrf.mxu0  ;;  %v1144_v36 = vpop.f32.mrf.mxu1 }
  0xd3   :  { %v385_v41 = vadd.f32 %v4417_v37, %v384_v35  ;;  %v1145_v42 = vadd.f32 %v4419_v38, %v1144_v36 }
  0xd4   :  { %vm2048_vm12 = vcmp.ge.f32.partialorder %v1902_v33, 0.0  ;;  %v2112_v43 = vmul.f32 0.25, %v1902_v33  ;;  %vm2808_vm13 = vcmp.ge.f32.partialorder %v2662_v34, 0.0  ;;  %v2872_v44 = vmul.f32 0.25, %v2662_v34 }
  0xd5   :  { %vm529_vm14 = vcmp.ge.f32.partialorder %v385_v41, 0.0  ;;  %v593_v45 = vmul.f32 0.25, %v385_v41  ;;  %vm1289_vm15 = vcmp.ge.f32.partialorder %v1145_v42, 0.0  ;;  %v1353_v46 = vmul.f32 0.25, %v1145_v42  ;;  %3205 = vmatmul.msk.bf16.gmra.mxu0 %vm253_vm0, %v4119_v31  ;;  %3435 = vmatmul.msk.bf16.gmra.mxu1 %vm253_vm0, %v4152_v32 }
  0xd6   :  { %v2176_v47 = vsel %vm2048_vm12, %v1902_v33, %v2112_v43  ;;  %v2936_v48 = vsel %vm2808_vm13, %v2662_v34, %v2872_v44  ;;  %3729 = vmatmul.msk.bf16.gmra.mxu2 %vm253_vm0, %v4185_v39  ;;  %4023 = vmatmul.msk.bf16.gmra.mxu3 %vm253_vm0, %v4218_v40 }
  0xd7   :  { %3757 = vst.msk [vmem:[%s6116_s3 + $0x448] sm:$0xff] %vm711_vm1, %v2176_v47  ;;  %v657_v51 = vsel %vm529_vm14, %v385_v41, %v593_v45  ;;  %v1417_v52 = vsel %vm1289_vm15, %v1145_v42, %v1353_v46  ;;  %v4121_v45 = vld [vmem:[%s6114_s0 + $0x78] sm:$0xff] }
  0xd8   :  { %4051 = vst.msk [vmem:[%s6116_s3 + $0x648] sm:$0xff] %vm711_vm1, %v2936_v48  ;;  %v4154_v46 = vld [vmem:[%s6114_s0 + $0x178] sm:$0xff] }
  0xd9   :  { %722 = vst.msk [vmem:[%s6116_s3 + $0x50] sm:$0xff] %vm711_vm1, %v657_v51  ;;  %v1904_v53 = vpop.f32.mrf.mxu2  ;;  %v2664_v54 = vpop.f32.mrf.mxu3 }
  0xda   :  { %3464 = vst.msk [vmem:[%s6116_s3 + $0x250] sm:$0xff] %vm711_vm1, %v1417_v52  ;;  %v1905_v55 = vadd.f32 %v4439_v49, %v1904_v53  ;;  %v2665_v56 = vadd.f32 %v4441_v50, %v2664_v54  ;;  %v386_v57 = vpop.f32.mrf.mxu0  ;;  %v1146_v58 = vpop.f32.mrf.mxu1  ;;  %v4187_v53 = vld [vmem:[%s6114_s0 + $0x278] sm:$0xff] }
  0xdb   :  { %v387_v59 = vadd.f32 %v4417_v37, %v386_v57  ;;  %v1147_v60 = vadd.f32 %v4419_v38, %v1146_v58  ;;  %v4220_v54 = vld [vmem:[%s6114_s0 + $0x378] sm:$0xff] }
  0xdc   :  { %vm2049_vm2 = vcmp.ge.f32.partialorder %v1905_v55, 0.0  ;;  %v2113_v61 = vmul.f32 0.25, %v1905_v55  ;;  %vm2809_vm3 = vcmp.ge.f32.partialorder %v2665_v56, 0.0  ;;  %v2873_v62 = vmul.f32 0.25, %v2665_v56 }
  0xdd   :  { %vm530_vm4 = vcmp.ge.f32.partialorder %v387_v59, 0.0  ;;  %v594_v63 = vmul.f32 0.25, %v387_v59  ;;  %vm1290_vm5 = vcmp.ge.f32.partialorder %v1147_v60, 0.0  ;;  %v1354_v0 = vmul.f32 0.25, %v1147_v60 }
  0xde   :  { %v2177_v1 = vsel %vm2049_vm2, %v1905_v55, %v2113_v61  ;;  %v2937_v2 = vsel %vm2809_vm3, %v2665_v56, %v2873_v62 }
  0xdf   :  { %3758 = vst.msk [vmem:[%s6116_s3 + $0x450] sm:$0xff] %vm711_vm1, %v2177_v1  ;;  %v658_v3 = vsel %vm530_vm4, %v387_v59, %v594_v63  ;;  %v1418_v4 = vsel %vm1290_vm5, %v1147_v60, %v1354_v0 }
  0xe0   :  { %4052 = vst.msk [vmem:[%s6116_s3 + $0x650] sm:$0xff] %vm711_vm1, %v2937_v2 }
  0xe1   :  { %723 = vst.msk [vmem:[%s6116_s3 + $0x58] sm:$0xff] %vm711_vm1, %v658_v3  ;;  %v1906_v5 = vpop.f32.mrf.mxu2  ;;  %v2666_v6 = vpop.f32.mrf.mxu3 }
  0xe2   :  { %3465 = vst.msk [vmem:[%s6116_s3 + $0x258] sm:$0xff] %vm711_vm1, %v1418_v4  ;;  %v1907_v9 = vadd.f32 %v4439_v49, %v1906_v5  ;;  %v2667_v10 = vadd.f32 %v4441_v50, %v2666_v6  ;;  %v389_v11 = vpop.f32.mrf.mxu0  ;;  %v1149_v12 = vpop.f32.mrf.mxu1 }
  0xe3   :  { %v390_v15 = vadd.f32 %v4417_v37, %v389_v11  ;;  %v1150_v16 = vadd.f32 %v4419_v38, %v1149_v12 }
  0xe4   :  { %vm2050_vm6 = vcmp.ge.f32.partialorder %v1907_v9, 0.0  ;;  %v2114_v17 = vmul.f32 0.25, %v1907_v9  ;;  %vm2810_vm7 = vcmp.ge.f32.partialorder %v2667_v10, 0.0  ;;  %v2874_v18 = vmul.f32 0.25, %v2667_v10 }
  0xe5   :  { %vm531_vm8 = vcmp.ge.f32.partialorder %v390_v15, 0.0  ;;  %v595_v19 = vmul.f32 0.25, %v390_v15  ;;  %vm1291_vm9 = vcmp.ge.f32.partialorder %v1150_v16, 0.0  ;;  %v1355_v20 = vmul.f32 0.25, %v1150_v16  ;;  %3206 = vmatmul.msk.bf16.gmra.mxu0 %vm253_vm0, %v4120_v7  ;;  %3436 = vmatmul.msk.bf16.gmra.mxu1 %vm253_vm0, %v4153_v8 }
  0xe6   :  { %v2178_v21 = vsel %vm2050_vm6, %v1907_v9, %v2114_v17  ;;  %v2938_v22 = vsel %vm2810_vm7, %v2667_v10, %v2874_v18  ;;  %3730 = vmatmul.msk.bf16.gmra.mxu2 %vm253_vm0, %v4186_v13  ;;  %4024 = vmatmul.msk.bf16.gmra.mxu3 %vm253_vm0, %v4219_v14 }
  0xe7   :  { %3759 = vst.msk [vmem:[%s6116_s3 + $0x458] sm:$0xff] %vm711_vm1, %v2178_v21  ;;  %v659_v23 = vsel %vm531_vm8, %v390_v15, %v595_v19  ;;  %v1419_v24 = vsel %vm1291_vm9, %v1150_v16, %v1355_v20  ;;  %v4122_v19 = vld [vmem:[%s6114_s0 + $0x80] sm:$0xff] }
  0xe8   :  { %4053 = vst.msk [vmem:[%s6116_s3 + $0x658] sm:$0xff] %vm711_vm1, %v2938_v22  ;;  %v4155_v20 = vld [vmem:[%s6114_s0 + $0x180] sm:$0xff] }
  0xe9   :  { %724 = vst.msk [vmem:[%s6116_s3 + $0x60] sm:$0xff] %vm711_vm1, %v659_v23  ;;  %v1909_v25 = vpop.f32.mrf.mxu2  ;;  %v2669_v26 = vpop.f32.mrf.mxu3 }
  0xea   :  { %3466 = vst.msk [vmem:[%s6116_s3 + $0x260] sm:$0xff] %vm711_vm1, %v1419_v24  ;;  %v1910_v27 = vadd.f32 %v4439_v49, %v1909_v25  ;;  %v2670_v28 = vadd.f32 %v4441_v50, %v2669_v26  ;;  %v391_v29 = vpop.f32.mrf.mxu0  ;;  %v1151_v30 = vpop.f32.mrf.mxu1  ;;  %v4188_v25 = vld [vmem:[%s6114_s0 + $0x280] sm:$0xff] }
  0xeb   :  { %v392_v31 = vadd.f32 %v4417_v37, %v391_v29  ;;  %v1152_v32 = vadd.f32 %v4419_v38, %v1151_v30  ;;  %v4221_v26 = vld [vmem:[%s6114_s0 + $0x380] sm:$0xff] }
  0xec   :  { %vm2051_vm10 = vcmp.ge.f32.partialorder %v1910_v27, 0.0  ;;  %v2115_v33 = vmul.f32 0.25, %v1910_v27  ;;  %vm2811_vm11 = vcmp.ge.f32.partialorder %v2670_v28, 0.0  ;;  %v2875_v34 = vmul.f32 0.25, %v2670_v28 }
  0xed   :  { %vm532_vm12 = vcmp.ge.f32.partialorder %v392_v31, 0.0  ;;  %v596_v35 = vmul.f32 0.25, %v392_v31  ;;  %vm1292_vm13 = vcmp.ge.f32.partialorder %v1152_v32, 0.0  ;;  %v1356_v36 = vmul.f32 0.25, %v1152_v32 }
  0xee   :  { %v2179_v39 = vsel %vm2051_vm10, %v1910_v27, %v2115_v33  ;;  %v2939_v40 = vsel %vm2811_vm11, %v2670_v28, %v2875_v34 }
  0xef   :  { %3760 = vst.msk [vmem:[%s6116_s3 + $0x460] sm:$0xff] %vm711_vm1, %v2179_v39  ;;  %v660_v41 = vsel %vm532_vm12, %v392_v31, %v596_v35  ;;  %v1420_v42 = vsel %vm1292_vm13, %v1152_v32, %v1356_v36 }
  0xf0   :  { %4054 = vst.msk [vmem:[%s6116_s3 + $0x660] sm:$0xff] %vm711_vm1, %v2939_v40 }
  0xf1   :  { %725 = vst.msk [vmem:[%s6116_s3 + $0x68] sm:$0xff] %vm711_vm1, %v660_v41  ;;  %v1911_v43 = vpop.f32.mrf.mxu2  ;;  %v2671_v44 = vpop.f32.mrf.mxu3 }
  0xf2   :  { %3467 = vst.msk [vmem:[%s6116_s3 + $0x268] sm:$0xff] %vm711_vm1, %v1420_v42  ;;  %v1912_v47 = vadd.f32 %v4439_v49, %v1911_v43  ;;  %v2672_v48 = vadd.f32 %v4441_v50, %v2671_v44  ;;  %v394_v51 = vpop.f32.mrf.mxu0  ;;  %v1154_v52 = vpop.f32.mrf.mxu1 }
  0xf3   :  { %v395_v55 = vadd.f32 %v4417_v37, %v394_v51  ;;  %v1155_v56 = vadd.f32 %v4419_v38, %v1154_v52 }
  0xf4   :  { %vm2052_vm14 = vcmp.ge.f32.partialorder %v1912_v47, 0.0  ;;  %v2116_v57 = vmul.f32 0.25, %v1912_v47  ;;  %vm2812_vm15 = vcmp.ge.f32.partialorder %v2672_v48, 0.0  ;;  %v2876_v58 = vmul.f32 0.25, %v2672_v48 }
  0xf5   :  { %vm533_vm2 = vcmp.ge.f32.partialorder %v395_v55, 0.0  ;;  %v597_v59 = vmul.f32 0.25, %v395_v55  ;;  %vm1293_vm3 = vcmp.ge.f32.partialorder %v1155_v56, 0.0  ;;  %v1357_v60 = vmul.f32 0.25, %v1155_v56  ;;  %3207 = vmatmul.msk.bf16.gmra.mxu0 %vm253_vm0, %v4121_v45  ;;  %3437 = vmatmul.msk.bf16.gmra.mxu1 %vm253_vm0, %v4154_v46 }
  0xf6   :  { %v2180_v61 = vsel %vm2052_vm14, %v1912_v47, %v2116_v57  ;;  %v2940_v62 = vsel %vm2812_vm15, %v2672_v48, %v2876_v58  ;;  %3731 = vmatmul.msk.bf16.gmra.mxu2 %vm253_vm0, %v4187_v53  ;;  %4025 = vmatmul.msk.bf16.gmra.mxu3 %vm253_vm0, %v4220_v54 }
  0xf7   :  { %3761 = vst.msk [vmem:[%s6116_s3 + $0x468] sm:$0xff] %vm711_vm1, %v2180_v61  ;;  %v661_v63 = vsel %vm533_vm2, %v395_v55, %v597_v59  ;;  %v1421_v0 = vsel %vm1293_vm3, %v1155_v56, %v1357_v60  ;;  %v4123_v59 = vld [vmem:[%s6114_s0 + $0x88] sm:$0xff] }
  0xf8   :  { %4055 = vst.msk [vmem:[%s6116_s3 + $0x668] sm:$0xff] %vm711_vm1, %v2940_v62  ;;  %v4156_v60 = vld [vmem:[%s6114_s0 + $0x188] sm:$0xff] }
  0xf9   :  { %726 = vst.msk [vmem:[%s6116_s3 + $0x70] sm:$0xff] %vm711_vm1, %v661_v63  ;;  %v1914_v1 = vpop.f32.mrf.mxu2  ;;  %v2674_v2 = vpop.f32.mrf.mxu3 }
  0xfa   :  { %3468 = vst.msk [vmem:[%s6116_s3 + $0x270] sm:$0xff] %vm711_vm1, %v1421_v0  ;;  %v1915_v3 = vadd.f32 %v4439_v49, %v1914_v1  ;;  %v2675_v4 = vadd.f32 %v4441_v50, %v2674_v2  ;;  %v396_v5 = vpop.f32.mrf.mxu0  ;;  %v1156_v6 = vpop.f32.mrf.mxu1  ;;  %v4189_v1 = vld [vmem:[%s6114_s0 + $0x288] sm:$0xff] }
  0xfb   :  { %v397_v7 = vadd.f32 %v4417_v37, %v396_v5  ;;  %v1157_v8 = vadd.f32 %v4419_v38, %v1156_v6  ;;  %v4222_v2 = vld [vmem:[%s6114_s0 + $0x388] sm:$0xff] }
  0xfc   :  { %vm2053_vm4 = vcmp.ge.f32.partialorder %v1915_v3, 0.0  ;;  %v2117_v9 = vmul.f32 0.25, %v1915_v3  ;;  %vm2813_vm5 = vcmp.ge.f32.partialorder %v2675_v4, 0.0  ;;  %v2877_v10 = vmul.f32 0.25, %v2675_v4 }
  0xfd   :  { %vm534_vm6 = vcmp.ge.f32.partialorder %v397_v7, 0.0  ;;  %v598_v11 = vmul.f32 0.25, %v397_v7  ;;  %vm1294_vm7 = vcmp.ge.f32.partialorder %v1157_v8, 0.0  ;;  %v1358_v12 = vmul.f32 0.25, %v1157_v8 }
  0xfe   :  { %v2181_v13 = vsel %vm2053_vm4, %v1915_v3, %v2117_v9  ;;  %v2941_v14 = vsel %vm2813_vm5, %v2675_v4, %v2877_v10 }
  0xff   :  { %3762 = vst.msk [vmem:[%s6116_s3 + $0x470] sm:$0xff] %vm711_vm1, %v2181_v13  ;;  %v662_v15 = vsel %vm534_vm6, %v397_v7, %v598_v11  ;;  %v1422_v16 = vsel %vm1294_vm7, %v1157_v8, %v1358_v12  ;;  %v4955_v11 = vld [vmem:[#allocation2] ss:$0 sm:$0xff] }
 0x100   :  { %4056 = vst.msk [vmem:[%s6116_s3 + $0x670] sm:$0xff] %vm711_vm1, %v2941_v14  ;;  %v4958_v13 = vld [vmem:[#allocation2] ss:$0 sm:$0xff] }
 0x101   :  { %727 = vst.msk [vmem:[%s6116_s3 + $0x78] sm:$0xff] %vm711_vm1, %v662_v15  ;;  %v1916_v17 = vpop.f32.mrf.mxu2  ;;  %v2676_v18 = vpop.f32.mrf.mxu3 }
 0x102   :  { %3469 = vst.msk [vmem:[%s6116_s3 + $0x278] sm:$0xff] %vm711_vm1, %v1422_v16  ;;  %v1917_v21 = vadd.f32 %v4439_v49, %v1916_v17  ;;  %v2677_v22 = vadd.f32 %v4441_v50, %v2676_v18  ;;  %v399_v23 = vpop.f32.mrf.mxu0  ;;  %v1159_v24 = vpop.f32.mrf.mxu1  ;;  %v4961_v17 = vld [vmem:[#allocation2] ss:$0 sm:$0xff] }
 0x103   :  { %v400_v27 = vadd.f32 %v4417_v37, %v399_v23  ;;  %v1160_v28 = vadd.f32 %v4419_v38, %v1159_v24 }
 0x104   :  { %vm2054_vm8 = vcmp.ge.f32.partialorder %v1917_v21, 0.0  ;;  %v2118_v29 = vmul.f32 0.25, %v1917_v21  ;;  %vm2814_vm9 = vcmp.ge.f32.partialorder %v2677_v22, 0.0  ;;  %v2878_v30 = vmul.f32 0.25, %v2677_v22 }
 0x105   :  { %vm535_vm10 = vcmp.ge.f32.partialorder %v400_v27, 0.0  ;;  %v599_v31 = vmul.f32 0.25, %v400_v27  ;;  %vm1295_vm11 = vcmp.ge.f32.partialorder %v1160_v28, 0.0  ;;  %v1359_v32 = vmul.f32 0.25, %v1160_v28  ;;  %3208 = vmatmul.msk.bf16.gmra.mxu0 %vm253_vm0, %v4122_v19  ;;  %3438 = vmatmul.msk.bf16.gmra.mxu1 %vm253_vm0, %v4155_v20  ;;  %v4964_v19 = vld [vmem:[#allocation2] ss:$0 sm:$0xff] }
 0x106   :  { %v2182_v33 = vsel %vm2054_vm8, %v1917_v21, %v2118_v29  ;;  %v2942_v34 = vsel %vm2814_vm9, %v2677_v22, %v2878_v30  ;;  %3732 = vmatmul.msk.bf16.gmra.mxu2 %vm253_vm0, %v4188_v25  ;;  %4026 = vmatmul.msk.bf16.gmra.mxu3 %vm253_vm0, %v4221_v26 }
 0x107   :  { %3763 = vst.msk [vmem:[%s6116_s3 + $0x478] sm:$0xff] %vm711_vm1, %v2182_v33  ;;  %v663_v35 = vsel %vm535_vm10, %v400_v27, %v599_v31  ;;  %v1423_v36 = vsel %vm1295_vm11, %v1160_v28, %v1359_v32  ;;  %v4124_v31 = vld [vmem:[%s6114_s0 + $0x90] sm:$0xff] }
 0x108   :  { %4057 = vst.msk [vmem:[%s6116_s3 + $0x678] sm:$0xff] %vm711_vm1, %v2942_v34  ;;  %v4157_v32 = vld [vmem:[%s6114_s0 + $0x190] sm:$0xff] }
 0x109   :  { %728 = vst.msk [vmem:[%s6116_s3 + $0x80] sm:$0xff] %vm711_vm1, %v663_v35  ;;  %v1919_v39 = vpop.f32.mrf.mxu2  ;;  %v2679_v40 = vpop.f32.mrf.mxu3 }
 0x10a   :  { %3470 = vst.msk [vmem:[%s6116_s3 + $0x280] sm:$0xff] %vm711_vm1, %v1423_v36  ;;  %v1920_v41 = vadd.f32 %v4439_v49, %v1919_v39  ;;  %v2680_v42 = vadd.f32 %v4441_v50, %v2679_v40  ;;  %v401_v43 = vpop.f32.mrf.mxu0  ;;  %v1161_v44 = vpop.f32.mrf.mxu1  ;;  %v4190_v39 = vld [vmem:[%s6114_s0 + $0x290] sm:$0xff] }
 0x10b   :  { %v402_v45 = vadd.f32 %v4417_v37, %v401_v43  ;;  %v1162_v46 = vadd.f32 %v4419_v38, %v1161_v44  ;;  %v4223_v40 = vld [vmem:[%s6114_s0 + $0x390] sm:$0xff] }
 0x10c   :  { %vm2055_vm12 = vcmp.ge.f32.partialorder %v1920_v41, 0.0  ;;  %v2119_v47 = vmul.f32 0.25, %v1920_v41  ;;  %vm2815_vm13 = vcmp.ge.f32.partialorder %v2680_v42, 0.0  ;;  %v2879_v48 = vmul.f32 0.25, %v2680_v42 }
 0x10d   :  { %vm536_vm14 = vcmp.ge.f32.partialorder %v402_v45, 0.0  ;;  %v600_v51 = vmul.f32 0.25, %v402_v45  ;;  %vm1296_vm15 = vcmp.ge.f32.partialorder %v1162_v46, 0.0  ;;  %v1360_v52 = vmul.f32 0.25, %v1162_v46 }
 0x10e   :  { %v2183_v53 = vsel %vm2055_vm12, %v1920_v41, %v2119_v47  ;;  %v2943_v54 = vsel %vm2815_vm13, %v2680_v42, %v2879_v48 }
 0x10f   :  { %3764 = vst.msk [vmem:[%s6116_s3 + $0x480] sm:$0xff] %vm711_vm1, %v2183_v53  ;;  %v664_v55 = vsel %vm536_vm14, %v402_v45, %v600_v51  ;;  %v1424_v56 = vsel %vm1296_vm15, %v1162_v46, %v1360_v52 }
 0x110   :  { %4058 = vst.msk [vmem:[%s6116_s3 + $0x680] sm:$0xff] %vm711_vm1, %v2943_v54 }
 0x111   :  { %729 = vst.msk [vmem:[%s6116_s3 + $0x88] sm:$0xff] %vm711_vm1, %v664_v55  ;;  %v1921_v57 = vpop.f32.mrf.mxu2  ;;  %v2681_v58 = vpop.f32.mrf.mxu3 }
 0x112   :  { %3471 = vst.msk [vmem:[%s6116_s3 + $0x288] sm:$0xff] %vm711_vm1, %v1424_v56  ;;  %v1922_v61 = vadd.f32 %v4439_v49, %v1921_v57  ;;  %v2682_v62 = vadd.f32 %v4441_v50, %v2681_v58  ;;  %v404_v63 = vpop.f32.mrf.mxu0  ;;  %v1164_v0 = vpop.f32.mrf.mxu1 }
 0x113   :  { %v405_v3 = vadd.f32 %v4417_v37, %v404_v63  ;;  %v1165_v4 = vadd.f32 %v4419_v38, %v1164_v0 }
 0x114   :  { %vm2056_vm2 = vcmp.ge.f32.partialorder %v1922_v61, 0.0  ;;  %v2120_v5 = vmul.f32 0.25, %v1922_v61  ;;  %vm2816_vm3 = vcmp.ge.f32.partialorder %v2682_v62, 0.0  ;;  %v2880_v49 = vmul.f32 0.25, %v2682_v62 }
 0x115   :  { %vm537_vm4 = vcmp.ge.f32.partialorder %v405_v3, 0.0  ;;  %v601_v50 = vmul.f32 0.25, %v405_v3  ;;  %vm1297_vm5 = vcmp.ge.f32.partialorder %v1165_v4, 0.0  ;;  %v1361_v6 = vmul.f32 0.25, %v1165_v4  ;;  %3209 = vmatmul.msk.bf16.gmra.mxu0 %vm253_vm0, %v4123_v59  ;;  %3439 = vmatmul.msk.bf16.gmra.mxu1 %vm253_vm0, %v4156_v60 }
 0x116   :  { %v2184_v7 = vsel %vm2056_vm2, %v1922_v61, %v2120_v5  ;;  %v2944_v8 = vsel %vm2816_vm3, %v2682_v62, %v2880_v49  ;;  %3733 = vmatmul.msk.bf16.gmra.mxu2 %vm253_vm0, %v4189_v1  ;;  %4027 = vmatmul.msk.bf16.gmra.mxu3 %vm253_vm0, %v4222_v2 }
 0x117   :  { %3765 = vst.msk [vmem:[%s6116_s3 + $0x488] sm:$0xff] %vm711_vm1, %v2184_v7  ;;  %v665_v37 = vsel %vm537_vm4, %v405_v3, %v601_v50  ;;  %v1425_v38 = vsel %vm1297_vm5, %v1165_v4, %v1361_v6  ;;  %v4125_v50 = vld [vmem:[%s6114_s0 + $0x98] sm:$0xff] }
 0x118   :  { %4059 = vst.msk [vmem:[%s6116_s3 + $0x688] sm:$0xff] %vm711_vm1, %v2944_v8  ;;  %v4158_v6 = vld [vmem:[%s6114_s0 + $0x198] sm:$0xff] }
 0x119   :  { %730 = vst.msk [vmem:[%s6116_s3 + $0x90] sm:$0xff] %vm711_vm1, %v665_v37  ;;  %v1924_v9 = vpop.f32.mrf.mxu2  ;;  %v2684_v10 = vpop.f32.mrf.mxu3 }
 0x11a   :  { %3472 = vst.msk [vmem:[%s6116_s3 + $0x290] sm:$0xff] %vm711_vm1, %v1425_v38  ;;  %v1925_v12 = vadd.f32 %v4955_v11, %v1924_v9  ;;  %v2685_v14 = vadd.f32 %v4958_v13, %v2684_v10  ;;  %v406_v15 = vpop.f32.mrf.mxu0  ;;  %v1166_v16 = vpop.f32.mrf.mxu1  ;;  %v4191_v9 = vld [vmem:[%s6114_s0 + $0x298] sm:$0xff] }
 0x11b   :  { %v407_v18 = vadd.f32 %v4961_v17, %v406_v15  ;;  %v1167_v20 = vadd.f32 %v4964_v19, %v1166_v16  ;;  %v4224_v10 = vld [vmem:[%s6114_s0 + $0x398] sm:$0xff] }
 0x11c   :  { %vm2057_vm6 = vcmp.ge.f32.partialorder %v1925_v12, 0.0  ;;  %v2121_v21 = vmul.f32 0.25, %v1925_v12  ;;  %vm2817_vm7 = vcmp.ge.f32.partialorder %v2685_v14, 0.0  ;;  %v2881_v22 = vmul.f32 0.25, %v2685_v14 }
 0x11d   :  { %vm538_vm8 = vcmp.ge.f32.partialorder %v407_v18, 0.0  ;;  %v602_v23 = vmul.f32 0.25, %v407_v18  ;;  %vm1298_vm9 = vcmp.ge.f32.partialorder %v1167_v20, 0.0  ;;  %v1362_v24 = vmul.f32 0.25, %v1167_v20 }
 0x11e   :  { %v2185_v25 = vsel %vm2057_vm6, %v1925_v12, %v2121_v21  ;;  %v2945_v26 = vsel %vm2817_vm7, %v2685_v14, %v2881_v22 }
 0x11f   :  { %3766 = vst.msk [vmem:[%s6116_s3 + $0x490] sm:$0xff] %vm711_vm1, %v2185_v25  ;;  %v666_v27 = vsel %vm538_vm8, %v407_v18, %v602_v23  ;;  %v1426_v28 = vsel %vm1298_vm9, %v1167_v20, %v1362_v24 }
 0x120   :  { %4060 = vst.msk [vmem:[%s6116_s3 + $0x690] sm:$0xff] %vm711_vm1, %v2945_v26 }
 0x121   :  { %731 = vst.msk [vmem:[%s6116_s3 + $0x98] sm:$0xff] %vm711_vm1, %v666_v27  ;;  %v1926_v29 = vpop.f32.mrf.mxu2  ;;  %v2686_v30 = vpop.f32.mrf.mxu3 }
 0x122   :  { %3473 = vst.msk [vmem:[%s6116_s3 + $0x298] sm:$0xff] %vm711_vm1, %v1426_v28  ;;  %v1927_v33 = vadd.f32 %v4955_v11, %v1926_v29  ;;  %v2687_v34 = vadd.f32 %v4958_v13, %v2686_v30  ;;  %v409_v35 = vpop.f32.mrf.mxu0  ;;  %v1169_v36 = vpop.f32.mrf.mxu1 }
 0x123   :  { %v410_v41 = vadd.f32 %v4961_v17, %v409_v35  ;;  %v1170_v42 = vadd.f32 %v4964_v19, %v1169_v36 }
 0x124   :  { %vm2058_vm10 = vcmp.ge.f32.partialorder %v1927_v33, 0.0  ;;  %v2122_v43 = vmul.f32 0.25, %v1927_v33  ;;  %vm2818_vm11 = vcmp.ge.f32.partialorder %v2687_v34, 0.0  ;;  %v2882_v44 = vmul.f32 0.25, %v2687_v34 }
 0x125   :  { %vm539_vm12 = vcmp.ge.f32.partialorder %v410_v41, 0.0  ;;  %v603_v45 = vmul.f32 0.25, %v410_v41  ;;  %vm1299_vm13 = vcmp.ge.f32.partialorder %v1170_v42, 0.0  ;;  %v1363_v46 = vmul.f32 0.25, %v1170_v42  ;;  %3210 = vmatmul.msk.bf16.gmra.mxu0 %vm253_vm0, %v4124_v31  ;;  %3440 = vmatmul.msk.bf16.gmra.mxu1 %vm253_vm0, %v4157_v32 }
 0x126   :  { %v2186_v47 = vsel %vm2058_vm10, %v1927_v33, %v2122_v43  ;;  %v2946_v48 = vsel %vm2818_vm11, %v2687_v34, %v2882_v44  ;;  %3734 = vmatmul.msk.bf16.gmra.mxu2 %vm253_vm0, %v4190_v39  ;;  %4028 = vmatmul.msk.bf16.gmra.mxu3 %vm253_vm0, %v4223_v40 }
 0x127   :  { %3767 = vst.msk [vmem:[%s6116_s3 + $0x498] sm:$0xff] %vm711_vm1, %v2186_v47  ;;  %v667_v51 = vsel %vm539_vm12, %v410_v41, %v603_v45  ;;  %v1427_v52 = vsel %vm1299_vm13, %v1170_v42, %v1363_v46  ;;  %v4126_v45 = vld [vmem:[%s6114_s0 + $0xa0] sm:$0xff] }
 0x128   :  { %4061 = vst.msk [vmem:[%s6116_s3 + $0x698] sm:$0xff] %vm711_vm1, %v2946_v48  ;;  %v4159_v46 = vld [vmem:[%s6114_s0 + $0x1a0] sm:$0xff] }
 0x129   :  { %732 = vst.msk [vmem:[%s6116_s3 + $0xa0] sm:$0xff] %vm711_vm1, %v667_v51  ;;  %v1929_v53 = vpop.f32.mrf.mxu2  ;;  %v2689_v54 = vpop.f32.mrf.mxu3 }
 0x12a   :  { %3474 = vst.msk [vmem:[%s6116_s3 + $0x2a0] sm:$0xff] %vm711_vm1, %v1427_v52  ;;  %v1930_v55 = vadd.f32 %v4955_v11, %v1929_v53  ;;  %v2690_v56 = vadd.f32 %v4958_v13, %v2689_v54  ;;  %v411_v57 = vpop.f32.mrf.mxu0  ;;  %v1171_v58 = vpop.f32.mrf.mxu1  ;;  %v4192_v53 = vld [vmem:[%s6114_s0 + $0x2a0] sm:$0xff] }
 0x12b   :  { %v412_v59 = vadd.f32 %v4961_v17, %v411_v57  ;;  %v1172_v60 = vadd.f32 %v4964_v19, %v1171_v58  ;;  %v4225_v54 = vld [vmem:[%s6114_s0 + $0x3a0] sm:$0xff] }
 0x12c   :  { %vm2059_vm14 = vcmp.ge.f32.partialorder %v1930_v55, 0.0  ;;  %v2123_v61 = vmul.f32 0.25, %v1930_v55  ;;  %vm2819_vm15 = vcmp.ge.f32.partialorder %v2690_v56, 0.0  ;;  %v2883_v62 = vmul.f32 0.25, %v2690_v56 }
 0x12d   :  { %vm540_vm2 = vcmp.ge.f32.partialorder %v412_v59, 0.0  ;;  %v604_v63 = vmul.f32 0.25, %v412_v59  ;;  %vm1300_vm3 = vcmp.ge.f32.partialorder %v1172_v60, 0.0  ;;  %v1364_v0 = vmul.f32 0.25, %v1172_v60 }
 0x12e   :  { %v2187_v1 = vsel %vm2059_vm14, %v1930_v55, %v2123_v61  ;;  %v2947_v2 = vsel %vm2819_vm15, %v2690_v56, %v2883_v62 }
 0x12f   :  { %3768 = vst.msk [vmem:[%s6116_s3 + $0x4a0] sm:$0xff] %vm711_vm1, %v2187_v1  ;;  %v668_v3 = vsel %vm540_vm2, %v412_v59, %v604_v63  ;;  %v1428_v4 = vsel %vm1300_vm3, %v1172_v60, %v1364_v0 }
 0x130   :  { %4062 = vst.msk [vmem:[%s6116_s3 + $0x6a0] sm:$0xff] %vm711_vm1, %v2947_v2 }
 0x131   :  { %733 = vst.msk [vmem:[%s6116_s3 + $0xa8] sm:$0xff] %vm711_vm1, %v668_v3  ;;  %v1931_v5 = vpop.f32.mrf.mxu2  ;;  %v2691_v49 = vpop.f32.mrf.mxu3 }
 0x132   :  { %3475 = vst.msk [vmem:[%s6116_s3 + $0x2a8] sm:$0xff] %vm711_vm1, %v1428_v4  ;;  %v1932_v7 = vadd.f32 %v4955_v11, %v1931_v5  ;;  %v2692_v8 = vadd.f32 %v4958_v13, %v2691_v49  ;;  %v414_v37 = vpop.f32.mrf.mxu0  ;;  %v1174_v38 = vpop.f32.mrf.mxu1 }
 0x133   :  { %v415_v12 = vadd.f32 %v4961_v17, %v414_v37  ;;  %v1175_v14 = vadd.f32 %v4964_v19, %v1174_v38 }
 0x134   :  { %vm2060_vm4 = vcmp.ge.f32.partialorder %v1932_v7, 0.0  ;;  %v2124_v15 = vmul.f32 0.25, %v1932_v7  ;;  %vm2820_vm5 = vcmp.ge.f32.partialorder %v2692_v8, 0.0  ;;  %v2884_v16 = vmul.f32 0.25, %v2692_v8 }
 0x135   :  { %vm541_vm6 = vcmp.ge.f32.partialorder %v415_v12, 0.0  ;;  %v605_v18 = vmul.f32 0.25, %v415_v12  ;;  %vm1301_vm7 = vcmp.ge.f32.partialorder %v1175_v14, 0.0  ;;  %v1365_v20 = vmul.f32 0.25, %v1175_v14  ;;  %3211 = vmatmul.msk.bf16.gmra.mxu0 %vm253_vm0, %v4125_v50  ;;  %3441 = vmatmul.msk.bf16.gmra.mxu1 %vm253_vm0, %v4158_v6 }
 0x136   :  { %v2188_v21 = vsel %vm2060_vm4, %v1932_v7, %v2124_v15  ;;  %v2948_v22 = vsel %vm2820_vm5, %v2692_v8, %v2884_v16  ;;  %3735 = vmatmul.msk.bf16.gmra.mxu2 %vm253_vm0, %v4191_v9  ;;  %4029 = vmatmul.msk.bf16.gmra.mxu3 %vm253_vm0, %v4224_v10 }
 0x137   :  { %3769 = vst.msk [vmem:[%s6116_s3 + $0x4a8] sm:$0xff] %vm711_vm1, %v2188_v21  ;;  %v669_v23 = vsel %vm541_vm6, %v415_v12, %v605_v18  ;;  %v1429_v24 = vsel %vm1301_vm7, %v1175_v14, %v1365_v20  ;;  %v4127_v18 = vld [vmem:[%s6114_s0 + $0xa8] sm:$0xff] }
 0x138   :  { %4063 = vst.msk [vmem:[%s6116_s3 + $0x6a8] sm:$0xff] %vm711_vm1, %v2948_v22  ;;  %v4160_v20 = vld [vmem:[%s6114_s0 + $0x1a8] sm:$0xff] }
 0x139   :  { %734 = vst.msk [vmem:[%s6116_s3 + $0xb0] sm:$0xff] %vm711_vm1, %v669_v23  ;;  %v1934_v25 = vpop.f32.mrf.mxu2  ;;  %v2694_v26 = vpop.f32.mrf.mxu3 }
 0x13a   :  { %3476 = vst.msk [vmem:[%s6116_s3 + $0x2b0] sm:$0xff] %vm711_vm1, %v1429_v24  ;;  %v1935_v27 = vadd.f32 %v4955_v11, %v1934_v25  ;;  %v2695_v28 = vadd.f32 %v4958_v13, %v2694_v26  ;;  %v416_v29 = vpop.f32.mrf.mxu0  ;;  %v1176_v30 = vpop.f32.mrf.mxu1  ;;  %v4193_v25 = vld [vmem:[%s6114_s0 + $0x2a8] sm:$0xff] }
 0x13b   :  { %v417_v31 = vadd.f32 %v4961_v17, %v416_v29  ;;  %v1177_v32 = vadd.f32 %v4964_v19, %v1176_v30  ;;  %v4226_v26 = vld [vmem:[%s6114_s0 + $0x3a8] sm:$0xff] }
 0x13c   :  { %vm2061_vm8 = vcmp.ge.f32.partialorder %v1935_v27, 0.0  ;;  %v2125_v33 = vmul.f32 0.25, %v1935_v27  ;;  %vm2821_vm9 = vcmp.ge.f32.partialorder %v2695_v28, 0.0  ;;  %v2885_v34 = vmul.f32 0.25, %v2695_v28 }
 0x13d   :  { %vm542_vm10 = vcmp.ge.f32.partialorder %v417_v31, 0.0  ;;  %v606_v35 = vmul.f32 0.25, %v417_v31  ;;  %vm1302_vm11 = vcmp.ge.f32.partialorder %v1177_v32, 0.0  ;;  %v1366_v36 = vmul.f32 0.25, %v1177_v32 }
 0x13e   :  { %v2189_v39 = vsel %vm2061_vm8, %v1935_v27, %v2125_v33  ;;  %v2949_v40 = vsel %vm2821_vm9, %v2695_v28, %v2885_v34 }
 0x13f   :  { %3770 = vst.msk [vmem:[%s6116_s3 + $0x4b0] sm:$0xff] %vm711_vm1, %v2189_v39  ;;  %v670_v41 = vsel %vm542_vm10, %v417_v31, %v606_v35  ;;  %v1430_v42 = vsel %vm1302_vm11, %v1177_v32, %v1366_v36 }
 0x140   :  { %4064 = vst.msk [vmem:[%s6116_s3 + $0x6b0] sm:$0xff] %vm711_vm1, %v2949_v40 }
 0x141   :  { %735 = vst.msk [vmem:[%s6116_s3 + $0xb8] sm:$0xff] %vm711_vm1, %v670_v41  ;;  %v1936_v43 = vpop.f32.mrf.mxu2  ;;  %v2696_v44 = vpop.f32.mrf.mxu3 }
 0x142   :  { %3477 = vst.msk [vmem:[%s6116_s3 + $0x2b8] sm:$0xff] %vm711_vm1, %v1430_v42  ;;  %v1937_v47 = vadd.f32 %v4955_v11, %v1936_v43  ;;  %v2697_v48 = vadd.f32 %v4958_v13, %v2696_v44  ;;  %v419_v51 = vpop.f32.mrf.mxu0  ;;  %v1179_v52 = vpop.f32.mrf.mxu1 }
 0x143   :  { %v420_v55 = vadd.f32 %v4961_v17, %v419_v51  ;;  %v1180_v56 = vadd.f32 %v4964_v19, %v1179_v52 }
 0x144   :  { %vm2062_vm12 = vcmp.ge.f32.partialorder %v1937_v47, 0.0  ;;  %v2126_v57 = vmul.f32 0.25, %v1937_v47  ;;  %vm2822_vm13 = vcmp.ge.f32.partialorder %v2697_v48, 0.0  ;;  %v2886_v58 = vmul.f32 0.25, %v2697_v48 }
 0x145   :  { %vm543_vm14 = vcmp.ge.f32.partialorder %v420_v55, 0.0  ;;  %v607_v59 = vmul.f32 0.25, %v420_v55  ;;  %vm1303_vm15 = vcmp.ge.f32.partialorder %v1180_v56, 0.0  ;;  %v1367_v60 = vmul.f32 0.25, %v1180_v56  ;;  %3212 = vmatmul.msk.bf16.gmra.mxu0 %vm253_vm0, %v4126_v45  ;;  %3442 = vmatmul.msk.bf16.gmra.mxu1 %vm253_vm0, %v4159_v46 }
 0x146   :  { %v2190_v61 = vsel %vm2062_vm12, %v1937_v47, %v2126_v57  ;;  %v2950_v62 = vsel %vm2822_vm13, %v2697_v48, %v2886_v58  ;;  %3736 = vmatmul.msk.bf16.gmra.mxu2 %vm253_vm0, %v4192_v53  ;;  %4030 = vmatmul.msk.bf16.gmra.mxu3 %vm253_vm0, %v4225_v54 }
 0x147   :  { %3771 = vst.msk [vmem:[%s6116_s3 + $0x4b8] sm:$0xff] %vm711_vm1, %v2190_v61  ;;  %v671_v63 = vsel %vm543_vm14, %v420_v55, %v607_v59  ;;  %v1431_v0 = vsel %vm1303_vm15, %v1180_v56, %v1367_v60  ;;  %v4128_v59 = vld [vmem:[%s6114_s0 + $0xb0] sm:$0xff] }
 0x148   :  { %4065 = vst.msk [vmem:[%s6116_s3 + $0x6b8] sm:$0xff] %vm711_vm1, %v2950_v62  ;;  %v4161_v60 = vld [vmem:[%s6114_s0 + $0x1b0] sm:$0xff] }
 0x149   :  { %736 = vst.msk [vmem:[%s6116_s3 + $0xc0] sm:$0xff] %vm711_vm1, %v671_v63  ;;  %v1939_v1 = vpop.f32.mrf.mxu2  ;;  %v2699_v2 = vpop.f32.mrf.mxu3 }
 0x14a   :  { %3478 = vst.msk [vmem:[%s6116_s3 + $0x2c0] sm:$0xff] %vm711_vm1, %v1431_v0  ;;  %v1940_v3 = vadd.f32 %v4955_v11, %v1939_v1  ;;  %v2700_v4 = vadd.f32 %v4958_v13, %v2699_v2  ;;  %v421_v5 = vpop.f32.mrf.mxu0  ;;  %v1181_v49 = vpop.f32.mrf.mxu1  ;;  %v4194_v1 = vld [vmem:[%s6114_s0 + $0x2b0] sm:$0xff] }
 0x14b   :  { %v422_v50 = vadd.f32 %v4961_v17, %v421_v5  ;;  %v1182_v6 = vadd.f32 %v4964_v19, %v1181_v49  ;;  %v4227_v2 = vld [vmem:[%s6114_s0 + $0x3b0] sm:$0xff] }
 0x14c   :  { %vm2063_vm2 = vcmp.ge.f32.partialorder %v1940_v3, 0.0  ;;  %v2127_v7 = vmul.f32 0.25, %v1940_v3  ;;  %vm2823_vm3 = vcmp.ge.f32.partialorder %v2700_v4, 0.0  ;;  %v2887_v8 = vmul.f32 0.25, %v2700_v4 }
 0x14d   :  { %vm544_vm4 = vcmp.ge.f32.partialorder %v422_v50, 0.0  ;;  %v608_v37 = vmul.f32 0.25, %v422_v50  ;;  %vm1304_vm5 = vcmp.ge.f32.partialorder %v1182_v6, 0.0  ;;  %v1368_v38 = vmul.f32 0.25, %v1182_v6 }
 0x14e   :  { %v2191_v9 = vsel %vm2063_vm2, %v1940_v3, %v2127_v7  ;;  %v2951_v10 = vsel %vm2823_vm3, %v2700_v4, %v2887_v8 }
 0x14f   :  { %3772 = vst.msk [vmem:[%s6116_s3 + $0x4c0] sm:$0xff] %vm711_vm1, %v2191_v9  ;;  %v672_v12 = vsel %vm544_vm4, %v422_v50, %v608_v37  ;;  %v1432_v14 = vsel %vm1304_vm5, %v1182_v6, %v1368_v38 }
 0x150   :  { %4066 = vst.msk [vmem:[%s6116_s3 + $0x6c0] sm:$0xff] %vm711_vm1, %v2951_v10 }
 0x151   :  { %737 = vst.msk [vmem:[%s6116_s3 + $0xc8] sm:$0xff] %vm711_vm1, %v672_v12  ;;  %v1941_v15 = vpop.f32.mrf.mxu2  ;;  %v2701_v16 = vpop.f32.mrf.mxu3 }
 0x152   :  { %3479 = vst.msk [vmem:[%s6116_s3 + $0x2c8] sm:$0xff] %vm711_vm1, %v1432_v14  ;;  %v1942_v21 = vadd.f32 %v4955_v11, %v1941_v15  ;;  %v2702_v22 = vadd.f32 %v4958_v13, %v2701_v16  ;;  %v424_v23 = vpop.f32.mrf.mxu0  ;;  %v1184_v24 = vpop.f32.mrf.mxu1 }
 0x153   :  { %v425_v27 = vadd.f32 %v4961_v17, %v424_v23  ;;  %v1185_v28 = vadd.f32 %v4964_v19, %v1184_v24 }
 0x154   :  { %vm2064_vm6 = vcmp.ge.f32.partialorder %v1942_v21, 0.0  ;;  %v2128_v29 = vmul.f32 0.25, %v1942_v21  ;;  %vm2824_vm7 = vcmp.ge.f32.partialorder %v2702_v22, 0.0  ;;  %v2888_v30 = vmul.f32 0.25, %v2702_v22 }
 0x155   :  { %vm545_vm8 = vcmp.ge.f32.partialorder %v425_v27, 0.0  ;;  %v609_v31 = vmul.f32 0.25, %v425_v27  ;;  %vm1305_vm9 = vcmp.ge.f32.partialorder %v1185_v28, 0.0  ;;  %v1369_v32 = vmul.f32 0.25, %v1185_v28  ;;  %3213 = vmatmul.msk.bf16.gmra.mxu0 %vm253_vm0, %v4127_v18  ;;  %3443 = vmatmul.msk.bf16.gmra.mxu1 %vm253_vm0, %v4160_v20 }
 0x156   :  { %v2192_v33 = vsel %vm2064_vm6, %v1942_v21, %v2128_v29  ;;  %v2952_v34 = vsel %vm2824_vm7, %v2702_v22, %v2888_v30  ;;  %3737 = vmatmul.msk.bf16.gmra.mxu2 %vm253_vm0, %v4193_v25  ;;  %4031 = vmatmul.msk.bf16.gmra.mxu3 %vm253_vm0, %v4226_v26 }
 0x157   :  { %3773 = vst.msk [vmem:[%s6116_s3 + $0x4c8] sm:$0xff] %vm711_vm1, %v2192_v33  ;;  %v673_v35 = vsel %vm545_vm8, %v425_v27, %v609_v31  ;;  %v1433_v36 = vsel %vm1305_vm9, %v1185_v28, %v1369_v32  ;;  %v4129_v31 = vld [vmem:[%s6114_s0 + $0xb8] sm:$0xff] }
 0x158   :  { %4067 = vst.msk [vmem:[%s6116_s3 + $0x6c8] sm:$0xff] %vm711_vm1, %v2952_v34  ;;  %v4162_v32 = vld [vmem:[%s6114_s0 + $0x1b8] sm:$0xff] }
 0x159   :  { %738 = vst.msk [vmem:[%s6116_s3 + $0xd0] sm:$0xff] %vm711_vm1, %v673_v35  ;;  %v1944_v39 = vpop.f32.mrf.mxu2  ;;  %v2704_v40 = vpop.f32.mrf.mxu3 }
 0x15a   :  { %3480 = vst.msk [vmem:[%s6116_s3 + $0x2d0] sm:$0xff] %vm711_vm1, %v1433_v36  ;;  %v1945_v41 = vadd.f32 %v4955_v11, %v1944_v39  ;;  %v2705_v42 = vadd.f32 %v4958_v13, %v2704_v40  ;;  %v426_v43 = vpop.f32.mrf.mxu0  ;;  %v1186_v44 = vpop.f32.mrf.mxu1  ;;  %v4195_v39 = vld [vmem:[%s6114_s0 + $0x2b8] sm:$0xff] }
 0x15b   :  { %v427_v45 = vadd.f32 %v4961_v17, %v426_v43  ;;  %v1187_v46 = vadd.f32 %v4964_v19, %v1186_v44  ;;  %v4228_v40 = vld [vmem:[%s6114_s0 + $0x3b8] sm:$0xff] }
 0x15c   :  { %vm2065_vm10 = vcmp.ge.f32.partialorder %v1945_v41, 0.0  ;;  %v2129_v47 = vmul.f32 0.25, %v1945_v41  ;;  %vm2825_vm11 = vcmp.ge.f32.partialorder %v2705_v42, 0.0  ;;  %v2889_v48 = vmul.f32 0.25, %v2705_v42 }
 0x15d   :  { %vm546_vm12 = vcmp.ge.f32.partialorder %v427_v45, 0.0  ;;  %v610_v51 = vmul.f32 0.25, %v427_v45  ;;  %vm1306_vm13 = vcmp.ge.f32.partialorder %v1187_v46, 0.0  ;;  %v1370_v52 = vmul.f32 0.25, %v1187_v46 }
 0x15e   :  { %v2193_v53 = vsel %vm2065_vm10, %v1945_v41, %v2129_v47  ;;  %v2953_v54 = vsel %vm2825_vm11, %v2705_v42, %v2889_v48 }
 0x15f   :  { %3774 = vst.msk [vmem:[%s6116_s3 + $0x4d0] sm:$0xff] %vm711_vm1, %v2193_v53  ;;  %v674_v55 = vsel %vm546_vm12, %v427_v45, %v610_v51  ;;  %v1434_v56 = vsel %vm1306_vm13, %v1187_v46, %v1370_v52 }
 0x160   :  { %4068 = vst.msk [vmem:[%s6116_s3 + $0x6d0] sm:$0xff] %vm711_vm1, %v2953_v54 }
 0x161   :  { %739 = vst.msk [vmem:[%s6116_s3 + $0xd8] sm:$0xff] %vm711_vm1, %v674_v55  ;;  %v1946_v57 = vpop.f32.mrf.mxu2  ;;  %v2706_v58 = vpop.f32.mrf.mxu3 }
 0x162   :  { %3481 = vst.msk [vmem:[%s6116_s3 + $0x2d8] sm:$0xff] %vm711_vm1, %v1434_v56  ;;  %v1947_v61 = vadd.f32 %v4955_v11, %v1946_v57  ;;  %v2707_v62 = vadd.f32 %v4958_v13, %v2706_v58  ;;  %v429_v63 = vpop.f32.mrf.mxu0  ;;  %v1189_v0 = vpop.f32.mrf.mxu1 }
 0x163   :  { %v430_v3 = vadd.f32 %v4961_v17, %v429_v63  ;;  %v1190_v4 = vadd.f32 %v4964_v19, %v1189_v0 }
 0x164   :  { %vm2066_vm14 = vcmp.ge.f32.partialorder %v1947_v61, 0.0  ;;  %v2130_v5 = vmul.f32 0.25, %v1947_v61  ;;  %vm2826_vm15 = vcmp.ge.f32.partialorder %v2707_v62, 0.0  ;;  %v2890_v49 = vmul.f32 0.25, %v2707_v62 }
 0x165   :  { %vm547_vm2 = vcmp.ge.f32.partialorder %v430_v3, 0.0  ;;  %v611_v50 = vmul.f32 0.25, %v430_v3  ;;  %vm1307_vm3 = vcmp.ge.f32.partialorder %v1190_v4, 0.0  ;;  %v1371_v6 = vmul.f32 0.25, %v1190_v4  ;;  %3214 = vmatmul.msk.bf16.gmra.mxu0 %vm253_vm0, %v4128_v59  ;;  %3444 = vmatmul.msk.bf16.gmra.mxu1 %vm253_vm0, %v4161_v60 }
 0x166   :  { %v2194_v7 = vsel %vm2066_vm14, %v1947_v61, %v2130_v5  ;;  %v2954_v8 = vsel %vm2826_vm15, %v2707_v62, %v2890_v49  ;;  %3738 = vmatmul.msk.bf16.gmra.mxu2 %vm253_vm0, %v4194_v1  ;;  %4032 = vmatmul.msk.bf16.gmra.mxu3 %vm253_vm0, %v4227_v2 }
 0x167   :  { %3775 = vst.msk [vmem:[%s6116_s3 + $0x4d8] sm:$0xff] %vm711_vm1, %v2194_v7  ;;  %v675_v37 = vsel %vm547_vm2, %v430_v3, %v611_v50  ;;  %v1435_v38 = vsel %vm1307_vm3, %v1190_v4, %v1371_v6  ;;  %v4130_v50 = vld [vmem:[%s6114_s0 + $0xc0] sm:$0xff] }
 0x168   :  { %4069 = vst.msk [vmem:[%s6116_s3 + $0x6d8] sm:$0xff] %vm711_vm1, %v2954_v8  ;;  %v4163_v6 = vld [vmem:[%s6114_s0 + $0x1c0] sm:$0xff] }
 0x169   :  { %740 = vst.msk [vmem:[%s6116_s3 + $0xe0] sm:$0xff] %vm711_vm1, %v675_v37  ;;  %v1949_v9 = vpop.f32.mrf.mxu2  ;;  %v2709_v10 = vpop.f32.mrf.mxu3 }
 0x16a   :  { %3482 = vst.msk [vmem:[%s6116_s3 + $0x2e0] sm:$0xff] %vm711_vm1, %v1435_v38  ;;  %v1950_v12 = vadd.f32 %v4955_v11, %v1949_v9  ;;  %v2710_v14 = vadd.f32 %v4958_v13, %v2709_v10  ;;  %v431_v15 = vpop.f32.mrf.mxu0  ;;  %v1191_v16 = vpop.f32.mrf.mxu1  ;;  %v4196_v9 = vld [vmem:[%s6114_s0 + $0x2c0] sm:$0xff] }
 0x16b   :  { %v432_v18 = vadd.f32 %v4961_v17, %v431_v15  ;;  %v1192_v20 = vadd.f32 %v4964_v19, %v1191_v16  ;;  %v4229_v10 = vld [vmem:[%s6114_s0 + $0x3c0] sm:$0xff] }
 0x16c   :  { %vm2067_vm4 = vcmp.ge.f32.partialorder %v1950_v12, 0.0  ;;  %v2131_v21 = vmul.f32 0.25, %v1950_v12  ;;  %vm2827_vm5 = vcmp.ge.f32.partialorder %v2710_v14, 0.0  ;;  %v2891_v22 = vmul.f32 0.25, %v2710_v14 }
 0x16d   :  { %vm548_vm6 = vcmp.ge.f32.partialorder %v432_v18, 0.0  ;;  %v612_v23 = vmul.f32 0.25, %v432_v18  ;;  %vm1308_vm7 = vcmp.ge.f32.partialorder %v1192_v20, 0.0  ;;  %v1372_v24 = vmul.f32 0.25, %v1192_v20 }
 0x16e   :  { %v2195_v25 = vsel %vm2067_vm4, %v1950_v12, %v2131_v21  ;;  %v2955_v26 = vsel %vm2827_vm5, %v2710_v14, %v2891_v22 }
 0x16f   :  { %3776 = vst.msk [vmem:[%s6116_s3 + $0x4e0] sm:$0xff] %vm711_vm1, %v2195_v25  ;;  %v676_v27 = vsel %vm548_vm6, %v432_v18, %v612_v23  ;;  %v1436_v28 = vsel %vm1308_vm7, %v1192_v20, %v1372_v24 }
 0x170   :  { %4070 = vst.msk [vmem:[%s6116_s3 + $0x6e0] sm:$0xff] %vm711_vm1, %v2955_v26 }
 0x171   :  { %741 = vst.msk [vmem:[%s6116_s3 + $0xe8] sm:$0xff] %vm711_vm1, %v676_v27  ;;  %v1951_v29 = vpop.f32.mrf.mxu2  ;;  %v2711_v30 = vpop.f32.mrf.mxu3 }
 0x172   :  { %3483 = vst.msk [vmem:[%s6116_s3 + $0x2e8] sm:$0xff] %vm711_vm1, %v1436_v28  ;;  %v1952_v33 = vadd.f32 %v4955_v11, %v1951_v29  ;;  %v2712_v34 = vadd.f32 %v4958_v13, %v2711_v30  ;;  %v434_v35 = vpop.f32.mrf.mxu0  ;;  %v1194_v36 = vpop.f32.mrf.mxu1 }
 0x173   :  { %v435_v41 = vadd.f32 %v4961_v17, %v434_v35  ;;  %v1195_v42 = vadd.f32 %v4964_v19, %v1194_v36 }
 0x174   :  { %vm2068_vm8 = vcmp.ge.f32.partialorder %v1952_v33, 0.0  ;;  %v2132_v43 = vmul.f32 0.25, %v1952_v33  ;;  %vm2828_vm9 = vcmp.ge.f32.partialorder %v2712_v34, 0.0  ;;  %v2892_v44 = vmul.f32 0.25, %v2712_v34 }
 0x175   :  { %vm549_vm10 = vcmp.ge.f32.partialorder %v435_v41, 0.0  ;;  %v613_v45 = vmul.f32 0.25, %v435_v41  ;;  %vm1309_vm11 = vcmp.ge.f32.partialorder %v1195_v42, 0.0  ;;  %v1373_v46 = vmul.f32 0.25, %v1195_v42  ;;  %3215 = vmatmul.msk.bf16.gmra.mxu0 %vm253_vm0, %v4129_v31  ;;  %3445 = vmatmul.msk.bf16.gmra.mxu1 %vm253_vm0, %v4162_v32 }
 0x176   :  { %v2196_v47 = vsel %vm2068_vm8, %v1952_v33, %v2132_v43  ;;  %v2956_v48 = vsel %vm2828_vm9, %v2712_v34, %v2892_v44  ;;  %3739 = vmatmul.msk.bf16.gmra.mxu2 %vm253_vm0, %v4195_v39  ;;  %4033 = vmatmul.msk.bf16.gmra.mxu3 %vm253_vm0, %v4228_v40 }
 0x177   :  { %3777 = vst.msk [vmem:[%s6116_s3 + $0x4e8] sm:$0xff] %vm711_vm1, %v2196_v47  ;;  %v677_v51 = vsel %vm549_vm10, %v435_v41, %v613_v45  ;;  %v1437_v52 = vsel %vm1309_vm11, %v1195_v42, %v1373_v46  ;;  %v4131_v45 = vld [vmem:[%s6114_s0 + $0xc8] sm:$0xff] }
 0x178   :  { %4071 = vst.msk [vmem:[%s6116_s3 + $0x6e8] sm:$0xff] %vm711_vm1, %v2956_v48  ;;  %v4164_v46 = vld [vmem:[%s6114_s0 + $0x1c8] sm:$0xff] }
 0x179   :  { %742 = vst.msk [vmem:[%s6116_s3 + $0xf0] sm:$0xff] %vm711_vm1, %v677_v51  ;;  %v1954_v53 = vpop.f32.mrf.mxu2  ;;  %v2714_v54 = vpop.f32.mrf.mxu3 }
 0x17a   :  { %3484 = vst.msk [vmem:[%s6116_s3 + $0x2f0] sm:$0xff] %vm711_vm1, %v1437_v52  ;;  %v1955_v55 = vadd.f32 %v4955_v11, %v1954_v53  ;;  %v2715_v56 = vadd.f32 %v4958_v13, %v2714_v54  ;;  %v436_v57 = vpop.f32.mrf.mxu0  ;;  %v1196_v58 = vpop.f32.mrf.mxu1  ;;  %v4197_v53 = vld [vmem:[%s6114_s0 + $0x2c8] sm:$0xff] }
 0x17b   :  { %v437_v59 = vadd.f32 %v4961_v17, %v436_v57  ;;  %v1197_v60 = vadd.f32 %v4964_v19, %v1196_v58  ;;  %v4230_v54 = vld [vmem:[%s6114_s0 + $0x3c8] sm:$0xff] }
 0x17c   :  { %vm2069_vm12 = vcmp.ge.f32.partialorder %v1955_v55, 0.0  ;;  %v2133_v61 = vmul.f32 0.25, %v1955_v55  ;;  %vm2829_vm13 = vcmp.ge.f32.partialorder %v2715_v56, 0.0  ;;  %v2893_v62 = vmul.f32 0.25, %v2715_v56 }
 0x17d   :  { %vm550_vm14 = vcmp.ge.f32.partialorder %v437_v59, 0.0  ;;  %v614_v63 = vmul.f32 0.25, %v437_v59  ;;  %vm1310_vm15 = vcmp.ge.f32.partialorder %v1197_v60, 0.0  ;;  %v1374_v0 = vmul.f32 0.25, %v1197_v60 }
 0x17e   :  { %v2197_v1 = vsel %vm2069_vm12, %v1955_v55, %v2133_v61  ;;  %v2957_v2 = vsel %vm2829_vm13, %v2715_v56, %v2893_v62 }
 0x17f   :  { %3778 = vst.msk [vmem:[%s6116_s3 + $0x4f0] sm:$0xff] %vm711_vm1, %v2197_v1  ;;  %v678_v3 = vsel %vm550_vm14, %v437_v59, %v614_v63  ;;  %v1438_v4 = vsel %vm1310_vm15, %v1197_v60, %v1374_v0 }
 0x180   :  { %4072 = vst.msk [vmem:[%s6116_s3 + $0x6f0] sm:$0xff] %vm711_vm1, %v2957_v2 }
 0x181   :  { %743 = vst.msk [vmem:[%s6116_s3 + $0xf8] sm:$0xff] %vm711_vm1, %v678_v3  ;;  %v1956_v5 = vpop.f32.mrf.mxu2  ;;  %v2716_v49 = vpop.f32.mrf.mxu3 }
 0x182   :  { %3485 = vst.msk [vmem:[%s6116_s3 + $0x2f8] sm:$0xff] %vm711_vm1, %v1438_v4  ;;  %v1957_v7 = vadd.f32 %v4955_v11, %v1956_v5  ;;  %v2717_v8 = vadd.f32 %v4958_v13, %v2716_v49  ;;  %v439_v37 = vpop.f32.mrf.mxu0  ;;  %v1199_v38 = vpop.f32.mrf.mxu1 }
 0x183   :  { %v440_v12 = vadd.f32 %v4961_v17, %v439_v37  ;;  %v1200_v14 = vadd.f32 %v4964_v19, %v1199_v38 }
 0x184   :  { %vm2070_vm2 = vcmp.ge.f32.partialorder %v1957_v7, 0.0  ;;  %v2134_v15 = vmul.f32 0.25, %v1957_v7  ;;  %vm2830_vm3 = vcmp.ge.f32.partialorder %v2717_v8, 0.0  ;;  %v2894_v16 = vmul.f32 0.25, %v2717_v8 }
 0x185   :  { %vm551_vm4 = vcmp.ge.f32.partialorder %v440_v12, 0.0  ;;  %v615_v18 = vmul.f32 0.25, %v440_v12  ;;  %vm1311_vm5 = vcmp.ge.f32.partialorder %v1200_v14, 0.0  ;;  %v1375_v20 = vmul.f32 0.25, %v1200_v14  ;;  %3216 = vmatmul.msk.bf16.gmra.mxu0 %vm253_vm0, %v4130_v50  ;;  %3446 = vmatmul.msk.bf16.gmra.mxu1 %vm253_vm0, %v4163_v6 }
 0x186   :  { %v2198_v21 = vsel %vm2070_vm2, %v1957_v7, %v2134_v15  ;;  %v2958_v22 = vsel %vm2830_vm3, %v2717_v8, %v2894_v16  ;;  %3740 = vmatmul.msk.bf16.gmra.mxu2 %vm253_vm0, %v4196_v9  ;;  %4034 = vmatmul.msk.bf16.gmra.mxu3 %vm253_vm0, %v4229_v10 }
 0x187   :  { %3779 = vst.msk [vmem:[%s6116_s3 + $0x4f8] sm:$0xff] %vm711_vm1, %v2198_v21  ;;  %v679_v23 = vsel %vm551_vm4, %v440_v12, %v615_v18  ;;  %v1439_v24 = vsel %vm1311_vm5, %v1200_v14, %v1375_v20  ;;  %v4132_v18 = vld [vmem:[%s6114_s0 + $0xd0] sm:$0xff] }
 0x188   :  { %4073 = vst.msk [vmem:[%s6116_s3 + $0x6f8] sm:$0xff] %vm711_vm1, %v2958_v22  ;;  %v4165_v20 = vld [vmem:[%s6114_s0 + $0x1d0] sm:$0xff] }
 0x189   :  { %744 = vst.msk [vmem:[%s6116_s3 + $0x100] sm:$0xff] %vm711_vm1, %v679_v23  ;;  %v1959_v25 = vpop.f32.mrf.mxu2  ;;  %v2719_v26 = vpop.f32.mrf.mxu3 }
 0x18a   :  { %3486 = vst.msk [vmem:[%s6116_s3 + $0x300] sm:$0xff] %vm711_vm1, %v1439_v24  ;;  %v1960_v27 = vadd.f32 %v4955_v11, %v1959_v25  ;;  %v2720_v28 = vadd.f32 %v4958_v13, %v2719_v26  ;;  %v441_v29 = vpop.f32.mrf.mxu0  ;;  %v1201_v30 = vpop.f32.mrf.mxu1  ;;  %v4198_v25 = vld [vmem:[%s6114_s0 + $0x2d0] sm:$0xff] }
 0x18b   :  { %v442_v31 = vadd.f32 %v4961_v17, %v441_v29  ;;  %v1202_v32 = vadd.f32 %v4964_v19, %v1201_v30  ;;  %v4231_v26 = vld [vmem:[%s6114_s0 + $0x3d0] sm:$0xff] }
 0x18c   :  { %vm2071_vm6 = vcmp.ge.f32.partialorder %v1960_v27, 0.0  ;;  %v2135_v33 = vmul.f32 0.25, %v1960_v27  ;;  %vm2831_vm7 = vcmp.ge.f32.partialorder %v2720_v28, 0.0  ;;  %v2895_v34 = vmul.f32 0.25, %v2720_v28 }
 0x18d   :  { %vm552_vm8 = vcmp.ge.f32.partialorder %v442_v31, 0.0  ;;  %v616_v35 = vmul.f32 0.25, %v442_v31  ;;  %vm1312_vm9 = vcmp.ge.f32.partialorder %v1202_v32, 0.0  ;;  %v1376_v36 = vmul.f32 0.25, %v1202_v32 }
 0x18e   :  { %v2199_v39 = vsel %vm2071_vm6, %v1960_v27, %v2135_v33  ;;  %v2959_v40 = vsel %vm2831_vm7, %v2720_v28, %v2895_v34 }
 0x18f   :  { %3780 = vst.msk [vmem:[%s6116_s3 + $0x500] sm:$0xff] %vm711_vm1, %v2199_v39  ;;  %v680_v41 = vsel %vm552_vm8, %v442_v31, %v616_v35  ;;  %v1440_v42 = vsel %vm1312_vm9, %v1202_v32, %v1376_v36 }
 0x190   :  { %4074 = vst.msk [vmem:[%s6116_s3 + $0x700] sm:$0xff] %vm711_vm1, %v2959_v40 }
 0x191   :  { %745 = vst.msk [vmem:[%s6116_s3 + $0x108] sm:$0xff] %vm711_vm1, %v680_v41  ;;  %v1961_v43 = vpop.f32.mrf.mxu2  ;;  %v2721_v44 = vpop.f32.mrf.mxu3 }
 0x192   :  { %3487 = vst.msk [vmem:[%s6116_s3 + $0x308] sm:$0xff] %vm711_vm1, %v1440_v42  ;;  %v1962_v47 = vadd.f32 %v4955_v11, %v1961_v43  ;;  %v2722_v48 = vadd.f32 %v4958_v13, %v2721_v44  ;;  %v444_v51 = vpop.f32.mrf.mxu0  ;;  %v1204_v52 = vpop.f32.mrf.mxu1 }
 0x193   :  { %v445_v55 = vadd.f32 %v4961_v17, %v444_v51  ;;  %v1205_v56 = vadd.f32 %v4964_v19, %v1204_v52 }
 0x194   :  { %vm2072_vm10 = vcmp.ge.f32.partialorder %v1962_v47, 0.0  ;;  %v2136_v57 = vmul.f32 0.25, %v1962_v47  ;;  %vm2832_vm11 = vcmp.ge.f32.partialorder %v2722_v48, 0.0  ;;  %v2896_v58 = vmul.f32 0.25, %v2722_v48 }
 0x195   :  { %vm553_vm12 = vcmp.ge.f32.partialorder %v445_v55, 0.0  ;;  %v617_v59 = vmul.f32 0.25, %v445_v55  ;;  %vm1313_vm13 = vcmp.ge.f32.partialorder %v1205_v56, 0.0  ;;  %v1377_v60 = vmul.f32 0.25, %v1205_v56  ;;  %3217 = vmatmul.msk.bf16.gmra.mxu0 %vm253_vm0, %v4131_v45  ;;  %3447 = vmatmul.msk.bf16.gmra.mxu1 %vm253_vm0, %v4164_v46 }
 0x196   :  { %v2200_v61 = vsel %vm2072_vm10, %v1962_v47, %v2136_v57  ;;  %v2960_v62 = vsel %vm2832_vm11, %v2722_v48, %v2896_v58  ;;  %3741 = vmatmul.msk.bf16.gmra.mxu2 %vm253_vm0, %v4197_v53  ;;  %4035 = vmatmul.msk.bf16.gmra.mxu3 %vm253_vm0, %v4230_v54  ;;  %v5493_v57 = vld [vmem:[#allocation2] ss:$0 sm:$0xff] }
 0x197   :  { %3781 = vst.msk [vmem:[%s6116_s3 + $0x508] sm:$0xff] %vm711_vm1, %v2200_v61  ;;  %v681_v63 = vsel %vm553_vm12, %v445_v55, %v617_v59  ;;  %v1441_v0 = vsel %vm1313_vm13, %v1205_v56, %v1377_v60  ;;  %v4133_v55 = vld [vmem:[%s6114_s0 + $0xd8] sm:$0xff]  ;;  %v5496_v59 = vld [vmem:[#allocation2] ss:$0 sm:$0xff] }
 0x198   :  { %4075 = vst.msk [vmem:[%s6116_s3 + $0x708] sm:$0xff] %vm711_vm1, %v2960_v62  ;;  %v4166_v56 = vld [vmem:[%s6114_s0 + $0x1d8] sm:$0xff] }
 0x199   :  { %746 = vst.msk [vmem:[%s6116_s3 + $0x110] sm:$0xff] %vm711_vm1, %v681_v63  ;;  %v1964_v1 = vpop.f32.mrf.mxu2  ;;  %v2724_v2 = vpop.f32.mrf.mxu3  ;;  %v4199_v63 = vld [vmem:[%s6114_s0 + $0x2d8] sm:$0xff] }
 0x19a   :  { %3488 = vst.msk [vmem:[%s6116_s3 + $0x310] sm:$0xff] %vm711_vm1, %v1441_v0  ;;  %v1965_v3 = vadd.f32 %v4955_v11, %v1964_v1  ;;  %v2725_v4 = vadd.f32 %v4958_v13, %v2724_v2  ;;  %v446_v5 = vpop.f32.mrf.mxu0  ;;  %v1206_v49 = vpop.f32.mrf.mxu1  ;;  %v4232_v0 = vld [vmem:[%s6114_s0 + $0x3d8] sm:$0xff]  ;;  %v5505_v1 = vld [vmem:[#allocation2] ss:$0 sm:$0xff] }
 0x19b   :  { %v447_v50 = vadd.f32 %v4961_v17, %v446_v5  ;;  %v1207_v6 = vadd.f32 %v4964_v19, %v1206_v49 }
 0x19c   :  { %vm2073_vm14 = vcmp.ge.f32.partialorder %v1965_v3, 0.0  ;;  %v2137_v7 = vmul.f32 0.25, %v1965_v3  ;;  %vm2833_vm15 = vcmp.ge.f32.partialorder %v2725_v4, 0.0  ;;  %v2897_v8 = vmul.f32 0.25, %v2725_v4 }
 0x19d   :  { %vm554_vm2 = vcmp.ge.f32.partialorder %v447_v50, 0.0  ;;  %v618_v37 = vmul.f32 0.25, %v447_v50  ;;  %vm1314_vm3 = vcmp.ge.f32.partialorder %v1207_v6, 0.0  ;;  %v1378_v38 = vmul.f32 0.25, %v1207_v6 }
 0x19e   :  { %v2201_v9 = vsel %vm2073_vm14, %v1965_v3, %v2137_v7  ;;  %v2961_v10 = vsel %vm2833_vm15, %v2725_v4, %v2897_v8  ;;  %v5508_v3 = vld [vmem:[#allocation2] ss:$0 sm:$0xff] }
 0x19f   :  { %3782 = vst.msk [vmem:[%s6116_s3 + $0x510] sm:$0xff] %vm711_vm1, %v2201_v9  ;;  %v682_v12 = vsel %vm554_vm2, %v447_v50, %v618_v37  ;;  %v1442_v14 = vsel %vm1314_vm3, %v1207_v6, %v1378_v38 }
 0x1a0   :  { %4076 = vst.msk [vmem:[%s6116_s3 + $0x710] sm:$0xff] %vm711_vm1, %v2961_v10 }
 0x1a1   :  { %747 = vst.msk [vmem:[%s6116_s3 + $0x118] sm:$0xff] %vm711_vm1, %v682_v12  ;;  %v1966_v15 = vpop.f32.mrf.mxu2  ;;  %v2726_v16 = vpop.f32.mrf.mxu3 }
 0x1a2   :  { %3489 = vst.msk [vmem:[%s6116_s3 + $0x318] sm:$0xff] %vm711_vm1, %v1442_v14  ;;  %v1967_v21 = vadd.f32 %v4955_v11, %v1966_v15  ;;  %v2727_v22 = vadd.f32 %v4958_v13, %v2726_v16  ;;  %v449_v23 = vpop.f32.mrf.mxu0  ;;  %v1209_v24 = vpop.f32.mrf.mxu1 }
 0x1a3   :  { %v450_v27 = vadd.f32 %v4961_v17, %v449_v23  ;;  %v1210_v28 = vadd.f32 %v4964_v19, %v1209_v24 }
 0x1a4   :  { %vm2074_vm4 = vcmp.ge.f32.partialorder %v1967_v21, 0.0  ;;  %v2138_v29 = vmul.f32 0.25, %v1967_v21  ;;  %vm2834_vm5 = vcmp.ge.f32.partialorder %v2727_v22, 0.0  ;;  %v2898_v30 = vmul.f32 0.25, %v2727_v22 }
 0x1a5   :  { %vm555_vm6 = vcmp.ge.f32.partialorder %v450_v27, 0.0  ;;  %v619_v31 = vmul.f32 0.25, %v450_v27  ;;  %vm1315_vm7 = vcmp.ge.f32.partialorder %v1210_v28, 0.0  ;;  %v1379_v32 = vmul.f32 0.25, %v1210_v28  ;;  %3218 = vmatmul.msk.bf16.gmra.mxu0 %vm253_vm0, %v4132_v18  ;;  %3448 = vmatmul.msk.bf16.gmra.mxu1 %vm253_vm0, %v4165_v20 }
 0x1a6   :  { %v2202_v33 = vsel %vm2074_vm4, %v1967_v21, %v2138_v29  ;;  %v2962_v34 = vsel %vm2834_vm5, %v2727_v22, %v2898_v30  ;;  %3742 = vmatmul.msk.bf16.gmra.mxu2 %vm253_vm0, %v4198_v25  ;;  %4036 = vmatmul.msk.bf16.gmra.mxu3 %vm253_vm0, %v4231_v26 }
 0x1a7   :  { %3783 = vst.msk [vmem:[%s6116_s3 + $0x518] sm:$0xff] %vm711_vm1, %v2202_v33  ;;  %v683_v35 = vsel %vm555_vm6, %v450_v27, %v619_v31  ;;  %v1443_v36 = vsel %vm1315_vm7, %v1210_v28, %v1379_v32  ;;  %v4134_v31 = vld [vmem:[%s6114_s0 + $0xe0] sm:$0xff] }
 0x1a8   :  { %4077 = vst.msk [vmem:[%s6116_s3 + $0x718] sm:$0xff] %vm711_vm1, %v2962_v34  ;;  %v4167_v32 = vld [vmem:[%s6114_s0 + $0x1e0] sm:$0xff] }
 0x1a9   :  { %748 = vst.msk [vmem:[%s6116_s3 + $0x120] sm:$0xff] %vm711_vm1, %v683_v35  ;;  %v1969_v39 = vpop.f32.mrf.mxu2  ;;  %v2729_v40 = vpop.f32.mrf.mxu3 }
 0x1aa   :  { %3490 = vst.msk [vmem:[%s6116_s3 + $0x320] sm:$0xff] %vm711_vm1, %v1443_v36  ;;  %v1970_v41 = vadd.f32 %v4955_v11, %v1969_v39  ;;  %v2730_v42 = vadd.f32 %v4958_v13, %v2729_v40  ;;  %v451_v43 = vpop.f32.mrf.mxu0  ;;  %v1211_v44 = vpop.f32.mrf.mxu1  ;;  %v4200_v39 = vld [vmem:[%s6114_s0 + $0x2e0] sm:$0xff] }
 0x1ab   :  { %v452_v45 = vadd.f32 %v4961_v17, %v451_v43  ;;  %v1212_v46 = vadd.f32 %v4964_v19, %v1211_v44  ;;  %v4233_v40 = vld [vmem:[%s6114_s0 + $0x3e0] sm:$0xff] }
 0x1ac   :  { %vm2075_vm8 = vcmp.ge.f32.partialorder %v1970_v41, 0.0  ;;  %v2139_v47 = vmul.f32 0.25, %v1970_v41  ;;  %vm2835_vm9 = vcmp.ge.f32.partialorder %v2730_v42, 0.0  ;;  %v2899_v48 = vmul.f32 0.25, %v2730_v42 }
 0x1ad   :  { %vm556_vm10 = vcmp.ge.f32.partialorder %v452_v45, 0.0  ;;  %v620_v51 = vmul.f32 0.25, %v452_v45  ;;  %vm1316_vm11 = vcmp.ge.f32.partialorder %v1212_v46, 0.0  ;;  %v1380_v52 = vmul.f32 0.25, %v1212_v46 }
 0x1ae   :  { %v2203_v53 = vsel %vm2075_vm8, %v1970_v41, %v2139_v47  ;;  %v2963_v54 = vsel %vm2835_vm9, %v2730_v42, %v2899_v48 }
 0x1af   :  { %3784 = vst.msk [vmem:[%s6116_s3 + $0x520] sm:$0xff] %vm711_vm1, %v2203_v53  ;;  %v684_v11 = vsel %vm556_vm10, %v452_v45, %v620_v51  ;;  %v1444_v13 = vsel %vm1316_vm11, %v1212_v46, %v1380_v52 }
 0x1b0   :  { %4078 = vst.msk [vmem:[%s6116_s3 + $0x720] sm:$0xff] %vm711_vm1, %v2963_v54 }
 0x1b1   :  { %749 = vst.msk [vmem:[%s6116_s3 + $0x128] sm:$0xff] %vm711_vm1, %v684_v11  ;;  %v1971_v17 = vpop.f32.mrf.mxu2  ;;  %v2731_v19 = vpop.f32.mrf.mxu3 }
 0x1b2   :  { %3491 = vst.msk [vmem:[%s6116_s3 + $0x328] sm:$0xff] %vm711_vm1, %v1444_v13  ;;  %v1972_v58 = vadd.f32 %v5493_v57, %v1971_v17  ;;  %v2732_v60 = vadd.f32 %v5496_v59, %v2731_v19  ;;  %v454_v61 = vpop.f32.mrf.mxu0  ;;  %v1214_v62 = vpop.f32.mrf.mxu1 }
 0x1b3   :  { %v455_v2 = vadd.f32 %v5505_v1, %v454_v61  ;;  %v1215_v4 = vadd.f32 %v5508_v3, %v1214_v62 }
 0x1b4   :  { %vm2076_vm12 = vcmp.ge.f32.partialorder %v1972_v58, 0.0  ;;  %v2140_v5 = vmul.f32 0.25, %v1972_v58  ;;  %vm2836_vm13 = vcmp.ge.f32.partialorder %v2732_v60, 0.0  ;;  %v2900_v49 = vmul.f32 0.25, %v2732_v60 }
 0x1b5   :  { %vm557_vm14 = vcmp.ge.f32.partialorder %v455_v2, 0.0  ;;  %v621_v50 = vmul.f32 0.25, %v455_v2  ;;  %vm1317_vm15 = vcmp.ge.f32.partialorder %v1215_v4, 0.0  ;;  %v1381_v6 = vmul.f32 0.25, %v1215_v4  ;;  %3219 = vmatmul.msk.bf16.gmra.mxu0 %vm253_vm0, %v4133_v55  ;;  %3449 = vmatmul.msk.bf16.gmra.mxu1 %vm253_vm0, %v4166_v56 }
 0x1b6   :  { %v2204_v7 = vsel %vm2076_vm12, %v1972_v58, %v2140_v5  ;;  %v2964_v8 = vsel %vm2836_vm13, %v2732_v60, %v2900_v49  ;;  %3743 = vmatmul.msk.bf16.gmra.mxu2 %vm253_vm0, %v4199_v63  ;;  %4037 = vmatmul.msk.bf16.gmra.mxu3 %vm253_vm0, %v4232_v0 }
 0x1b7   :  { %3785 = vst.msk [vmem:[%s6116_s3 + $0x528] sm:$0xff] %vm711_vm1, %v2204_v7  ;;  %v685_v37 = vsel %vm557_vm14, %v455_v2, %v621_v50  ;;  %v1445_v38 = vsel %vm1317_vm15, %v1215_v4, %v1381_v6  ;;  %v4135_v50 = vld [vmem:[%s6114_s0 + $0xe8] sm:$0xff] }
 0x1b8   :  { %4079 = vst.msk [vmem:[%s6116_s3 + $0x728] sm:$0xff] %vm711_vm1, %v2964_v8  ;;  %v4168_v6 = vld [vmem:[%s6114_s0 + $0x1e8] sm:$0xff] }
 0x1b9   :  { %750 = vst.msk [vmem:[%s6116_s3 + $0x130] sm:$0xff] %vm711_vm1, %v685_v37  ;;  %v1974_v9 = vpop.f32.mrf.mxu2  ;;  %v2734_v10 = vpop.f32.mrf.mxu3 }
 0x1ba   :  { %3492 = vst.msk [vmem:[%s6116_s3 + $0x330] sm:$0xff] %vm711_vm1, %v1445_v38  ;;  %v1975_v12 = vadd.f32 %v5493_v57, %v1974_v9  ;;  %v2735_v14 = vadd.f32 %v5496_v59, %v2734_v10  ;;  %v456_v15 = vpop.f32.mrf.mxu0  ;;  %v1216_v16 = vpop.f32.mrf.mxu1  ;;  %v4201_v9 = vld [vmem:[%s6114_s0 + $0x2e8] sm:$0xff] }
 0x1bb   :  { %v457_v18 = vadd.f32 %v5505_v1, %v456_v15  ;;  %v1217_v20 = vadd.f32 %v5508_v3, %v1216_v16  ;;  %v4234_v10 = vld [vmem:[%s6114_s0 + $0x3e8] sm:$0xff] }
 0x1bc   :  { %vm2077_vm2 = vcmp.ge.f32.partialorder %v1975_v12, 0.0  ;;  %v2141_v21 = vmul.f32 0.25, %v1975_v12  ;;  %vm2837_vm3 = vcmp.ge.f32.partialorder %v2735_v14, 0.0  ;;  %v2901_v22 = vmul.f32 0.25, %v2735_v14 }
 0x1bd   :  { %vm558_vm4 = vcmp.ge.f32.partialorder %v457_v18, 0.0  ;;  %v622_v23 = vmul.f32 0.25, %v457_v18  ;;  %vm1318_vm5 = vcmp.ge.f32.partialorder %v1217_v20, 0.0  ;;  %v1382_v24 = vmul.f32 0.25, %v1217_v20 }
 0x1be   :  { %v2205_v25 = vsel %vm2077_vm2, %v1975_v12, %v2141_v21  ;;  %v2965_v26 = vsel %vm2837_vm3, %v2735_v14, %v2901_v22 }
 0x1bf   :  { %3786 = vst.msk [vmem:[%s6116_s3 + $0x530] sm:$0xff] %vm711_vm1, %v2205_v25  ;;  %v686_v27 = vsel %vm558_vm4, %v457_v18, %v622_v23  ;;  %v1446_v28 = vsel %vm1318_vm5, %v1217_v20, %v1382_v24 }
 0x1c0   :  { %4080 = vst.msk [vmem:[%s6116_s3 + $0x730] sm:$0xff] %vm711_vm1, %v2965_v26 }
 0x1c1   :  { %751 = vst.msk [vmem:[%s6116_s3 + $0x138] sm:$0xff] %vm711_vm1, %v686_v27  ;;  %v1976_v29 = vpop.f32.mrf.mxu2  ;;  %v2736_v30 = vpop.f32.mrf.mxu3 }
 0x1c2   :  { %3493 = vst.msk [vmem:[%s6116_s3 + $0x338] sm:$0xff] %vm711_vm1, %v1446_v28  ;;  %v1977_v33 = vadd.f32 %v5493_v57, %v1976_v29  ;;  %v2737_v34 = vadd.f32 %v5496_v59, %v2736_v30  ;;  %v459_v35 = vpop.f32.mrf.mxu0  ;;  %v1219_v36 = vpop.f32.mrf.mxu1 }
 0x1c3   :  { %v460_v41 = vadd.f32 %v5505_v1, %v459_v35  ;;  %v1220_v42 = vadd.f32 %v5508_v3, %v1219_v36 }
 0x1c4   :  { %vm2078_vm6 = vcmp.ge.f32.partialorder %v1977_v33, 0.0  ;;  %v2142_v43 = vmul.f32 0.25, %v1977_v33  ;;  %vm2838_vm7 = vcmp.ge.f32.partialorder %v2737_v34, 0.0  ;;  %v2902_v44 = vmul.f32 0.25, %v2737_v34 }
 0x1c5   :  { %vm559_vm8 = vcmp.ge.f32.partialorder %v460_v41, 0.0  ;;  %v623_v45 = vmul.f32 0.25, %v460_v41  ;;  %vm1319_vm9 = vcmp.ge.f32.partialorder %v1220_v42, 0.0  ;;  %v1383_v46 = vmul.f32 0.25, %v1220_v42  ;;  %3220 = vmatmul.msk.bf16.gmra.mxu0 %vm253_vm0, %v4134_v31  ;;  %3450 = vmatmul.msk.bf16.gmra.mxu1 %vm253_vm0, %v4167_v32 }
 0x1c6   :  { %v2206_v47 = vsel %vm2078_vm6, %v1977_v33, %v2142_v43  ;;  %v2966_v48 = vsel %vm2838_vm7, %v2737_v34, %v2902_v44  ;;  %3744 = vmatmul.msk.bf16.gmra.mxu2 %vm253_vm0, %v4200_v39  ;;  %4038 = vmatmul.msk.bf16.gmra.mxu3 %vm253_vm0, %v4233_v40 }
 0x1c7   :  { %3787 = vst.msk [vmem:[%s6116_s3 + $0x538] sm:$0xff] %vm711_vm1, %v2206_v47  ;;  %v687_v51 = vsel %vm559_vm8, %v460_v41, %v623_v45  ;;  %v1447_v52 = vsel %vm1319_vm9, %v1220_v42, %v1383_v46  ;;  %v4136_v45 = vld [vmem:[%s6114_s0 + $0xf0] sm:$0xff] }
 0x1c8   :  { %4081 = vst.msk [vmem:[%s6116_s3 + $0x738] sm:$0xff] %vm711_vm1, %v2966_v48  ;;  %v4169_v46 = vld [vmem:[%s6114_s0 + $0x1f0] sm:$0xff] }
 0x1c9   :  { %752 = vst.msk [vmem:[%s6116_s3 + $0x140] sm:$0xff] %vm711_vm1, %v687_v51  ;;  %v1979_v53 = vpop.f32.mrf.mxu2  ;;  %v2739_v54 = vpop.f32.mrf.mxu3 }
 0x1ca   :  { %3494 = vst.msk [vmem:[%s6116_s3 + $0x340] sm:$0xff] %vm711_vm1, %v1447_v52  ;;  %v1980_v11 = vadd.f32 %v5493_v57, %v1979_v53  ;;  %v2740_v13 = vadd.f32 %v5496_v59, %v2739_v54  ;;  %v461_v17 = vpop.f32.mrf.mxu0  ;;  %v1221_v19 = vpop.f32.mrf.mxu1  ;;  %v4202_v53 = vld [vmem:[%s6114_s0 + $0x2f0] sm:$0xff] }
 0x1cb   :  { %v462_v55 = vadd.f32 %v5505_v1, %v461_v17  ;;  %v1222_v56 = vadd.f32 %v5508_v3, %v1221_v19  ;;  %v4235_v54 = vld [vmem:[%s6114_s0 + $0x3f0] sm:$0xff] }
 0x1cc   :  { %vm2079_vm10 = vcmp.ge.f32.partialorder %v1980_v11, 0.0  ;;  %v2143_v58 = vmul.f32 0.25, %v1980_v11  ;;  %vm2839_vm11 = vcmp.ge.f32.partialorder %v2740_v13, 0.0  ;;  %v2903_v60 = vmul.f32 0.25, %v2740_v13 }
 0x1cd   :  { %vm560_vm12 = vcmp.ge.f32.partialorder %v462_v55, 0.0  ;;  %v624_v61 = vmul.f32 0.25, %v462_v55  ;;  %vm1320_vm13 = vcmp.ge.f32.partialorder %v1222_v56, 0.0  ;;  %v1384_v62 = vmul.f32 0.25, %v1222_v56 }
 0x1ce   :  { %v2207_v63 = vsel %vm2079_vm10, %v1980_v11, %v2143_v58  ;;  %v2967_v0 = vsel %vm2839_vm11, %v2740_v13, %v2903_v60 }
 0x1cf   :  { %3788 = vst.msk [vmem:[%s6116_s3 + $0x540] sm:$0xff] %vm711_vm1, %v2207_v63  ;;  %v688_v2 = vsel %vm560_vm12, %v462_v55, %v624_v61  ;;  %v1448_v4 = vsel %vm1320_vm13, %v1222_v56, %v1384_v62 }
 0x1d0   :  { %4082 = vst.msk [vmem:[%s6116_s3 + $0x740] sm:$0xff] %vm711_vm1, %v2967_v0 }
 0x1d1   :  { %753 = vst.msk [vmem:[%s6116_s3 + $0x148] sm:$0xff] %vm711_vm1, %v688_v2  ;;  %v1981_v5 = vpop.f32.mrf.mxu2  ;;  %v2741_v49 = vpop.f32.mrf.mxu3 }
 0x1d2   :  { %3495 = vst.msk [vmem:[%s6116_s3 + $0x348] sm:$0xff] %vm711_vm1, %v1448_v4  ;;  %v1982_v7 = vadd.f32 %v5493_v57, %v1981_v5  ;;  %v2742_v8 = vadd.f32 %v5496_v59, %v2741_v49  ;;  %v464_v37 = vpop.f32.mrf.mxu0  ;;  %v1224_v38 = vpop.f32.mrf.mxu1 }
 0x1d3   :  { %v465_v12 = vadd.f32 %v5505_v1, %v464_v37  ;;  %v1225_v14 = vadd.f32 %v5508_v3, %v1224_v38 }
 0x1d4   :  { %vm2080_vm14 = vcmp.ge.f32.partialorder %v1982_v7, 0.0  ;;  %v2144_v15 = vmul.f32 0.25, %v1982_v7  ;;  %vm2840_vm15 = vcmp.ge.f32.partialorder %v2742_v8, 0.0  ;;  %v2904_v16 = vmul.f32 0.25, %v2742_v8 }
 0x1d5   :  { %vm561_vm2 = vcmp.ge.f32.partialorder %v465_v12, 0.0  ;;  %v625_v18 = vmul.f32 0.25, %v465_v12  ;;  %vm1321_vm3 = vcmp.ge.f32.partialorder %v1225_v14, 0.0  ;;  %v1385_v20 = vmul.f32 0.25, %v1225_v14  ;;  %3221 = vmatmul.msk.bf16.gmra.mxu0 %vm253_vm0, %v4135_v50  ;;  %3451 = vmatmul.msk.bf16.gmra.mxu1 %vm253_vm0, %v4168_v6 }
 0x1d6   :  { %v2208_v21 = vsel %vm2080_vm14, %v1982_v7, %v2144_v15  ;;  %v2968_v22 = vsel %vm2840_vm15, %v2742_v8, %v2904_v16  ;;  %3745 = vmatmul.msk.bf16.gmra.mxu2 %vm253_vm0, %v4201_v9  ;;  %4039 = vmatmul.msk.bf16.gmra.mxu3 %vm253_vm0, %v4234_v10 }
 0x1d7   :  { %3789 = vst.msk [vmem:[%s6116_s3 + $0x548] sm:$0xff] %vm711_vm1, %v2208_v21  ;;  %v689_v23 = vsel %vm561_vm2, %v465_v12, %v625_v18  ;;  %v1449_v24 = vsel %vm1321_vm3, %v1225_v14, %v1385_v20  ;;  %v4137_v18 = vld [vmem:[%s6114_s0 + $0xf8] sm:$0xff] }
 0x1d8   :  { %4083 = vst.msk [vmem:[%s6116_s3 + $0x748] sm:$0xff] %vm711_vm1, %v2968_v22  ;;  %v4170_v20 = vld [vmem:[%s6114_s0 + $0x1f8] sm:$0xff] }
 0x1d9   :  { %754 = vst.msk [vmem:[%s6116_s3 + $0x150] sm:$0xff] %vm711_vm1, %v689_v23  ;;  %v1984_v25 = vpop.f32.mrf.mxu2  ;;  %v2744_v26 = vpop.f32.mrf.mxu3 }
 0x1da   :  { %3496 = vst.msk [vmem:[%s6116_s3 + $0x350] sm:$0xff] %vm711_vm1, %v1449_v24  ;;  %v1985_v27 = vadd.f32 %v5493_v57, %v1984_v25  ;;  %v2745_v28 = vadd.f32 %v5496_v59, %v2744_v26  ;;  %v466_v29 = vpop.f32.mrf.mxu0  ;;  %v1226_v30 = vpop.f32.mrf.mxu1  ;;  %v4203_v25 = vld [vmem:[%s6114_s0 + $0x2f8] sm:$0xff] }
 0x1db   :  { %v467_v31 = vadd.f32 %v5505_v1, %v466_v29  ;;  %v1227_v32 = vadd.f32 %v5508_v3, %v1226_v30  ;;  %v4236_v26 = vld [vmem:[%s6114_s0 + $0x3f8] sm:$0xff] }
 0x1dc   :  { %vm2081_vm4 = vcmp.ge.f32.partialorder %v1985_v27, 0.0  ;;  %v2145_v33 = vmul.f32 0.25, %v1985_v27  ;;  %vm2841_vm5 = vcmp.ge.f32.partialorder %v2745_v28, 0.0  ;;  %v2905_v34 = vmul.f32 0.25, %v2745_v28 }
 0x1dd   :  { %vm562_vm6 = vcmp.ge.f32.partialorder %v467_v31, 0.0  ;;  %v626_v35 = vmul.f32 0.25, %v467_v31  ;;  %vm1322_vm7 = vcmp.ge.f32.partialorder %v1227_v32, 0.0  ;;  %v1386_v36 = vmul.f32 0.25, %v1227_v32 }
 0x1de   :  { %v2209_v39 = vsel %vm2081_vm4, %v1985_v27, %v2145_v33  ;;  %v2969_v40 = vsel %vm2841_vm5, %v2745_v28, %v2905_v34 }
 0x1df   :  { %3790 = vst.msk [vmem:[%s6116_s3 + $0x550] sm:$0xff] %vm711_vm1, %v2209_v39  ;;  %v690_v41 = vsel %vm562_vm6, %v467_v31, %v626_v35  ;;  %v1450_v42 = vsel %vm1322_vm7, %v1227_v32, %v1386_v36 }
 0x1e0   :  { %4084 = vst.msk [vmem:[%s6116_s3 + $0x750] sm:$0xff] %vm711_vm1, %v2969_v40 }
 0x1e1   :  { %755 = vst.msk [vmem:[%s6116_s3 + $0x158] sm:$0xff] %vm711_vm1, %v690_v41  ;;  %v1986_v43 = vpop.f32.mrf.mxu2  ;;  %v2746_v44 = vpop.f32.mrf.mxu3 }
 0x1e2   :  { %3497 = vst.msk [vmem:[%s6116_s3 + $0x358] sm:$0xff] %vm711_vm1, %v1450_v42  ;;  %v1987_v47 = vadd.f32 %v5493_v57, %v1986_v43  ;;  %v2747_v48 = vadd.f32 %v5496_v59, %v2746_v44  ;;  %v469_v51 = vpop.f32.mrf.mxu0  ;;  %v1229_v52 = vpop.f32.mrf.mxu1 }
 0x1e3   :  { %v470_v11 = vadd.f32 %v5505_v1, %v469_v51  ;;  %v1230_v13 = vadd.f32 %v5508_v3, %v1229_v52 }
 0x1e4   :  { %vm2082_vm8 = vcmp.ge.f32.partialorder %v1987_v47, 0.0  ;;  %v2146_v17 = vmul.f32 0.25, %v1987_v47  ;;  %vm2842_vm9 = vcmp.ge.f32.partialorder %v2747_v48, 0.0  ;;  %v2906_v19 = vmul.f32 0.25, %v2747_v48 }
 0x1e5   :  { %vm563_vm10 = vcmp.ge.f32.partialorder %v470_v11, 0.0  ;;  %v627_v55 = vmul.f32 0.25, %v470_v11  ;;  %vm1323_vm11 = vcmp.ge.f32.partialorder %v1230_v13, 0.0  ;;  %v1387_v56 = vmul.f32 0.25, %v1230_v13  ;;  %3222 = vmatmul.msk.bf16.gmra.mxu0 %vm253_vm0, %v4136_v45  ;;  %3452 = vmatmul.msk.bf16.gmra.mxu1 %vm253_vm0, %v4169_v46 }
 0x1e6   :  { %v2210_v58 = vsel %vm2082_vm8, %v1987_v47, %v2146_v17  ;;  %v2970_v60 = vsel %vm2842_vm9, %v2747_v48, %v2906_v19  ;;  %3746 = vmatmul.msk.bf16.gmra.mxu2 %vm253_vm0, %v4202_v53  ;;  %4040 = vmatmul.msk.bf16.gmra.mxu3 %vm253_vm0, %v4235_v54 }
 0x1e7   :  { %3791 = vst.msk [vmem:[%s6116_s3 + $0x558] sm:$0xff] %vm711_vm1, %v2210_v58  ;;  %v691_v61 = vsel %vm563_vm10, %v470_v11, %v627_v55  ;;  %v1451_v62 = vsel %vm1323_vm11, %v1230_v13, %v1387_v56 }
 0x1e8   :  { %4085 = vst.msk [vmem:[%s6116_s3 + $0x758] sm:$0xff] %vm711_vm1, %v2970_v60 }
 0x1e9   :  { %756 = vst.msk [vmem:[%s6116_s3 + $0x160] sm:$0xff] %vm711_vm1, %v691_v61  ;;  %v1989_v63 = vpop.f32.mrf.mxu2  ;;  %v2749_v0 = vpop.f32.mrf.mxu3 }
 0x1ea   :  { %3498 = vst.msk [vmem:[%s6116_s3 + $0x360] sm:$0xff] %vm711_vm1, %v1451_v62  ;;  %v1990_v2 = vadd.f32 %v5493_v57, %v1989_v63  ;;  %v2750_v4 = vadd.f32 %v5496_v59, %v2749_v0  ;;  %v471_v5 = vpop.f32.mrf.mxu0  ;;  %v1231_v49 = vpop.f32.mrf.mxu1 }
 0x1eb   :  { %v472_v50 = vadd.f32 %v5505_v1, %v471_v5  ;;  %v1232_v6 = vadd.f32 %v5508_v3, %v1231_v49 }
 0x1ec   :  { %vm2083_vm12 = vcmp.ge.f32.partialorder %v1990_v2, 0.0  ;;  %v2147_v7 = vmul.f32 0.25, %v1990_v2  ;;  %vm2843_vm13 = vcmp.ge.f32.partialorder %v2750_v4, 0.0  ;;  %v2907_v8 = vmul.f32 0.25, %v2750_v4 }
 0x1ed   :  { %vm564_vm14 = vcmp.ge.f32.partialorder %v472_v50, 0.0  ;;  %v628_v37 = vmul.f32 0.25, %v472_v50  ;;  %vm1324_vm15 = vcmp.ge.f32.partialorder %v1232_v6, 0.0  ;;  %v1388_v38 = vmul.f32 0.25, %v1232_v6 }
 0x1ee   :  { %v2211_v9 = vsel %vm2083_vm12, %v1990_v2, %v2147_v7  ;;  %v2971_v10 = vsel %vm2843_vm13, %v2750_v4, %v2907_v8 }
 0x1ef   :  { %3792 = vst.msk [vmem:[%s6116_s3 + $0x560] sm:$0xff] %vm711_vm1, %v2211_v9  ;;  %v692_v12 = vsel %vm564_vm14, %v472_v50, %v628_v37  ;;  %v1452_v14 = vsel %vm1324_vm15, %v1232_v6, %v1388_v38 }
 0x1f0   :  { %4086 = vst.msk [vmem:[%s6116_s3 + $0x760] sm:$0xff] %vm711_vm1, %v2971_v10 }
 0x1f1   :  { %757 = vst.msk [vmem:[%s6116_s3 + $0x168] sm:$0xff] %vm711_vm1, %v692_v12  ;;  %v1991_v15 = vpop.f32.mrf.mxu2  ;;  %v2751_v16 = vpop.f32.mrf.mxu3 }
 0x1f2   :  { %3499 = vst.msk [vmem:[%s6116_s3 + $0x368] sm:$0xff] %vm711_vm1, %v1452_v14  ;;  %v1992_v21 = vadd.f32 %v5493_v57, %v1991_v15  ;;  %v2752_v22 = vadd.f32 %v5496_v59, %v2751_v16  ;;  %v474_v23 = vpop.f32.mrf.mxu0  ;;  %v1234_v24 = vpop.f32.mrf.mxu1 }
 0x1f3   :  { %v475_v27 = vadd.f32 %v5505_v1, %v474_v23  ;;  %v1235_v28 = vadd.f32 %v5508_v3, %v1234_v24 }
 0x1f4   :  { %vm2084_vm2 = vcmp.ge.f32.partialorder %v1992_v21, 0.0  ;;  %v2148_v29 = vmul.f32 0.25, %v1992_v21  ;;  %vm2844_vm3 = vcmp.ge.f32.partialorder %v2752_v22, 0.0  ;;  %v2908_v30 = vmul.f32 0.25, %v2752_v22 }
 0x1f5   :  { %vm565_vm4 = vcmp.ge.f32.partialorder %v475_v27, 0.0  ;;  %v629_v31 = vmul.f32 0.25, %v475_v27  ;;  %vm1325_vm5 = vcmp.ge.f32.partialorder %v1235_v28, 0.0  ;;  %v1389_v32 = vmul.f32 0.25, %v1235_v28  ;;  %3223 = vmatmul.msk.bf16.gmra.mxu0 %vm253_vm0, %v4137_v18  ;;  %3453 = vmatmul.msk.bf16.gmra.mxu1 %vm253_vm0, %v4170_v20 }
 0x1f6   :  { %v2212_v33 = vsel %vm2084_vm2, %v1992_v21, %v2148_v29  ;;  %v2972_v34 = vsel %vm2844_vm3, %v2752_v22, %v2908_v30  ;;  %3747 = vmatmul.msk.bf16.gmra.mxu2 %vm253_vm0, %v4203_v25  ;;  %4041 = vmatmul.msk.bf16.gmra.mxu3 %vm253_vm0, %v4236_v26 }
 0x1f7   :  { %3793 = vst.msk [vmem:[%s6116_s3 + $0x568] sm:$0xff] %vm711_vm1, %v2212_v33  ;;  %v693_v35 = vsel %vm565_vm4, %v475_v27, %v629_v31  ;;  %v1453_v36 = vsel %vm1325_vm5, %v1235_v28, %v1389_v32 }
 0x1f8   :  { %4087 = vst.msk [vmem:[%s6116_s3 + $0x768] sm:$0xff] %vm711_vm1, %v2972_v34 }
 0x1f9   :  { %758 = vst.msk [vmem:[%s6116_s3 + $0x170] sm:$0xff] %vm711_vm1, %v693_v35  ;;  %v1994_v39 = vpop.f32.mrf.mxu2  ;;  %v2754_v40 = vpop.f32.mrf.mxu3 }
 0x1fa   :  { %3500 = vst.msk [vmem:[%s6116_s3 + $0x370] sm:$0xff] %vm711_vm1, %v1453_v36  ;;  %v1995_v41 = vadd.f32 %v5493_v57, %v1994_v39  ;;  %v2755_v42 = vadd.f32 %v5496_v59, %v2754_v40  ;;  %v476_v43 = vpop.f32.mrf.mxu0  ;;  %v1236_v44 = vpop.f32.mrf.mxu1 }
 0x1fb   :  { %v477_v45 = vadd.f32 %v5505_v1, %v476_v43  ;;  %v1237_v46 = vadd.f32 %v5508_v3, %v1236_v44 }
 0x1fc   :  { %vm2085_vm0 = vcmp.ge.f32.partialorder %v1995_v41, 0.0  ;;  %v2149_v47 = vmul.f32 0.25, %v1995_v41  ;;  %vm2845_vm6 = vcmp.ge.f32.partialorder %v2755_v42, 0.0  ;;  %v2909_v48 = vmul.f32 0.25, %v2755_v42 }
 0x1fd   :  { %vm566_vm7 = vcmp.ge.f32.partialorder %v477_v45, 0.0  ;;  %v630_v51 = vmul.f32 0.25, %v477_v45  ;;  %vm1326_vm8 = vcmp.ge.f32.partialorder %v1237_v46, 0.0  ;;  %v1390_v52 = vmul.f32 0.25, %v1237_v46 }
 0x1fe   :  { %v2213_v53 = vsel %vm2085_vm0, %v1995_v41, %v2149_v47  ;;  %v2973_v54 = vsel %vm2845_vm6, %v2755_v42, %v2909_v48 }
 0x1ff   :  { %3794 = vst.msk [vmem:[%s6116_s3 + $0x570] sm:$0xff] %vm711_vm1, %v2213_v53  ;;  %v694_v11 = vsel %vm566_vm7, %v477_v45, %v630_v51  ;;  %v1454_v13 = vsel %vm1326_vm8, %v1237_v46, %v1390_v52 }
 0x200   :  { %4088 = vst.msk [vmem:[%s6116_s3 + $0x770] sm:$0xff] %vm711_vm1, %v2973_v54 }
 0x201   :  { %759 = vst.msk [vmem:[%s6116_s3 + $0x178] sm:$0xff] %vm711_vm1, %v694_v11  ;;  %v1996_v17 = vpop.f32.mrf.mxu2  ;;  %v2756_v19 = vpop.f32.mrf.mxu3 }
 0x202   :  { %3501 = vst.msk [vmem:[%s6116_s3 + $0x378] sm:$0xff] %vm711_vm1, %v1454_v13  ;;  %v1997_v55 = vadd.f32 %v5493_v57, %v1996_v17  ;;  %v2757_v56 = vadd.f32 %v5496_v59, %v2756_v19  ;;  %v479_v58 = vpop.f32.mrf.mxu0  ;;  %v1239_v60 = vpop.f32.mrf.mxu1 }
 0x203   :  { %v480_v61 = vadd.f32 %v5505_v1, %v479_v58  ;;  %v1240_v62 = vadd.f32 %v5508_v3, %v1239_v60 }
 0x204   :  { %vm2086_vm9 = vcmp.ge.f32.partialorder %v1997_v55, 0.0  ;;  %v2150_v63 = vmul.f32 0.25, %v1997_v55  ;;  %vm2846_vm10 = vcmp.ge.f32.partialorder %v2757_v56, 0.0  ;;  %v2910_v0 = vmul.f32 0.25, %v2757_v56 }
 0x205   :  { %vm567_vm11 = vcmp.ge.f32.partialorder %v480_v61, 0.0  ;;  %v631_v2 = vmul.f32 0.25, %v480_v61  ;;  %vm1327_vm12 = vcmp.ge.f32.partialorder %v1240_v62, 0.0  ;;  %v1391_v4 = vmul.f32 0.25, %v1240_v62 }
 0x206   :  { %v2214_v5 = vsel %vm2086_vm9, %v1997_v55, %v2150_v63  ;;  %v2974_v49 = vsel %vm2846_vm10, %v2757_v56, %v2910_v0 }
 0x207   :  { %3795 = vst.msk [vmem:[%s6116_s3 + $0x578] sm:$0xff] %vm711_vm1, %v2214_v5  ;;  %v695_v50 = vsel %vm567_vm11, %v480_v61, %v631_v2  ;;  %v1455_v6 = vsel %vm1327_vm12, %v1240_v62, %v1391_v4 }
 0x208   :  { %4089 = vst.msk [vmem:[%s6116_s3 + $0x778] sm:$0xff] %vm711_vm1, %v2974_v49 }
 0x209   :  { %760 = vst.msk [vmem:[%s6116_s3 + $0x180] sm:$0xff] %vm711_vm1, %v695_v50  ;;  %v1999_v7 = vpop.f32.mrf.mxu2  ;;  %v2759_v8 = vpop.f32.mrf.mxu3 }
 0x20a   :  { %3502 = vst.msk [vmem:[%s6116_s3 + $0x380] sm:$0xff] %vm711_vm1, %v1455_v6  ;;  %v2000_v37 = vadd.f32 %v5493_v57, %v1999_v7  ;;  %v2760_v38 = vadd.f32 %v5496_v59, %v2759_v8  ;;  %v481_v9 = vpop.f32.mrf.mxu0  ;;  %v1241_v10 = vpop.f32.mrf.mxu1 }
 0x20b   :  { %v482_v12 = vadd.f32 %v5505_v1, %v481_v9  ;;  %v1242_v14 = vadd.f32 %v5508_v3, %v1241_v10 }
 0x20c   :  { %vm2087_vm13 = vcmp.ge.f32.partialorder %v2000_v37, 0.0  ;;  %v2151_v15 = vmul.f32 0.25, %v2000_v37  ;;  %vm2847_vm14 = vcmp.ge.f32.partialorder %v2760_v38, 0.0  ;;  %v2911_v16 = vmul.f32 0.25, %v2760_v38 }
 0x20d   :  { %vm568_vm15 = vcmp.ge.f32.partialorder %v482_v12, 0.0  ;;  %v632_v18 = vmul.f32 0.25, %v482_v12  ;;  %vm1328_vm2 = vcmp.ge.f32.partialorder %v1242_v14, 0.0  ;;  %v1392_v20 = vmul.f32 0.25, %v1242_v14 }
 0x20e   :  { %v2215_v21 = vsel %vm2087_vm13, %v2000_v37, %v2151_v15  ;;  %v2975_v22 = vsel %vm2847_vm14, %v2760_v38, %v2911_v16 }
 0x20f   :  { %3796 = vst.msk [vmem:[%s6116_s3 + $0x580] sm:$0xff] %vm711_vm1, %v2215_v21  ;;  %v696_v23 = vsel %vm568_vm15, %v482_v12, %v632_v18  ;;  %v1456_v24 = vsel %vm1328_vm2, %v1242_v14, %v1392_v20 }
 0x210   :  { %4090 = vst.msk [vmem:[%s6116_s3 + $0x780] sm:$0xff] %vm711_vm1, %v2975_v22 }
 0x211   :  { %761 = vst.msk [vmem:[%s6116_s3 + $0x188] sm:$0xff] %vm711_vm1, %v696_v23  ;;  %v2001_v25 = vpop.f32.mrf.mxu2  ;;  %v2761_v26 = vpop.f32.mrf.mxu3 }
 0x212   :  { %3503 = vst.msk [vmem:[%s6116_s3 + $0x388] sm:$0xff] %vm711_vm1, %v1456_v24  ;;  %v2002_v27 = vadd.f32 %v5493_v57, %v2001_v25  ;;  %v2762_v28 = vadd.f32 %v5496_v59, %v2761_v26  ;;  %v484_v29 = vpop.f32.mrf.mxu0  ;;  %v1244_v30 = vpop.f32.mrf.mxu1 }
 0x213   :  { %v485_v31 = vadd.f32 %v5505_v1, %v484_v29  ;;  %v1245_v32 = vadd.f32 %v5508_v3, %v1244_v30 }
 0x214   :  { %vm2088_vm3 = vcmp.ge.f32.partialorder %v2002_v27, 0.0  ;;  %v2152_v33 = vmul.f32 0.25, %v2002_v27  ;;  %vm2848_vm4 = vcmp.ge.f32.partialorder %v2762_v28, 0.0  ;;  %v2912_v34 = vmul.f32 0.25, %v2762_v28 }
 0x215   :  { %vm569_vm5 = vcmp.ge.f32.partialorder %v485_v31, 0.0  ;;  %v633_v35 = vmul.f32 0.25, %v485_v31  ;;  %vm1329_vm0 = vcmp.ge.f32.partialorder %v1245_v32, 0.0  ;;  %v1393_v36 = vmul.f32 0.25, %v1245_v32 }
 0x216   :  { %v2216_v39 = vsel %vm2088_vm3, %v2002_v27, %v2152_v33  ;;  %v2976_v40 = vsel %vm2848_vm4, %v2762_v28, %v2912_v34 }
 0x217   :  { %3797 = vst.msk [vmem:[%s6116_s3 + $0x588] sm:$0xff] %vm711_vm1, %v2216_v39  ;;  %v697_v41 = vsel %vm569_vm5, %v485_v31, %v633_v35  ;;  %v1457_v42 = vsel %vm1329_vm0, %v1245_v32, %v1393_v36 }
 0x218   :  { %4091 = vst.msk [vmem:[%s6116_s3 + $0x788] sm:$0xff] %vm711_vm1, %v2976_v40 }
 0x219   :  { %762 = vst.msk [vmem:[%s6116_s3 + $0x190] sm:$0xff] %vm711_vm1, %v697_v41  ;;  %v2004_v43 = vpop.f32.mrf.mxu2  ;;  %v2764_v44 = vpop.f32.mrf.mxu3 }
 0x21a   :  { %3504 = vst.msk [vmem:[%s6116_s3 + $0x390] sm:$0xff] %vm711_vm1, %v1457_v42  ;;  %v2005_v45 = vadd.f32 %v5493_v57, %v2004_v43  ;;  %v2765_v46 = vadd.f32 %v5496_v59, %v2764_v44  ;;  %v486_v47 = vpop.f32.mrf.mxu0  ;;  %v1246_v48 = vpop.f32.mrf.mxu1 }
 0x21b   :  { %v487_v51 = vadd.f32 %v5505_v1, %v486_v47  ;;  %v1247_v52 = vadd.f32 %v5508_v3, %v1246_v48 }
 0x21c   :  { %vm2089_vm6 = vcmp.ge.f32.partialorder %v2005_v45, 0.0  ;;  %v2153_v53 = vmul.f32 0.25, %v2005_v45  ;;  %vm2849_vm7 = vcmp.ge.f32.partialorder %v2765_v46, 0.0  ;;  %v2913_v54 = vmul.f32 0.25, %v2765_v46 }
 0x21d   :  { %vm570_vm8 = vcmp.ge.f32.partialorder %v487_v51, 0.0  ;;  %v634_v11 = vmul.f32 0.25, %v487_v51  ;;  %vm1330_vm9 = vcmp.ge.f32.partialorder %v1247_v52, 0.0  ;;  %v1394_v13 = vmul.f32 0.25, %v1247_v52 }
 0x21e   :  { %v2217_v17 = vsel %vm2089_vm6, %v2005_v45, %v2153_v53  ;;  %v2977_v19 = vsel %vm2849_vm7, %v2765_v46, %v2913_v54 }
 0x21f   :  { %3798 = vst.msk [vmem:[%s6116_s3 + $0x590] sm:$0xff] %vm711_vm1, %v2217_v17  ;;  %v698_v55 = vsel %vm570_vm8, %v487_v51, %v634_v11  ;;  %v1458_v56 = vsel %vm1330_vm9, %v1247_v52, %v1394_v13 }
 0x220   :  { %4092 = vst.msk [vmem:[%s6116_s3 + $0x790] sm:$0xff] %vm711_vm1, %v2977_v19 }
 0x221   :  { %763 = vst.msk [vmem:[%s6116_s3 + $0x198] sm:$0xff] %vm711_vm1, %v698_v55  ;;  %v2006_v58 = vpop.f32.mrf.mxu2  ;;  %v2766_v60 = vpop.f32.mrf.mxu3 }
 0x222   :  { %3505 = vst.msk [vmem:[%s6116_s3 + $0x398] sm:$0xff] %vm711_vm1, %v1458_v56  ;;  %v2007_v61 = vadd.f32 %v5493_v57, %v2006_v58  ;;  %v2767_v62 = vadd.f32 %v5496_v59, %v2766_v60  ;;  %v489_v63 = vpop.f32.mrf.mxu0  ;;  %v1249_v0 = vpop.f32.mrf.mxu1 }
 0x223   :  { %v490_v2 = vadd.f32 %v5505_v1, %v489_v63  ;;  %v1250_v4 = vadd.f32 %v5508_v3, %v1249_v0 }
 0x224   :  { %vm2090_vm10 = vcmp.ge.f32.partialorder %v2007_v61, 0.0  ;;  %v2154_v5 = vmul.f32 0.25, %v2007_v61  ;;  %vm2850_vm11 = vcmp.ge.f32.partialorder %v2767_v62, 0.0  ;;  %v2914_v49 = vmul.f32 0.25, %v2767_v62 }
 0x225   :  { %vm571_vm12 = vcmp.ge.f32.partialorder %v490_v2, 0.0  ;;  %v635_v50 = vmul.f32 0.25, %v490_v2  ;;  %vm1331_vm13 = vcmp.ge.f32.partialorder %v1250_v4, 0.0  ;;  %v1395_v6 = vmul.f32 0.25, %v1250_v4 }
 0x226   :  { %v2218_v7 = vsel %vm2090_vm10, %v2007_v61, %v2154_v5  ;;  %v2978_v8 = vsel %vm2850_vm11, %v2767_v62, %v2914_v49 }
 0x227   :  { %3799 = vst.msk [vmem:[%s6116_s3 + $0x598] sm:$0xff] %vm711_vm1, %v2218_v7  ;;  %v699_v37 = vsel %vm571_vm12, %v490_v2, %v635_v50  ;;  %v1459_v38 = vsel %vm1331_vm13, %v1250_v4, %v1395_v6 }
 0x228   :  { %4093 = vst.msk [vmem:[%s6116_s3 + $0x798] sm:$0xff] %vm711_vm1, %v2978_v8 }
 0x229   :  { %764 = vst.msk [vmem:[%s6116_s3 + $0x1a0] sm:$0xff] %vm711_vm1, %v699_v37  ;;  %v2009_v9 = vpop.f32.mrf.mxu2  ;;  %v2769_v10 = vpop.f32.mrf.mxu3 }
 0x22a   :  { %3506 = vst.msk [vmem:[%s6116_s3 + $0x3a0] sm:$0xff] %vm711_vm1, %v1459_v38  ;;  %v2010_v12 = vadd.f32 %v5493_v57, %v2009_v9  ;;  %v2770_v14 = vadd.f32 %v5496_v59, %v2769_v10  ;;  %v491_v15 = vpop.f32.mrf.mxu0  ;;  %v1251_v16 = vpop.f32.mrf.mxu1 }
 0x22b   :  { %v492_v18 = vadd.f32 %v5505_v1, %v491_v15  ;;  %v1252_v20 = vadd.f32 %v5508_v3, %v1251_v16 }
 0x22c   :  { %vm2091_vm14 = vcmp.ge.f32.partialorder %v2010_v12, 0.0  ;;  %v2155_v21 = vmul.f32 0.25, %v2010_v12  ;;  %vm2851_vm15 = vcmp.ge.f32.partialorder %v2770_v14, 0.0  ;;  %v2915_v22 = vmul.f32 0.25, %v2770_v14 }
 0x22d   :  { %vm572_vm2 = vcmp.ge.f32.partialorder %v492_v18, 0.0  ;;  %v636_v23 = vmul.f32 0.25, %v492_v18  ;;  %vm1332_vm3 = vcmp.ge.f32.partialorder %v1252_v20, 0.0  ;;  %v1396_v24 = vmul.f32 0.25, %v1252_v20 }
 0x22e   :  { %v2219_v25 = vsel %vm2091_vm14, %v2010_v12, %v2155_v21  ;;  %v2979_v26 = vsel %vm2851_vm15, %v2770_v14, %v2915_v22 }
 0x22f   :  { %3800 = vst.msk [vmem:[%s6116_s3 + $0x5a0] sm:$0xff] %vm711_vm1, %v2219_v25  ;;  %v700_v27 = vsel %vm572_vm2, %v492_v18, %v636_v23  ;;  %v1460_v28 = vsel %vm1332_vm3, %v1252_v20, %v1396_v24 }
 0x230   :  { %4094 = vst.msk [vmem:[%s6116_s3 + $0x7a0] sm:$0xff] %vm711_vm1, %v2979_v26 }
 0x231   :  { %765 = vst.msk [vmem:[%s6116_s3 + $0x1a8] sm:$0xff] %vm711_vm1, %v700_v27  ;;  %v2011_v29 = vpop.f32.mrf.mxu2  ;;  %v2771_v30 = vpop.f32.mrf.mxu3 }
 0x232   :  { %3507 = vst.msk [vmem:[%s6116_s3 + $0x3a8] sm:$0xff] %vm711_vm1, %v1460_v28  ;;  %v2012_v31 = vadd.f32 %v5493_v57, %v2011_v29  ;;  %v2772_v32 = vadd.f32 %v5496_v59, %v2771_v30  ;;  %v494_v33 = vpop.f32.mrf.mxu0  ;;  %v1254_v34 = vpop.f32.mrf.mxu1 }
 0x233   :  { %v495_v35 = vadd.f32 %v5505_v1, %v494_v33  ;;  %v1255_v36 = vadd.f32 %v5508_v3, %v1254_v34  ;;  %v5978_v33 = vld [vmem:[#allocation2] ss:$0 sm:$0xff] }
 0x234   :  { %vm2092_vm4 = vcmp.ge.f32.partialorder %v2012_v31, 0.0  ;;  %v2156_v39 = vmul.f32 0.25, %v2012_v31  ;;  %vm2852_vm5 = vcmp.ge.f32.partialorder %v2772_v32, 0.0  ;;  %v2916_v40 = vmul.f32 0.25, %v2772_v32 }
 0x235   :  { %vm573_vm0 = vcmp.ge.f32.partialorder %v495_v35, 0.0  ;;  %v637_v41 = vmul.f32 0.25, %v495_v35  ;;  %vm1333_vm6 = vcmp.ge.f32.partialorder %v1255_v36, 0.0  ;;  %v1397_v42 = vmul.f32 0.25, %v1255_v36 }
 0x236   :  { %v2220_v43 = vsel %vm2092_vm4, %v2012_v31, %v2156_v39  ;;  %v2980_v44 = vsel %vm2852_vm5, %v2772_v32, %v2916_v40  ;;  %v5975_v31 = vld [vmem:[#allocation2] ss:$0 sm:$0xff] }
 0x237   :  { %3801 = vst.msk [vmem:[%s6116_s3 + $0x5a8] sm:$0xff] %vm711_vm1, %v2220_v43  ;;  %v701_v45 = vsel %vm573_vm0, %v495_v35, %v637_v41  ;;  %v1461_v46 = vsel %vm1333_vm6, %v1255_v36, %v1397_v42  ;;  %v5981_v39 = vld [vmem:[#allocation2] ss:$0 sm:$0xff] }
 0x238   :  { %4095 = vst.msk [vmem:[%s6116_s3 + $0x7a8] sm:$0xff] %vm711_vm1, %v2980_v44  ;;  %v5984_v41 = vld [vmem:[#allocation2] ss:$0 sm:$0xff] }
 0x239   :  { %766 = vst.msk [vmem:[%s6116_s3 + $0x1b0] sm:$0xff] %vm711_vm1, %v701_v45  ;;  %v2014_v47 = vpop.f32.mrf.mxu2  ;;  %v2774_v48 = vpop.f32.mrf.mxu3 }
 0x23a   :  { %3508 = vst.msk [vmem:[%s6116_s3 + $0x3b0] sm:$0xff] %vm711_vm1, %v1461_v46  ;;  %v2015_v51 = vadd.f32 %v5493_v57, %v2014_v47  ;;  %v2775_v52 = vadd.f32 %v5496_v59, %v2774_v48  ;;  %v496_v53 = vpop.f32.mrf.mxu0  ;;  %v1256_v54 = vpop.f32.mrf.mxu1 }
 0x23b   :  { %v497_v11 = vadd.f32 %v5505_v1, %v496_v53  ;;  %v1257_v13 = vadd.f32 %v5508_v3, %v1256_v54 }
 0x23c   :  { %vm2093_vm7 = vcmp.ge.f32.partialorder %v2015_v51, 0.0  ;;  %v2157_v17 = vmul.f32 0.25, %v2015_v51  ;;  %vm2853_vm8 = vcmp.ge.f32.partialorder %v2775_v52, 0.0  ;;  %v2917_v19 = vmul.f32 0.25, %v2775_v52 }
 0x23d   :  { %vm574_vm9 = vcmp.ge.f32.partialorder %v497_v11, 0.0  ;;  %v638_v55 = vmul.f32 0.25, %v497_v11  ;;  %vm1334_vm10 = vcmp.ge.f32.partialorder %v1257_v13, 0.0  ;;  %v1398_v56 = vmul.f32 0.25, %v1257_v13 }
 0x23e   :  { %v2221_v58 = vsel %vm2093_vm7, %v2015_v51, %v2157_v17  ;;  %v2981_v60 = vsel %vm2853_vm8, %v2775_v52, %v2917_v19 }
 0x23f   :  { %3802 = vst.msk [vmem:[%s6116_s3 + $0x5b0] sm:$0xff] %vm711_vm1, %v2221_v58  ;;  %v702_v61 = vsel %vm574_vm9, %v497_v11, %v638_v55  ;;  %v1462_v62 = vsel %vm1334_vm10, %v1257_v13, %v1398_v56 }
 0x240   :  { %4096 = vst.msk [vmem:[%s6116_s3 + $0x7b0] sm:$0xff] %vm711_vm1, %v2981_v60 }
 0x241   :  { %767 = vst.msk [vmem:[%s6116_s3 + $0x1b8] sm:$0xff] %vm711_vm1, %v702_v61  ;;  %v2016_v63 = vpop.f32.mrf.mxu2  ;;  %v2776_v0 = vpop.f32.mrf.mxu3 }
 0x242   :  { %3509 = vst.msk [vmem:[%s6116_s3 + $0x3b8] sm:$0xff] %vm711_vm1, %v1462_v62  ;;  %v2017_v2 = vadd.f32 %v5493_v57, %v2016_v63  ;;  %v2777_v4 = vadd.f32 %v5496_v59, %v2776_v0  ;;  %v499_v5 = vpop.f32.mrf.mxu0  ;;  %v1259_v49 = vpop.f32.mrf.mxu1 }
 0x243   :  { %v500_v50 = vadd.f32 %v5505_v1, %v499_v5  ;;  %v1260_v6 = vadd.f32 %v5508_v3, %v1259_v49 }
 0x244   :  { %vm2094_vm11 = vcmp.ge.f32.partialorder %v2017_v2, 0.0  ;;  %v2158_v7 = vmul.f32 0.25, %v2017_v2  ;;  %vm2854_vm12 = vcmp.ge.f32.partialorder %v2777_v4, 0.0  ;;  %v2918_v8 = vmul.f32 0.25, %v2777_v4 }
 0x245   :  { %vm575_vm13 = vcmp.ge.f32.partialorder %v500_v50, 0.0  ;;  %v639_v37 = vmul.f32 0.25, %v500_v50  ;;  %vm1335_vm14 = vcmp.ge.f32.partialorder %v1260_v6, 0.0  ;;  %v1399_v38 = vmul.f32 0.25, %v1260_v6 }
 0x246   :  { %v2222_v9 = vsel %vm2094_vm11, %v2017_v2, %v2158_v7  ;;  %v2982_v10 = vsel %vm2854_vm12, %v2777_v4, %v2918_v8 }
 0x247   :  { %3803 = vst.msk [vmem:[%s6116_s3 + $0x5b8] sm:$0xff] %vm711_vm1, %v2222_v9  ;;  %v703_v12 = vsel %vm575_vm13, %v500_v50, %v639_v37  ;;  %v1463_v14 = vsel %vm1335_vm14, %v1260_v6, %v1399_v38 }
 0x248   :  { %4097 = vst.msk [vmem:[%s6116_s3 + $0x7b8] sm:$0xff] %vm711_vm1, %v2982_v10 }
 0x249   :  { %768 = vst.msk [vmem:[%s6116_s3 + $0x1c0] sm:$0xff] %vm711_vm1, %v703_v12  ;;  %v2019_v15 = vpop.f32.mrf.mxu2  ;;  %v2779_v16 = vpop.f32.mrf.mxu3 }
 0x24a   :  { %3510 = vst.msk [vmem:[%s6116_s3 + $0x3c0] sm:$0xff] %vm711_vm1, %v1463_v14  ;;  %v2020_v18 = vadd.f32 %v5493_v57, %v2019_v15  ;;  %v2780_v20 = vadd.f32 %v5496_v59, %v2779_v16  ;;  %v501_v21 = vpop.f32.mrf.mxu0  ;;  %v1261_v22 = vpop.f32.mrf.mxu1 }
 0x24b   :  { %v502_v23 = vadd.f32 %v5505_v1, %v501_v21  ;;  %v1262_v24 = vadd.f32 %v5508_v3, %v1261_v22 }
 0x24c   :  { %vm2095_vm15 = vcmp.ge.f32.partialorder %v2020_v18, 0.0  ;;  %v2159_v25 = vmul.f32 0.25, %v2020_v18  ;;  %vm2855_vm2 = vcmp.ge.f32.partialorder %v2780_v20, 0.0  ;;  %v2919_v26 = vmul.f32 0.25, %v2780_v20 }
 0x24d   :  { %vm576_vm3 = vcmp.ge.f32.partialorder %v502_v23, 0.0  ;;  %v640_v27 = vmul.f32 0.25, %v502_v23  ;;  %vm1336_vm4 = vcmp.ge.f32.partialorder %v1262_v24, 0.0  ;;  %v1400_v28 = vmul.f32 0.25, %v1262_v24 }
 0x24e   :  { %v2223_v29 = vsel %vm2095_vm15, %v2020_v18, %v2159_v25  ;;  %v2983_v30 = vsel %vm2855_vm2, %v2780_v20, %v2919_v26 }
 0x24f   :  { %3804 = vst.msk [vmem:[%s6116_s3 + $0x5c0] sm:$0xff] %vm711_vm1, %v2223_v29  ;;  %v704_v57 = vsel %vm576_vm3, %v502_v23, %v640_v27  ;;  %v1464_v59 = vsel %vm1336_vm4, %v1262_v24, %v1400_v28 }
 0x250   :  { %4098 = vst.msk [vmem:[%s6116_s3 + $0x7c0] sm:$0xff] %vm711_vm1, %v2983_v30 }
 0x251   :  { %769 = vst.msk [vmem:[%s6116_s3 + $0x1c8] sm:$0xff] %vm711_vm1, %v704_v57  ;;  %v2021_v1 = vpop.f32.mrf.mxu2  ;;  %v2781_v3 = vpop.f32.mrf.mxu3 }
 0x252   :  { %3511 = vst.msk [vmem:[%s6116_s3 + $0x3c8] sm:$0xff] %vm711_vm1, %v1464_v59  ;;  %v2022_v32 = vadd.f32 %v5975_v31, %v2021_v1  ;;  %v2782_v34 = vadd.f32 %v5978_v33, %v2781_v3  ;;  %v504_v35 = vpop.f32.mrf.mxu0  ;;  %v1264_v36 = vpop.f32.mrf.mxu1 }
 0x253   :  { %v505_v40 = vadd.f32 %v5981_v39, %v504_v35  ;;  %v1265_v42 = vadd.f32 %v5984_v41, %v1264_v36 }
 0x254   :  { %vm2096_vm5 = vcmp.ge.f32.partialorder %v2022_v32, 0.0  ;;  %v2160_v43 = vmul.f32 0.25, %v2022_v32  ;;  %vm2856_vm0 = vcmp.ge.f32.partialorder %v2782_v34, 0.0  ;;  %v2920_v44 = vmul.f32 0.25, %v2782_v34 }
 0x255   :  { %vm577_vm6 = vcmp.ge.f32.partialorder %v505_v40, 0.0  ;;  %v641_v45 = vmul.f32 0.25, %v505_v40  ;;  %vm1337_vm7 = vcmp.ge.f32.partialorder %v1265_v42, 0.0  ;;  %v1401_v46 = vmul.f32 0.25, %v1265_v42 }
 0x256   :  { %v2224_v47 = vsel %vm2096_vm5, %v2022_v32, %v2160_v43  ;;  %v2984_v48 = vsel %vm2856_vm0, %v2782_v34, %v2920_v44 }
 0x257   :  { %3805 = vst.msk [vmem:[%s6116_s3 + $0x5c8] sm:$0xff] %vm711_vm1, %v2224_v47  ;;  %v705_v51 = vsel %vm577_vm6, %v505_v40, %v641_v45  ;;  %v1465_v52 = vsel %vm1337_vm7, %v1265_v42, %v1401_v46 }
 0x258   :  { %4099 = vst.msk [vmem:[%s6116_s3 + $0x7c8] sm:$0xff] %vm711_vm1, %v2984_v48 }
 0x259   :  { %770 = vst.msk [vmem:[%s6116_s3 + $0x1d0] sm:$0xff] %vm711_vm1, %v705_v51  ;;  %v2024_v53 = vpop.f32.mrf.mxu2  ;;  %v2784_v54 = vpop.f32.mrf.mxu3 }
 0x25a   :  { %3512 = vst.msk [vmem:[%s6116_s3 + $0x3d0] sm:$0xff] %vm711_vm1, %v1465_v52  ;;  %v2025_v11 = vadd.f32 %v5975_v31, %v2024_v53  ;;  %v2785_v13 = vadd.f32 %v5978_v33, %v2784_v54  ;;  %v506_v17 = vpop.f32.mrf.mxu0  ;;  %v1266_v19 = vpop.f32.mrf.mxu1 }
 0x25b   :  { %v507_v55 = vadd.f32 %v5981_v39, %v506_v17  ;;  %v1267_v56 = vadd.f32 %v5984_v41, %v1266_v19 }
 0x25c   :  { %vm2097_vm8 = vcmp.ge.f32.partialorder %v2025_v11, 0.0  ;;  %v2161_v58 = vmul.f32 0.25, %v2025_v11  ;;  %vm2857_vm9 = vcmp.ge.f32.partialorder %v2785_v13, 0.0  ;;  %v2921_v60 = vmul.f32 0.25, %v2785_v13 }
 0x25d   :  { %vm578_vm10 = vcmp.ge.f32.partialorder %v507_v55, 0.0  ;;  %v642_v61 = vmul.f32 0.25, %v507_v55  ;;  %vm1338_vm11 = vcmp.ge.f32.partialorder %v1267_v56, 0.0  ;;  %v1402_v62 = vmul.f32 0.25, %v1267_v56 }
 0x25e   :  { %v2225_v63 = vsel %vm2097_vm8, %v2025_v11, %v2161_v58  ;;  %v2985_v0 = vsel %vm2857_vm9, %v2785_v13, %v2921_v60 }
 0x25f   :  { %3806 = vst.msk [vmem:[%s6116_s3 + $0x5d0] sm:$0xff] %vm711_vm1, %v2225_v63  ;;  %v706_v2 = vsel %vm578_vm10, %v507_v55, %v642_v61  ;;  %v1466_v4 = vsel %vm1338_vm11, %v1267_v56, %v1402_v62 }
 0x260   :  { %4100 = vst.msk [vmem:[%s6116_s3 + $0x7d0] sm:$0xff] %vm711_vm1, %v2985_v0 }
 0x261   :  { %771 = vst.msk [vmem:[%s6116_s3 + $0x1d8] sm:$0xff] %vm711_vm1, %v706_v2  ;;  %v2026_v5 = vpop.f32.mrf.mxu2  ;;  %v2786_v49 = vpop.f32.mrf.mxu3 }
 0x262   :  { %3513 = vst.msk [vmem:[%s6116_s3 + $0x3d8] sm:$0xff] %vm711_vm1, %v1466_v4  ;;  %v2027_v50 = vadd.f32 %v5975_v31, %v2026_v5  ;;  %v2787_v6 = vadd.f32 %v5978_v33, %v2786_v49  ;;  %v509_v7 = vpop.f32.mrf.mxu0  ;;  %v1269_v8 = vpop.f32.mrf.mxu1 }
 0x263   :  { %v510_v37 = vadd.f32 %v5981_v39, %v509_v7  ;;  %v1270_v38 = vadd.f32 %v5984_v41, %v1269_v8 }
 0x264   :  { %vm2098_vm12 = vcmp.ge.f32.partialorder %v2027_v50, 0.0  ;;  %v2162_v9 = vmul.f32 0.25, %v2027_v50  ;;  %vm2858_vm13 = vcmp.ge.f32.partialorder %v2787_v6, 0.0  ;;  %v2922_v10 = vmul.f32 0.25, %v2787_v6 }
 0x265   :  { %vm579_vm14 = vcmp.ge.f32.partialorder %v510_v37, 0.0  ;;  %v643_v12 = vmul.f32 0.25, %v510_v37  ;;  %vm1339_vm15 = vcmp.ge.f32.partialorder %v1270_v38, 0.0  ;;  %v1403_v14 = vmul.f32 0.25, %v1270_v38 }
 0x266   :  { %v2226_v15 = vsel %vm2098_vm12, %v2027_v50, %v2162_v9  ;;  %v2986_v16 = vsel %vm2858_vm13, %v2787_v6, %v2922_v10 }
 0x267   :  { %3807 = vst.msk [vmem:[%s6116_s3 + $0x5d8] sm:$0xff] %vm711_vm1, %v2226_v15  ;;  %v707_v18 = vsel %vm579_vm14, %v510_v37, %v643_v12  ;;  %v1467_v20 = vsel %vm1339_vm15, %v1270_v38, %v1403_v14 }
 0x268   :  { %4101 = vst.msk [vmem:[%s6116_s3 + $0x7d8] sm:$0xff] %vm711_vm1, %v2986_v16 }
 0x269   :  { %772 = vst.msk [vmem:[%s6116_s3 + $0x1e0] sm:$0xff] %vm711_vm1, %v707_v18  ;;  %v2029_v21 = vpop.f32.mrf.mxu2  ;;  %v2789_v22 = vpop.f32.mrf.mxu3 }
 0x26a   :  { %3514 = vst.msk [vmem:[%s6116_s3 + $0x3e0] sm:$0xff] %vm711_vm1, %v1467_v20  ;;  %v2030_v23 = vadd.f32 %v5975_v31, %v2029_v21  ;;  %v2790_v24 = vadd.f32 %v5978_v33, %v2789_v22  ;;  %v511_v25 = vpop.f32.mrf.mxu0  ;;  %v1271_v26 = vpop.f32.mrf.mxu1 }
 0x26b   :  { %v512_v27 = vadd.f32 %v5981_v39, %v511_v25  ;;  %v1272_v28 = vadd.f32 %v5984_v41, %v1271_v26 }
 0x26c   :  { %vm2099_vm2 = vcmp.ge.f32.partialorder %v2030_v23, 0.0  ;;  %v2163_v29 = vmul.f32 0.25, %v2030_v23  ;;  %vm2859_vm3 = vcmp.ge.f32.partialorder %v2790_v24, 0.0  ;;  %v2923_v30 = vmul.f32 0.25, %v2790_v24 }
 0x26d   :  { %vm580_vm4 = vcmp.ge.f32.partialorder %v512_v27, 0.0  ;;  %v644_v57 = vmul.f32 0.25, %v512_v27  ;;  %vm1340_vm5 = vcmp.ge.f32.partialorder %v1272_v28, 0.0  ;;  %v1404_v59 = vmul.f32 0.25, %v1272_v28 }
 0x26e   :  { %v2227_v1 = vsel %vm2099_vm2, %v2030_v23, %v2163_v29  ;;  %v2987_v3 = vsel %vm2859_vm3, %v2790_v24, %v2923_v30 }
 0x26f   :  { %3808 = vst.msk [vmem:[%s6116_s3 + $0x5e0] sm:$0xff] %vm711_vm1, %v2227_v1  ;;  %v708_v32 = vsel %vm580_vm4, %v512_v27, %v644_v57  ;;  %v1468_v34 = vsel %vm1340_vm5, %v1272_v28, %v1404_v59 }
 0x270   :  { %4102 = vst.msk [vmem:[%s6116_s3 + $0x7e0] sm:$0xff] %vm711_vm1, %v2987_v3 }
 0x271   :  { %773 = vst.msk [vmem:[%s6116_s3 + $0x1e8] sm:$0xff] %vm711_vm1, %v708_v32  ;;  %v2031_v35 = vpop.f32.mrf.mxu2  ;;  %v2791_v36 = vpop.f32.mrf.mxu3 }
 0x272   :  { %3515 = vst.msk [vmem:[%s6116_s3 + $0x3e8] sm:$0xff] %vm711_vm1, %v1468_v34  ;;  %v2032_v40 = vadd.f32 %v5975_v31, %v2031_v35  ;;  %v2792_v42 = vadd.f32 %v5978_v33, %v2791_v36  ;;  %v514_v43 = vpop.f32.mrf.mxu0  ;;  %v1274_v44 = vpop.f32.mrf.mxu1 }
 0x273   :  { %v515_v45 = vadd.f32 %v5981_v39, %v514_v43  ;;  %v1275_v46 = vadd.f32 %v5984_v41, %v1274_v44 }
 0x274   :  { %vm2100_vm0 = vcmp.ge.f32.partialorder %v2032_v40, 0.0  ;;  %v2164_v47 = vmul.f32 0.25, %v2032_v40  ;;  %vm2860_vm6 = vcmp.ge.f32.partialorder %v2792_v42, 0.0  ;;  %v2924_v48 = vmul.f32 0.25, %v2792_v42 }
 0x275   :  { %vm581_vm7 = vcmp.ge.f32.partialorder %v515_v45, 0.0  ;;  %v645_v51 = vmul.f32 0.25, %v515_v45  ;;  %vm1341_vm8 = vcmp.ge.f32.partialorder %v1275_v46, 0.0  ;;  %v1405_v52 = vmul.f32 0.25, %v1275_v46 }
 0x276   :  { %v2228_v53 = vsel %vm2100_vm0, %v2032_v40, %v2164_v47  ;;  %v2988_v54 = vsel %vm2860_vm6, %v2792_v42, %v2924_v48 }
 0x277   :  { %3809 = vst.msk [vmem:[%s6116_s3 + $0x5e8] sm:$0xff] %vm711_vm1, %v2228_v53  ;;  %v709_v11 = vsel %vm581_vm7, %v515_v45, %v645_v51  ;;  %v1469_v13 = vsel %vm1341_vm8, %v1275_v46, %v1405_v52 }
 0x278   :  { %4103 = vst.msk [vmem:[%s6116_s3 + $0x7e8] sm:$0xff] %vm711_vm1, %v2988_v54 }
 0x279   :  { %774 = vst.msk [vmem:[%s6116_s3 + $0x1f0] sm:$0xff] %vm711_vm1, %v709_v11  ;;  %v2034_v17 = vpop.f32.mrf.mxu2  ;;  %v2794_v19 = vpop.f32.mrf.mxu3 }
 0x27a   :  { %3516 = vst.msk [vmem:[%s6116_s3 + $0x3f0] sm:$0xff] %vm711_vm1, %v1469_v13  ;;  %v2035_v55 = vadd.f32 %v5975_v31, %v2034_v17  ;;  %v2795_v56 = vadd.f32 %v5978_v33, %v2794_v19  ;;  %v516_v58 = vpop.f32.mrf.mxu0  ;;  %v1276_v60 = vpop.f32.mrf.mxu1 }
 0x27b   :  { %v517_v61 = vadd.f32 %v5981_v39, %v516_v58  ;;  %v1277_v62 = vadd.f32 %v5984_v41, %v1276_v60 }
 0x27c   :  { %vm2101_vm9 = vcmp.ge.f32.partialorder %v2035_v55, 0.0  ;;  %v2165_v63 = vmul.f32 0.25, %v2035_v55  ;;  %vm2861_vm10 = vcmp.ge.f32.partialorder %v2795_v56, 0.0  ;;  %v2925_v0 = vmul.f32 0.25, %v2795_v56 }
 0x27d   :  { %vm582_vm11 = vcmp.ge.f32.partialorder %v517_v61, 0.0  ;;  %v646_v2 = vmul.f32 0.25, %v517_v61  ;;  %vm1342_vm12 = vcmp.ge.f32.partialorder %v1277_v62, 0.0  ;;  %v1406_v4 = vmul.f32 0.25, %v1277_v62 }
 0x27e   :  { %v2229_v5 = vsel %vm2101_vm9, %v2035_v55, %v2165_v63  ;;  %v2989_v49 = vsel %vm2861_vm10, %v2795_v56, %v2925_v0 }
 0x27f   :  { %3810 = vst.msk [vmem:[%s6116_s3 + $0x5f0] sm:$0xff] %vm711_vm1, %v2229_v5  ;;  %v710_v50 = vsel %vm582_vm11, %v517_v61, %v646_v2  ;;  %v1470_v6 = vsel %vm1342_vm12, %v1277_v62, %v1406_v4 }
 0x280   :  { %4104 = vst.msk [vmem:[%s6116_s3 + $0x7f0] sm:$0xff] %vm711_vm1, %v2989_v49 }
 0x281   :  { %775 = vst.msk [vmem:[%s6116_s3 + $0x1f8] sm:$0xff] %vm711_vm1, %v710_v50  ;;  %v2036_v39 = vpop.f32.mrf.mxu2  ;;  %v2796_v41 = vpop.f32.mrf.mxu3 }
 0x282   :  { %3517 = vst.msk [vmem:[%s6116_s3 + $0x3f8] sm:$0xff] %vm711_vm1, %v1470_v6  ;;  %v2037_v7 = vadd.f32 %v5975_v31, %v2036_v39  ;;  %v2797_v8 = vadd.f32 %v5978_v33, %v2796_v41 }
 0x284   :  { %vm2102_vm13 = vcmp.ge.f32.partialorder %v2037_v7, 0.0  ;;  %v2166_v37 = vmul.f32 0.25, %v2037_v7  ;;  %vm2862_vm14 = vcmp.ge.f32.partialorder %v2797_v8, 0.0  ;;  %v2926_v38 = vmul.f32 0.25, %v2797_v8 }
 0x286   :  { %v2230_v9 = vsel %vm2102_vm13, %v2037_v7, %v2166_v37  ;;  %v2990_v10 = vsel %vm2862_vm14, %v2797_v8, %v2926_v38 }
 0x287   :  { %3811 = vst.msk [vmem:[%s6116_s3 + $0x5f8] sm:$0xff] %vm711_vm1, %v2230_v9 }
 0x288   :  { %4105 = vst.msk [vmem:[%s6116_s3 + $0x7f8] sm:$0xff] %vm711_vm1, %v2990_v10 }

</bundles_post_ra>
